<compile_context>
chip_gen: v5e
topology: v5e:2x2
jax: 0.10.0
libtpu: 0.0.40
codegen_flags: <defaults>
</compile_context>

<pallas_src>
import functools
import math

import jax
import jax.numpy as jnp
from jax.experimental import pallas as pl
from jax.experimental.pallas import tpu as pltpu


def _round_up(v, m):
    return ((v + m - 1) // m) * m


# ---------------------------------------------------------------------------
# Kernel A: whole-K matmul + fused bias + optional ReLU (conv layers).
# The entire K dimension fits in one block, so there is no accumulator scratch
# and no init/finalize pl.when -- one MXU pass straight to the output tile.
# ---------------------------------------------------------------------------
def _mm_bias_act_singlek_kernel(x_ref, w_ref, b_ref, o_ref, *, apply_relu):
    acc = jnp.dot(x_ref[...], w_ref[...], preferred_element_type=jnp.float32)
    acc = acc + b_ref[...]                        # (tm, tn) + (1, tn) broadcast
    if apply_relu:
        acc = jnp.maximum(acc, 0.0)
    o_ref[...] = acc.astype(o_ref.dtype)


def matmul_bias_act_singlek(x, w_padded, b_padded, *, apply_relu, out_dtype):
    """act(x @ w + b). x: (M, K) bf16; w_padded: (Kp, Np) bf16 pre-padded at init;
    b_padded: (1, Np) f32.  Returns (M, Np)."""
    M, K = x.shape
    Kp, Np = w_padded.shape
    assert Kp % 128 == 0 and Np % 128 == 0 and Kp >= K

    Mp16 = _round_up(M, 16)                       # bf16-friendly sublane granularity
    tm = Mp16 if Mp16 <= 1024 else 1024
    Mp = _round_up(M, tm)
    tn = 128

    xp = jnp.pad(x, ((0, Mp - M), (0, Kp - K)))   # zero-padding is matmul-neutral

    kernel = functools.partial(_mm_bias_act_singlek_kernel, apply_relu=apply_relu)
    out = pl.pallas_call(
        kernel,
        out_shape=jax.ShapeDtypeStruct((Mp, Np), out_dtype),
        grid_spec=pltpu.PrefetchScalarGridSpec(
            num_scalar_prefetch=0,
            grid=(Mp // tm, Np // tn),
            in_specs=[
                pl.BlockSpec((tm, Kp), lambda i, j: (i, 0)),
                pl.BlockSpec((Kp, tn), lambda i, j: (0, j)),
                pl.BlockSpec((1, tn), lambda i, j: (0, j)),
            ],
            out_specs=pl.BlockSpec((tm, tn), lambda i, j: (i, j)),
        ),
        compiler_params=pltpu.CompilerParams(
            dimension_semantics=("parallel", "parallel")
        ),
    )(xp, w_padded, b_padded)
    return out[:M]


# ---------------------------------------------------------------------------
# Kernel B: K-tiled matmul with accumulator + fused bias/ReLU (fc1).
# ---------------------------------------------------------------------------
def _mm_bias_act_acc_kernel(x_ref, w_ref, b_ref, o_ref, acc_ref, *, apply_relu):
    k = pl.program_id(2)

    @pl.when(k == 0)
    def _():
        acc_ref[...] = jnp.zeros_like(acc_ref)

    acc_ref[...] += jnp.dot(x_ref[...], w_ref[...],
                            preferred_element_type=jnp.float32)

    @pl.when(k == pl.num_programs(2) - 1)
    def _():
        res = acc_ref[...] + b_ref[...]
        if apply_relu:
            res = jnp.maximum(res, 0.0)
        o_ref[...] = res.astype(o_ref.dtype)


def matmul_bias_act_bigk(x, w_padded, b_padded, *, apply_relu, out_dtype):
    """act(x @ w + b) with a coarse K-tiled grid (HBM-bandwidth-bound weights)."""
    M, K = x.shape
    Kp, Np = w_padded.shape
    assert Kp % 128 == 0 and Np % 128 == 0 and Kp >= K

    tm = min(_round_up(M, 16), 128)
    Mp = _round_up(M, tm)
    tn = 256 if Np % 256 == 0 else 128            # >=2 j-blocks keeps both v7x TCs busy
    tk = next(c for c in (2048, 1024, 512, 256, 128) if Kp % c == 0)

    xp = jnp.pad(x, ((0, Mp - M), (0, Kp - K)))

    kernel = functools.partial(_mm_bias_act_acc_kernel, apply_relu=apply_relu)
    out = pl.pallas_call(
        kernel,
        out_shape=jax.ShapeDtypeStruct((Mp, Np), out_dtype),
        grid_spec=pltpu.PrefetchScalarGridSpec(
            num_scalar_prefetch=0,
            grid=(Mp // tm, Np // tn, Kp // tk),
            in_specs=[
                pl.BlockSpec((tm, tk), lambda i, j, k: (i, k)),
                pl.BlockSpec((tk, tn), lambda i, j, k: (k, j)),
                pl.BlockSpec((1, tn), lambda i, j, k: (0, j)),
            ],
            out_specs=pl.BlockSpec((tm, tn), lambda i, j, k: (i, j)),
            scratch_shapes=[pltpu.VMEM((tm, tn), jnp.float32)],
        ),
        compiler_params=pltpu.CompilerParams(
            dimension_semantics=("parallel", "parallel", "arbitrary")
        ),
    )(xp, w_padded, b_padded)
    return out[:M]


# ---------------------------------------------------------------------------
# Conv2d (valid padding, stride s): dilated-patches (single XLA op, NHWC
# activations, (C,KH,KW)-ordered features) + Pallas matmul with fused bias/ReLU.
# ---------------------------------------------------------------------------
def conv2d_relu_nhwc(x_nhwc, w_packed, b_packed, out_channels, *, ksize, stride):
    N, H, W, C = x_nhwc.shape
    KH, KW = ksize
    Ho = (H - KH) // stride + 1
    Wo = (W - KW) // stride + 1

    # Feature order of the patches is channel-major then filter-spatial, i.e.
    # (C, KH, KW) -- exactly PyTorch's weight.reshape(O, C*KH*KW) ordering.
    patches = jax.lax.conv_general_dilated_patches(
        x_nhwc, filter_shape=(KH, KW), window_strides=(stride, stride),
        padding="VALID", dimension_numbers=("NHWC", "HWIO", "NHWC"))
    patches = patches.reshape(N * Ho * Wo, C * KH * KW)

    out = matmul_bias_act_singlek(patches, w_packed, b_packed,
                                  apply_relu=True, out_dtype=jnp.bfloat16)
    return out[:, :out_channels].reshape(N, Ho, Wo, out_channels)


# ---------------------------------------------------------------------------
# One-time (outside jit) weight packing: transpose to (K, N), permute fc1 for
# the NHWC flatten, pad to multiples of 128, cast matmul weights to bf16.
# ---------------------------------------------------------------------------
def prepare_params(params, input_hw):
    def pack(w_ko, b):
        K, O = w_ko.shape
        Kp, Np = _round_up(K, 128), _round_up(O, 128)
        wp = jnp.pad(w_ko, ((0, Kp - K), (0, Np - O))).astype(jnp.bfloat16)
        bp = jnp.pad(b.reshape(1, -1).astype(jnp.float32), ((0, 0), (0, Np - O)))
        return wp, bp

    def pack_conv(w_oihw, b):
        O = w_oihw.shape[0]
        return pack(w_oihw.reshape(O, -1).T, b)   # K order = (C, KH, KW)

    H, W = input_hw
    co = lambda v, k, s: (v - k) // s + 1
    H1, W1 = co(H, 8, 4), co(W, 8, 4)
    H2, W2 = co(H1, 4, 2), co(W1, 4, 2)
    H3, W3 = co(H2, 3, 1), co(W2, 3, 1)
    C3 = params["conv3_w"].shape[0]
    assert C3 * H3 * W3 == params["fc1_w"].shape[1]

    # PyTorch flattens conv3 output as (C, H, W); our NHWC pipeline flattens
    # (H, W, C), so re-permute fc1's input axis once here.
    fc1_w = params["fc1_w"].reshape(-1, C3, H3, W3).transpose(2, 3, 1, 0)
    fc1_w = fc1_w.reshape(H3 * W3 * C3, -1)       # (22528, 512), (H,W,C)-major K

    p = {}
    p["conv1_w"], p["conv1_b"] = pack_conv(params["conv1_w"], params["conv1_b"])
    p["conv2_w"], p["conv2_b"] = pack_conv(params["conv2_w"], params["conv2_b"])
    p["conv3_w"], p["conv3_b"] = pack_conv(params["conv3_w"], params["conv3_b"])
    p["fc1_w"], p["fc1_b"] = pack(fc1_w, params["fc1_b"])
    p["fc2_w"] = params["fc2_w"].T.astype(jnp.float32)   # (512, 1), stays f32
    p["fc2_b"] = params["fc2_b"].astype(jnp.float32)
    return p


# ---------------------------------------------------------------------------
# ValueNetwork forward
# ---------------------------------------------------------------------------
def value_network_forward(prepped, x_nchw):
    # Single NCHW -> NHWC layout change at the input; everything stays NHWC/bf16.
    x = jnp.transpose(x_nchw, (0, 2, 3, 1)).astype(jnp.bfloat16)
    x = conv2d_relu_nhwc(x, prepped["conv1_w"], prepped["conv1_b"], 32, ksize=(8, 8), stride=4)
    x = conv2d_relu_nhwc(x, prepped["conv2_w"], prepped["conv2_b"], 64, ksize=(4, 4), stride=2)
    x = conv2d_relu_nhwc(x, prepped["conv3_w"], prepped["conv3_b"], 64, ksize=(3, 3), stride=1)
    x = x.reshape(x.shape[0], -1)                 # NHWC flatten; fc1_w pre-permuted to match
    x = matmul_bias_act_bigk(x, prepped["fc1_w"], prepped["fc1_b"],
                             apply_relu=True, out_dtype=jnp.float32)   # (N, 512) f32
    # fc2 is (N,512)@(512,1): far below Pallas launch overhead -> plain XLA dot.
    return x @ prepped["fc2_w"] + prepped["fc2_b"]


# ---------------------------------------------------------------------------
# Plain-JAX reference mirroring the kernel's bf16-input / f32-accumulate numerics
# (used only for the in-script correctness check).
# ---------------------------------------------------------------------------
def reference_forward(params, x_nchw):
    x = x_nchw.astype(jnp.bfloat16)

    def conv(x, w, b, stride):
        y = jax.lax.conv_general_dilated(
            x, w.astype(jnp.bfloat16), window_strides=(stride, stride),
            padding="VALID", dimension_numbers=("NCHW", "OIHW", "NCHW"),
            preferred_element_type=jnp.float32)
        y = y + b.reshape(1, -1, 1, 1)
        return jnp.maximum(y, 0.0).astype(jnp.bfloat16)

    x = conv(x, params["conv1_w"], params["conv1_b"], 4)
    x = conv(x, params["conv2_w"], params["conv2_b"], 2)
    x = conv(x, params["conv3_w"], params["conv3_b"], 1)
    x = x.reshape(x.shape[0], -1)                 # torch-order (C, H, W) flatten
    h = jnp.dot(x, params["fc1_w"].astype(jnp.bfloat16).T,
                preferred_element_type=jnp.float32) + params["fc1_b"]
    h = jnp.maximum(h, 0.0)
    return h @ params["fc2_w"].T + params["fc2_b"]


def init_params(key):
    """Deterministic PyTorch-style uniform(-1/sqrt(fan_in), 1/sqrt(fan_in)) init."""
    def u(k, shape, fan_in):
        bound = 1.0 / math.sqrt(fan_in)
        return jax.random.uniform(k, shape, jnp.float32, -bound, bound)

    ks = jax.random.split(key, 10)
    return {
        "conv1_w": u(ks[0], (32, 3, 8, 8), 3 * 8 * 8),
        "conv1_b": u(ks[1], (32,), 3 * 8 * 8),
        "conv2_w": u(ks[2], (64, 32, 4, 4), 32 * 4 * 4),
        "conv2_b": u(ks[3], (64,), 32 * 4 * 4),
        "conv3_w": u(ks[4], (64, 64, 3, 3), 64 * 3 * 3),
        "conv3_b": u(ks[5], (64,), 64 * 3 * 3),
        "fc1_w": u(ks[6], (512, 22528), 22528),
        "fc1_b": u(ks[7], (512,), 22528),
        "fc2_w": u(ks[8], (1, 512), 512),
        "fc2_b": u(ks[9], (1,), 512),
    }


if __name__ == "__main__":
    key = jax.random.PRNGKey(0)
    pkey, xkey = jax.random.split(key)
    params = init_params(pkey)

    # One-time weight packing, outside the jitted forward.
    prepped = prepare_params(params, input_hw=(204, 156))

    # Smallest batch; spatial size is dictated by fc1's 22528 in_features.
    x = jax.random.normal(xkey, (2, 3, 204, 156), jnp.float32)

    fwd = jax.jit(value_network_forward)
    out = fwd(prepped, x)
    jax.block_until_ready(out)

    assert out.shape == (2, 1), out.shape
    assert out.dtype == jnp.float32, out.dtype

    ref = jax.jit(reference_forward)(params, x)
    jax.block_until_ready(ref)
    max_err = float(jnp.max(jnp.abs(out - ref)))
    assert jnp.allclose(out, ref, rtol=1e-2, atol=1e-3), ("mismatch", max_err)

    print("KERNEL_OK")
</pallas_src>

<mosaic_0001>
module attributes {stable_mosaic.version = 11 : i64} {
  func.func @_mm_bias_act_singlek_kernel(%arg0: i32, %arg1: i32, %arg2: memref<1024x256xbf16, #tpu.memory_space<vmem>>, %arg3: memref<256x128xbf16, #tpu.memory_space<vmem>>, %arg4: memref<1x128xf32, #tpu.memory_space<vmem>>, %arg5: memref<1024x128xbf16, #tpu.memory_space<vmem>>) attributes {dimension_semantics = [#tpu.dimension_semantics<parallel>, #tpu.dimension_semantics<parallel>], iteration_bounds = array<i64: 4, 1>, scalar_prefetch = 0 : i64, scratch_operands = 0 : i64, tpu.core_type = #tpu.core_type<tc>, window_params = [{transform_indices = @transform_0, window_bounds = array<i64: 1024, 256>}, {transform_indices = @transform_1, window_bounds = array<i64: 256, 128>}, {transform_indices = @transform_2, window_bounds = array<i64: 1, 128>}, {transform_indices = @transform_3, window_bounds = array<i64: 1024, 128>}]} {
    %c0 = arith.constant 0 : index
    %c0_0 = arith.constant 0 : index
    %0 = vector.load %arg2[%c0, %c0_0] : memref<1024x256xbf16, #tpu.memory_space<vmem>>, vector<1024x256xbf16>
    %c0_1 = arith.constant 0 : index
    %c0_2 = arith.constant 0 : index
    %1 = vector.load %arg3[%c0_1, %c0_2] : memref<256x128xbf16, #tpu.memory_space<vmem>>, vector<256x128xbf16>
    %cst = arith.constant dense<0.000000e+00> : vector<1024x128xf32>
    %2 = tpu.matmul %0, %1, %cst {dimension_numbers = #tpu.dot_dimension_numbers<[1], [0], [0], [1], [0, 0, 1, 1], [], []>} : vector<1024x256xbf16>, vector<256x128xbf16>, vector<1024x128xf32> -> vector<1024x128xf32>
    %c0_3 = arith.constant 0 : index
    %c0_4 = arith.constant 0 : index
    %3 = vector.load %arg4[%c0_3, %c0_4] : memref<1x128xf32, #tpu.memory_space<vmem>>, vector<1x128xf32>
    %4 = vector.broadcast %3 : vector<1x128xf32> to vector<1024x128xf32>
    %5 = arith.addf %2, %4 : vector<1024x128xf32>
    %cst_5 = arith.constant 0.000000e+00 : f32
    %6 = vector.broadcast %cst_5 : f32 to vector<1024x128xf32>
    %7 = arith.maximumf %5, %6 : vector<1024x128xf32>
    %8 = arith.truncf %7 : vector<1024x128xf32> to vector<1024x128xbf16>
    %c0_6 = arith.constant 0 : index
    %c0_7 = arith.constant 0 : index
    %9 = vector.load %arg5[%c0_6, %c0_7] : memref<1024x128xbf16, #tpu.memory_space<vmem>>, vector<1024x128xbf16>
    tpu.vector_store %arg5[%c0_6, %c0_7], %8 {strides = array<i32>} : memref<1024x128xbf16, #tpu.memory_space<vmem>>, vector<1024x128xbf16>,
    return
  }
  func.func @transform_0(%arg0: i32, %arg1: i32) -> (i32, i32) {
    %c0_i32 = arith.constant 0 : i32
    %c0_i32_0 = arith.constant 0 : i32
    return %arg0, %c0_i32 : i32, i32
  }
  func.func @transform_1(%arg0: i32, %arg1: i32) -> (i32, i32) {
    %c0_i32 = arith.constant 0 : i32
    %c0_i32_0 = arith.constant 0 : i32
    return %c0_i32, %arg1 : i32, i32
  }
  func.func @transform_2(%arg0: i32, %arg1: i32) -> (i32, i32) {
    %c0_i32 = arith.constant 0 : i32
    %c0_i32_0 = arith.constant 0 : i32
    return %c0_i32, %arg1 : i32, i32
  }
  func.func @transform_3(%arg0: i32, %arg1: i32) -> (i32, i32) {
    %c0_i32 = arith.constant 0 : i32
    return %arg0, %arg1 : i32, i32
  }
}

module attributes {stable_mosaic.version = 11 : i64} {
  func.func @_mm_bias_act_singlek_kernel(%arg0: i32, %arg1: i32, %arg2: memref<864x512xbf16, #tpu.memory_space<vmem>>, %arg3: memref<512x128xbf16, #tpu.memory_space<vmem>>, %arg4: memref<1x128xf32, #tpu.memory_space<vmem>>, %arg5: memref<864x128xbf16, #tpu.memory_space<vmem>>) attributes {dimension_semantics = [#tpu.dimension_semantics<parallel>, #tpu.dimension_semantics<parallel>], iteration_bounds = array<i64: 1, 1>, scalar_prefetch = 0 : i64, scratch_operands = 0 : i64, tpu.core_type = #tpu.core_type<tc>, window_params = [{transform_indices = @transform_0, window_bounds = array<i64: 864, 512>}, {transform_indices = @transform_1, window_bounds = array<i64: 512, 128>}, {transform_indices = @transform_2, window_bounds = array<i64: 1, 128>}, {transform_indices = @transform_3, window_bounds = array<i64: 864, 128>}]} {
    %c0 = arith.constant 0 : index
    %c0_0 = arith.constant 0 : index
    %0 = vector.load %arg2[%c0, %c0_0] : memref<864x512xbf16, #tpu.memory_space<vmem>>, vector<864x512xbf16>
    %c0_1 = arith.constant 0 : index
    %c0_2 = arith.constant 0 : index
    %1 = vector.load %arg3[%c0_1, %c0_2] : memref<512x128xbf16, #tpu.memory_space<vmem>>, vector<512x128xbf16>
    %cst = arith.constant dense<0.000000e+00> : vector<864x128xf32>
    %2 = tpu.matmul %0, %1, %cst {dimension_numbers = #tpu.dot_dimension_numbers<[1], [0], [0], [1], [0, 0, 1, 1], [], []>} : vector<864x512xbf16>, vector<512x128xbf16>, vector<864x128xf32> -> vector<864x128xf32>
    %c0_3 = arith.constant 0 : index
    %c0_4 = arith.constant 0 : index
    %3 = vector.load %arg4[%c0_3, %c0_4] : memref<1x128xf32, #tpu.memory_space<vmem>>, vector<1x128xf32>
    %4 = vector.broadcast %3 : vector<1x128xf32> to vector<864x128xf32>
    %5 = arith.addf %2, %4 : vector<864x128xf32>
    %cst_5 = arith.constant 0.000000e+00 : f32
    %6 = vector.broadcast %cst_5 : f32 to vector<864x128xf32>
    %7 = arith.maximumf %5, %6 : vector<864x128xf32>
    %8 = arith.truncf %7 : vector<864x128xf32> to vector<864x128xbf16>
    %c0_6 = arith.constant 0 : index
    %c0_7 = arith.constant 0 : index
    %9 = vector.load %arg5[%c0_6, %c0_7] : memref<864x128xbf16, #tpu.memory_space<vmem>>, vector<864x128xbf16>
    tpu.vector_store %arg5[%c0_6, %c0_7], %8 {strides = array<i32>} : memref<864x128xbf16, #tpu.memory_space<vmem>>, vector<864x128xbf16>,
    return
  }
  func.func @transform_0(%arg0: i32, %arg1: i32) -> (i32, i32) {
    %c0_i32 = arith.constant 0 : i32
    %c0_i32_0 = arith.constant 0 : i32
    return %arg0, %c0_i32 : i32, i32
  }
  func.func @transform_1(%arg0: i32, %arg1: i32) -> (i32, i32) {
    %c0_i32 = arith.constant 0 : i32
    %c0_i32_0 = arith.constant 0 : i32
    return %c0_i32, %arg1 : i32, i32
  }
  func.func @transform_2(%arg0: i32, %arg1: i32) -> (i32, i32) {
    %c0_i32 = arith.constant 0 : i32
    %c0_i32_0 = arith.constant 0 : i32
    return %c0_i32, %arg1 : i32, i32
  }
  func.func @transform_3(%arg0: i32, %arg1: i32) -> (i32, i32) {
    %c0_i32 = arith.constant 0 : i32
    return %arg0, %arg1 : i32, i32
  }
}

module attributes {stable_mosaic.version = 11 : i64} {
  func.func @_mm_bias_act_singlek_kernel(%arg0: i32, %arg1: i32, %arg2: memref<704x640xbf16, #tpu.memory_space<vmem>>, %arg3: memref<640x128xbf16, #tpu.memory_space<vmem>>, %arg4: memref<1x128xf32, #tpu.memory_space<vmem>>, %arg5: memref<704x128xbf16, #tpu.memory_space<vmem>>) attributes {dimension_semantics = [#tpu.dimension_semantics<parallel>, #tpu.dimension_semantics<parallel>], iteration_bounds = array<i64: 1, 1>, scalar_prefetch = 0 : i64, scratch_operands = 0 : i64, tpu.core_type = #tpu.core_type<tc>, window_params = [{transform_indices = @transform_0, window_bounds = array<i64: 704, 640>}, {transform_indices = @transform_1, window_bounds = array<i64: 640, 128>}, {transform_indices = @transform_2, window_bounds = array<i64: 1, 128>}, {transform_indices = @transform_3, window_bounds = array<i64: 704, 128>}]} {
    %c0 = arith.constant 0 : index
    %c0_0 = arith.constant 0 : index
    %0 = vector.load %arg2[%c0, %c0_0] : memref<704x640xbf16, #tpu.memory_space<vmem>>, vector<704x640xbf16>
    %c0_1 = arith.constant 0 : index
    %c0_2 = arith.constant 0 : index
    %1 = vector.load %arg3[%c0_1, %c0_2] : memref<640x128xbf16, #tpu.memory_space<vmem>>, vector<640x128xbf16>
    %cst = arith.constant dense<0.000000e+00> : vector<704x128xf32>
    %2 = tpu.matmul %0, %1, %cst {dimension_numbers = #tpu.dot_dimension_numbers<[1], [0], [0], [1], [0, 0, 1, 1], [], []>} : vector<704x640xbf16>, vector<640x128xbf16>, vector<704x128xf32> -> vector<704x128xf32>
    %c0_3 = arith.constant 0 : index
    %c0_4 = arith.constant 0 : index
    %3 = vector.load %arg4[%c0_3, %c0_4] : memref<1x128xf32, #tpu.memory_space<vmem>>, vector<1x128xf32>
    %4 = vector.broadcast %3 : vector<1x128xf32> to vector<704x128xf32>
    %5 = arith.addf %2, %4 : vector<704x128xf32>
    %cst_5 = arith.constant 0.000000e+00 : f32
    %6 = vector.broadcast %cst_5 : f32 to vector<704x128xf32>
    %7 = arith.maximumf %5, %6 : vector<704x128xf32>
    %8 = arith.truncf %7 : vector<704x128xf32> to vector<704x128xbf16>
    %c0_6 = arith.constant 0 : index
    %c0_7 = arith.constant 0 : index
    %9 = vector.load %arg5[%c0_6, %c0_7] : memref<704x128xbf16, #tpu.memory_space<vmem>>, vector<704x128xbf16>
    tpu.vector_store %arg5[%c0_6, %c0_7], %8 {strides = array<i32>} : memref<704x128xbf16, #tpu.memory_space<vmem>>, vector<704x128xbf16>,
    return
  }
  func.func @transform_0(%arg0: i32, %arg1: i32) -> (i32, i32) {
    %c0_i32 = arith.constant 0 : i32
    %c0_i32_0 = arith.constant 0 : i32
    return %arg0, %c0_i32 : i32, i32
  }
  func.func @transform_1(%arg0: i32, %arg1: i32) -> (i32, i32) {
    %c0_i32 = arith.constant 0 : i32
    %c0_i32_0 = arith.constant 0 : i32
    return %c0_i32, %arg1 : i32, i32
  }
  func.func @transform_2(%arg0: i32, %arg1: i32) -> (i32, i32) {
    %c0_i32 = arith.constant 0 : i32
    %c0_i32_0 = arith.constant 0 : i32
    return %c0_i32, %arg1 : i32, i32
  }
  func.func @transform_3(%arg0: i32, %arg1: i32) -> (i32, i32) {
    %c0_i32 = arith.constant 0 : i32
    return %arg0, %arg1 : i32, i32
  }
}

module attributes {stable_mosaic.version = 11 : i64} {
  func.func @_mm_bias_act_acc_kernel(%arg0: i32, %arg1: i32, %arg2: i32, %arg3: memref<16x2048xbf16, #tpu.memory_space<vmem>>, %arg4: memref<2048x256xbf16, #tpu.memory_space<vmem>>, %arg5: memref<1x256xf32, #tpu.memory_space<vmem>>, %arg6: memref<16x256xf32, #tpu.memory_space<vmem>>, %arg7: memref<16x256xf32, #tpu.memory_space<vmem>>) attributes {dimension_semantics = [#tpu.dimension_semantics<parallel>, #tpu.dimension_semantics<parallel>, #tpu.dimension_semantics<arbitrary>], iteration_bounds = array<i64: 1, 2, 11>, scalar_prefetch = 0 : i64, scratch_operands = 1 : i64, tpu.core_type = #tpu.core_type<tc>, window_params = [{transform_indices = @transform_0, window_bounds = array<i64: 16, 2048>}, {transform_indices = @transform_1, window_bounds = array<i64: 2048, 256>}, {transform_indices = @transform_2, window_bounds = array<i64: 1, 256>}, {transform_indices = @transform_3, window_bounds = array<i64: 16, 256>}]} {
    %c0_i32 = arith.constant 0 : i32
    %0 = arith.cmpi eq, %arg2, %c0_i32 : i32
    %1 = arith.extui %0 : i1 to i32
    %c0_i32_0 = arith.constant 0 : i32
    %2 = arith.cmpi ne, %1, %c0_i32_0 : i32
    scf.if %2 {
      %cst_9 = arith.constant 0.000000e+00 : f32
      %12 = vector.broadcast %cst_9 : f32 to vector<16x256xf32>
      %c0_10 = arith.constant 0 : index
      %c0_11 = arith.constant 0 : index
      %13 = vector.load %arg7[%c0_10, %c0_11] : memref<16x256xf32, #tpu.memory_space<vmem>>, vector<16x256xf32>
      tpu.vector_store %arg7[%c0_10, %c0_11], %12 {strides = array<i32>} : memref<16x256xf32, #tpu.memory_space<vmem>>, vector<16x256xf32>,
    } else {
    }
    %c0 = arith.constant 0 : index
    %c0_1 = arith.constant 0 : index
    %3 = vector.load %arg7[%c0, %c0_1] : memref<16x256xf32, #tpu.memory_space<vmem>>, vector<16x256xf32>
    %c0_2 = arith.constant 0 : index
    %c0_3 = arith.constant 0 : index
    %4 = vector.load %arg3[%c0_2, %c0_3] : memref<16x2048xbf16, #tpu.memory_space<vmem>>, vector<16x2048xbf16>
    %c0_4 = arith.constant 0 : index
    %c0_5 = arith.constant 0 : index
    %5 = vector.load %arg4[%c0_4, %c0_5] : memref<2048x256xbf16, #tpu.memory_space<vmem>>, vector<2048x256xbf16>
    %cst = arith.constant dense<0.000000e+00> : vector<16x256xf32>
    %6 = tpu.matmul %4, %5, %cst {dimension_numbers = #tpu.dot_dimension_numbers<[1], [0], [0], [1], [0, 0, 1, 1], [], []>} : vector<16x2048xbf16>, vector<2048x256xbf16>, vector<16x256xf32> -> vector<16x256xf32>
    %7 = arith.addf %3, %6 : vector<16x256xf32>
    %c0_6 = arith.constant 0 : index
    %c0_7 = arith.constant 0 : index
    %8 = vector.load %arg7[%c0_6, %c0_7] : memref<16x256xf32, #tpu.memory_space<vmem>>, vector<16x256xf32>
    tpu.vector_store %arg7[%c0_6, %c0_7], %7 {strides = array<i32>} : memref<16x256xf32, #tpu.memory_space<vmem>>, vector<16x256xf32>,
    %c10_i32 = arith.constant 10 : i32
    %9 = arith.cmpi eq, %arg2, %c10_i32 : i32
    %10 = arith.extui %9 : i1 to i32
    %c0_i32_8 = arith.constant 0 : i32
    %11 = arith.cmpi ne, %10, %c0_i32_8 : i32
    scf.if %11 {
      %c0_9 = arith.constant 0 : index
      %c0_10 = arith.constant 0 : index
      %12 = vector.load %arg7[%c0_9, %c0_10] : memref<16x256xf32, #tpu.memory_space<vmem>>, vector<16x256xf32>
      %c0_11 = arith.constant 0 : index
      %c0_12 = arith.constant 0 : index
      %13 = vector.load %arg5[%c0_11, %c0_12] : memref<1x256xf32, #tpu.memory_space<vmem>>, vector<1x256xf32>
      %14 = vector.broadcast %13 : vector<1x256xf32> to vector<16x256xf32>
      %15 = arith.addf %12, %14 : vector<16x256xf32>
      %cst_13 = arith.constant 0.000000e+00 : f32
      %16 = vector.broadcast %cst_13 : f32 to vector<16x256xf32>
      %17 = arith.maximumf %15, %16 : vector<16x256xf32>
      %c0_14 = arith.constant 0 : index
      %c0_15 = arith.constant 0 : index
      %18 = vector.load %arg6[%c0_14, %c0_15] : memref<16x256xf32, #tpu.memory_space<vmem>>, vector<16x256xf32>
      tpu.vector_store %arg6[%c0_14, %c0_15], %17 {strides = array<i32>} : memref<16x256xf32, #tpu.memory_space<vmem>>, vector<16x256xf32>,
    } else {
    }
    return
  }
  func.func @transform_0(%arg0: i32, %arg1: i32, %arg2: i32) -> (i32, i32) {
    %c0_i32 = arith.constant 0 : i32
    return %arg0, %arg2 : i32, i32
  }
  func.func @transform_1(%arg0: i32, %arg1: i32, %arg2: i32) -> (i32, i32) {
    %c0_i32 = arith.constant 0 : i32
    return %arg2, %arg1 : i32, i32
  }
  func.func @transform_2(%arg0: i32, %arg1: i32, %arg2: i32) -> (i32, i32) {
    %c0_i32 = arith.constant 0 : i32
    %c0_i32_0 = arith.constant 0 : i32
    return %c0_i32, %arg1 : i32, i32
  }
  func.func @transform_3(%arg0: i32, %arg1: i32, %arg2: i32) -> (i32, i32) {
    %c0_i32 = arith.constant 0 : i32
    return %arg0, %arg1 : i32, i32
  }
}

</mosaic_0001>

<bundles_post_ra>
// kernel: value_network_forward.4
= control target key start
LH: loop header
LB: loop body
LE: loop exit
PB: predicated region body
PF: predicated region fallthrough
CT: control target
= control target key end

     0   :  { %s3477_s12 = smov 0   ;;  %s3479_s13 = smov 0   ;;  %s4032_s0 = inlined_call_operand.vmem [shape: bf16[4096,256], index: 0, kind: input, shape index: {}]   ;;  %s4033_s1 = inlined_call_operand.vmem [shape: bf16[256,128], index: 1, kind: input, shape index: {}]   ;;  %s4034_s2 = inlined_call_operand.vmem [shape: f32[1,128], index: 2, kind: input, shape index: {}]   ;;  %s4035_s3 = inlined_call_operand.vmem [shape: bf16[4096,128], index: 3, kind: output, shape index: {}]  }
   0x1   :  { %s3481_s14 = smov 0  }
   0x2 LB: > { %s25_s15 = sadd.s32 1, %s3451_s13  ;;  %p2278_p0 = scmp.ge.s32.totalorder %s3455_s14, 1  ;;  %s3455_s14 = sphi %s3481_s14, %s13_s14   ;;  %s3451_s13 = sphi %s3479_s13, %s4037_s13   ;;  %s3447_s12 = sphi %s3477_s12, %s4036_s12  }
   0x3   : > { %p27_p1 = scmp.ge.s32.totalorder %s25_s15, 4  ;;  %p170_p2 = scmp.lt.s32.totalorder %s3455_s14, 5 }
   0x5   : > { %s4039_s15 = smov (%p27_p1, %s25_s15), 0  ;;  %p171_p3 = pnand %p2278_p0, %p170_p2 }
   0x6   : > { %s2279_s28 = sshll.u32 (!%p171_p3), %s3447_s12, 7 }
   0x7   : > { %174 = sbr.rel (%p171_p3) target bundleno = 689 (0x2b1), region = 32  ;;  %p206_p4 = scmp.lt.s32.totalorder (!%p171_p3), %s2279_s28, 511 }
   0xc   : > { %v2998_v0 = vld [vmem:[%s4033_s1 + $0x38] sm:$0xff]  ;;  %v2997_v2 = vld [vmem:[%s4033_s1 + $0x30] sm:$0xff]  ;;  %v2996_v4 = vld [vmem:[%s4033_s1 + $0x28] sm:$0xff]  ;;  %s4041_s28 = smov (!%p206_p4, %s2279_s28), 511 }
   0xd   : > { %v3006_v1 = vld [vmem:[%s4033_s1 + $0x78] sm:$0xff]  ;;  %1128 = vmatpush.bf16.msra.mxu0 %v2998_v0  ;;  %3390 = vmatpush.bf16.msra.mxu2 %v2998_v0  ;;  %v3005_v3 = vld [vmem:[%s4033_s1 + $0x70] sm:$0xff]  ;;  %v3004_v5 = vld [vmem:[%s4033_s1 + $0x68] sm:$0xff]  ;;  %s2862_s17 = sshll.u32 %s4041_s28, 3  ;;  %s2283_s5 = sshll.u32 %s4041_s28, 2 }
   0xe   : > { %1457 = vmatpush.bf16.msra.mxu1 %v3006_v1  ;;  %3398 = vmatpush.bf16.msra.mxu3 %v3006_v1  ;;  %v2995_v6 = vld [vmem:[%s4033_s1 + $0x20] sm:$0xff]  ;;  %v2994_v8 = vld [vmem:[%s4033_s1 + $0x18] sm:$0xff]  ;;  %v2993_v10 = vld [vmem:[%s4033_s1 + $0x10] sm:$0xff]  ;;  %s3543_s22 = scalar_lea.vmem %s4032_s0, %s2862_s17  ;;  %s3646_s8 = scalar_lea.vmem %s4035_s3, %s2283_s5 }
   0xf   : > { %v3003_v7 = vld [vmem:[%s4033_s1 + $0x60] sm:$0xff]  ;;  %v3002_v9 = vld [vmem:[%s4033_s1 + $0x58] sm:$0xff]  ;;  %v3001_v11 = vld [vmem:[%s4033_s1 + $0x50] sm:$0xff] }
  0x10   : > { %v2992_v12 = vld [vmem:[%s4033_s1 + $0x8] sm:$0xff]  ;;  %v2991_v14 = vld [vmem:[%s4033_s1] sm:$0xff]  ;;  %v2294_v28 = vld [vmem:[%s3543_s22 + $0x10] sm:$0xf] }
  0x11   : > { %1129 = vmatpush.bf16.msra.mxu0 %v2997_v2  ;;  %3391 = vmatpush.bf16.msra.mxu2 %v2997_v2  ;;  %v3000_v13 = vld [vmem:[%s4033_s1 + $0x48] sm:$0xff]  ;;  %v2999_v15 = vld [vmem:[%s4033_s1 + $0x40] sm:$0xff]  ;;  %v2866_v29 = vld [vmem:[%s3543_s22 + $0x14] sm:$0xf0] }
  0x12   : > { %1458 = vmatpush.bf16.msra.mxu1 %v3005_v3  ;;  %3399 = vmatpush.bf16.msra.mxu3 %v3005_v3  ;;  %v2286_v16 = vld [vmem:[%s3543_s22] sm:$0xf]  ;;  %v2864_v17 = vld [vmem:[%s3543_s22 + $0x4] sm:$0xf0]  ;;  %v2863_v20 = vld [vmem:[%s3543_s22 + $0x4] sm:$0xf]  ;;  %v2295_v36 = vor.u32 %v2866_v29, %v2294_v28 }
  0x13   : > { %v2542_v18 = vld [vmem:[%s3543_s22 + $0x200] sm:$0xf]  ;;  %v2928_v19 = vld [vmem:[%s3543_s22 + $0x204] sm:$0xf0]  ;;  %v2288_v21 = vld [vmem:[%s3543_s22 + $0x8] sm:$0xf0]  ;;  %v2287_v24 = vor.u32 %v2864_v17, %v2286_v16 }
  0x14   : > { %v2927_v22 = vld [vmem:[%s3543_s22 + $0x204] sm:$0xf]  ;;  %v2544_v23 = vld [vmem:[%s3543_s22 + $0x208] sm:$0xf0]  ;;  %v2543_v25 = vor.u32 %v2928_v19, %v2542_v18  ;;  %v2291_v26 = vor.u32 %v2863_v20, %v2288_v21  ;;  %v2550_v30 = vld [vmem:[%s3543_s22 + $0x210] sm:$0xf] }
  0x15   : > { %1130 = vmatpush.bf16.msra.mxu0 %v2996_v4  ;;  %3392 = vmatpush.bf16.msra.mxu2 %v2996_v4  ;;  %v2547_v27 = vor.u32 %v2927_v22, %v2544_v23  ;;  %v2930_v31 = vld [vmem:[%s3543_s22 + $0x214] sm:$0xf0]  ;;  %v2865_v32 = vld [vmem:[%s3543_s22 + $0x14] sm:$0xf]  ;;  %v2296_v33 = vld [vmem:[%s3543_s22 + $0x18] sm:$0xf0] }
  0x16   : > { %1459 = vmatpush.bf16.msra.mxu1 %v3004_v5  ;;  %3400 = vmatpush.bf16.msra.mxu3 %v3004_v5  ;;  %v2929_v34 = vld [vmem:[%s3543_s22 + $0x214] sm:$0xf]  ;;  %v2552_v35 = vld [vmem:[%s3543_s22 + $0x218] sm:$0xf0]  ;;  %v2551_v37 = vor.u32 %v2930_v31, %v2550_v30  ;;  %v2299_v38 = vor.u32 %v2865_v32, %v2296_v33  ;;  %v2302_v40 = vld [vmem:[%s3543_s22 + $0x20] sm:$0xf] }
  0x17   : > { %v2555_v39 = vor.u32 %v2929_v34, %v2552_v35  ;;  %v2868_v41 = vld [vmem:[%s3543_s22 + $0x24] sm:$0xf0]  ;;  %v2558_v42 = vld [vmem:[%s3543_s22 + $0x220] sm:$0xf]  ;;  %v2867_v44 = vld [vmem:[%s3543_s22 + $0x24] sm:$0xf] }
  0x18   : > { %v2932_v43 = vld [vmem:[%s3543_s22 + $0x224] sm:$0xf0]  ;;  %v2304_v45 = vld [vmem:[%s3543_s22 + $0x28] sm:$0xf0]  ;;  %v2931_v46 = vld [vmem:[%s3543_s22 + $0x224] sm:$0xf]  ;;  %v2303_v48 = vor.u32 %v2868_v41, %v2302_v40 }
  0x19   : > { %1131 = vmatpush.bf16.msra.mxu0 %v2995_v6  ;;  %3393 = vmatpush.bf16.msra.mxu2 %v2995_v6  ;;  %v2560_v47 = vld [vmem:[%s3543_s22 + $0x228] sm:$0xf0]  ;;  %v2559_v49 = vor.u32 %v2932_v43, %v2558_v42  ;;  %v2307_v50 = vor.u32 %v2867_v44, %v2304_v45  ;;  %v2310_v52 = vld [vmem:[%s3543_s22 + $0x30] sm:$0xf]  ;;  %v2870_v53 = vld [vmem:[%s3543_s22 + $0x34] sm:$0xf0] }
  0x1a   : > { %1460 = vmatpush.bf16.msra.mxu1 %v3003_v7  ;;  %3401 = vmatpush.bf16.msra.mxu3 %v3003_v7  ;;  %v2563_v51 = vor.u32 %v2931_v46, %v2560_v47  ;;  %v2566_v54 = vld [vmem:[%s3543_s22 + $0x230] sm:$0xf]  ;;  %v2934_v55 = vld [vmem:[%s3543_s22 + $0x234] sm:$0xf0]  ;;  %v2869_v56 = vld [vmem:[%s3543_s22 + $0x34] sm:$0xf]  ;;  %v2311_v60 = vor.u32 %v2870_v53, %v2310_v52 }
  0x1b   : > { %v2312_v57 = vld [vmem:[%s3543_s22 + $0x38] sm:$0xf0]  ;;  %v2933_v58 = vld [vmem:[%s3543_s22 + $0x234] sm:$0xf]  ;;  %v2567_v61 = vor.u32 %v2934_v55, %v2566_v54  ;;  %v2318_v0 = vld [vmem:[%s3543_s22 + $0x40] sm:$0xf] }
  0x1c   : > { %v2568_v59 = vld [vmem:[%s3543_s22 + $0x238] sm:$0xf0]  ;;  %v2315_v62 = vor.u32 %v2869_v56, %v2312_v57  ;;  %v2872_v1 = vld [vmem:[%s3543_s22 + $0x44] sm:$0xf0]  ;;  %v2574_v2 = vld [vmem:[%s3543_s22 + $0x240] sm:$0xf] }
  0x1d   : > { %1132 = vmatpush.bf16.msra.mxu0 %v2994_v8  ;;  %3394 = vmatpush.bf16.msra.mxu2 %v2994_v8  ;;  %v2571_v63 = vor.u32 %v2933_v58, %v2568_v59  ;;  %v2936_v3 = vld [vmem:[%s3543_s22 + $0x244] sm:$0xf0]  ;;  %v2871_v4 = vld [vmem:[%s3543_s22 + $0x44] sm:$0xf]  ;;  %v2320_v5 = vld [vmem:[%s3543_s22 + $0x48] sm:$0xf0]  ;;  %v2319_v8 = vor.u32 %v2872_v1, %v2318_v0 }
  0x1e   : > { %1461 = vmatpush.bf16.msra.mxu1 %v3002_v9  ;;  %3402 = vmatpush.bf16.msra.mxu3 %v3002_v9  ;;  %v2935_v6 = vld [vmem:[%s3543_s22 + $0x244] sm:$0xf]  ;;  %v2576_v7 = vld [vmem:[%s3543_s22 + $0x248] sm:$0xf0]  ;;  %v2575_v9 = vor.u32 %v2936_v3, %v2574_v2  ;;  %v2873_v16 = vld [vmem:[%s3543_s22 + $0x54] sm:$0xf] }
  0x1f   : > { %v2328_v17 = vld [vmem:[%s3543_s22 + $0x58] sm:$0xf0]  ;;  %v2937_v18 = vld [vmem:[%s3543_s22 + $0x254] sm:$0xf]  ;;  %v2875_v28 = vld [vmem:[%s3543_s22 + $0x64] sm:$0xf] }
  0x20   : > { %v2584_v19 = vld [vmem:[%s3543_s22 + $0x258] sm:$0xf0]  ;;  %v2331_v22 = vor.u32 %v2873_v16, %v2328_v17  ;;  %v2336_v29 = vld [vmem:[%s3543_s22 + $0x68] sm:$0xf0]  ;;  %v2939_v30 = vld [vmem:[%s3543_s22 + $0x264] sm:$0xf] }
  0x21   : > { %1133 = vmatpush.bf16.msra.mxu0 %v2993_v10  ;;  %3395 = vmatpush.bf16.msra.mxu2 %v2993_v10  ;;  %v2323_v10 = vor.u32 %v2871_v4, %v2320_v5  ;;  %v2587_v23 = vor.u32 %v2937_v18, %v2584_v19  ;;  %v2592_v31 = vld [vmem:[%s3543_s22 + $0x268] sm:$0xf0]  ;;  %v2339_v34 = vor.u32 %v2875_v28, %v2336_v29  ;;  %v2877_v40 = vld [vmem:[%s3543_s22 + $0x74] sm:$0xf]  ;;  %v2344_v41 = vld [vmem:[%s3543_s22 + $0x78] sm:$0xf0] }
  0x22   : > { %1462 = vmatpush.bf16.msra.mxu1 %v3001_v11  ;;  %3403 = vmatpush.bf16.msra.mxu3 %v3001_v11  ;;  %v2579_v11 = vor.u32 %v2935_v6, %v2576_v7  ;;  %v2595_v35 = vor.u32 %v2939_v30, %v2592_v31  ;;  %v2941_v42 = vld [vmem:[%s3543_s22 + $0x274] sm:$0xf]  ;;  %v2600_v43 = vld [vmem:[%s3543_s22 + $0x278] sm:$0xf0]  ;;  %v2347_v46 = vor.u32 %v2877_v40, %v2344_v41  ;;  %v2879_v52 = vld [vmem:[%s3543_s22 + $0x84] sm:$0xf] }
  0x23   : > { %v2603_v47 = vor.u32 %v2941_v42, %v2600_v43  ;;  %v2352_v53 = vld [vmem:[%s3543_s22 + $0x88] sm:$0xf0]  ;;  %v2943_v54 = vld [vmem:[%s3543_s22 + $0x284] sm:$0xf]  ;;  %v2945_v16 = vld [vmem:[%s3543_s22 + $0x294] sm:$0xf] }
  0x24   : > { %v2608_v55 = vld [vmem:[%s3543_s22 + $0x288] sm:$0xf0]  ;;  %v2355_v59 = vor.u32 %v2879_v52, %v2352_v53  ;;  %v2616_v17 = vld [vmem:[%s3543_s22 + $0x298] sm:$0xf0]  ;;  %v2366_v42 = vld [vmem:[%s3543_s22 + $0xa0] sm:$0xf] }
  0x25   : > { %1134 = vmatpush.bf16.msra.mxu0 %v2992_v12  ;;  %3396 = vmatpush.bf16.msra.mxu2 %v2992_v12  ;;  %v2326_v12 = vld [vmem:[%s3543_s22 + $0x50] sm:$0xf]  ;;  %v2884_v43 = vld [vmem:[%s3543_s22 + $0xa4] sm:$0xf0] }
  0x26   : > { %1463 = vmatpush.bf16.msra.mxu1 %v3000_v13  ;;  %3404 = vmatpush.bf16.msra.mxu3 %v3000_v13  ;;  %v2874_v13 = vld [vmem:[%s3543_s22 + $0x54] sm:$0xf0]  ;;  %v2367_v53 = vor.u32 %v2884_v43, %v2366_v42 }
  0x27   : > { %v2327_v20 = vor.u32 %v2874_v13, %v2326_v12  ;;  %v2881_v12 = vld [vmem:[%s3543_s22 + $0x94] sm:$0xf]  ;;  %v2360_v13 = vld [vmem:[%s3543_s22 + $0x98] sm:$0xf0] }
  0x29   : > { %1135 = vmatpush.bf16.msra.mxu0 %v2991_v14  ;;  %3397 = vmatpush.bf16.msra.mxu2 %v2991_v14  ;;  %v2582_v14 = vld [vmem:[%s3543_s22 + $0x250] sm:$0xf] }
  0x2a   : > { %1464 = vmatpush.bf16.msra.mxu1 %v2999_v15  ;;  %3405 = vmatpush.bf16.msra.mxu3 %v2999_v15  ;;  %v2938_v15 = vld [vmem:[%s3543_s22 + $0x254] sm:$0xf0] }
  0x2b   : > { %v2583_v21 = vor.u32 %v2938_v15, %v2582_v14 }
  0x2c   : > { %1136 = vmatmul.bf16.vlgmr.msra.gmra.mxu0 %v2287_v24  ;;  %1296 = vmatmul.bf16.vlgmr.msra.gmra.mxu2 %v2543_v25  ;;  %v2334_v24 = vld [vmem:[%s3543_s22 + $0x60] sm:$0xf]  ;;  %v2876_v25 = vld [vmem:[%s3543_s22 + $0x64] sm:$0xf0] }
  0x2d   : > { %1465 = vmatmul.bf16.vlgmr.msra.gmra.mxu1 %v2291_v26  ;;  %1625 = vmatmul.bf16.vlgmr.msra.gmra.mxu3 %v2547_v27  ;;  %v2590_v26 = vld [vmem:[%s3543_s22 + $0x260] sm:$0xf]  ;;  %v2940_v27 = vld [vmem:[%s3543_s22 + $0x264] sm:$0xf0]  ;;  %v2335_v32 = vor.u32 %v2876_v25, %v2334_v24 }
  0x2e   : > { %v2591_v33 = vor.u32 %v2940_v27, %v2590_v26  ;;  %v2363_v26 = vor.u32 %v2881_v12, %v2360_v13  ;;  %v2619_v27 = vor.u32 %v2945_v16, %v2616_v17  ;;  %v2374_v13 = vld [vmem:[%s3543_s22 + $0xb0] sm:$0xf]  ;;  %v2950_v16 = vld [vmem:[%s3543_s22 + $0x2b4] sm:$0xf0]  ;;  %v2885_v17 = vld [vmem:[%s3543_s22 + $0xb4] sm:$0xf] }
  0x3c   : > { %1141 = vmatmul.bf16.gmra.mxu0 %v2295_v36  ;;  %1301 = vmatmul.bf16.gmra.mxu2 %v2551_v37  ;;  %v2342_v36 = vld [vmem:[%s3543_s22 + $0x70] sm:$0xf]  ;;  %v2878_v37 = vld [vmem:[%s3543_s22 + $0x74] sm:$0xf0] }
  0x3d   : > { %1470 = vmatmul.bf16.gmra.mxu1 %v2299_v38  ;;  %1630 = vmatmul.bf16.gmra.mxu3 %v2555_v39  ;;  %v2598_v38 = vld [vmem:[%s3543_s22 + $0x270] sm:$0xf]  ;;  %v2942_v39 = vld [vmem:[%s3543_s22 + $0x274] sm:$0xf0]  ;;  %v2343_v44 = vor.u32 %v2878_v37, %v2342_v36 }
  0x3e   : > { %v2599_v45 = vor.u32 %v2942_v39, %v2598_v38 }
  0x4c   : > { %1146 = vmatmul.bf16.gmra.mxu0 %v2303_v48  ;;  %1306 = vmatmul.bf16.gmra.mxu2 %v2559_v49  ;;  %v2350_v48 = vld [vmem:[%s3543_s22 + $0x80] sm:$0xf]  ;;  %v2880_v49 = vld [vmem:[%s3543_s22 + $0x84] sm:$0xf0] }
  0x4d   : > { %1475 = vmatmul.bf16.gmra.mxu1 %v2307_v50  ;;  %1635 = vmatmul.bf16.gmra.mxu3 %v2563_v51  ;;  %v2606_v50 = vld [vmem:[%s3543_s22 + $0x280] sm:$0xf]  ;;  %v2944_v51 = vld [vmem:[%s3543_s22 + $0x284] sm:$0xf0]  ;;  %v2351_v56 = vor.u32 %v2880_v49, %v2350_v48 }
  0x4e   : > { %v2607_v57 = vor.u32 %v2944_v51, %v2606_v50  ;;  %v2947_v50 = vld [vmem:[%s3543_s22 + $0x2a4] sm:$0xf]  ;;  %v2624_v51 = vld [vmem:[%s3543_s22 + $0x2a8] sm:$0xf0] }
  0x5c   : > { %1151 = vmatmul.bf16.gmra.mxu0 %v2311_v60  ;;  %1311 = vmatmul.bf16.gmra.mxu2 %v2567_v61  ;;  %v2611_v60 = vor.u32 %v2943_v54, %v2608_v55  ;;  %v3629_v61 = vld [vmem:[%s4034_s2] ss:$0 sm:$0xff] }
  0x5d   : > { %1480 = vmatmul.bf16.gmra.mxu1 %v2315_v62  ;;  %1640 = vmatmul.bf16.gmra.mxu3 %v2571_v63 }
  0x6c   : > { %1156 = vmatmul.bf16.gmra.mxu0 %v2319_v8  ;;  %1316 = vmatmul.bf16.gmra.mxu2 %v2575_v9  ;;  %v2358_v8 = vld [vmem:[%s3543_s22 + $0x90] sm:$0xf]  ;;  %v2882_v9 = vld [vmem:[%s3543_s22 + $0x94] sm:$0xf0] }
  0x6d   : > { %1485 = vmatmul.bf16.gmra.mxu1 %v2323_v10  ;;  %1645 = vmatmul.bf16.gmra.mxu3 %v2579_v11  ;;  %v2614_v10 = vld [vmem:[%s3543_s22 + $0x290] sm:$0xf]  ;;  %v2946_v11 = vld [vmem:[%s3543_s22 + $0x294] sm:$0xf0]  ;;  %v2359_v19 = vor.u32 %v2882_v9, %v2358_v8 }
  0x6e   : > { %v2615_v24 = vor.u32 %v2946_v11, %v2614_v10 }
  0x7c   : > { %1161 = vmatmul.bf16.gmra.mxu0 %v2327_v20  ;;  %1321 = vmatmul.bf16.gmra.mxu2 %v2583_v21 }
  0x7d   : > { %1490 = vmatmul.bf16.gmra.mxu1 %v2331_v22  ;;  %1650 = vmatmul.bf16.gmra.mxu3 %v2587_v23 }
  0x8c   : > { %1166 = vmatmul.bf16.gmra.mxu0 %v2335_v32  ;;  %1326 = vmatmul.bf16.gmra.mxu2 %v2591_v33 }
  0x8d   : > { %1495 = vmatmul.bf16.gmra.mxu1 %v2339_v34  ;;  %1655 = vmatmul.bf16.gmra.mxu3 %v2595_v35 }
  0x9c   : > { %1171 = vmatmul.bf16.gmra.mxu0 %v2343_v44  ;;  %1331 = vmatmul.bf16.gmra.mxu2 %v2599_v45  ;;  %v2622_v44 = vld [vmem:[%s3543_s22 + $0x2a0] sm:$0xf]  ;;  %v2948_v45 = vld [vmem:[%s3543_s22 + $0x2a4] sm:$0xf0] }
  0x9d   : > { %1500 = vmatmul.bf16.gmra.mxu1 %v2347_v46  ;;  %1660 = vmatmul.bf16.gmra.mxu3 %v2603_v47  ;;  %v2883_v46 = vld [vmem:[%s3543_s22 + $0xa4] sm:$0xf]  ;;  %v2368_v47 = vld [vmem:[%s3543_s22 + $0xa8] sm:$0xf0] }
  0xa9   : > { %v1137_v58 = vpop.f32.mrf.mxu0 }
  0xaa   : > { %v1466_v62 = vpop.f32.mrf.mxu1  ;;  %v1138_v63 = vadd.f32 %v3629_v61, %v1137_v58  ;;  %v2623_v58 = vor.u32 %v2948_v45, %v2622_v44 }
  0xac   : > { %1176 = vmatmul.bf16.gmra.mxu0 %v2351_v56  ;;  %1336 = vmatmul.bf16.gmra.mxu2 %v2607_v57  ;;  %v1467_v3 = vadd.f32 %v1466_v62, %v1138_v63  ;;  %v2627_v62 = vor.u32 %v2947_v50, %v2624_v51  ;;  %v2952_v50 = vld [vmem:[%s3543_s22 + $0x2c4] sm:$0xf0]  ;;  %v2887_v51 = vld [vmem:[%s3543_s22 + $0xc4] sm:$0xf] }
  0xad   : > { %1505 = vmatmul.bf16.gmra.mxu1 %v2355_v59  ;;  %1665 = vmatmul.bf16.gmra.mxu3 %v2611_v60  ;;  %v2371_v60 = vor.u32 %v2883_v46, %v2368_v47  ;;  %v2382_v47 = vld [vmem:[%s3543_s22 + $0xc0] sm:$0xf] }
  0xae   : > { %v1786_v14 = vmax.f32 %v1467_v3, 0.0 }
  0xaf   : > { %v1297_v0 = vpop.f32.mrf.mxu2 }
  0xb0   : > { %v1626_v1 = vpop.f32.mrf.mxu3  ;;  %v1298_v6 = vadd.f32 %v3629_v61, %v1297_v0 }
  0xb1   : > { %v1139_v2 = vpop.f32.mrf.mxu0 }
  0xb2   : > { %v1140_v4 = vadd.f32 %v3629_v61, %v1139_v2  ;;  %v1468_v5 = vpop.f32.mrf.mxu1  ;;  %v1627_v20 = vadd.f32 %v1626_v1, %v1298_v6 }
  0xb4   : > { %v1469_v7 = vadd.f32 %v1468_v5, %v1140_v4  ;;  %v1850_v30 = vmax.f32 %v1627_v20, 0.0 }
  0xb6   : > { %v1787_v15 = vmax.f32 %v1469_v7, 0.0 }
  0xb7   : > { %v1299_v18 = vpop.f32.mrf.mxu2 }
  0xb8   : > { %v3010_v21 = vpack.c.bf16 %v1787_v15, %v1786_v14  ;;  %v1300_v22 = vadd.f32 %v3629_v61, %v1299_v18  ;;  %v1628_v23 = vpop.f32.mrf.mxu3  ;;  %v2886_v14 = vld [vmem:[%s3543_s22 + $0xb4] sm:$0xf0]  ;;  %v2630_v15 = vld [vmem:[%s3543_s22 + $0x2b0] sm:$0xf]  ;;  %v2376_v18 = vld [vmem:[%s3543_s22 + $0xb8] sm:$0xf0] }
  0xb9   : > { %v1142_v25 = vpop.f32.mrf.mxu0 }
  0xba   : > { %3011 = vst [vmem:[%s3646_s8] sm:$0xff] %v3010_v21   ;;  %v1629_v28 = vadd.f32 %v1628_v23, %v1300_v22  ;;  %v1471_v29 = vpop.f32.mrf.mxu1  ;;  %v1143_v33 = vadd.f32 %v3629_v61, %v1142_v25  ;;  %v2949_v21 = vld [vmem:[%s3543_s22 + $0x2b4] sm:$0xf]  ;;  %v2632_v22 = vld [vmem:[%s3543_s22 + $0x2b8] sm:$0xf0] }
  0xbc   : > { %v1851_v31 = vmax.f32 %v1629_v28, 0.0  ;;  %1181 = vmatmul.bf16.gmra.mxu0 %v2359_v19  ;;  %1341 = vmatmul.bf16.gmra.mxu2 %v2615_v24  ;;  %v1472_v37 = vadd.f32 %v1471_v29, %v1143_v33  ;;  %v2375_v24 = vor.u32 %v2886_v14, %v2374_v13  ;;  %v2631_v29 = vor.u32 %v2950_v16, %v2630_v15 }
  0xbd   : > { %1510 = vmatmul.bf16.gmra.mxu1 %v2363_v26  ;;  %1670 = vmatmul.bf16.gmra.mxu3 %v2619_v27 }
  0xbe   : > { %v3170_v32 = vpack.c.bf16 %v1851_v31, %v1850_v30  ;;  %v1788_v48 = vmax.f32 %v1472_v37, 0.0  ;;  %v2379_v31 = vor.u32 %v2885_v17, %v2376_v18  ;;  %v2390_v18 = vld [vmem:[%s3543_s22 + $0xd0] sm:$0xf] }
  0xbf   : > { %v1302_v34 = vpop.f32.mrf.mxu2 }
  0xc0   : > { %3358 = vst [vmem:[%s3646_s8 + $0x100] sm:$0xff] %v3170_v32   ;;  %v1631_v35 = vpop.f32.mrf.mxu3  ;;  %v1303_v40 = vadd.f32 %v3629_v61, %v1302_v34  ;;  %v2635_v32 = vor.u32 %v2949_v21, %v2632_v22  ;;  %v2954_v21 = vld [vmem:[%s3543_s22 + $0x2d4] sm:$0xf0]  ;;  %v2889_v22 = vld [vmem:[%s3543_s22 + $0xd4] sm:$0xf] }
  0xc1   : > { %v1144_v36 = vpop.f32.mrf.mxu0 }
  0xc2   : > { %v1145_v38 = vadd.f32 %v3629_v61, %v1144_v36  ;;  %v1473_v39 = vpop.f32.mrf.mxu1  ;;  %v1632_v54 = vadd.f32 %v1631_v35, %v1303_v40 }
  0xc4   : > { %v1474_v41 = vadd.f32 %v1473_v39, %v1145_v38  ;;  %v1852_v1 = vmax.f32 %v1632_v54, 0.0 }
  0xc6   : > { %v1789_v49 = vmax.f32 %v1474_v41, 0.0 }
  0xc7   : > { %v1304_v52 = vpop.f32.mrf.mxu2 }
  0xc8   : > { %v3015_v55 = vpack.c.bf16 %v1789_v49, %v1788_v48  ;;  %v1305_v56 = vadd.f32 %v3629_v61, %v1304_v52  ;;  %v1633_v57 = vpop.f32.mrf.mxu3  ;;  %v2888_v48 = vld [vmem:[%s3543_s22 + $0xc4] sm:$0xf0]  ;;  %v2638_v49 = vld [vmem:[%s3543_s22 + $0x2c0] sm:$0xf]  ;;  %v2384_v52 = vld [vmem:[%s3543_s22 + $0xc8] sm:$0xf0] }
  0xc9   : > { %v1147_v59 = vpop.f32.mrf.mxu0 }
  0xca   : > { %3327 = vst [vmem:[%s3646_s8 + $0x8] sm:$0xff] %v3015_v55   ;;  %v1634_v63 = vadd.f32 %v1633_v57, %v1305_v56  ;;  %v1476_v0 = vpop.f32.mrf.mxu1  ;;  %v1148_v4 = vadd.f32 %v3629_v61, %v1147_v59  ;;  %v2951_v55 = vld [vmem:[%s3543_s22 + $0x2c4] sm:$0xf]  ;;  %v2640_v56 = vld [vmem:[%s3543_s22 + $0x2c8] sm:$0xf0] }
  0xcc   : > { %v1853_v2 = vmax.f32 %v1634_v63, 0.0  ;;  %1186 = vmatmul.bf16.gmra.mxu0 %v2367_v53  ;;  %1346 = vmatmul.bf16.gmra.mxu2 %v2623_v58  ;;  %v1477_v8 = vadd.f32 %v1476_v0, %v1148_v4  ;;  %v2383_v58 = vor.u32 %v2888_v48, %v2382_v47  ;;  %v2639_v0 = vor.u32 %v2952_v50, %v2638_v49 }
  0xcd   : > { %1515 = vmatmul.bf16.gmra.mxu1 %v2371_v60  ;;  %1675 = vmatmul.bf16.gmra.mxu3 %v2627_v62 }
  0xce   : > { %v3175_v3 = vpack.c.bf16 %v1853_v2, %v1852_v1  ;;  %v1790_v19 = vmax.f32 %v1477_v8, 0.0  ;;  %v2387_v2 = vor.u32 %v2887_v51, %v2384_v52  ;;  %v2398_v52 = vld [vmem:[%s3543_s22 + $0xe0] sm:$0xf] }
  0xcf   : > { %v1307_v5 = vpop.f32.mrf.mxu2 }
  0xd0   : > { %3359 = vst [vmem:[%s3646_s8 + $0x108] sm:$0xff] %v3175_v3   ;;  %v1636_v6 = vpop.f32.mrf.mxu3  ;;  %v1308_v11 = vadd.f32 %v3629_v61, %v1307_v5  ;;  %v2643_v3 = vor.u32 %v2951_v55, %v2640_v56  ;;  %v2956_v55 = vld [vmem:[%s3543_s22 + $0x2e4] sm:$0xf0]  ;;  %v2891_v56 = vld [vmem:[%s3543_s22 + $0xe4] sm:$0xf] }
  0xd1   : > { %v1149_v7 = vpop.f32.mrf.mxu0 }
  0xd2   : > { %v1150_v9 = vadd.f32 %v3629_v61, %v1149_v7  ;;  %v1478_v10 = vpop.f32.mrf.mxu1  ;;  %v1637_v25 = vadd.f32 %v1636_v6, %v1308_v11 }
  0xd4   : > { %v1479_v12 = vadd.f32 %v1478_v10, %v1150_v9  ;;  %v1854_v35 = vmax.f32 %v1637_v25, 0.0 }
  0xd6   : > { %v1791_v20 = vmax.f32 %v1479_v12, 0.0 }
  0xd7   : > { %v1309_v23 = vpop.f32.mrf.mxu2 }
  0xd8   : > { %v3020_v26 = vpack.c.bf16 %v1791_v20, %v1790_v19  ;;  %v1310_v27 = vadd.f32 %v3629_v61, %v1309_v23  ;;  %v1638_v28 = vpop.f32.mrf.mxu3  ;;  %v2890_v19 = vld [vmem:[%s3543_s22 + $0xd4] sm:$0xf0]  ;;  %v2646_v20 = vld [vmem:[%s3543_s22 + $0x2d0] sm:$0xf]  ;;  %v2392_v23 = vld [vmem:[%s3543_s22 + $0xd8] sm:$0xf0] }
  0xd9   : > { %v1152_v30 = vpop.f32.mrf.mxu0 }
  0xda   : > { %3328 = vst [vmem:[%s3646_s8 + $0x10] sm:$0xff] %v3020_v26   ;;  %v1639_v33 = vadd.f32 %v1638_v28, %v1310_v27  ;;  %v1481_v34 = vpop.f32.mrf.mxu1  ;;  %v1153_v38 = vadd.f32 %v3629_v61, %v1152_v30  ;;  %v2953_v26 = vld [vmem:[%s3543_s22 + $0x2d4] sm:$0xf]  ;;  %v2648_v27 = vld [vmem:[%s3543_s22 + $0x2d8] sm:$0xf0] }
  0xdc   : > { %v1855_v36 = vmax.f32 %v1639_v33, 0.0  ;;  %1191 = vmatmul.bf16.gmra.mxu0 %v2375_v24  ;;  %1351 = vmatmul.bf16.gmra.mxu2 %v2631_v29  ;;  %v1482_v42 = vadd.f32 %v1481_v34, %v1153_v38  ;;  %v2391_v29 = vor.u32 %v2890_v19, %v2390_v18  ;;  %v2647_v34 = vor.u32 %v2954_v21, %v2646_v20 }
  0xdd   : > { %1520 = vmatmul.bf16.gmra.mxu1 %v2379_v31  ;;  %1680 = vmatmul.bf16.gmra.mxu3 %v2635_v32 }
  0xde   : > { %v3180_v37 = vpack.c.bf16 %v1855_v36, %v1854_v35  ;;  %v1792_v53 = vmax.f32 %v1482_v42, 0.0  ;;  %v2395_v36 = vor.u32 %v2889_v22, %v2392_v23  ;;  %v2406_v23 = vld [vmem:[%s3543_s22 + $0xf0] sm:$0xf] }
  0xdf   : > { %v1312_v39 = vpop.f32.mrf.mxu2 }
  0xe0   : > { %3360 = vst [vmem:[%s3646_s8 + $0x110] sm:$0xff] %v3180_v37   ;;  %v1641_v40 = vpop.f32.mrf.mxu3  ;;  %v1313_v45 = vadd.f32 %v3629_v61, %v1312_v39  ;;  %v2651_v37 = vor.u32 %v2953_v26, %v2648_v27  ;;  %v2958_v26 = vld [vmem:[%s3543_s22 + $0x2f4] sm:$0xf0]  ;;  %v2893_v27 = vld [vmem:[%s3543_s22 + $0xf4] sm:$0xf] }
  0xe1   : > { %v1154_v41 = vpop.f32.mrf.mxu0 }
  0xe2   : > { %v1155_v43 = vadd.f32 %v3629_v61, %v1154_v41  ;;  %v1483_v44 = vpop.f32.mrf.mxu1  ;;  %v1642_v59 = vadd.f32 %v1641_v40, %v1313_v45 }
  0xe4   : > { %v1484_v46 = vadd.f32 %v1483_v44, %v1155_v43  ;;  %v1856_v6 = vmax.f32 %v1642_v59, 0.0 }
  0xe6   : > { %v1793_v54 = vmax.f32 %v1484_v46, 0.0 }
  0xe7   : > { %v1314_v57 = vpop.f32.mrf.mxu2 }
  0xe8   : > { %v3025_v60 = vpack.c.bf16 %v1793_v54, %v1792_v53  ;;  %v1315_v62 = vadd.f32 %v3629_v61, %v1314_v57  ;;  %v1643_v63 = vpop.f32.mrf.mxu3  ;;  %v2892_v53 = vld [vmem:[%s3543_s22 + $0xe4] sm:$0xf0]  ;;  %v2654_v54 = vld [vmem:[%s3543_s22 + $0x2e0] sm:$0xf]  ;;  %v2400_v57 = vld [vmem:[%s3543_s22 + $0xe8] sm:$0xf0] }
  0xe9   : > { %v1157_v1 = vpop.f32.mrf.mxu0 }
  0xea   : > { %3329 = vst [vmem:[%s3646_s8 + $0x18] sm:$0xff] %v3025_v60   ;;  %v1644_v4 = vadd.f32 %v1643_v63, %v1315_v62  ;;  %v1486_v5 = vpop.f32.mrf.mxu1  ;;  %v1158_v9 = vadd.f32 %v3629_v61, %v1157_v1  ;;  %v2955_v60 = vld [vmem:[%s3543_s22 + $0x2e4] sm:$0xf]  ;;  %v2656_v62 = vld [vmem:[%s3543_s22 + $0x2e8] sm:$0xf0] }
  0xec   : > { %v1857_v7 = vmax.f32 %v1644_v4, 0.0  ;;  %1196 = vmatmul.bf16.gmra.mxu0 %v2383_v58  ;;  %1356 = vmatmul.bf16.gmra.mxu2 %v2639_v0  ;;  %v1487_v13 = vadd.f32 %v1486_v5, %v1158_v9  ;;  %v2399_v0 = vor.u32 %v2892_v53, %v2398_v52  ;;  %v2655_v5 = vor.u32 %v2956_v55, %v2654_v54 }
  0xed   : > { %1525 = vmatmul.bf16.gmra.mxu1 %v2387_v2  ;;  %1685 = vmatmul.bf16.gmra.mxu3 %v2643_v3 }
  0xee   : > { %v3185_v8 = vpack.c.bf16 %v1857_v7, %v1856_v6  ;;  %v1794_v24 = vmax.f32 %v1487_v13, 0.0  ;;  %v2403_v7 = vor.u32 %v2891_v56, %v2400_v57  ;;  %v2414_v57 = vld [vmem:[%s3543_s22 + $0x100] sm:$0xf] }
  0xef   : > { %v1317_v10 = vpop.f32.mrf.mxu2 }
  0xf0   : > { %3361 = vst [vmem:[%s3646_s8 + $0x118] sm:$0xff] %v3185_v8   ;;  %v1646_v11 = vpop.f32.mrf.mxu3  ;;  %v1318_v16 = vadd.f32 %v3629_v61, %v1317_v10  ;;  %v2659_v8 = vor.u32 %v2955_v60, %v2656_v62  ;;  %v2960_v60 = vld [vmem:[%s3543_s22 + $0x304] sm:$0xf0]  ;;  %v2895_v62 = vld [vmem:[%s3543_s22 + $0x104] sm:$0xf] }
  0xf1   : > { %v1159_v12 = vpop.f32.mrf.mxu0 }
  0xf2   : > { %v1160_v14 = vadd.f32 %v3629_v61, %v1159_v12  ;;  %v1488_v15 = vpop.f32.mrf.mxu1  ;;  %v1647_v30 = vadd.f32 %v1646_v11, %v1318_v16 }
  0xf4   : > { %v1489_v17 = vadd.f32 %v1488_v15, %v1160_v14  ;;  %v1858_v40 = vmax.f32 %v1647_v30, 0.0 }
  0xf6   : > { %v1795_v25 = vmax.f32 %v1489_v17, 0.0 }
  0xf7   : > { %v1319_v28 = vpop.f32.mrf.mxu2 }
  0xf8   : > { %v3030_v31 = vpack.c.bf16 %v1795_v25, %v1794_v24  ;;  %v1320_v32 = vadd.f32 %v3629_v61, %v1319_v28  ;;  %v1648_v33 = vpop.f32.mrf.mxu3  ;;  %v2894_v24 = vld [vmem:[%s3543_s22 + $0xf4] sm:$0xf0]  ;;  %v2662_v25 = vld [vmem:[%s3543_s22 + $0x2f0] sm:$0xf]  ;;  %v2408_v28 = vld [vmem:[%s3543_s22 + $0xf8] sm:$0xf0] }
  0xf9   : > { %v1162_v35 = vpop.f32.mrf.mxu0 }
  0xfa   : > { %3330 = vst [vmem:[%s3646_s8 + $0x20] sm:$0xff] %v3030_v31   ;;  %v1649_v38 = vadd.f32 %v1648_v33, %v1320_v32  ;;  %v1491_v39 = vpop.f32.mrf.mxu1  ;;  %v1163_v43 = vadd.f32 %v3629_v61, %v1162_v35  ;;  %v2957_v31 = vld [vmem:[%s3543_s22 + $0x2f4] sm:$0xf]  ;;  %v2664_v32 = vld [vmem:[%s3543_s22 + $0x2f8] sm:$0xf0] }
  0xfc   : > { %v1859_v41 = vmax.f32 %v1649_v38, 0.0  ;;  %1201 = vmatmul.bf16.gmra.mxu0 %v2391_v29  ;;  %1361 = vmatmul.bf16.gmra.mxu2 %v2647_v34  ;;  %v1492_v47 = vadd.f32 %v1491_v39, %v1163_v43  ;;  %v2407_v34 = vor.u32 %v2894_v24, %v2406_v23  ;;  %v2663_v39 = vor.u32 %v2958_v26, %v2662_v25 }
  0xfd   : > { %1530 = vmatmul.bf16.gmra.mxu1 %v2395_v36  ;;  %1690 = vmatmul.bf16.gmra.mxu3 %v2651_v37 }
  0xfe   : > { %v3190_v42 = vpack.c.bf16 %v1859_v41, %v1858_v40  ;;  %v1796_v58 = vmax.f32 %v1492_v47, 0.0  ;;  %v2411_v41 = vor.u32 %v2893_v27, %v2408_v28  ;;  %v2422_v28 = vld [vmem:[%s3543_s22 + $0x110] sm:$0xf] }
  0xff   : > { %v1322_v44 = vpop.f32.mrf.mxu2 }
 0x100   : > { %3362 = vst [vmem:[%s3646_s8 + $0x120] sm:$0xff] %v3190_v42   ;;  %v1651_v45 = vpop.f32.mrf.mxu3  ;;  %v1323_v50 = vadd.f32 %v3629_v61, %v1322_v44  ;;  %v2667_v42 = vor.u32 %v2957_v31, %v2664_v32  ;;  %v2962_v31 = vld [vmem:[%s3543_s22 + $0x314] sm:$0xf0]  ;;  %v2897_v32 = vld [vmem:[%s3543_s22 + $0x114] sm:$0xf] }
 0x101   : > { %v1164_v46 = vpop.f32.mrf.mxu0 }
 0x102   : > { %v1165_v48 = vadd.f32 %v3629_v61, %v1164_v46  ;;  %v1493_v49 = vpop.f32.mrf.mxu1  ;;  %v1652_v1 = vadd.f32 %v1651_v45, %v1323_v50 }
 0x104   : > { %v1494_v51 = vadd.f32 %v1493_v49, %v1165_v48  ;;  %v1860_v11 = vmax.f32 %v1652_v1, 0.0 }
 0x106   : > { %v1797_v59 = vmax.f32 %v1494_v51, 0.0 }
 0x107   : > { %v1324_v63 = vpop.f32.mrf.mxu2 }
 0x108   : > { %v3035_v2 = vpack.c.bf16 %v1797_v59, %v1796_v58  ;;  %v1325_v3 = vadd.f32 %v3629_v61, %v1324_v63  ;;  %v1653_v4 = vpop.f32.mrf.mxu3  ;;  %v2896_v58 = vld [vmem:[%s3543_s22 + $0x104] sm:$0xf0]  ;;  %v2670_v59 = vld [vmem:[%s3543_s22 + $0x300] sm:$0xf]  ;;  %v2416_v63 = vld [vmem:[%s3543_s22 + $0x108] sm:$0xf0] }
 0x109   : > { %v1167_v6 = vpop.f32.mrf.mxu0 }
 0x10a   : > { %3331 = vst [vmem:[%s3646_s8 + $0x28] sm:$0xff] %v3035_v2   ;;  %v1654_v9 = vadd.f32 %v1653_v4, %v1325_v3  ;;  %v1496_v10 = vpop.f32.mrf.mxu1  ;;  %v1168_v14 = vadd.f32 %v3629_v61, %v1167_v6  ;;  %v2959_v2 = vld [vmem:[%s3543_s22 + $0x304] sm:$0xf]  ;;  %v2672_v3 = vld [vmem:[%s3543_s22 + $0x308] sm:$0xf0] }
 0x10c   : > { %v1861_v12 = vmax.f32 %v1654_v9, 0.0  ;;  %1206 = vmatmul.bf16.gmra.mxu0 %v2399_v0  ;;  %1366 = vmatmul.bf16.gmra.mxu2 %v2655_v5  ;;  %v1497_v18 = vadd.f32 %v1496_v10, %v1168_v14  ;;  %v2415_v5 = vor.u32 %v2896_v58, %v2414_v57  ;;  %v2671_v10 = vor.u32 %v2960_v60, %v2670_v59 }
 0x10d   : > { %1535 = vmatmul.bf16.gmra.mxu1 %v2403_v7  ;;  %1695 = vmatmul.bf16.gmra.mxu3 %v2659_v8 }
 0x10e   : > { %v3195_v13 = vpack.c.bf16 %v1861_v12, %v1860_v11  ;;  %v1798_v29 = vmax.f32 %v1497_v18, 0.0  ;;  %v2419_v12 = vor.u32 %v2895_v62, %v2416_v63  ;;  %v2430_v63 = vld [vmem:[%s3543_s22 + $0x120] sm:$0xf] }
 0x10f   : > { %v1327_v15 = vpop.f32.mrf.mxu2 }
 0x110   : > { %3363 = vst [vmem:[%s3646_s8 + $0x128] sm:$0xff] %v3195_v13   ;;  %v1656_v16 = vpop.f32.mrf.mxu3  ;;  %v1328_v21 = vadd.f32 %v3629_v61, %v1327_v15  ;;  %v2675_v13 = vor.u32 %v2959_v2, %v2672_v3  ;;  %v2964_v2 = vld [vmem:[%s3543_s22 + $0x324] sm:$0xf0]  ;;  %v2899_v3 = vld [vmem:[%s3543_s22 + $0x124] sm:$0xf] }
 0x111   : > { %v1169_v17 = vpop.f32.mrf.mxu0 }
 0x112   : > { %v1170_v19 = vadd.f32 %v3629_v61, %v1169_v17  ;;  %v1498_v20 = vpop.f32.mrf.mxu1  ;;  %v1657_v35 = vadd.f32 %v1656_v16, %v1328_v21 }
 0x114   : > { %v1499_v22 = vadd.f32 %v1498_v20, %v1170_v19  ;;  %v1862_v45 = vmax.f32 %v1657_v35, 0.0 }
 0x116   : > { %v1799_v30 = vmax.f32 %v1499_v22, 0.0 }
 0x117   : > { %v1329_v33 = vpop.f32.mrf.mxu2 }
 0x118   : > { %v3040_v36 = vpack.c.bf16 %v1799_v30, %v1798_v29  ;;  %v1330_v37 = vadd.f32 %v3629_v61, %v1329_v33  ;;  %v1658_v38 = vpop.f32.mrf.mxu3  ;;  %v2898_v29 = vld [vmem:[%s3543_s22 + $0x114] sm:$0xf0]  ;;  %v2678_v30 = vld [vmem:[%s3543_s22 + $0x310] sm:$0xf]  ;;  %v2424_v33 = vld [vmem:[%s3543_s22 + $0x118] sm:$0xf0] }
 0x119   : > { %v1172_v40 = vpop.f32.mrf.mxu0 }
 0x11a   : > { %3332 = vst [vmem:[%s3646_s8 + $0x30] sm:$0xff] %v3040_v36   ;;  %v1659_v43 = vadd.f32 %v1658_v38, %v1330_v37  ;;  %v1501_v44 = vpop.f32.mrf.mxu1  ;;  %v1173_v48 = vadd.f32 %v3629_v61, %v1172_v40  ;;  %v2961_v36 = vld [vmem:[%s3543_s22 + $0x314] sm:$0xf]  ;;  %v2680_v37 = vld [vmem:[%s3543_s22 + $0x318] sm:$0xf0] }
 0x11c   : > { %v1863_v46 = vmax.f32 %v1659_v43, 0.0  ;;  %1211 = vmatmul.bf16.gmra.mxu0 %v2407_v34  ;;  %1371 = vmatmul.bf16.gmra.mxu2 %v2663_v39  ;;  %v1502_v52 = vadd.f32 %v1501_v44, %v1173_v48  ;;  %v2423_v39 = vor.u32 %v2898_v29, %v2422_v28  ;;  %v2679_v44 = vor.u32 %v2962_v31, %v2678_v30 }
 0x11d   : > { %1540 = vmatmul.bf16.gmra.mxu1 %v2411_v41  ;;  %1700 = vmatmul.bf16.gmra.mxu3 %v2667_v42 }
 0x11e   : > { %v3200_v47 = vpack.c.bf16 %v1863_v46, %v1862_v45  ;;  %v1800_v0 = vmax.f32 %v1502_v52, 0.0  ;;  %v2427_v46 = vor.u32 %v2897_v32, %v2424_v33  ;;  %v2438_v33 = vld [vmem:[%s3543_s22 + $0x130] sm:$0xf] }
 0x11f   : > { %v1332_v49 = vpop.f32.mrf.mxu2 }
 0x120   : > { %3364 = vst [vmem:[%s3646_s8 + $0x130] sm:$0xff] %v3200_v47   ;;  %v1661_v50 = vpop.f32.mrf.mxu3  ;;  %v1333_v55 = vadd.f32 %v3629_v61, %v1332_v49  ;;  %v2683_v47 = vor.u32 %v2961_v36, %v2680_v37  ;;  %v2966_v36 = vld [vmem:[%s3543_s22 + $0x334] sm:$0xf0]  ;;  %v2901_v37 = vld [vmem:[%s3543_s22 + $0x134] sm:$0xf] }
 0x121   : > { %v1174_v51 = vpop.f32.mrf.mxu0 }
 0x122   : > { %v1175_v53 = vadd.f32 %v3629_v61, %v1174_v51  ;;  %v1503_v54 = vpop.f32.mrf.mxu1  ;;  %v1662_v6 = vadd.f32 %v1661_v50, %v1333_v55 }
 0x124   : > { %v1504_v56 = vadd.f32 %v1503_v54, %v1175_v53  ;;  %v1864_v16 = vmax.f32 %v1662_v6, 0.0 }
 0x126   : > { %v1801_v1 = vmax.f32 %v1504_v56, 0.0 }
 0x127   : > { %v1334_v4 = vpop.f32.mrf.mxu2 }
 0x128   : > { %v3045_v7 = vpack.c.bf16 %v1801_v1, %v1800_v0  ;;  %v1335_v8 = vadd.f32 %v3629_v61, %v1334_v4  ;;  %v1663_v9 = vpop.f32.mrf.mxu3  ;;  %v2900_v0 = vld [vmem:[%s3543_s22 + $0x124] sm:$0xf0]  ;;  %v2686_v1 = vld [vmem:[%s3543_s22 + $0x320] sm:$0xf]  ;;  %v2432_v4 = vld [vmem:[%s3543_s22 + $0x128] sm:$0xf0] }
 0x129   : > { %v1177_v11 = vpop.f32.mrf.mxu0 }
 0x12a   : > { %3333 = vst [vmem:[%s3646_s8 + $0x38] sm:$0xff] %v3045_v7   ;;  %v1664_v14 = vadd.f32 %v1663_v9, %v1335_v8  ;;  %v1506_v15 = vpop.f32.mrf.mxu1  ;;  %v1178_v19 = vadd.f32 %v3629_v61, %v1177_v11  ;;  %v2963_v7 = vld [vmem:[%s3543_s22 + $0x324] sm:$0xf]  ;;  %v2688_v8 = vld [vmem:[%s3543_s22 + $0x328] sm:$0xf0] }
 0x12c   : > { %v1865_v17 = vmax.f32 %v1664_v14, 0.0  ;;  %1216 = vmatmul.bf16.gmra.mxu0 %v2415_v5  ;;  %1376 = vmatmul.bf16.gmra.mxu2 %v2671_v10  ;;  %v1507_v23 = vadd.f32 %v1506_v15, %v1178_v19  ;;  %v2431_v10 = vor.u32 %v2900_v0, %v2430_v63  ;;  %v2687_v15 = vor.u32 %v2964_v2, %v2686_v1 }
 0x12d   : > { %1545 = vmatmul.bf16.gmra.mxu1 %v2419_v12  ;;  %1705 = vmatmul.bf16.gmra.mxu3 %v2675_v13 }
 0x12e   : > { %v3205_v18 = vpack.c.bf16 %v1865_v17, %v1864_v16  ;;  %v1802_v34 = vmax.f32 %v1507_v23, 0.0  ;;  %v2435_v17 = vor.u32 %v2899_v3, %v2432_v4  ;;  %v2446_v4 = vld [vmem:[%s3543_s22 + $0x140] sm:$0xf] }
 0x12f   : > { %v1337_v20 = vpop.f32.mrf.mxu2 }
 0x130   : > { %3365 = vst [vmem:[%s3646_s8 + $0x138] sm:$0xff] %v3205_v18   ;;  %v1666_v21 = vpop.f32.mrf.mxu3  ;;  %v1338_v26 = vadd.f32 %v3629_v61, %v1337_v20  ;;  %v2691_v18 = vor.u32 %v2963_v7, %v2688_v8  ;;  %v2968_v7 = vld [vmem:[%s3543_s22 + $0x344] sm:$0xf0]  ;;  %v2903_v8 = vld [vmem:[%s3543_s22 + $0x144] sm:$0xf] }
 0x131   : > { %v1179_v22 = vpop.f32.mrf.mxu0 }
 0x132   : > { %v1180_v24 = vadd.f32 %v3629_v61, %v1179_v22  ;;  %v1508_v25 = vpop.f32.mrf.mxu1  ;;  %v1667_v40 = vadd.f32 %v1666_v21, %v1338_v26 }
 0x134   : > { %v1509_v27 = vadd.f32 %v1508_v25, %v1180_v24  ;;  %v1866_v50 = vmax.f32 %v1667_v40, 0.0 }
 0x136   : > { %v1803_v35 = vmax.f32 %v1509_v27, 0.0 }
 0x137   : > { %v1339_v38 = vpop.f32.mrf.mxu2 }
 0x138   : > { %v3050_v41 = vpack.c.bf16 %v1803_v35, %v1802_v34  ;;  %v1340_v42 = vadd.f32 %v3629_v61, %v1339_v38  ;;  %v1668_v43 = vpop.f32.mrf.mxu3  ;;  %v2902_v34 = vld [vmem:[%s3543_s22 + $0x134] sm:$0xf0]  ;;  %v2694_v35 = vld [vmem:[%s3543_s22 + $0x330] sm:$0xf]  ;;  %v2440_v38 = vld [vmem:[%s3543_s22 + $0x138] sm:$0xf0] }
 0x139   : > { %v1182_v45 = vpop.f32.mrf.mxu0 }
 0x13a   : > { %3334 = vst [vmem:[%s3646_s8 + $0x40] sm:$0xff] %v3050_v41   ;;  %v1669_v48 = vadd.f32 %v1668_v43, %v1340_v42  ;;  %v1511_v49 = vpop.f32.mrf.mxu1  ;;  %v1183_v53 = vadd.f32 %v3629_v61, %v1182_v45  ;;  %v2965_v41 = vld [vmem:[%s3543_s22 + $0x334] sm:$0xf]  ;;  %v2696_v42 = vld [vmem:[%s3543_s22 + $0x338] sm:$0xf0] }
 0x13c   : > { %v1867_v51 = vmax.f32 %v1669_v48, 0.0  ;;  %1221 = vmatmul.bf16.gmra.mxu0 %v2423_v39  ;;  %1381 = vmatmul.bf16.gmra.mxu2 %v2679_v44  ;;  %v1512_v57 = vadd.f32 %v1511_v49, %v1183_v53  ;;  %v2439_v44 = vor.u32 %v2902_v34, %v2438_v33  ;;  %v2695_v49 = vor.u32 %v2966_v36, %v2694_v35 }
 0x13d   : > { %1550 = vmatmul.bf16.gmra.mxu1 %v2427_v46  ;;  %1710 = vmatmul.bf16.gmra.mxu3 %v2683_v47 }
 0x13e   : > { %v3210_v52 = vpack.c.bf16 %v1867_v51, %v1866_v50  ;;  %v1804_v5 = vmax.f32 %v1512_v57, 0.0  ;;  %v2443_v51 = vor.u32 %v2901_v37, %v2440_v38  ;;  %v2454_v38 = vld [vmem:[%s3543_s22 + $0x150] sm:$0xf] }
 0x13f   : > { %v1342_v54 = vpop.f32.mrf.mxu2 }
 0x140   : > { %3366 = vst [vmem:[%s3646_s8 + $0x140] sm:$0xff] %v3210_v52   ;;  %v1671_v55 = vpop.f32.mrf.mxu3  ;;  %v1343_v60 = vadd.f32 %v3629_v61, %v1342_v54  ;;  %v2699_v52 = vor.u32 %v2965_v41, %v2696_v42  ;;  %v2970_v41 = vld [vmem:[%s3543_s22 + $0x354] sm:$0xf0]  ;;  %v2905_v42 = vld [vmem:[%s3543_s22 + $0x154] sm:$0xf] }
 0x141   : > { %v1184_v56 = vpop.f32.mrf.mxu0 }
 0x142   : > { %v1185_v58 = vadd.f32 %v3629_v61, %v1184_v56  ;;  %v1513_v59 = vpop.f32.mrf.mxu1  ;;  %v1672_v11 = vadd.f32 %v1671_v55, %v1343_v60 }
 0x144   : > { %v1514_v62 = vadd.f32 %v1513_v59, %v1185_v58  ;;  %v1868_v21 = vmax.f32 %v1672_v11, 0.0 }
 0x146   : > { %v1805_v6 = vmax.f32 %v1514_v62, 0.0 }
 0x147   : > { %v1344_v9 = vpop.f32.mrf.mxu2 }
 0x148   : > { %v3055_v12 = vpack.c.bf16 %v1805_v6, %v1804_v5  ;;  %v1345_v13 = vadd.f32 %v3629_v61, %v1344_v9  ;;  %v1673_v14 = vpop.f32.mrf.mxu3  ;;  %v2904_v5 = vld [vmem:[%s3543_s22 + $0x144] sm:$0xf0]  ;;  %v2702_v6 = vld [vmem:[%s3543_s22 + $0x340] sm:$0xf]  ;;  %v2448_v9 = vld [vmem:[%s3543_s22 + $0x148] sm:$0xf0] }
 0x149   : > { %v1187_v16 = vpop.f32.mrf.mxu0 }
 0x14a   : > { %3335 = vst [vmem:[%s3646_s8 + $0x48] sm:$0xff] %v3055_v12   ;;  %v1674_v19 = vadd.f32 %v1673_v14, %v1345_v13  ;;  %v1516_v20 = vpop.f32.mrf.mxu1  ;;  %v1188_v24 = vadd.f32 %v3629_v61, %v1187_v16  ;;  %v2967_v12 = vld [vmem:[%s3543_s22 + $0x344] sm:$0xf]  ;;  %v2704_v13 = vld [vmem:[%s3543_s22 + $0x348] sm:$0xf0] }
 0x14c   : > { %v1869_v22 = vmax.f32 %v1674_v19, 0.0  ;;  %1226 = vmatmul.bf16.gmra.mxu0 %v2431_v10  ;;  %1386 = vmatmul.bf16.gmra.mxu2 %v2687_v15  ;;  %v1517_v28 = vadd.f32 %v1516_v20, %v1188_v24  ;;  %v2447_v15 = vor.u32 %v2904_v5, %v2446_v4  ;;  %v2703_v20 = vor.u32 %v2968_v7, %v2702_v6 }
 0x14d   : > { %1555 = vmatmul.bf16.gmra.mxu1 %v2435_v17  ;;  %1715 = vmatmul.bf16.gmra.mxu3 %v2691_v18 }
 0x14e   : > { %v3215_v23 = vpack.c.bf16 %v1869_v22, %v1868_v21  ;;  %v1806_v39 = vmax.f32 %v1517_v28, 0.0  ;;  %v2451_v22 = vor.u32 %v2903_v8, %v2448_v9  ;;  %v2462_v9 = vld [vmem:[%s3543_s22 + $0x160] sm:$0xf] }
 0x14f   : > { %v1347_v25 = vpop.f32.mrf.mxu2 }
 0x150   : > { %3367 = vst [vmem:[%s3646_s8 + $0x148] sm:$0xff] %v3215_v23   ;;  %v1676_v26 = vpop.f32.mrf.mxu3  ;;  %v1348_v31 = vadd.f32 %v3629_v61, %v1347_v25  ;;  %v2707_v23 = vor.u32 %v2967_v12, %v2704_v13  ;;  %v2972_v12 = vld [vmem:[%s3543_s22 + $0x364] sm:$0xf0]  ;;  %v2907_v13 = vld [vmem:[%s3543_s22 + $0x164] sm:$0xf] }
 0x151   : > { %v1189_v27 = vpop.f32.mrf.mxu0 }
 0x152   : > { %v1190_v29 = vadd.f32 %v3629_v61, %v1189_v27  ;;  %v1518_v30 = vpop.f32.mrf.mxu1  ;;  %v1677_v45 = vadd.f32 %v1676_v26, %v1348_v31 }
 0x154   : > { %v1519_v32 = vadd.f32 %v1518_v30, %v1190_v29  ;;  %v1870_v55 = vmax.f32 %v1677_v45, 0.0 }
 0x156   : > { %v1807_v40 = vmax.f32 %v1519_v32, 0.0 }
 0x157   : > { %v1349_v43 = vpop.f32.mrf.mxu2 }
 0x158   : > { %v3060_v46 = vpack.c.bf16 %v1807_v40, %v1806_v39  ;;  %v1350_v47 = vadd.f32 %v3629_v61, %v1349_v43  ;;  %v1678_v48 = vpop.f32.mrf.mxu3  ;;  %v2906_v39 = vld [vmem:[%s3543_s22 + $0x154] sm:$0xf0]  ;;  %v2710_v40 = vld [vmem:[%s3543_s22 + $0x350] sm:$0xf]  ;;  %v2456_v43 = vld [vmem:[%s3543_s22 + $0x158] sm:$0xf0] }
 0x159   : > { %v1192_v50 = vpop.f32.mrf.mxu0 }
 0x15a   : > { %3336 = vst [vmem:[%s3646_s8 + $0x50] sm:$0xff] %v3060_v46   ;;  %v1679_v53 = vadd.f32 %v1678_v48, %v1350_v47  ;;  %v1521_v54 = vpop.f32.mrf.mxu1  ;;  %v1193_v58 = vadd.f32 %v3629_v61, %v1192_v50  ;;  %v2969_v46 = vld [vmem:[%s3543_s22 + $0x354] sm:$0xf]  ;;  %v2712_v47 = vld [vmem:[%s3543_s22 + $0x358] sm:$0xf0] }
 0x15c   : > { %v1871_v56 = vmax.f32 %v1679_v53, 0.0  ;;  %1231 = vmatmul.bf16.gmra.mxu0 %v2439_v44  ;;  %1391 = vmatmul.bf16.gmra.mxu2 %v2695_v49  ;;  %v1522_v63 = vadd.f32 %v1521_v54, %v1193_v58  ;;  %v2455_v49 = vor.u32 %v2906_v39, %v2454_v38  ;;  %v2711_v54 = vor.u32 %v2970_v41, %v2710_v40 }
 0x15d   : > { %1560 = vmatmul.bf16.gmra.mxu1 %v2443_v51  ;;  %1720 = vmatmul.bf16.gmra.mxu3 %v2699_v52 }
 0x15e   : > { %v3220_v57 = vpack.c.bf16 %v1871_v56, %v1870_v55  ;;  %v1808_v10 = vmax.f32 %v1522_v63, 0.0  ;;  %v2459_v56 = vor.u32 %v2905_v42, %v2456_v43  ;;  %v3821_v63 = vld [vmem:[%s4034_s2] ss:$0 sm:$0xff]  ;;  %v2470_v43 = vld [vmem:[%s3543_s22 + $0x170] sm:$0xf] }
 0x15f   : > { %v1352_v59 = vpop.f32.mrf.mxu2 }
 0x160   : > { %3368 = vst [vmem:[%s3646_s8 + $0x150] sm:$0xff] %v3220_v57   ;;  %v1681_v60 = vpop.f32.mrf.mxu3  ;;  %v1353_v2 = vadd.f32 %v3629_v61, %v1352_v59  ;;  %v2715_v57 = vor.u32 %v2969_v46, %v2712_v47  ;;  %v2974_v46 = vld [vmem:[%s3543_s22 + $0x374] sm:$0xf0]  ;;  %v2909_v47 = vld [vmem:[%s3543_s22 + $0x174] sm:$0xf] }
 0x161   : > { %v1194_v62 = vpop.f32.mrf.mxu0 }
 0x162   : > { %v1195_v0 = vadd.f32 %v3629_v61, %v1194_v62  ;;  %v1523_v1 = vpop.f32.mrf.mxu1  ;;  %v1682_v16 = vadd.f32 %v1681_v60, %v1353_v2 }
 0x164   : > { %v1524_v3 = vadd.f32 %v1523_v1, %v1195_v0  ;;  %v1872_v26 = vmax.f32 %v1682_v16, 0.0 }
 0x166   : > { %v1809_v11 = vmax.f32 %v1524_v3, 0.0 }
 0x167   : > { %v1354_v14 = vpop.f32.mrf.mxu2 }
 0x168   : > { %v3065_v17 = vpack.c.bf16 %v1809_v11, %v1808_v10  ;;  %v1355_v18 = vadd.f32 %v3629_v61, %v1354_v14  ;;  %v1683_v19 = vpop.f32.mrf.mxu3  ;;  %v2908_v10 = vld [vmem:[%s3543_s22 + $0x164] sm:$0xf0]  ;;  %v2718_v11 = vld [vmem:[%s3543_s22 + $0x360] sm:$0xf]  ;;  %v2464_v14 = vld [vmem:[%s3543_s22 + $0x168] sm:$0xf0] }
 0x169   : > { %v1197_v21 = vpop.f32.mrf.mxu0 }
 0x16a   : > { %3337 = vst [vmem:[%s3646_s8 + $0x58] sm:$0xff] %v3065_v17   ;;  %v1684_v24 = vadd.f32 %v1683_v19, %v1355_v18  ;;  %v1526_v25 = vpop.f32.mrf.mxu1  ;;  %v1198_v29 = vadd.f32 %v3629_v61, %v1197_v21  ;;  %v2971_v17 = vld [vmem:[%s3543_s22 + $0x364] sm:$0xf]  ;;  %v2720_v18 = vld [vmem:[%s3543_s22 + $0x368] sm:$0xf0] }
 0x16c   : > { %v1873_v27 = vmax.f32 %v1684_v24, 0.0  ;;  %1236 = vmatmul.bf16.gmra.mxu0 %v2447_v15  ;;  %1396 = vmatmul.bf16.gmra.mxu2 %v2703_v20  ;;  %v1527_v33 = vadd.f32 %v1526_v25, %v1198_v29  ;;  %v2463_v20 = vor.u32 %v2908_v10, %v2462_v9  ;;  %v2719_v25 = vor.u32 %v2972_v12, %v2718_v11 }
 0x16d   : > { %1565 = vmatmul.bf16.gmra.mxu1 %v2451_v22  ;;  %1725 = vmatmul.bf16.gmra.mxu3 %v2707_v23 }
 0x16e   : > { %v3225_v28 = vpack.c.bf16 %v1873_v27, %v1872_v26  ;;  %v1810_v44 = vmax.f32 %v1527_v33, 0.0  ;;  %v2467_v27 = vor.u32 %v2907_v13, %v2464_v14  ;;  %v2478_v14 = vld [vmem:[%s3543_s22 + $0x180] sm:$0xf] }
 0x16f   : > { %v1357_v30 = vpop.f32.mrf.mxu2 }
 0x170   : > { %3369 = vst [vmem:[%s3646_s8 + $0x158] sm:$0xff] %v3225_v28   ;;  %v1686_v31 = vpop.f32.mrf.mxu3  ;;  %v1358_v36 = vadd.f32 %v3629_v61, %v1357_v30  ;;  %v2723_v28 = vor.u32 %v2971_v17, %v2720_v18  ;;  %v2976_v17 = vld [vmem:[%s3543_s22 + $0x384] sm:$0xf0]  ;;  %v2911_v18 = vld [vmem:[%s3543_s22 + $0x184] sm:$0xf] }
 0x171   : > { %v1199_v32 = vpop.f32.mrf.mxu0 }
 0x172   : > { %v1200_v34 = vadd.f32 %v3629_v61, %v1199_v32  ;;  %v1528_v35 = vpop.f32.mrf.mxu1  ;;  %v1687_v50 = vadd.f32 %v1686_v31, %v1358_v36 }
 0x174   : > { %v1529_v37 = vadd.f32 %v1528_v35, %v1200_v34  ;;  %v1874_v60 = vmax.f32 %v1687_v50, 0.0 }
 0x176   : > { %v1811_v45 = vmax.f32 %v1529_v37, 0.0 }
 0x177   : > { %v1359_v48 = vpop.f32.mrf.mxu2 }
 0x178   : > { %v3070_v51 = vpack.c.bf16 %v1811_v45, %v1810_v44  ;;  %v1360_v52 = vadd.f32 %v3629_v61, %v1359_v48  ;;  %v1688_v53 = vpop.f32.mrf.mxu3  ;;  %v2910_v44 = vld [vmem:[%s3543_s22 + $0x174] sm:$0xf0]  ;;  %v2726_v45 = vld [vmem:[%s3543_s22 + $0x370] sm:$0xf]  ;;  %v2472_v48 = vld [vmem:[%s3543_s22 + $0x178] sm:$0xf0] }
 0x179   : > { %v1202_v55 = vpop.f32.mrf.mxu0 }
 0x17a   : > { %3338 = vst [vmem:[%s3646_s8 + $0x60] sm:$0xff] %v3070_v51   ;;  %v1689_v58 = vadd.f32 %v1688_v53, %v1360_v52  ;;  %v1531_v59 = vpop.f32.mrf.mxu1  ;;  %v1203_v0 = vadd.f32 %v3821_v63, %v1202_v55  ;;  %v2973_v51 = vld [vmem:[%s3543_s22 + $0x374] sm:$0xf]  ;;  %v2728_v52 = vld [vmem:[%s3543_s22 + $0x378] sm:$0xf0] }
 0x17c   : > { %v1875_v62 = vmax.f32 %v1689_v58, 0.0  ;;  %1241 = vmatmul.bf16.gmra.mxu0 %v2455_v49  ;;  %1401 = vmatmul.bf16.gmra.mxu2 %v2711_v54  ;;  %v1532_v4 = vadd.f32 %v1531_v59, %v1203_v0  ;;  %v2471_v54 = vor.u32 %v2910_v44, %v2470_v43  ;;  %v2727_v59 = vor.u32 %v2974_v46, %v2726_v45 }
 0x17d   : > { %1570 = vmatmul.bf16.gmra.mxu1 %v2459_v56  ;;  %1730 = vmatmul.bf16.gmra.mxu3 %v2715_v57 }
 0x17e   : > { %v3230_v61 = vpack.c.bf16 %v1875_v62, %v1874_v60  ;;  %v1812_v15 = vmax.f32 %v1532_v4, 0.0  ;;  %v2475_v62 = vor.u32 %v2909_v47, %v2472_v48  ;;  %v2486_v48 = vld [vmem:[%s3543_s22 + $0x190] sm:$0xf] }
 0x17f   : > { %v1362_v1 = vpop.f32.mrf.mxu2 }
 0x180   : > { %3370 = vst [vmem:[%s3646_s8 + $0x160] sm:$0xff] %v3230_v61   ;;  %v1691_v2 = vpop.f32.mrf.mxu3  ;;  %v1363_v7 = vadd.f32 %v3821_v63, %v1362_v1  ;;  %v2731_v61 = vor.u32 %v2973_v51, %v2728_v52  ;;  %v2978_v51 = vld [vmem:[%s3543_s22 + $0x394] sm:$0xf0]  ;;  %v2913_v52 = vld [vmem:[%s3543_s22 + $0x194] sm:$0xf] }
 0x181   : > { %v1204_v3 = vpop.f32.mrf.mxu0 }
 0x182   : > { %v1205_v5 = vadd.f32 %v3821_v63, %v1204_v3  ;;  %v1533_v6 = vpop.f32.mrf.mxu1  ;;  %v1692_v21 = vadd.f32 %v1691_v2, %v1363_v7 }
 0x184   : > { %v1534_v8 = vadd.f32 %v1533_v6, %v1205_v5  ;;  %v1876_v31 = vmax.f32 %v1692_v21, 0.0 }
 0x186   : > { %v1813_v16 = vmax.f32 %v1534_v8, 0.0 }
 0x187   : > { %v1364_v19 = vpop.f32.mrf.mxu2 }
 0x188   : > { %v3075_v22 = vpack.c.bf16 %v1813_v16, %v1812_v15  ;;  %v1365_v23 = vadd.f32 %v3821_v63, %v1364_v19  ;;  %v1693_v24 = vpop.f32.mrf.mxu3  ;;  %v2912_v15 = vld [vmem:[%s3543_s22 + $0x184] sm:$0xf0]  ;;  %v2734_v16 = vld [vmem:[%s3543_s22 + $0x380] sm:$0xf]  ;;  %v2480_v19 = vld [vmem:[%s3543_s22 + $0x188] sm:$0xf0] }
 0x189   : > { %v1207_v26 = vpop.f32.mrf.mxu0 }
 0x18a   : > { %3339 = vst [vmem:[%s3646_s8 + $0x68] sm:$0xff] %v3075_v22   ;;  %v1694_v29 = vadd.f32 %v1693_v24, %v1365_v23  ;;  %v1536_v30 = vpop.f32.mrf.mxu1  ;;  %v1208_v34 = vadd.f32 %v3821_v63, %v1207_v26  ;;  %v2975_v22 = vld [vmem:[%s3543_s22 + $0x384] sm:$0xf]  ;;  %v2736_v23 = vld [vmem:[%s3543_s22 + $0x388] sm:$0xf0] }
 0x18c   : > { %v1877_v32 = vmax.f32 %v1694_v29, 0.0  ;;  %1246 = vmatmul.bf16.gmra.mxu0 %v2463_v20  ;;  %1406 = vmatmul.bf16.gmra.mxu2 %v2719_v25  ;;  %v1537_v38 = vadd.f32 %v1536_v30, %v1208_v34  ;;  %v2479_v25 = vor.u32 %v2912_v15, %v2478_v14  ;;  %v2735_v30 = vor.u32 %v2976_v17, %v2734_v16 }
 0x18d   : > { %1575 = vmatmul.bf16.gmra.mxu1 %v2467_v27  ;;  %1735 = vmatmul.bf16.gmra.mxu3 %v2723_v28 }
 0x18e   : > { %v3235_v33 = vpack.c.bf16 %v1877_v32, %v1876_v31  ;;  %v1814_v49 = vmax.f32 %v1537_v38, 0.0  ;;  %v2483_v32 = vor.u32 %v2911_v18, %v2480_v19  ;;  %v2494_v19 = vld [vmem:[%s3543_s22 + $0x1a0] sm:$0xf] }
 0x18f   : > { %v1367_v35 = vpop.f32.mrf.mxu2 }
 0x190   : > { %3371 = vst [vmem:[%s3646_s8 + $0x168] sm:$0xff] %v3235_v33   ;;  %v1696_v36 = vpop.f32.mrf.mxu3  ;;  %v1368_v41 = vadd.f32 %v3821_v63, %v1367_v35  ;;  %v2739_v33 = vor.u32 %v2975_v22, %v2736_v23  ;;  %v2980_v22 = vld [vmem:[%s3543_s22 + $0x3a4] sm:$0xf0]  ;;  %v2915_v23 = vld [vmem:[%s3543_s22 + $0x1a4] sm:$0xf] }
 0x191   : > { %v1209_v37 = vpop.f32.mrf.mxu0 }
 0x192   : > { %v1210_v39 = vadd.f32 %v3821_v63, %v1209_v37  ;;  %v1538_v40 = vpop.f32.mrf.mxu1  ;;  %v1697_v55 = vadd.f32 %v1696_v36, %v1368_v41 }
 0x194   : > { %v1539_v42 = vadd.f32 %v1538_v40, %v1210_v39  ;;  %v1878_v2 = vmax.f32 %v1697_v55, 0.0 }
 0x196   : > { %v1815_v50 = vmax.f32 %v1539_v42, 0.0 }
 0x197   : > { %v1369_v53 = vpop.f32.mrf.mxu2 }
 0x198   : > { %v3080_v56 = vpack.c.bf16 %v1815_v50, %v1814_v49  ;;  %v1370_v57 = vadd.f32 %v3821_v63, %v1369_v53  ;;  %v1698_v58 = vpop.f32.mrf.mxu3  ;;  %v2914_v49 = vld [vmem:[%s3543_s22 + $0x194] sm:$0xf0]  ;;  %v2742_v50 = vld [vmem:[%s3543_s22 + $0x390] sm:$0xf]  ;;  %v2488_v53 = vld [vmem:[%s3543_s22 + $0x198] sm:$0xf0] }
 0x199   : > { %v1212_v60 = vpop.f32.mrf.mxu0 }
 0x19a   : > { %3340 = vst [vmem:[%s3646_s8 + $0x70] sm:$0xff] %v3080_v56   ;;  %v1699_v0 = vadd.f32 %v1698_v58, %v1370_v57  ;;  %v1541_v1 = vpop.f32.mrf.mxu1  ;;  %v1213_v5 = vadd.f32 %v3821_v63, %v1212_v60  ;;  %v2977_v56 = vld [vmem:[%s3543_s22 + $0x394] sm:$0xf]  ;;  %v2744_v57 = vld [vmem:[%s3543_s22 + $0x398] sm:$0xf0] }
 0x19c   : > { %v1879_v3 = vmax.f32 %v1699_v0, 0.0  ;;  %1251 = vmatmul.bf16.gmra.mxu0 %v2471_v54  ;;  %1411 = vmatmul.bf16.gmra.mxu2 %v2727_v59  ;;  %v1542_v9 = vadd.f32 %v1541_v1, %v1213_v5  ;;  %v2487_v59 = vor.u32 %v2914_v49, %v2486_v48  ;;  %v2743_v1 = vor.u32 %v2978_v51, %v2742_v50 }
 0x19d   : > { %1580 = vmatmul.bf16.gmra.mxu1 %v2475_v62  ;;  %1740 = vmatmul.bf16.gmra.mxu3 %v2731_v61 }
 0x19e   : > { %v3240_v4 = vpack.c.bf16 %v1879_v3, %v1878_v2  ;;  %v1816_v20 = vmax.f32 %v1542_v9, 0.0  ;;  %v2491_v3 = vor.u32 %v2913_v52, %v2488_v53  ;;  %v2502_v53 = vld [vmem:[%s3543_s22 + $0x1b0] sm:$0xf] }
 0x19f   : > { %v1372_v6 = vpop.f32.mrf.mxu2 }
 0x1a0   : > { %3372 = vst [vmem:[%s3646_s8 + $0x170] sm:$0xff] %v3240_v4   ;;  %v1701_v7 = vpop.f32.mrf.mxu3  ;;  %v1373_v12 = vadd.f32 %v3821_v63, %v1372_v6  ;;  %v2747_v4 = vor.u32 %v2977_v56, %v2744_v57  ;;  %v2982_v56 = vld [vmem:[%s3543_s22 + $0x3b4] sm:$0xf0]  ;;  %v2917_v57 = vld [vmem:[%s3543_s22 + $0x1b4] sm:$0xf] }
 0x1a1   : > { %v1214_v8 = vpop.f32.mrf.mxu0 }
 0x1a2   : > { %v1215_v10 = vadd.f32 %v3821_v63, %v1214_v8  ;;  %v1543_v11 = vpop.f32.mrf.mxu1  ;;  %v1702_v26 = vadd.f32 %v1701_v7, %v1373_v12 }
 0x1a4   : > { %v1544_v13 = vadd.f32 %v1543_v11, %v1215_v10  ;;  %v1880_v36 = vmax.f32 %v1702_v26, 0.0 }
 0x1a6   : > { %v1817_v21 = vmax.f32 %v1544_v13, 0.0 }
 0x1a7   : > { %v1374_v24 = vpop.f32.mrf.mxu2 }
 0x1a8   : > { %v3085_v27 = vpack.c.bf16 %v1817_v21, %v1816_v20  ;;  %v1375_v28 = vadd.f32 %v3821_v63, %v1374_v24  ;;  %v1703_v29 = vpop.f32.mrf.mxu3  ;;  %v2916_v20 = vld [vmem:[%s3543_s22 + $0x1a4] sm:$0xf0]  ;;  %v2750_v21 = vld [vmem:[%s3543_s22 + $0x3a0] sm:$0xf]  ;;  %v2496_v24 = vld [vmem:[%s3543_s22 + $0x1a8] sm:$0xf0] }
 0x1a9   : > { %v1217_v31 = vpop.f32.mrf.mxu0 }
 0x1aa   : > { %3341 = vst [vmem:[%s3646_s8 + $0x78] sm:$0xff] %v3085_v27   ;;  %v1704_v34 = vadd.f32 %v1703_v29, %v1375_v28  ;;  %v1546_v35 = vpop.f32.mrf.mxu1  ;;  %v1218_v39 = vadd.f32 %v3821_v63, %v1217_v31  ;;  %v2979_v27 = vld [vmem:[%s3543_s22 + $0x3a4] sm:$0xf]  ;;  %v2752_v28 = vld [vmem:[%s3543_s22 + $0x3a8] sm:$0xf0] }
 0x1ac   : > { %v1881_v37 = vmax.f32 %v1704_v34, 0.0  ;;  %1256 = vmatmul.bf16.gmra.mxu0 %v2479_v25  ;;  %1416 = vmatmul.bf16.gmra.mxu2 %v2735_v30  ;;  %v1547_v43 = vadd.f32 %v1546_v35, %v1218_v39  ;;  %v2495_v30 = vor.u32 %v2916_v20, %v2494_v19  ;;  %v2751_v35 = vor.u32 %v2980_v22, %v2750_v21 }
 0x1ad   : > { %1585 = vmatmul.bf16.gmra.mxu1 %v2483_v32  ;;  %1745 = vmatmul.bf16.gmra.mxu3 %v2739_v33 }
 0x1ae   : > { %v3245_v38 = vpack.c.bf16 %v1881_v37, %v1880_v36  ;;  %v1818_v54 = vmax.f32 %v1547_v43, 0.0  ;;  %v2499_v37 = vor.u32 %v2915_v23, %v2496_v24  ;;  %v2510_v24 = vld [vmem:[%s3543_s22 + $0x1c0] sm:$0xf] }
 0x1af   : > { %v1377_v40 = vpop.f32.mrf.mxu2 }
 0x1b0   : > { %3373 = vst [vmem:[%s3646_s8 + $0x178] sm:$0xff] %v3245_v38   ;;  %v1706_v41 = vpop.f32.mrf.mxu3  ;;  %v1378_v46 = vadd.f32 %v3821_v63, %v1377_v40  ;;  %v2755_v38 = vor.u32 %v2979_v27, %v2752_v28  ;;  %v2984_v27 = vld [vmem:[%s3543_s22 + $0x3c4] sm:$0xf0]  ;;  %v2919_v28 = vld [vmem:[%s3543_s22 + $0x1c4] sm:$0xf] }
 0x1b1   : > { %v1219_v42 = vpop.f32.mrf.mxu0 }
 0x1b2   : > { %v1220_v44 = vadd.f32 %v3821_v63, %v1219_v42  ;;  %v1548_v45 = vpop.f32.mrf.mxu1  ;;  %v1707_v60 = vadd.f32 %v1706_v41, %v1378_v46 }
 0x1b4   : > { %v1549_v47 = vadd.f32 %v1548_v45, %v1220_v44  ;;  %v1882_v7 = vmax.f32 %v1707_v60, 0.0 }
 0x1b6   : > { %v1819_v55 = vmax.f32 %v1549_v47, 0.0 }
 0x1b7   : > { %v1379_v58 = vpop.f32.mrf.mxu2 }
 0x1b8   : > { %v3090_v62 = vpack.c.bf16 %v1819_v55, %v1818_v54  ;;  %v1380_v61 = vadd.f32 %v3821_v63, %v1379_v58  ;;  %v1708_v0 = vpop.f32.mrf.mxu3  ;;  %v2918_v54 = vld [vmem:[%s3543_s22 + $0x1b4] sm:$0xf0]  ;;  %v2758_v55 = vld [vmem:[%s3543_s22 + $0x3b0] sm:$0xf]  ;;  %v2504_v58 = vld [vmem:[%s3543_s22 + $0x1b8] sm:$0xf0] }
 0x1b9   : > { %v1222_v2 = vpop.f32.mrf.mxu0 }
 0x1ba   : > { %3342 = vst [vmem:[%s3646_s8 + $0x80] sm:$0xff] %v3090_v62   ;;  %v1709_v5 = vadd.f32 %v1708_v0, %v1380_v61  ;;  %v1551_v6 = vpop.f32.mrf.mxu1  ;;  %v1223_v10 = vadd.f32 %v3821_v63, %v1222_v2  ;;  %v2981_v62 = vld [vmem:[%s3543_s22 + $0x3b4] sm:$0xf]  ;;  %v2760_v61 = vld [vmem:[%s3543_s22 + $0x3b8] sm:$0xf0] }
 0x1bc   : > { %v1883_v8 = vmax.f32 %v1709_v5, 0.0  ;;  %1261 = vmatmul.bf16.gmra.mxu0 %v2487_v59  ;;  %1421 = vmatmul.bf16.gmra.mxu2 %v2743_v1  ;;  %v1552_v14 = vadd.f32 %v1551_v6, %v1223_v10  ;;  %v2503_v1 = vor.u32 %v2918_v54, %v2502_v53  ;;  %v2759_v6 = vor.u32 %v2982_v56, %v2758_v55 }
 0x1bd   : > { %1590 = vmatmul.bf16.gmra.mxu1 %v2491_v3  ;;  %1750 = vmatmul.bf16.gmra.mxu3 %v2747_v4 }
 0x1be   : > { %v3250_v9 = vpack.c.bf16 %v1883_v8, %v1882_v7  ;;  %v1820_v25 = vmax.f32 %v1552_v14, 0.0  ;;  %v2507_v8 = vor.u32 %v2917_v57, %v2504_v58  ;;  %v2518_v58 = vld [vmem:[%s3543_s22 + $0x1d0] sm:$0xf] }
 0x1bf   : > { %v1382_v11 = vpop.f32.mrf.mxu2 }
 0x1c0   : > { %3374 = vst [vmem:[%s3646_s8 + $0x180] sm:$0xff] %v3250_v9   ;;  %v1711_v12 = vpop.f32.mrf.mxu3  ;;  %v1383_v17 = vadd.f32 %v3821_v63, %v1382_v11  ;;  %v2763_v9 = vor.u32 %v2981_v62, %v2760_v61  ;;  %v2986_v62 = vld [vmem:[%s3543_s22 + $0x3d4] sm:$0xf0]  ;;  %v2921_v61 = vld [vmem:[%s3543_s22 + $0x1d4] sm:$0xf] }
 0x1c1   : > { %v1224_v13 = vpop.f32.mrf.mxu0 }
 0x1c2   : > { %v1225_v15 = vadd.f32 %v3821_v63, %v1224_v13  ;;  %v1553_v16 = vpop.f32.mrf.mxu1  ;;  %v1712_v31 = vadd.f32 %v1711_v12, %v1383_v17 }
 0x1c4   : > { %v1554_v18 = vadd.f32 %v1553_v16, %v1225_v15  ;;  %v1884_v41 = vmax.f32 %v1712_v31, 0.0 }
 0x1c6   : > { %v1821_v26 = vmax.f32 %v1554_v18, 0.0 }
 0x1c7   : > { %v1384_v29 = vpop.f32.mrf.mxu2 }
 0x1c8   : > { %v3095_v32 = vpack.c.bf16 %v1821_v26, %v1820_v25  ;;  %v1385_v33 = vadd.f32 %v3821_v63, %v1384_v29  ;;  %v1713_v34 = vpop.f32.mrf.mxu3  ;;  %v2920_v25 = vld [vmem:[%s3543_s22 + $0x1c4] sm:$0xf0]  ;;  %v2766_v26 = vld [vmem:[%s3543_s22 + $0x3c0] sm:$0xf]  ;;  %v2512_v29 = vld [vmem:[%s3543_s22 + $0x1c8] sm:$0xf0] }
 0x1c9   : > { %v1227_v36 = vpop.f32.mrf.mxu0 }
 0x1ca   : > { %3343 = vst [vmem:[%s3646_s8 + $0x88] sm:$0xff] %v3095_v32   ;;  %v1714_v39 = vadd.f32 %v1713_v34, %v1385_v33  ;;  %v1556_v40 = vpop.f32.mrf.mxu1  ;;  %v1228_v44 = vadd.f32 %v3821_v63, %v1227_v36  ;;  %v2983_v32 = vld [vmem:[%s3543_s22 + $0x3c4] sm:$0xf]  ;;  %v2768_v33 = vld [vmem:[%s3543_s22 + $0x3c8] sm:$0xf0] }
 0x1cc   : > { %v1885_v42 = vmax.f32 %v1714_v39, 0.0  ;;  %1266 = vmatmul.bf16.gmra.mxu0 %v2495_v30  ;;  %1426 = vmatmul.bf16.gmra.mxu2 %v2751_v35  ;;  %v1557_v48 = vadd.f32 %v1556_v40, %v1228_v44  ;;  %v2511_v35 = vor.u32 %v2920_v25, %v2510_v24  ;;  %v2767_v40 = vor.u32 %v2984_v27, %v2766_v26 }
 0x1cd   : > { %1595 = vmatmul.bf16.gmra.mxu1 %v2499_v37  ;;  %1755 = vmatmul.bf16.gmra.mxu3 %v2755_v38 }
 0x1ce   : > { %v3255_v43 = vpack.c.bf16 %v1885_v42, %v1884_v41  ;;  %v1822_v59 = vmax.f32 %v1557_v48, 0.0  ;;  %v2515_v42 = vor.u32 %v2919_v28, %v2512_v29  ;;  %v2526_v29 = vld [vmem:[%s3543_s22 + $0x1e0] sm:$0xf] }
 0x1cf   : > { %v1387_v45 = vpop.f32.mrf.mxu2 }
 0x1d0   : > { %3375 = vst [vmem:[%s3646_s8 + $0x188] sm:$0xff] %v3255_v43   ;;  %v1716_v46 = vpop.f32.mrf.mxu3  ;;  %v1388_v51 = vadd.f32 %v3821_v63, %v1387_v45  ;;  %v2771_v43 = vor.u32 %v2983_v32, %v2768_v33  ;;  %v2988_v32 = vld [vmem:[%s3543_s22 + $0x3e4] sm:$0xf0]  ;;  %v2923_v33 = vld [vmem:[%s3543_s22 + $0x1e4] sm:$0xf] }
 0x1d1   : > { %v1229_v47 = vpop.f32.mrf.mxu0 }
 0x1d2   : > { %v1230_v49 = vadd.f32 %v3821_v63, %v1229_v47  ;;  %v1558_v50 = vpop.f32.mrf.mxu1  ;;  %v1717_v2 = vadd.f32 %v1716_v46, %v1388_v51 }
 0x1d4   : > { %v1559_v52 = vadd.f32 %v1558_v50, %v1230_v49  ;;  %v1886_v12 = vmax.f32 %v1717_v2, 0.0 }
 0x1d6   : > { %v1823_v60 = vmax.f32 %v1559_v52, 0.0 }
 0x1d7   : > { %v1389_v0 = vpop.f32.mrf.mxu2 }
 0x1d8   : > { %v3100_v3 = vpack.c.bf16 %v1823_v60, %v1822_v59  ;;  %v1390_v4 = vadd.f32 %v3821_v63, %v1389_v0  ;;  %v1718_v5 = vpop.f32.mrf.mxu3  ;;  %v2922_v59 = vld [vmem:[%s3543_s22 + $0x1d4] sm:$0xf0]  ;;  %v2774_v60 = vld [vmem:[%s3543_s22 + $0x3d0] sm:$0xf]  ;;  %v2520_v0 = vld [vmem:[%s3543_s22 + $0x1d8] sm:$0xf0] }
 0x1d9   : > { %v1232_v7 = vpop.f32.mrf.mxu0 }
 0x1da   : > { %3344 = vst [vmem:[%s3646_s8 + $0x90] sm:$0xff] %v3100_v3   ;;  %v1719_v10 = vadd.f32 %v1718_v5, %v1390_v4  ;;  %v1561_v11 = vpop.f32.mrf.mxu1  ;;  %v1233_v15 = vadd.f32 %v3821_v63, %v1232_v7  ;;  %v2985_v3 = vld [vmem:[%s3543_s22 + $0x3d4] sm:$0xf]  ;;  %v2776_v4 = vld [vmem:[%s3543_s22 + $0x3d8] sm:$0xf0] }
 0x1dc   : > { %v1887_v13 = vmax.f32 %v1719_v10, 0.0  ;;  %1271 = vmatmul.bf16.gmra.mxu0 %v2503_v1  ;;  %1431 = vmatmul.bf16.gmra.mxu2 %v2759_v6  ;;  %v1562_v19 = vadd.f32 %v1561_v11, %v1233_v15  ;;  %v2519_v6 = vor.u32 %v2922_v59, %v2518_v58  ;;  %v2775_v11 = vor.u32 %v2986_v62, %v2774_v60 }
 0x1dd   : > { %1600 = vmatmul.bf16.gmra.mxu1 %v2507_v8  ;;  %1760 = vmatmul.bf16.gmra.mxu3 %v2763_v9 }
 0x1de   : > { %v3260_v14 = vpack.c.bf16 %v1887_v13, %v1886_v12  ;;  %v1824_v30 = vmax.f32 %v1562_v19, 0.0  ;;  %v2523_v13 = vor.u32 %v2921_v61, %v2520_v0  ;;  %v2534_v0 = vld [vmem:[%s3543_s22 + $0x1f0] sm:$0xf] }
 0x1df   : > { %v1392_v16 = vpop.f32.mrf.mxu2 }
 0x1e0   : > { %3376 = vst [vmem:[%s3646_s8 + $0x190] sm:$0xff] %v3260_v14   ;;  %v1721_v17 = vpop.f32.mrf.mxu3  ;;  %v1393_v22 = vadd.f32 %v3821_v63, %v1392_v16  ;;  %v2779_v14 = vor.u32 %v2985_v3, %v2776_v4  ;;  %v2990_v3 = vld [vmem:[%s3543_s22 + $0x3f4] sm:$0xf0]  ;;  %v2925_v4 = vld [vmem:[%s3543_s22 + $0x1f4] sm:$0xf] }
 0x1e1   : > { %v1234_v18 = vpop.f32.mrf.mxu0 }
 0x1e2   : > { %v1235_v20 = vadd.f32 %v3821_v63, %v1234_v18  ;;  %v1563_v21 = vpop.f32.mrf.mxu1  ;;  %v1722_v36 = vadd.f32 %v1721_v17, %v1393_v22 }
 0x1e4   : > { %v1564_v23 = vadd.f32 %v1563_v21, %v1235_v20  ;;  %v1888_v46 = vmax.f32 %v1722_v36, 0.0 }
 0x1e6   : > { %v1825_v31 = vmax.f32 %v1564_v23, 0.0 }
 0x1e7   : > { %v1394_v34 = vpop.f32.mrf.mxu2 }
 0x1e8   : > { %v3105_v37 = vpack.c.bf16 %v1825_v31, %v1824_v30  ;;  %v1395_v38 = vadd.f32 %v3821_v63, %v1394_v34  ;;  %v1723_v39 = vpop.f32.mrf.mxu3  ;;  %v2924_v30 = vld [vmem:[%s3543_s22 + $0x1e4] sm:$0xf0]  ;;  %v2782_v31 = vld [vmem:[%s3543_s22 + $0x3e0] sm:$0xf]  ;;  %v2528_v34 = vld [vmem:[%s3543_s22 + $0x1e8] sm:$0xf0] }
 0x1e9   : > { %v1237_v41 = vpop.f32.mrf.mxu0 }
 0x1ea   : > { %3345 = vst [vmem:[%s3646_s8 + $0x98] sm:$0xff] %v3105_v37   ;;  %v1724_v44 = vadd.f32 %v1723_v39, %v1395_v38  ;;  %v1566_v45 = vpop.f32.mrf.mxu1  ;;  %v1238_v49 = vadd.f32 %v3821_v63, %v1237_v41  ;;  %v2987_v37 = vld [vmem:[%s3543_s22 + $0x3e4] sm:$0xf]  ;;  %v2784_v38 = vld [vmem:[%s3543_s22 + $0x3e8] sm:$0xf0] }
 0x1ec   : > { %v1889_v47 = vmax.f32 %v1724_v44, 0.0  ;;  %1276 = vmatmul.bf16.gmra.mxu0 %v2511_v35  ;;  %1436 = vmatmul.bf16.gmra.mxu2 %v2767_v40  ;;  %v1567_v53 = vadd.f32 %v1566_v45, %v1238_v49  ;;  %v2527_v40 = vor.u32 %v2924_v30, %v2526_v29  ;;  %v2783_v45 = vor.u32 %v2988_v32, %v2782_v31 }
 0x1ed   : > { %1605 = vmatmul.bf16.gmra.mxu1 %v2515_v42  ;;  %1765 = vmatmul.bf16.gmra.mxu3 %v2771_v43 }
 0x1ee   : > { %v3265_v48 = vpack.c.bf16 %v1889_v47, %v1888_v46  ;;  %v1826_v1 = vmax.f32 %v1567_v53, 0.0  ;;  %v2531_v47 = vor.u32 %v2923_v33, %v2528_v34 }
 0x1ef   : > { %v1397_v50 = vpop.f32.mrf.mxu2 }
 0x1f0   : > { %3377 = vst [vmem:[%s3646_s8 + $0x198] sm:$0xff] %v3265_v48   ;;  %v1726_v51 = vpop.f32.mrf.mxu3  ;;  %v1398_v56 = vadd.f32 %v3821_v63, %v1397_v50  ;;  %v2787_v48 = vor.u32 %v2987_v37, %v2784_v38 }
 0x1f1   : > { %v1239_v52 = vpop.f32.mrf.mxu0 }
 0x1f2   : > { %v1240_v54 = vadd.f32 %v3821_v63, %v1239_v52  ;;  %v1568_v55 = vpop.f32.mrf.mxu1  ;;  %v1727_v7 = vadd.f32 %v1726_v51, %v1398_v56 }
 0x1f4   : > { %v1569_v57 = vadd.f32 %v1568_v55, %v1240_v54  ;;  %v1890_v17 = vmax.f32 %v1727_v7, 0.0 }
 0x1f6   : > { %v1827_v2 = vmax.f32 %v1569_v57, 0.0 }
 0x1f7   : > { %v1399_v5 = vpop.f32.mrf.mxu2 }
 0x1f8   : > { %v3110_v8 = vpack.c.bf16 %v1827_v2, %v1826_v1  ;;  %v1400_v9 = vadd.f32 %v3821_v63, %v1399_v5  ;;  %v1728_v10 = vpop.f32.mrf.mxu3  ;;  %v2926_v1 = vld [vmem:[%s3543_s22 + $0x1f4] sm:$0xf0]  ;;  %v2790_v2 = vld [vmem:[%s3543_s22 + $0x3f0] sm:$0xf]  ;;  %v2536_v5 = vld [vmem:[%s3543_s22 + $0x1f8] sm:$0xf0] }
 0x1f9   : > { %v1242_v12 = vpop.f32.mrf.mxu0 }
 0x1fa   : > { %3346 = vst [vmem:[%s3646_s8 + $0xa0] sm:$0xff] %v3110_v8   ;;  %v1729_v15 = vadd.f32 %v1728_v10, %v1400_v9  ;;  %v1571_v16 = vpop.f32.mrf.mxu1  ;;  %v1243_v20 = vadd.f32 %v3821_v63, %v1242_v12  ;;  %v2989_v8 = vld [vmem:[%s3543_s22 + $0x3f4] sm:$0xf]  ;;  %v2792_v9 = vld [vmem:[%s3543_s22 + $0x3f8] sm:$0xf0] }
 0x1fc   : > { %v1891_v18 = vmax.f32 %v1729_v15, 0.0  ;;  %1281 = vmatmul.bf16.gmra.mxu0 %v2519_v6  ;;  %1441 = vmatmul.bf16.gmra.mxu2 %v2775_v11  ;;  %v1572_v24 = vadd.f32 %v1571_v16, %v1243_v20  ;;  %v2535_v11 = vor.u32 %v2926_v1, %v2534_v0  ;;  %v2791_v16 = vor.u32 %v2990_v3, %v2790_v2 }
 0x1fd   : > { %1610 = vmatmul.bf16.gmra.mxu1 %v2523_v13  ;;  %1770 = vmatmul.bf16.gmra.mxu3 %v2779_v14 }
 0x1fe   : > { %v3270_v19 = vpack.c.bf16 %v1891_v18, %v1890_v17  ;;  %v1828_v35 = vmax.f32 %v1572_v24, 0.0  ;;  %v2539_v18 = vor.u32 %v2925_v4, %v2536_v5 }
 0x1ff   : > { %v1402_v21 = vpop.f32.mrf.mxu2 }
 0x200   : > { %3378 = vst [vmem:[%s3646_s8 + $0x1a0] sm:$0xff] %v3270_v19   ;;  %v1731_v22 = vpop.f32.mrf.mxu3  ;;  %v1403_v27 = vadd.f32 %v3821_v63, %v1402_v21  ;;  %v2795_v19 = vor.u32 %v2989_v8, %v2792_v9 }
 0x201   : > { %v1244_v23 = vpop.f32.mrf.mxu0 }
 0x202   : > { %v1245_v25 = vadd.f32 %v3821_v63, %v1244_v23  ;;  %v1573_v26 = vpop.f32.mrf.mxu1  ;;  %v1732_v41 = vadd.f32 %v1731_v22, %v1403_v27 }
 0x204   : > { %v1574_v28 = vadd.f32 %v1573_v26, %v1245_v25  ;;  %v1892_v51 = vmax.f32 %v1732_v41, 0.0 }
 0x206   : > { %v1829_v36 = vmax.f32 %v1574_v28, 0.0 }
 0x207   : > { %v1404_v39 = vpop.f32.mrf.mxu2 }
 0x208   : > { %v3115_v42 = vpack.c.bf16 %v1829_v36, %v1828_v35  ;;  %v1405_v43 = vadd.f32 %v3821_v63, %v1404_v39  ;;  %v1733_v44 = vpop.f32.mrf.mxu3 }
 0x209   : > { %v1247_v46 = vpop.f32.mrf.mxu0 }
 0x20a   : > { %3347 = vst [vmem:[%s3646_s8 + $0xa8] sm:$0xff] %v3115_v42   ;;  %v1734_v49 = vadd.f32 %v1733_v44, %v1405_v43  ;;  %v1576_v50 = vpop.f32.mrf.mxu1  ;;  %v1248_v54 = vadd.f32 %v3821_v63, %v1247_v46 }
 0x20c   : > { %v1893_v52 = vmax.f32 %v1734_v49, 0.0  ;;  %1286 = vmatmul.bf16.gmra.mxu0 %v2527_v40  ;;  %1446 = vmatmul.bf16.gmra.mxu2 %v2783_v45  ;;  %v1577_v58 = vadd.f32 %v1576_v50, %v1248_v54 }
 0x20d   : > { %1615 = vmatmul.bf16.gmra.mxu1 %v2531_v47  ;;  %1775 = vmatmul.bf16.gmra.mxu3 %v2787_v48 }
 0x20e   : > { %v3275_v53 = vpack.c.bf16 %v1893_v52, %v1892_v51  ;;  %v1830_v6 = vmax.f32 %v1577_v58, 0.0 }
 0x20f   : > { %v1407_v55 = vpop.f32.mrf.mxu2 }
 0x210   : > { %3379 = vst [vmem:[%s3646_s8 + $0x1a8] sm:$0xff] %v3275_v53   ;;  %v1736_v56 = vpop.f32.mrf.mxu3  ;;  %v1408_v62 = vadd.f32 %v3821_v63, %v1407_v55 }
 0x211   : > { %v1249_v57 = vpop.f32.mrf.mxu0 }
 0x212   : > { %v1250_v59 = vadd.f32 %v3821_v63, %v1249_v57  ;;  %v1578_v60 = vpop.f32.mrf.mxu1  ;;  %v1737_v12 = vadd.f32 %v1736_v56, %v1408_v62 }
 0x214   : > { %v1579_v61 = vadd.f32 %v1578_v60, %v1250_v59  ;;  %v1894_v22 = vmax.f32 %v1737_v12, 0.0 }
 0x216   : > { %v1831_v7 = vmax.f32 %v1579_v61, 0.0 }
 0x217   : > { %v1409_v10 = vpop.f32.mrf.mxu2 }
 0x218   : > { %v3120_v13 = vpack.c.bf16 %v1831_v7, %v1830_v6  ;;  %v1410_v14 = vadd.f32 %v3821_v63, %v1409_v10  ;;  %v1738_v15 = vpop.f32.mrf.mxu3 }
 0x219   : > { %v1252_v17 = vpop.f32.mrf.mxu0 }
 0x21a   : > { %3348 = vst [vmem:[%s3646_s8 + $0xb0] sm:$0xff] %v3120_v13   ;;  %v1739_v20 = vadd.f32 %v1738_v15, %v1410_v14  ;;  %v1581_v21 = vpop.f32.mrf.mxu1  ;;  %v1253_v25 = vadd.f32 %v3821_v63, %v1252_v17 }
 0x21c   : > { %v1895_v23 = vmax.f32 %v1739_v20, 0.0  ;;  %1291 = vmatmul.bf16.gmra.mxu0 %v2535_v11  ;;  %1451 = vmatmul.bf16.gmra.mxu2 %v2791_v16  ;;  %v1582_v29 = vadd.f32 %v1581_v21, %v1253_v25 }
 0x21d   : > { %1620 = vmatmul.bf16.gmra.mxu1 %v2539_v18  ;;  %1780 = vmatmul.bf16.gmra.mxu3 %v2795_v19 }
 0x21e   : > { %v3280_v24 = vpack.c.bf16 %v1895_v23, %v1894_v22  ;;  %v1832_v34 = vmax.f32 %v1582_v29, 0.0 }
 0x21f   : > { %v1412_v26 = vpop.f32.mrf.mxu2 }
 0x220   : > { %3380 = vst [vmem:[%s3646_s8 + $0x1b0] sm:$0xff] %v3280_v24   ;;  %v1741_v27 = vpop.f32.mrf.mxu3  ;;  %v1413_v32 = vadd.f32 %v3821_v63, %v1412_v26 }
 0x221   : > { %v1254_v28 = vpop.f32.mrf.mxu0 }
 0x222   : > { %v1255_v30 = vadd.f32 %v3821_v63, %v1254_v28  ;;  %v1583_v31 = vpop.f32.mrf.mxu1  ;;  %v1742_v37 = vadd.f32 %v1741_v27, %v1413_v32 }
 0x224   : > { %v1584_v33 = vadd.f32 %v1583_v31, %v1255_v30  ;;  %v1896_v44 = vmax.f32 %v1742_v37, 0.0 }
 0x226   : > { %v1833_v35 = vmax.f32 %v1584_v33, 0.0 }
 0x227   : > { %v1414_v36 = vpop.f32.mrf.mxu2 }
 0x228   : > { %v3125_v38 = vpack.c.bf16 %v1833_v35, %v1832_v34  ;;  %v1415_v39 = vadd.f32 %v3821_v63, %v1414_v36  ;;  %v1743_v40 = vpop.f32.mrf.mxu3 }
 0x229   : > { %v1257_v41 = vpop.f32.mrf.mxu0 }
 0x22a   : > { %3349 = vst [vmem:[%s3646_s8 + $0xb8] sm:$0xff] %v3125_v38   ;;  %v1744_v42 = vadd.f32 %v1743_v40, %v1415_v39  ;;  %v1586_v43 = vpop.f32.mrf.mxu1  ;;  %v1258_v47 = vadd.f32 %v3821_v63, %v1257_v41 }
 0x22c   : > { %v1897_v45 = vmax.f32 %v1744_v42, 0.0  ;;  %v1587_v51 = vadd.f32 %v1586_v43, %v1258_v47 }
 0x22e   : > { %v3285_v46 = vpack.c.bf16 %v1897_v45, %v1896_v44  ;;  %v1834_v56 = vmax.f32 %v1587_v51, 0.0 }
 0x22f   : > { %v1417_v48 = vpop.f32.mrf.mxu2 }
 0x230   : > { %3381 = vst [vmem:[%s3646_s8 + $0x1b8] sm:$0xff] %v3285_v46   ;;  %v1746_v49 = vpop.f32.mrf.mxu3  ;;  %v1418_v54 = vadd.f32 %v3821_v63, %v1417_v48 }
 0x231   : > { %v1259_v50 = vpop.f32.mrf.mxu0 }
 0x232   : > { %v1260_v52 = vadd.f32 %v3821_v63, %v1259_v50  ;;  %v1588_v53 = vpop.f32.mrf.mxu1  ;;  %v1747_v59 = vadd.f32 %v1746_v49, %v1418_v54 }
 0x234   : > { %v1589_v55 = vadd.f32 %v1588_v53, %v1260_v52  ;;  %v1898_v3 = vmax.f32 %v1747_v59, 0.0 }
 0x236   : > { %v1835_v57 = vmax.f32 %v1589_v55, 0.0 }
 0x237   : > { %v1419_v58 = vpop.f32.mrf.mxu2 }
 0x238   : > { %v3130_v60 = vpack.c.bf16 %v1835_v57, %v1834_v56  ;;  %v1420_v62 = vadd.f32 %v3821_v63, %v1419_v58  ;;  %v1748_v61 = vpop.f32.mrf.mxu3 }
 0x239   : > { %v1262_v0 = vpop.f32.mrf.mxu0 }
 0x23a   : > { %3350 = vst [vmem:[%s3646_s8 + $0xc0] sm:$0xff] %v3130_v60   ;;  %v1749_v1 = vadd.f32 %v1748_v61, %v1420_v62  ;;  %v1591_v2 = vpop.f32.mrf.mxu1  ;;  %v1263_v6 = vadd.f32 %v3821_v63, %v1262_v0 }
 0x23c   : > { %v1899_v4 = vmax.f32 %v1749_v1, 0.0  ;;  %v1592_v10 = vadd.f32 %v1591_v2, %v1263_v6 }
 0x23e   : > { %v3290_v5 = vpack.c.bf16 %v1899_v4, %v1898_v3  ;;  %v1836_v15 = vmax.f32 %v1592_v10, 0.0 }
 0x23f   : > { %v1422_v7 = vpop.f32.mrf.mxu2 }
 0x240   : > { %3382 = vst [vmem:[%s3646_s8 + $0x1c0] sm:$0xff] %v3290_v5   ;;  %v1751_v8 = vpop.f32.mrf.mxu3  ;;  %v1423_v13 = vadd.f32 %v3821_v63, %v1422_v7 }
 0x241   : > { %v1264_v9 = vpop.f32.mrf.mxu0 }
 0x242   : > { %v1265_v11 = vadd.f32 %v3821_v63, %v1264_v9  ;;  %v1593_v12 = vpop.f32.mrf.mxu1  ;;  %v1752_v18 = vadd.f32 %v1751_v8, %v1423_v13  ;;  %v3996_v9 = vld [vmem:[%s4034_s2] ss:$0 sm:$0xff] }
 0x244   : > { %v1594_v14 = vadd.f32 %v1593_v12, %v1265_v11  ;;  %v1900_v25 = vmax.f32 %v1752_v18, 0.0 }
 0x246   : > { %v1837_v16 = vmax.f32 %v1594_v14, 0.0 }
 0x247   : > { %v1424_v17 = vpop.f32.mrf.mxu2 }
 0x248   : > { %v3135_v19 = vpack.c.bf16 %v1837_v16, %v1836_v15  ;;  %v1425_v20 = vadd.f32 %v3821_v63, %v1424_v17  ;;  %v1753_v21 = vpop.f32.mrf.mxu3 }
 0x249   : > { %v1267_v22 = vpop.f32.mrf.mxu0 }
 0x24a   : > { %3351 = vst [vmem:[%s3646_s8 + $0xc8] sm:$0xff] %v3135_v19   ;;  %v1754_v23 = vadd.f32 %v1753_v21, %v1425_v20  ;;  %v1596_v24 = vpop.f32.mrf.mxu1  ;;  %v1268_v28 = vadd.f32 %v3821_v63, %v1267_v22 }
 0x24c   : > { %v1901_v26 = vmax.f32 %v1754_v23, 0.0  ;;  %v1597_v32 = vadd.f32 %v1596_v24, %v1268_v28 }
 0x24e   : > { %v3295_v27 = vpack.c.bf16 %v1901_v26, %v1900_v25  ;;  %v1838_v37 = vmax.f32 %v1597_v32, 0.0 }
 0x24f   : > { %v1427_v29 = vpop.f32.mrf.mxu2 }
 0x250   : > { %3383 = vst [vmem:[%s3646_s8 + $0x1c8] sm:$0xff] %v3295_v27   ;;  %v1756_v30 = vpop.f32.mrf.mxu3  ;;  %v1428_v35 = vadd.f32 %v3821_v63, %v1427_v29 }
 0x251   : > { %v1269_v31 = vpop.f32.mrf.mxu0 }
 0x252   : > { %v1270_v33 = vadd.f32 %v3821_v63, %v1269_v31  ;;  %v1598_v34 = vpop.f32.mrf.mxu1  ;;  %v1757_v40 = vadd.f32 %v1756_v30, %v1428_v35 }
 0x254   : > { %v1599_v36 = vadd.f32 %v1598_v34, %v1270_v33  ;;  %v1902_v47 = vmax.f32 %v1757_v40, 0.0 }
 0x256   : > { %v1839_v38 = vmax.f32 %v1599_v36, 0.0 }
 0x257   : > { %v1429_v39 = vpop.f32.mrf.mxu2 }
 0x258   : > { %v3140_v41 = vpack.c.bf16 %v1839_v38, %v1838_v37  ;;  %v1430_v42 = vadd.f32 %v3821_v63, %v1429_v39  ;;  %v1758_v43 = vpop.f32.mrf.mxu3 }
 0x259   : > { %v1272_v44 = vpop.f32.mrf.mxu0 }
 0x25a   : > { %3352 = vst [vmem:[%s3646_s8 + $0xd0] sm:$0xff] %v3140_v41   ;;  %v1759_v45 = vadd.f32 %v1758_v43, %v1430_v42  ;;  %v1601_v46 = vpop.f32.mrf.mxu1  ;;  %v1273_v50 = vadd.f32 %v3821_v63, %v1272_v44 }
 0x25c   : > { %v1903_v48 = vmax.f32 %v1759_v45, 0.0  ;;  %v1602_v54 = vadd.f32 %v1601_v46, %v1273_v50 }
 0x25e   : > { %v3300_v49 = vpack.c.bf16 %v1903_v48, %v1902_v47  ;;  %v1840_v59 = vmax.f32 %v1602_v54, 0.0 }
 0x25f   : > { %v1432_v51 = vpop.f32.mrf.mxu2 }
 0x260   : > { %3384 = vst [vmem:[%s3646_s8 + $0x1d0] sm:$0xff] %v3300_v49   ;;  %v1761_v52 = vpop.f32.mrf.mxu3  ;;  %v1433_v57 = vadd.f32 %v3821_v63, %v1432_v51 }
 0x261   : > { %v1274_v53 = vpop.f32.mrf.mxu0 }
 0x262   : > { %v1275_v55 = vadd.f32 %v3821_v63, %v1274_v53  ;;  %v1603_v56 = vpop.f32.mrf.mxu1  ;;  %v1762_v61 = vadd.f32 %v1761_v52, %v1433_v57 }
 0x264   : > { %v1604_v58 = vadd.f32 %v1603_v56, %v1275_v55  ;;  %v1904_v6 = vmax.f32 %v1762_v61, 0.0 }
 0x266   : > { %v1841_v60 = vmax.f32 %v1604_v58, 0.0 }
 0x267   : > { %v1434_v62 = vpop.f32.mrf.mxu2 }
 0x268   : > { %v3145_v0 = vpack.c.bf16 %v1841_v60, %v1840_v59  ;;  %v1435_v1 = vadd.f32 %v3821_v63, %v1434_v62  ;;  %v1763_v2 = vpop.f32.mrf.mxu3 }
 0x269   : > { %v1277_v3 = vpop.f32.mrf.mxu0 }
 0x26a   : > { %3353 = vst [vmem:[%s3646_s8 + $0xd8] sm:$0xff] %v3145_v0   ;;  %v1764_v4 = vadd.f32 %v1763_v2, %v1435_v1  ;;  %v1606_v5 = vpop.f32.mrf.mxu1  ;;  %v1278_v10 = vadd.f32 %v3996_v9, %v1277_v3 }
 0x26c   : > { %v1905_v7 = vmax.f32 %v1764_v4, 0.0  ;;  %v1607_v13 = vadd.f32 %v1606_v5, %v1278_v10 }
 0x26e   : > { %v3305_v8 = vpack.c.bf16 %v1905_v7, %v1904_v6  ;;  %v1842_v18 = vmax.f32 %v1607_v13, 0.0 }
 0x26f   : > { %v1437_v11 = vpop.f32.mrf.mxu2 }
 0x270   : > { %3385 = vst [vmem:[%s3646_s8 + $0x1d8] sm:$0xff] %v3305_v8   ;;  %v1766_v12 = vpop.f32.mrf.mxu3  ;;  %v1438_v16 = vadd.f32 %v3996_v9, %v1437_v11 }
 0x271   : > { %v1279_v63 = vpop.f32.mrf.mxu0 }
 0x272   : > { %v1280_v14 = vadd.f32 %v3996_v9, %v1279_v63  ;;  %v1608_v15 = vpop.f32.mrf.mxu1  ;;  %v1767_v21 = vadd.f32 %v1766_v12, %v1438_v16 }
 0x274   : > { %v1609_v17 = vadd.f32 %v1608_v15, %v1280_v14  ;;  %v1906_v28 = vmax.f32 %v1767_v21, 0.0 }
 0x276   : > { %v1843_v19 = vmax.f32 %v1609_v17, 0.0 }
 0x277   : > { %v1439_v20 = vpop.f32.mrf.mxu2 }
 0x278   : > { %v3150_v22 = vpack.c.bf16 %v1843_v19, %v1842_v18  ;;  %v1440_v23 = vadd.f32 %v3996_v9, %v1439_v20  ;;  %v1768_v24 = vpop.f32.mrf.mxu3 }
 0x279   : > { %v1282_v25 = vpop.f32.mrf.mxu0 }
 0x27a   : > { %3354 = vst [vmem:[%s3646_s8 + $0xe0] sm:$0xff] %v3150_v22   ;;  %v1769_v26 = vadd.f32 %v1768_v24, %v1440_v23  ;;  %v1611_v27 = vpop.f32.mrf.mxu1  ;;  %v1283_v31 = vadd.f32 %v3996_v9, %v1282_v25 }
 0x27c   : > { %v1907_v29 = vmax.f32 %v1769_v26, 0.0  ;;  %v1612_v35 = vadd.f32 %v1611_v27, %v1283_v31 }
 0x27e   : > { %v3310_v30 = vpack.c.bf16 %v1907_v29, %v1906_v28  ;;  %v1844_v40 = vmax.f32 %v1612_v35, 0.0 }
 0x27f   : > { %v1442_v32 = vpop.f32.mrf.mxu2 }
 0x280   : > { %3386 = vst [vmem:[%s3646_s8 + $0x1e0] sm:$0xff] %v3310_v30   ;;  %v1771_v33 = vpop.f32.mrf.mxu3  ;;  %v1443_v38 = vadd.f32 %v3996_v9, %v1442_v32 }
 0x281   : > { %v1284_v34 = vpop.f32.mrf.mxu0 }
 0x282   : > { %v1285_v36 = vadd.f32 %v3996_v9, %v1284_v34  ;;  %v1613_v37 = vpop.f32.mrf.mxu1  ;;  %v1772_v43 = vadd.f32 %v1771_v33, %v1443_v38 }
 0x284   : > { %v1614_v39 = vadd.f32 %v1613_v37, %v1285_v36  ;;  %v1908_v50 = vmax.f32 %v1772_v43, 0.0 }
 0x286   : > { %v1845_v41 = vmax.f32 %v1614_v39, 0.0 }
 0x287   : > { %v1444_v42 = vpop.f32.mrf.mxu2 }
 0x288   : > { %v3155_v44 = vpack.c.bf16 %v1845_v41, %v1844_v40  ;;  %v1445_v45 = vadd.f32 %v3996_v9, %v1444_v42  ;;  %v1773_v46 = vpop.f32.mrf.mxu3 }
 0x289   : > { %v1287_v47 = vpop.f32.mrf.mxu0 }
 0x28a   : > { %3355 = vst [vmem:[%s3646_s8 + $0xe8] sm:$0xff] %v3155_v44   ;;  %v1774_v48 = vadd.f32 %v1773_v46, %v1445_v45  ;;  %v1616_v49 = vpop.f32.mrf.mxu1  ;;  %v1288_v53 = vadd.f32 %v3996_v9, %v1287_v47 }
 0x28c   : > { %v1909_v51 = vmax.f32 %v1774_v48, 0.0  ;;  %v1617_v57 = vadd.f32 %v1616_v49, %v1288_v53 }
 0x28e   : > { %v3315_v52 = vpack.c.bf16 %v1909_v51, %v1908_v50  ;;  %v1846_v61 = vmax.f32 %v1617_v57, 0.0 }
 0x28f   : > { %v1447_v54 = vpop.f32.mrf.mxu2 }
 0x290   : > { %3387 = vst [vmem:[%s3646_s8 + $0x1e8] sm:$0xff] %v3315_v52   ;;  %v1776_v55 = vpop.f32.mrf.mxu3  ;;  %v1448_v60 = vadd.f32 %v3996_v9, %v1447_v54 }
 0x291   : > { %v1289_v56 = vpop.f32.mrf.mxu0 }
 0x292   : > { %v1290_v58 = vadd.f32 %v3996_v9, %v1289_v56  ;;  %v1618_v59 = vpop.f32.mrf.mxu1  ;;  %v1777_v2 = vadd.f32 %v1776_v55, %v1448_v60 }
 0x294   : > { %v1619_v62 = vadd.f32 %v1618_v59, %v1290_v58  ;;  %v1910_v10 = vmax.f32 %v1777_v2, 0.0 }
 0x296   : > { %v1847_v0 = vmax.f32 %v1619_v62, 0.0 }
 0x297   : > { %v1449_v1 = vpop.f32.mrf.mxu2 }
 0x298   : > { %v3160_v3 = vpack.c.bf16 %v1847_v0, %v1846_v61  ;;  %v1450_v4 = vadd.f32 %v3996_v9, %v1449_v1  ;;  %v1778_v5 = vpop.f32.mrf.mxu3 }
 0x299   : > { %v1292_v6 = vpop.f32.mrf.mxu0 }
 0x29a   : > { %3356 = vst [vmem:[%s3646_s8 + $0xf0] sm:$0xff] %v3160_v3   ;;  %v1779_v7 = vadd.f32 %v1778_v5, %v1450_v4  ;;  %v1621_v8 = vpop.f32.mrf.mxu1  ;;  %v1293_v63 = vadd.f32 %v3996_v9, %v1292_v6 }
 0x29c   : > { %v1911_v11 = vmax.f32 %v1779_v7, 0.0  ;;  %v1622_v16 = vadd.f32 %v1621_v8, %v1293_v63 }
 0x29e   : > { %v3320_v12 = vpack.c.bf16 %v1911_v11, %v1910_v10  ;;  %v1848_v21 = vmax.f32 %v1622_v16, 0.0 }
 0x29f   : > { %v1452_v13 = vpop.f32.mrf.mxu2 }
 0x2a0   : > { %3388 = vst [vmem:[%s3646_s8 + $0x1f0] sm:$0xff] %v3320_v12   ;;  %v1781_v14 = vpop.f32.mrf.mxu3  ;;  %v1453_v19 = vadd.f32 %v3996_v9, %v1452_v13 }
 0x2a1   : > { %v1294_v15 = vpop.f32.mrf.mxu0 }
 0x2a2   : > { %v1295_v17 = vadd.f32 %v3996_v9, %v1294_v15  ;;  %v1623_v18 = vpop.f32.mrf.mxu1  ;;  %v1782_v24 = vadd.f32 %v1781_v14, %v1453_v19 }
 0x2a4   : > { %v1624_v20 = vadd.f32 %v1623_v18, %v1295_v17  ;;  %v1912_v29 = vmax.f32 %v1782_v24, 0.0 }
 0x2a6   : > { %v1849_v22 = vmax.f32 %v1624_v20, 0.0 }
 0x2a7   : > { %v1454_v23 = vpop.f32.mrf.mxu2 }
 0x2a8   : > { %v3165_v25 = vpack.c.bf16 %v1849_v22, %v1848_v21  ;;  %v1455_v26 = vadd.f32 %v3996_v9, %v1454_v23  ;;  %v1783_v27 = vpop.f32.mrf.mxu3 }
 0x2aa   : > { %3357 = vst [vmem:[%s3646_s8 + $0xf8] sm:$0xff] %v3165_v25   ;;  %v1784_v28 = vadd.f32 %v1783_v27, %v1455_v26 }
 0x2ac   : > { %v1913_v30 = vmax.f32 %v1784_v28, 0.0 }
 0x2ae   : > { %v3325_v31 = vpack.c.bf16 %v1913_v30, %v1912_v29 }
 0x2b0   : > { %3389 = vst [vmem:[%s3646_s8 + $0x1f8] sm:$0xff] %v3325_v31  }
 0x2b1 PF: > { %s13_s14 = sadd.s32 1, %s3455_s14   ;;  %s4036_s12 = smov %s3451_s13 }
 0x2b2   : > { %p10_p5 = scmp.ge.s32.totalorder %s13_s14, 6   ;;  %s4037_s13 = smov %s4039_s15 }
 0x2b4   :  { %12 = sbr.rel (!%p10_p5) target bundleno = 2 (0x2), region = 68 }

// kernel: value_network_forward.5
= control target key start
LH: loop header
LB: loop body
LE: loop exit
PB: predicated region body
PF: predicated region fallthrough
CT: control target
= control target key end

     0   :  { %s6283_s1 = inlined_call_operand.vmem [shape: bf16[512,128], index: 1, kind: input, shape index: {}]   ;;  %s6284_s2 = inlined_call_operand.vmem [shape: f32[1,128], index: 2, kind: input, shape index: {}]   ;;  %s6285_s0 = inlined_call_operand.vmem [shape: bf16[864,512], index: 0, kind: input, shape index: {}]   ;;  %s6286_s3 = inlined_call_operand.vmem [shape: bf16[864,128], index: 3, kind: output, shape index: {}]  }
   0x1   :  { %v4229_v0 = vld [vmem:[%s6283_s1 + $0x38] sm:$0xff]  ;;  %v4228_v4 = vld [vmem:[%s6283_s1 + $0x30] sm:$0xff]  ;;  %v4227_v8 = vld [vmem:[%s6283_s1 + $0x28] sm:$0xff] }
   0x2   :  { %v4237_v1 = vld [vmem:[%s6283_s1 + $0x78] sm:$0xff]  ;;  %1570 = vmatpush.bf16.msra.mxu0 %v4229_v0  ;;  %v4236_v5 = vld [vmem:[%s6283_s1 + $0x70] sm:$0xff]  ;;  %v4235_v9 = vld [vmem:[%s6283_s1 + $0x68] sm:$0xff] }
   0x3   :  { %v4245_v2 = vld [vmem:[%s6283_s1 + $0xb8] sm:$0xff]  ;;  %1849 = vmatpush.bf16.msra.mxu1 %v4237_v1  ;;  %v4244_v6 = vld [vmem:[%s6283_s1 + $0xb0] sm:$0xff]  ;;  %v4243_v10 = vld [vmem:[%s6283_s1 + $0xa8] sm:$0xff] }
   0x4   :  { %v4253_v3 = vld [vmem:[%s6283_s1 + $0xf8] sm:$0xff]  ;;  %2128 = vmatpush.bf16.msra.mxu2 %v4245_v2  ;;  %v4252_v7 = vld [vmem:[%s6283_s1 + $0xf0] sm:$0xff]  ;;  %v4251_v11 = vld [vmem:[%s6283_s1 + $0xe8] sm:$0xff] }
   0x5   :  { %2407 = vmatpush.bf16.msra.mxu3 %v4253_v3  ;;  %v4226_v12 = vld [vmem:[%s6283_s1 + $0x20] sm:$0xff]  ;;  %v4225_v16 = vld [vmem:[%s6283_s1 + $0x18] sm:$0xff]  ;;  %v4224_v20 = vld [vmem:[%s6283_s1 + $0x10] sm:$0xff] }
   0x6   :  { %1571 = vmatpush.bf16.msra.mxu0 %v4228_v4  ;;  %v4234_v13 = vld [vmem:[%s6283_s1 + $0x60] sm:$0xff]  ;;  %v4233_v17 = vld [vmem:[%s6283_s1 + $0x58] sm:$0xff]  ;;  %v4232_v21 = vld [vmem:[%s6283_s1 + $0x50] sm:$0xff] }
   0x7   :  { %1850 = vmatpush.bf16.msra.mxu1 %v4236_v5  ;;  %v4242_v14 = vld [vmem:[%s6283_s1 + $0xa0] sm:$0xff]  ;;  %v4241_v18 = vld [vmem:[%s6283_s1 + $0x98] sm:$0xff]  ;;  %v4240_v22 = vld [vmem:[%s6283_s1 + $0x90] sm:$0xff] }
   0x8   :  { %2129 = vmatpush.bf16.msra.mxu2 %v4244_v6  ;;  %v4250_v15 = vld [vmem:[%s6283_s1 + $0xe0] sm:$0xff]  ;;  %v4249_v19 = vld [vmem:[%s6283_s1 + $0xd8] sm:$0xff]  ;;  %v4248_v23 = vld [vmem:[%s6283_s1 + $0xd0] sm:$0xff] }
   0x9   :  { %2408 = vmatpush.bf16.msra.mxu3 %v4252_v7  ;;  %v4223_v24 = vld [vmem:[%s6283_s1 + $0x8] sm:$0xff]  ;;  %v4222_v28 = vld [vmem:[%s6283_s1] sm:$0xff]  ;;  %v4008_v33 = vld [vmem:[%s6285_s0 + $0xc] sm:$0xf0] }
   0xa   :  { %1572 = vmatpush.bf16.msra.mxu0 %v4227_v8  ;;  %v4231_v25 = vld [vmem:[%s6283_s1 + $0x48] sm:$0xff]  ;;  %v4230_v29 = vld [vmem:[%s6283_s1 + $0x40] sm:$0xff]  ;;  %v3018_v35 = vld [vmem:[%s6285_s0 + $0x10] sm:$0xf0] }
   0xb   :  { %1851 = vmatpush.bf16.msra.mxu1 %v4235_v9  ;;  %v4239_v26 = vld [vmem:[%s6283_s1 + $0x88] sm:$0xff]  ;;  %v4238_v30 = vld [vmem:[%s6283_s1 + $0x80] sm:$0xff]  ;;  %v4009_v37 = vld [vmem:[%s6285_s0 + $0x14] sm:$0xf0] }
   0xc   :  { %2130 = vmatpush.bf16.msra.mxu2 %v4243_v10  ;;  %v4247_v27 = vld [vmem:[%s6283_s1 + $0xc8] sm:$0xff]  ;;  %v4246_v31 = vld [vmem:[%s6283_s1 + $0xc0] sm:$0xff]  ;;  %v3026_v39 = vld [vmem:[%s6285_s0 + $0x18] sm:$0xf0] }
   0xd   :  { %2409 = vmatpush.bf16.msra.mxu3 %v4251_v11  ;;  %v3016_v32 = vld [vmem:[%s6285_s0] sm:$0xf]  ;;  %v4006_v34 = vld [vmem:[%s6285_s0 + $0x4] sm:$0xf]  ;;  %v3024_v36 = vld [vmem:[%s6285_s0 + $0x8] sm:$0xf] }
   0xe   :  { %1573 = vmatpush.bf16.msra.mxu0 %v4226_v12  ;;  %v4007_v38 = vld [vmem:[%s6285_s0 + $0xc] sm:$0xf]  ;;  %v3017_v40 = vor.u32 %v4008_v33, %v3016_v32  ;;  %v3021_v41 = vor.u32 %v4006_v34, %v3018_v35  ;;  %v3025_v42 = vor.u32 %v4009_v37, %v3024_v36  ;;  %v3032_v44 = vld [vmem:[%s6285_s0 + $0x20] sm:$0xf]  ;;  %v4012_v45 = vld [vmem:[%s6285_s0 + $0x2c] sm:$0xf0] }
   0xf   :  { %1852 = vmatpush.bf16.msra.mxu1 %v4234_v13  ;;  %v3029_v43 = vor.u32 %v4007_v38, %v3026_v39  ;;  %v4010_v46 = vld [vmem:[%s6285_s0 + $0x24] sm:$0xf]  ;;  %v3034_v47 = vld [vmem:[%s6285_s0 + $0x30] sm:$0xf0]  ;;  %v3040_v48 = vld [vmem:[%s6285_s0 + $0x28] sm:$0xf]  ;;  %v3033_v52 = vor.u32 %v4012_v45, %v3032_v44 }
  0x10   :  { %2131 = vmatpush.bf16.msra.mxu2 %v4242_v14  ;;  %v4013_v49 = vld [vmem:[%s6285_s0 + $0x34] sm:$0xf0]  ;;  %v4011_v50 = vld [vmem:[%s6285_s0 + $0x2c] sm:$0xf]  ;;  %v3042_v51 = vld [vmem:[%s6285_s0 + $0x38] sm:$0xf0]  ;;  %v3037_v53 = vor.u32 %v4010_v46, %v3034_v47 }
  0x11   :  { %2410 = vmatpush.bf16.msra.mxu3 %v4250_v15  ;;  %v3041_v54 = vor.u32 %v4013_v49, %v3040_v48  ;;  %v3045_v55 = vor.u32 %v4011_v50, %v3042_v51  ;;  %v3048_v56 = vld [vmem:[%s6285_s0 + $0x40] sm:$0xf]  ;;  %v4016_v57 = vld [vmem:[%s6285_s0 + $0x4c] sm:$0xf0]  ;;  %v4014_v58 = vld [vmem:[%s6285_s0 + $0x44] sm:$0xf] }
  0x12   :  { %1574 = vmatpush.bf16.msra.mxu0 %v4225_v16  ;;  %v3050_v59 = vld [vmem:[%s6285_s0 + $0x50] sm:$0xf0]  ;;  %v3056_v60 = vld [vmem:[%s6285_s0 + $0x48] sm:$0xf]  ;;  %v4017_v61 = vld [vmem:[%s6285_s0 + $0x54] sm:$0xf0]  ;;  %v3049_v0 = vor.u32 %v4016_v57, %v3048_v56 }
  0x13   :  { %1853 = vmatpush.bf16.msra.mxu1 %v4233_v17  ;;  %v4015_v62 = vld [vmem:[%s6285_s0 + $0x4c] sm:$0xf]  ;;  %v3058_v63 = vld [vmem:[%s6285_s0 + $0x58] sm:$0xf0]  ;;  %v3053_v1 = vor.u32 %v4014_v58, %v3050_v59  ;;  %v3057_v2 = vor.u32 %v4017_v61, %v3056_v60  ;;  %v3064_v4 = vld [vmem:[%s6285_s0 + $0x60] sm:$0xf] }
  0x14   :  { %2132 = vmatpush.bf16.msra.mxu2 %v4241_v18  ;;  %v3061_v3 = vor.u32 %v4015_v62, %v3058_v63  ;;  %v4020_v5 = vld [vmem:[%s6285_s0 + $0x6c] sm:$0xf0]  ;;  %v4018_v6 = vld [vmem:[%s6285_s0 + $0x64] sm:$0xf]  ;;  %v3066_v7 = vld [vmem:[%s6285_s0 + $0x70] sm:$0xf0] }
  0x15   :  { %2411 = vmatpush.bf16.msra.mxu3 %v4249_v19  ;;  %v3072_v8 = vld [vmem:[%s6285_s0 + $0x68] sm:$0xf]  ;;  %v4021_v9 = vld [vmem:[%s6285_s0 + $0x74] sm:$0xf0]  ;;  %v4019_v10 = vld [vmem:[%s6285_s0 + $0x6c] sm:$0xf]  ;;  %v3065_v12 = vor.u32 %v4020_v5, %v3064_v4  ;;  %v3069_v13 = vor.u32 %v4018_v6, %v3066_v7 }
  0x16   :  { %1575 = vmatpush.bf16.msra.mxu0 %v4224_v20  ;;  %v3074_v11 = vld [vmem:[%s6285_s0 + $0x78] sm:$0xf0]  ;;  %v3073_v14 = vor.u32 %v4021_v9, %v3072_v8  ;;  %v3080_v16 = vld [vmem:[%s6285_s0 + $0x80] sm:$0xf]  ;;  %v4024_v17 = vld [vmem:[%s6285_s0 + $0x8c] sm:$0xf0] }
  0x17   :  { %1854 = vmatpush.bf16.msra.mxu1 %v4232_v21  ;;  %v3077_v15 = vor.u32 %v4019_v10, %v3074_v11  ;;  %v4022_v18 = vld [vmem:[%s6285_s0 + $0x84] sm:$0xf]  ;;  %v3082_v19 = vld [vmem:[%s6285_s0 + $0x90] sm:$0xf0]  ;;  %v3088_v20 = vld [vmem:[%s6285_s0 + $0x88] sm:$0xf] }
  0x18   :  { %2133 = vmatpush.bf16.msra.mxu2 %v4240_v22  ;;  %v4025_v21 = vld [vmem:[%s6285_s0 + $0x94] sm:$0xf0]  ;;  %v4023_v22 = vld [vmem:[%s6285_s0 + $0x8c] sm:$0xf]  ;;  %v3104_v32 = vld [vmem:[%s6285_s0 + $0xa8] sm:$0xf] }
  0x19   :  { %2412 = vmatpush.bf16.msra.mxu3 %v4248_v23  ;;  %v3090_v23 = vld [vmem:[%s6285_s0 + $0x98] sm:$0xf0]  ;;  %v4029_v33 = vld [vmem:[%s6285_s0 + $0xb4] sm:$0xf0]  ;;  %v4027_v34 = vld [vmem:[%s6285_s0 + $0xac] sm:$0xf] }
  0x1a   :  { %1576 = vmatpush.bf16.msra.mxu0 %v4223_v24  ;;  %v3081_v24 = vor.u32 %v4024_v17, %v3080_v16  ;;  %v3106_v35 = vld [vmem:[%s6285_s0 + $0xb8] sm:$0xf0]  ;;  %v3105_v38 = vor.u32 %v4029_v33, %v3104_v32  ;;  %v3120_v44 = vld [vmem:[%s6285_s0 + $0xc8] sm:$0xf]  ;;  %v4033_v45 = vld [vmem:[%s6285_s0 + $0xd4] sm:$0xf0] }
  0x1b   :  { %1855 = vmatpush.bf16.msra.mxu1 %v4231_v25  ;;  %v3085_v25 = vor.u32 %v4022_v18, %v3082_v19  ;;  %v3109_v39 = vor.u32 %v4027_v34, %v3106_v35  ;;  %v4031_v46 = vld [vmem:[%s6285_s0 + $0xcc] sm:$0xf]  ;;  %v3122_v47 = vld [vmem:[%s6285_s0 + $0xd8] sm:$0xf0]  ;;  %v3121_v50 = vor.u32 %v4033_v45, %v3120_v44  ;;  %v3136_v56 = vld [vmem:[%s6285_s0 + $0xe8] sm:$0xf] }
  0x1c   :  { %2134 = vmatpush.bf16.msra.mxu2 %v4239_v26  ;;  %v3089_v26 = vor.u32 %v4025_v21, %v3088_v20  ;;  %v3125_v51 = vor.u32 %v4031_v46, %v3122_v47  ;;  %v4037_v57 = vld [vmem:[%s6285_s0 + $0xf4] sm:$0xf0]  ;;  %v4035_v58 = vld [vmem:[%s6285_s0 + $0xec] sm:$0xf]  ;;  %v3138_v59 = vld [vmem:[%s6285_s0 + $0xf8] sm:$0xf0] }
  0x1d   :  { %2413 = vmatpush.bf16.msra.mxu3 %v4247_v27  ;;  %v3093_v27 = vor.u32 %v4023_v22, %v3090_v23  ;;  %v3137_v62 = vor.u32 %v4037_v57, %v3136_v56  ;;  %v3141_v63 = vor.u32 %v4035_v58, %v3138_v59  ;;  %v3152_v4 = vld [vmem:[%s6285_s0 + $0x108] sm:$0xf]  ;;  %v4041_v5 = vld [vmem:[%s6285_s0 + $0x114] sm:$0xf0]  ;;  %v4039_v6 = vld [vmem:[%s6285_s0 + $0x10c] sm:$0xf] }
  0x1e   :  { %1577 = vmatpush.bf16.msra.mxu0 %v4222_v28  ;;  %v3096_v28 = vld [vmem:[%s6285_s0 + $0xa0] sm:$0xf]  ;;  %v3154_v7 = vld [vmem:[%s6285_s0 + $0x118] sm:$0xf0]  ;;  %v4044_v23 = vld [vmem:[%s6285_s0 + $0x12c] sm:$0xf0] }
  0x1f   :  { %1856 = vmatpush.bf16.msra.mxu1 %v4230_v29  ;;  %v4028_v29 = vld [vmem:[%s6285_s0 + $0xac] sm:$0xf0]  ;;  %v4916_v10 = vld [vmem:[%s6284_s2] ss:$0 sm:$0xff]  ;;  %v4046_v56 = vld [vmem:[%s6285_s0 + $0x144] sm:$0xf] }
  0x20   :  { %2135 = vmatpush.bf16.msra.mxu2 %v4238_v30  ;;  %v4026_v30 = vld [vmem:[%s6285_s0 + $0xa4] sm:$0xf]  ;;  %v3097_v36 = vor.u32 %v4028_v29, %v3096_v28  ;;  %v3160_v22 = vld [vmem:[%s6285_s0 + $0x120] sm:$0xf]  ;;  %v4045_v28 = vld [vmem:[%s6285_s0 + $0x134] sm:$0xf0] }
  0x21   :  { %2414 = vmatpush.bf16.msra.mxu3 %v4246_v31  ;;  %1578 = vmatmul.bf16.vlgmr.msra.gmra.mxu0 %v3017_v40  ;;  %v3098_v31 = vld [vmem:[%s6285_s0 + $0xb0] sm:$0xf0]  ;;  %v3112_v40 = vld [vmem:[%s6285_s0 + $0xc0] sm:$0xf]  ;;  %v4043_v29 = vld [vmem:[%s6285_s0 + $0x12c] sm:$0xf]  ;;  %v3161_v34 = vor.u32 %v4044_v23, %v3160_v22 }
  0x22   :  { %1857 = vmatmul.bf16.vlgmr.msra.gmra.mxu1 %v3021_v41  ;;  %v3101_v37 = vor.u32 %v4026_v30, %v3098_v31  ;;  %v4032_v41 = vld [vmem:[%s6285_s0 + $0xcc] sm:$0xf0]  ;;  %v3170_v30 = vld [vmem:[%s6285_s0 + $0x138] sm:$0xf0]  ;;  %v3178_v57 = vld [vmem:[%s6285_s0 + $0x150] sm:$0xf0] }
  0x23   :  { %2136 = vmatmul.bf16.vlgmr.msra.gmra.mxu2 %v3025_v42  ;;  %v4030_v42 = vld [vmem:[%s6285_s0 + $0xc4] sm:$0xf]  ;;  %v3113_v48 = vor.u32 %v4032_v41, %v3112_v40  ;;  %v3173_v41 = vor.u32 %v4043_v29, %v3170_v30  ;;  %v3184_v58 = vld [vmem:[%s6285_s0 + $0x148] sm:$0xf]  ;;  %v4049_v59 = vld [vmem:[%s6285_s0 + $0x154] sm:$0xf0] }
  0x24   :  { %2415 = vmatmul.bf16.vlgmr.msra.gmra.mxu3 %v3029_v43  ;;  %v3114_v43 = vld [vmem:[%s6285_s0 + $0xd0] sm:$0xf0]  ;;  %v4052_v22 = vld [vmem:[%s6285_s0 + $0x16c] sm:$0xf0]  ;;  %v3202_v29 = vld [vmem:[%s6285_s0 + $0x178] sm:$0xf0] }
  0x25   :  { %v3117_v49 = vor.u32 %v4030_v42, %v3114_v43 }
  0x31   :  { %1583 = vmatmul.bf16.gmra.mxu0 %v3033_v52  ;;  %v3128_v52 = vld [vmem:[%s6285_s0 + $0xe0] sm:$0xf] }
  0x32   :  { %1862 = vmatmul.bf16.gmra.mxu1 %v3037_v53  ;;  %v4036_v53 = vld [vmem:[%s6285_s0 + $0xec] sm:$0xf0] }
  0x33   :  { %2141 = vmatmul.bf16.gmra.mxu2 %v3041_v54  ;;  %v4034_v54 = vld [vmem:[%s6285_s0 + $0xe4] sm:$0xf]  ;;  %v3129_v60 = vor.u32 %v4036_v53, %v3128_v52  ;;  %v3176_v53 = vld [vmem:[%s6285_s0 + $0x140] sm:$0xf] }
  0x34   :  { %2420 = vmatmul.bf16.gmra.mxu3 %v3045_v55  ;;  %v3130_v55 = vld [vmem:[%s6285_s0 + $0xf0] sm:$0xf0] }
  0x35   :  { %v3133_v61 = vor.u32 %v4034_v54, %v3130_v55  ;;  %v4048_v54 = vld [vmem:[%s6285_s0 + $0x14c] sm:$0xf0] }
  0x41   :  { %1588 = vmatmul.bf16.gmra.mxu0 %v3049_v0  ;;  %v3144_v0 = vld [vmem:[%s6285_s0 + $0x100] sm:$0xf] }
  0x42   :  { %1867 = vmatmul.bf16.gmra.mxu1 %v3053_v1  ;;  %v4040_v1 = vld [vmem:[%s6285_s0 + $0x10c] sm:$0xf0] }
  0x43   :  { %2146 = vmatmul.bf16.gmra.mxu2 %v3057_v2  ;;  %v4038_v2 = vld [vmem:[%s6285_s0 + $0x104] sm:$0xf]  ;;  %v3145_v8 = vor.u32 %v4040_v1, %v3144_v0  ;;  %v3177_v1 = vor.u32 %v4048_v54, %v3176_v53  ;;  %v4056_v53 = vld [vmem:[%s6285_s0 + $0x18c] sm:$0xf0] }
  0x44   :  { %2425 = vmatmul.bf16.gmra.mxu3 %v3061_v3  ;;  %v3146_v3 = vld [vmem:[%s6285_s0 + $0x110] sm:$0xf0] }
  0x45   :  { %v3149_v9 = vor.u32 %v4038_v2, %v3146_v3  ;;  %v3181_v2 = vor.u32 %v4046_v56, %v3178_v57  ;;  %v3210_v56 = vld [vmem:[%s6285_s0 + $0x190] sm:$0xf0]  ;;  %v3216_v57 = vld [vmem:[%s6285_s0 + $0x188] sm:$0xf] }
  0x51   :  { %1593 = vmatmul.bf16.gmra.mxu0 %v3065_v12 }
  0x52   :  { %1872 = vmatmul.bf16.gmra.mxu1 %v3069_v13  ;;  %v3153_v13 = vor.u32 %v4041_v5, %v3152_v4 }
  0x53   :  { %2151 = vmatmul.bf16.gmra.mxu2 %v3073_v14  ;;  %v3157_v14 = vor.u32 %v4039_v6, %v3154_v7  ;;  %v3185_v7 = vor.u32 %v4049_v59, %v3184_v58  ;;  %v4057_v58 = vld [vmem:[%s6285_s0 + $0x194] sm:$0xf0]  ;;  %v4055_v59 = vld [vmem:[%s6285_s0 + $0x18c] sm:$0xf] }
  0x54   :  { %2430 = vmatmul.bf16.gmra.mxu3 %v3077_v15 }
  0x61   :  { %1598 = vmatmul.bf16.gmra.mxu0 %v3081_v24 }
  0x62   :  { %1877 = vmatmul.bf16.gmra.mxu1 %v3085_v25  ;;  %v4042_v25 = vld [vmem:[%s6285_s0 + $0x124] sm:$0xf] }
  0x63   :  { %2156 = vmatmul.bf16.gmra.mxu2 %v3089_v26  ;;  %v3162_v26 = vld [vmem:[%s6285_s0 + $0x130] sm:$0xf0] }
  0x64   :  { %2435 = vmatmul.bf16.gmra.mxu3 %v3093_v27  ;;  %v3168_v27 = vld [vmem:[%s6285_s0 + $0x128] sm:$0xf]  ;;  %v3165_v35 = vor.u32 %v4042_v25, %v3162_v26  ;;  %v3194_v25 = vld [vmem:[%s6285_s0 + $0x170] sm:$0xf0] }
  0x65   :  { %v3169_v40 = vor.u32 %v4045_v28, %v3168_v27  ;;  %v3200_v26 = vld [vmem:[%s6285_s0 + $0x168] sm:$0xf]  ;;  %v4053_v27 = vld [vmem:[%s6285_s0 + $0x174] sm:$0xf0]  ;;  %v4051_v28 = vld [vmem:[%s6285_s0 + $0x16c] sm:$0xf] }
  0x71   :  { %1603 = vmatmul.bf16.gmra.mxu0 %v3097_v36 }
  0x72   :  { %1882 = vmatmul.bf16.gmra.mxu1 %v3101_v37 }
  0x73   :  { %2161 = vmatmul.bf16.gmra.mxu2 %v3105_v38 }
  0x74   :  { %2440 = vmatmul.bf16.gmra.mxu3 %v3109_v39 }
  0x81   :  { %1608 = vmatmul.bf16.gmra.mxu0 %v3113_v48 }
  0x82   :  { %1887 = vmatmul.bf16.gmra.mxu1 %v3117_v49 }
  0x83   :  { %2166 = vmatmul.bf16.gmra.mxu2 %v3121_v50 }
  0x84   :  { %2445 = vmatmul.bf16.gmra.mxu3 %v3125_v51 }
  0x91   :  { %1613 = vmatmul.bf16.gmra.mxu0 %v3129_v60  ;;  %v4047_v60 = vld [vmem:[%s6285_s0 + $0x14c] sm:$0xf] }
  0x92   :  { %1892 = vmatmul.bf16.gmra.mxu1 %v3133_v61  ;;  %v3186_v61 = vld [vmem:[%s6285_s0 + $0x158] sm:$0xf0] }
  0x93   :  { %2171 = vmatmul.bf16.gmra.mxu2 %v3137_v62 }
  0x94   :  { %2450 = vmatmul.bf16.gmra.mxu3 %v3141_v63 }
  0x9e   :  { %v1579_v11 = vpop.f32.mrf.mxu0 }
  0x9f   :  { %v1858_v12 = vpop.f32.mrf.mxu1  ;;  %v1580_v15 = vadd.f32 %v4916_v10, %v1579_v11 }
  0xa1   :  { %1618 = vmatmul.bf16.gmra.mxu0 %v3145_v8  ;;  %v1859_v18 = vadd.f32 %v1858_v12, %v1580_v15  ;;  %v3189_v8 = vor.u32 %v4047_v60, %v3186_v61  ;;  %v3218_v60 = vld [vmem:[%s6285_s0 + $0x198] sm:$0xf0] }
  0xa2   :  { %1897 = vmatmul.bf16.gmra.mxu1 %v3149_v9 }
  0xa3   :  { %2176 = vmatmul.bf16.gmra.mxu2 %v3153_v13 }
  0xa4   :  { %2455 = vmatmul.bf16.gmra.mxu3 %v3157_v14 }
  0xa6   :  { %v2137_v16 = vpop.f32.mrf.mxu2  ;;  %v1581_v19 = vpop.f32.mrf.mxu0 }
  0xa7   :  { %v2416_v17 = vpop.f32.mrf.mxu3  ;;  %v1860_v20 = vpop.f32.mrf.mxu1  ;;  %v1582_v21 = vadd.f32 %v4916_v10, %v1581_v19  ;;  %v2138_v24 = vadd.f32 %v2137_v16, %v1859_v18 }
  0xa9   :  { %v1861_v31 = vadd.f32 %v1860_v20, %v1582_v21  ;;  %v2417_v36 = vadd.f32 %v2416_v17, %v2138_v24  ;;  %v3192_v21 = vld [vmem:[%s6285_s0 + $0x160] sm:$0xf]  ;;  %v4050_v24 = vld [vmem:[%s6285_s0 + $0x164] sm:$0xf] }
  0xab   :  { %v2686_v43 = vmax.f32 %v2417_v36, 0.0 }
  0xae   :  { %v2139_v32 = vpop.f32.mrf.mxu2  ;;  %v1584_v38 = vpop.f32.mrf.mxu0 }
  0xaf   :  { %v2418_v33 = vpop.f32.mrf.mxu3  ;;  %v2140_v37 = vadd.f32 %v2139_v32, %v1861_v31  ;;  %v1863_v39 = vpop.f32.mrf.mxu1  ;;  %v1585_v45 = vadd.f32 %v4916_v10, %v1584_v38 }
  0xb1   :  { %v2419_v42 = vadd.f32 %v2418_v33, %v2140_v37  ;;  %1623 = vmatmul.bf16.gmra.mxu0 %v3161_v34  ;;  %v1864_v49 = vadd.f32 %v1863_v39, %v1585_v45  ;;  %v3193_v33 = vor.u32 %v4052_v22, %v3192_v21  ;;  %v3197_v34 = vor.u32 %v4050_v24, %v3194_v25  ;;  %v4060_v21 = vld [vmem:[%s6285_s0 + $0x1ac] sm:$0xf0]  ;;  %v3226_v24 = vld [vmem:[%s6285_s0 + $0x1b0] sm:$0xf0]  ;;  %v3232_v25 = vld [vmem:[%s6285_s0 + $0x1a8] sm:$0xf] }
  0xb2   :  { %1902 = vmatmul.bf16.gmra.mxu1 %v3165_v35  ;;  %v3201_v39 = vor.u32 %v4053_v27, %v3200_v26  ;;  %v4061_v26 = vld [vmem:[%s6285_s0 + $0x1b4] sm:$0xf0]  ;;  %v4059_v27 = vld [vmem:[%s6285_s0 + $0x1ac] sm:$0xf] }
  0xb3   :  { %v2687_v44 = vmax.f32 %v2419_v42, 0.0  ;;  %2181 = vmatmul.bf16.gmra.mxu2 %v3169_v40  ;;  %v3205_v40 = vor.u32 %v4051_v28, %v3202_v29  ;;  %v3234_v28 = vld [vmem:[%s6285_s0 + $0x1b8] sm:$0xf0] }
  0xb4   :  { %2460 = vmatmul.bf16.gmra.mxu3 %v3173_v41 }
  0xb5   :  { %v4257_v46 = vpack.c.bf16 %v2687_v44, %v2686_v43 }
  0xb6   :  { %v2142_v47 = vpop.f32.mrf.mxu2  ;;  %v1586_v50 = vpop.f32.mrf.mxu0 }
  0xb7   :  { %v2421_v48 = vpop.f32.mrf.mxu3  ;;  %4258 = vst [vmem:[%s6286_s3] sm:$0xff] %v4257_v46   ;;  %v1865_v51 = vpop.f32.mrf.mxu1  ;;  %v1587_v52 = vadd.f32 %v4916_v10, %v1586_v50  ;;  %v2143_v55 = vadd.f32 %v2142_v47, %v1864_v49 }
  0xb9   :  { %v1866_v62 = vadd.f32 %v1865_v51, %v1587_v52  ;;  %v2422_v3 = vadd.f32 %v2421_v48, %v2143_v55  ;;  %v3208_v52 = vld [vmem:[%s6285_s0 + $0x180] sm:$0xf]  ;;  %v4054_v55 = vld [vmem:[%s6285_s0 + $0x184] sm:$0xf] }
  0xbb   :  { %v2688_v11 = vmax.f32 %v2422_v3, 0.0 }
  0xbe   :  { %v2144_v63 = vpop.f32.mrf.mxu2  ;;  %v1589_v5 = vpop.f32.mrf.mxu0 }
  0xbf   :  { %v2423_v0 = vpop.f32.mrf.mxu3  ;;  %v2145_v4 = vadd.f32 %v2144_v63, %v1866_v62  ;;  %v1868_v6 = vpop.f32.mrf.mxu1  ;;  %v1590_v13 = vadd.f32 %v4916_v10, %v1589_v5 }
  0xc1   :  { %v2424_v9 = vadd.f32 %v2423_v0, %v2145_v4  ;;  %1628 = vmatmul.bf16.gmra.mxu0 %v3177_v1  ;;  %v1869_v17 = vadd.f32 %v1868_v6, %v1590_v13  ;;  %v3209_v0 = vor.u32 %v4056_v53, %v3208_v52  ;;  %v3213_v1 = vor.u32 %v4054_v55, %v3210_v56  ;;  %v4064_v52 = vld [vmem:[%s6285_s0 + $0x1cc] sm:$0xf0]  ;;  %v3242_v55 = vld [vmem:[%s6285_s0 + $0x1d0] sm:$0xf0]  ;;  %v3248_v56 = vld [vmem:[%s6285_s0 + $0x1c8] sm:$0xf] }
  0xc2   :  { %1907 = vmatmul.bf16.gmra.mxu1 %v3181_v2  ;;  %v3217_v6 = vor.u32 %v4057_v58, %v3216_v57  ;;  %v4065_v57 = vld [vmem:[%s6285_s0 + $0x1d4] sm:$0xf0]  ;;  %v4063_v58 = vld [vmem:[%s6285_s0 + $0x1cc] sm:$0xf] }
  0xc3   :  { %v2689_v12 = vmax.f32 %v2424_v9, 0.0  ;;  %2186 = vmatmul.bf16.gmra.mxu2 %v3185_v7  ;;  %v3221_v7 = vor.u32 %v4055_v59, %v3218_v60  ;;  %v3250_v59 = vld [vmem:[%s6285_s0 + $0x1d8] sm:$0xf0] }
  0xc4   :  { %2465 = vmatmul.bf16.gmra.mxu3 %v3189_v8 }
  0xc5   :  { %v4262_v14 = vpack.c.bf16 %v2689_v12, %v2688_v11 }
  0xc6   :  { %v2147_v15 = vpop.f32.mrf.mxu2  ;;  %v1591_v18 = vpop.f32.mrf.mxu0 }
  0xc7   :  { %v2426_v16 = vpop.f32.mrf.mxu3  ;;  %4524 = vst [vmem:[%s6286_s3 + $0x8] sm:$0xff] %v4262_v14   ;;  %v1870_v19 = vpop.f32.mrf.mxu1  ;;  %v1592_v20 = vadd.f32 %v4916_v10, %v1591_v18  ;;  %v2148_v23 = vadd.f32 %v2147_v15, %v1869_v17 }
  0xc9   :  { %v1871_v30 = vadd.f32 %v1870_v19, %v1592_v20  ;;  %v2427_v35 = vadd.f32 %v2426_v16, %v2148_v23  ;;  %v3224_v20 = vld [vmem:[%s6285_s0 + $0x1a0] sm:$0xf]  ;;  %v4058_v23 = vld [vmem:[%s6285_s0 + $0x1a4] sm:$0xf] }
  0xcb   :  { %v2690_v42 = vmax.f32 %v2427_v35, 0.0 }
  0xce   :  { %v2149_v31 = vpop.f32.mrf.mxu2  ;;  %v1594_v37 = vpop.f32.mrf.mxu0 }
  0xcf   :  { %v2428_v32 = vpop.f32.mrf.mxu3  ;;  %v2150_v36 = vadd.f32 %v2149_v31, %v1871_v30  ;;  %v1873_v38 = vpop.f32.mrf.mxu1  ;;  %v1595_v44 = vadd.f32 %v4916_v10, %v1594_v37 }
  0xd1   :  { %v2429_v41 = vadd.f32 %v2428_v32, %v2150_v36  ;;  %1633 = vmatmul.bf16.gmra.mxu0 %v3193_v33  ;;  %v1874_v48 = vadd.f32 %v1873_v38, %v1595_v44  ;;  %v3225_v32 = vor.u32 %v4060_v21, %v3224_v20  ;;  %v3229_v33 = vor.u32 %v4058_v23, %v3226_v24  ;;  %v4068_v20 = vld [vmem:[%s6285_s0 + $0x1ec] sm:$0xf0]  ;;  %v3258_v23 = vld [vmem:[%s6285_s0 + $0x1f0] sm:$0xf0]  ;;  %v3264_v24 = vld [vmem:[%s6285_s0 + $0x1e8] sm:$0xf] }
  0xd2   :  { %1912 = vmatmul.bf16.gmra.mxu1 %v3197_v34  ;;  %v3233_v38 = vor.u32 %v4061_v26, %v3232_v25  ;;  %v4069_v25 = vld [vmem:[%s6285_s0 + $0x1f4] sm:$0xf0]  ;;  %v4067_v26 = vld [vmem:[%s6285_s0 + $0x1ec] sm:$0xf] }
  0xd3   :  { %v2691_v43 = vmax.f32 %v2429_v41, 0.0  ;;  %2191 = vmatmul.bf16.gmra.mxu2 %v3201_v39  ;;  %v3237_v39 = vor.u32 %v4059_v27, %v3234_v28  ;;  %v3266_v27 = vld [vmem:[%s6285_s0 + $0x1f8] sm:$0xf0] }
  0xd4   :  { %2470 = vmatmul.bf16.gmra.mxu3 %v3205_v40 }
  0xd5   :  { %v4267_v45 = vpack.c.bf16 %v2691_v43, %v2690_v42 }
  0xd6   :  { %v2152_v46 = vpop.f32.mrf.mxu2  ;;  %v1596_v49 = vpop.f32.mrf.mxu0 }
  0xd7   :  { %v2431_v47 = vpop.f32.mrf.mxu3  ;;  %4525 = vst [vmem:[%s6286_s3 + $0x10] sm:$0xff] %v4267_v45   ;;  %v1875_v50 = vpop.f32.mrf.mxu1  ;;  %v1597_v51 = vadd.f32 %v4916_v10, %v1596_v49  ;;  %v2153_v54 = vadd.f32 %v2152_v46, %v1874_v48 }
  0xd9   :  { %v1876_v61 = vadd.f32 %v1875_v50, %v1597_v51  ;;  %v2432_v2 = vadd.f32 %v2431_v47, %v2153_v54  ;;  %v3240_v51 = vld [vmem:[%s6285_s0 + $0x1c0] sm:$0xf]  ;;  %v4062_v54 = vld [vmem:[%s6285_s0 + $0x1c4] sm:$0xf] }
  0xdb   :  { %v2692_v9 = vmax.f32 %v2432_v2, 0.0 }
  0xde   :  { %v2154_v62 = vpop.f32.mrf.mxu2  ;;  %v1599_v4 = vpop.f32.mrf.mxu0 }
  0xdf   :  { %v2433_v63 = vpop.f32.mrf.mxu3  ;;  %v2155_v3 = vadd.f32 %v2154_v62, %v1876_v61  ;;  %v1878_v5 = vpop.f32.mrf.mxu1  ;;  %v1600_v12 = vadd.f32 %v4916_v10, %v1599_v4 }
  0xe1   :  { %v2434_v8 = vadd.f32 %v2433_v63, %v2155_v3  ;;  %1638 = vmatmul.bf16.gmra.mxu0 %v3209_v0  ;;  %v1879_v16 = vadd.f32 %v1878_v5, %v1600_v12  ;;  %v3241_v63 = vor.u32 %v4064_v52, %v3240_v51  ;;  %v3245_v0 = vor.u32 %v4062_v54, %v3242_v55  ;;  %v4072_v51 = vld [vmem:[%s6285_s0 + $0x20c] sm:$0xf0]  ;;  %v3274_v54 = vld [vmem:[%s6285_s0 + $0x210] sm:$0xf0]  ;;  %v3280_v55 = vld [vmem:[%s6285_s0 + $0x208] sm:$0xf] }
  0xe2   :  { %1917 = vmatmul.bf16.gmra.mxu1 %v3213_v1  ;;  %v3249_v5 = vor.u32 %v4065_v57, %v3248_v56  ;;  %v4073_v56 = vld [vmem:[%s6285_s0 + $0x214] sm:$0xf0]  ;;  %v4071_v57 = vld [vmem:[%s6285_s0 + $0x20c] sm:$0xf] }
  0xe3   :  { %v2693_v11 = vmax.f32 %v2434_v8, 0.0  ;;  %2196 = vmatmul.bf16.gmra.mxu2 %v3217_v6  ;;  %v3253_v6 = vor.u32 %v4063_v58, %v3250_v59  ;;  %v3282_v58 = vld [vmem:[%s6285_s0 + $0x218] sm:$0xf0] }
  0xe4   :  { %2475 = vmatmul.bf16.gmra.mxu3 %v3221_v7 }
  0xe5   :  { %v4272_v13 = vpack.c.bf16 %v2693_v11, %v2692_v9 }
  0xe6   :  { %v2157_v14 = vpop.f32.mrf.mxu2  ;;  %v1601_v17 = vpop.f32.mrf.mxu0 }
  0xe7   :  { %v2436_v15 = vpop.f32.mrf.mxu3  ;;  %4526 = vst [vmem:[%s6286_s3 + $0x18] sm:$0xff] %v4272_v13   ;;  %v1880_v18 = vpop.f32.mrf.mxu1  ;;  %v1602_v19 = vadd.f32 %v4916_v10, %v1601_v17  ;;  %v2158_v22 = vadd.f32 %v2157_v14, %v1879_v16 }
  0xe9   :  { %v1881_v29 = vadd.f32 %v1880_v18, %v1602_v19  ;;  %v2437_v34 = vadd.f32 %v2436_v15, %v2158_v22  ;;  %v3256_v19 = vld [vmem:[%s6285_s0 + $0x1e0] sm:$0xf]  ;;  %v4066_v22 = vld [vmem:[%s6285_s0 + $0x1e4] sm:$0xf] }
  0xeb   :  { %v2694_v41 = vmax.f32 %v2437_v34, 0.0 }
  0xee   :  { %v2159_v30 = vpop.f32.mrf.mxu2  ;;  %v1604_v36 = vpop.f32.mrf.mxu0 }
  0xef   :  { %v2438_v31 = vpop.f32.mrf.mxu3  ;;  %v2160_v35 = vadd.f32 %v2159_v30, %v1881_v29  ;;  %v1883_v37 = vpop.f32.mrf.mxu1  ;;  %v1605_v43 = vadd.f32 %v4916_v10, %v1604_v36 }
  0xf1   :  { %v2439_v40 = vadd.f32 %v2438_v31, %v2160_v35  ;;  %1643 = vmatmul.bf16.gmra.mxu0 %v3225_v32  ;;  %v1884_v47 = vadd.f32 %v1883_v37, %v1605_v43  ;;  %v3257_v31 = vor.u32 %v4068_v20, %v3256_v19  ;;  %v3261_v32 = vor.u32 %v4066_v22, %v3258_v23  ;;  %v4076_v19 = vld [vmem:[%s6285_s0 + $0x22c] sm:$0xf0]  ;;  %v3290_v22 = vld [vmem:[%s6285_s0 + $0x230] sm:$0xf0]  ;;  %v3296_v23 = vld [vmem:[%s6285_s0 + $0x228] sm:$0xf] }
  0xf2   :  { %1922 = vmatmul.bf16.gmra.mxu1 %v3229_v33  ;;  %v3265_v37 = vor.u32 %v4069_v25, %v3264_v24  ;;  %v4077_v24 = vld [vmem:[%s6285_s0 + $0x234] sm:$0xf0]  ;;  %v4075_v25 = vld [vmem:[%s6285_s0 + $0x22c] sm:$0xf] }
  0xf3   :  { %v2695_v42 = vmax.f32 %v2439_v40, 0.0  ;;  %2201 = vmatmul.bf16.gmra.mxu2 %v3233_v38  ;;  %v3269_v38 = vor.u32 %v4067_v26, %v3266_v27  ;;  %v3298_v26 = vld [vmem:[%s6285_s0 + $0x238] sm:$0xf0] }
  0xf4   :  { %2480 = vmatmul.bf16.gmra.mxu3 %v3237_v39 }
  0xf5   :  { %v4277_v44 = vpack.c.bf16 %v2695_v42, %v2694_v41 }
  0xf6   :  { %v2162_v45 = vpop.f32.mrf.mxu2  ;;  %v1606_v48 = vpop.f32.mrf.mxu0 }
  0xf7   :  { %v2441_v46 = vpop.f32.mrf.mxu3  ;;  %4527 = vst [vmem:[%s6286_s3 + $0x20] sm:$0xff] %v4277_v44   ;;  %v1885_v49 = vpop.f32.mrf.mxu1  ;;  %v1607_v50 = vadd.f32 %v4916_v10, %v1606_v48  ;;  %v2163_v53 = vadd.f32 %v2162_v45, %v1884_v47 }
  0xf9   :  { %v1886_v60 = vadd.f32 %v1885_v49, %v1607_v50  ;;  %v2442_v1 = vadd.f32 %v2441_v46, %v2163_v53  ;;  %v3272_v50 = vld [vmem:[%s6285_s0 + $0x200] sm:$0xf]  ;;  %v4070_v53 = vld [vmem:[%s6285_s0 + $0x204] sm:$0xf] }
  0xfb   :  { %v2696_v8 = vmax.f32 %v2442_v1, 0.0 }
  0xfe   :  { %v2164_v61 = vpop.f32.mrf.mxu2  ;;  %v1609_v3 = vpop.f32.mrf.mxu0 }
  0xff   :  { %v2443_v62 = vpop.f32.mrf.mxu3  ;;  %v2165_v2 = vadd.f32 %v2164_v61, %v1886_v60  ;;  %v1888_v4 = vpop.f32.mrf.mxu1  ;;  %v1610_v11 = vadd.f32 %v4916_v10, %v1609_v3 }
 0x101   :  { %v2444_v7 = vadd.f32 %v2443_v62, %v2165_v2  ;;  %1648 = vmatmul.bf16.gmra.mxu0 %v3241_v63  ;;  %v1889_v15 = vadd.f32 %v1888_v4, %v1610_v11  ;;  %v3273_v62 = vor.u32 %v4072_v51, %v3272_v50  ;;  %v3277_v63 = vor.u32 %v4070_v53, %v3274_v54  ;;  %v4080_v50 = vld [vmem:[%s6285_s0 + $0x24c] sm:$0xf0]  ;;  %v3306_v53 = vld [vmem:[%s6285_s0 + $0x250] sm:$0xf0]  ;;  %v3312_v54 = vld [vmem:[%s6285_s0 + $0x248] sm:$0xf] }
 0x102   :  { %1927 = vmatmul.bf16.gmra.mxu1 %v3245_v0  ;;  %v3281_v4 = vor.u32 %v4073_v56, %v3280_v55  ;;  %v4081_v55 = vld [vmem:[%s6285_s0 + $0x254] sm:$0xf0]  ;;  %v4079_v56 = vld [vmem:[%s6285_s0 + $0x24c] sm:$0xf] }
 0x103   :  { %v2697_v9 = vmax.f32 %v2444_v7, 0.0  ;;  %2206 = vmatmul.bf16.gmra.mxu2 %v3249_v5  ;;  %v3285_v5 = vor.u32 %v4071_v57, %v3282_v58  ;;  %v3314_v57 = vld [vmem:[%s6285_s0 + $0x258] sm:$0xf0] }
 0x104   :  { %2485 = vmatmul.bf16.gmra.mxu3 %v3253_v6 }
 0x105   :  { %v4282_v12 = vpack.c.bf16 %v2697_v9, %v2696_v8 }
 0x106   :  { %v2167_v13 = vpop.f32.mrf.mxu2  ;;  %v1611_v16 = vpop.f32.mrf.mxu0 }
 0x107   :  { %v2446_v14 = vpop.f32.mrf.mxu3  ;;  %4528 = vst [vmem:[%s6286_s3 + $0x28] sm:$0xff] %v4282_v12   ;;  %v1890_v17 = vpop.f32.mrf.mxu1  ;;  %v1612_v18 = vadd.f32 %v4916_v10, %v1611_v16  ;;  %v2168_v21 = vadd.f32 %v2167_v13, %v1889_v15 }
 0x109   :  { %v1891_v28 = vadd.f32 %v1890_v17, %v1612_v18  ;;  %v2447_v33 = vadd.f32 %v2446_v14, %v2168_v21  ;;  %v3288_v18 = vld [vmem:[%s6285_s0 + $0x220] sm:$0xf]  ;;  %v4074_v21 = vld [vmem:[%s6285_s0 + $0x224] sm:$0xf] }
 0x10b   :  { %v2698_v40 = vmax.f32 %v2447_v33, 0.0 }
 0x10e   :  { %v2169_v29 = vpop.f32.mrf.mxu2  ;;  %v1614_v35 = vpop.f32.mrf.mxu0 }
 0x10f   :  { %v2448_v30 = vpop.f32.mrf.mxu3  ;;  %v2170_v34 = vadd.f32 %v2169_v29, %v1891_v28  ;;  %v1893_v36 = vpop.f32.mrf.mxu1  ;;  %v1615_v42 = vadd.f32 %v4916_v10, %v1614_v35 }
 0x111   :  { %v2449_v39 = vadd.f32 %v2448_v30, %v2170_v34  ;;  %1653 = vmatmul.bf16.gmra.mxu0 %v3257_v31  ;;  %v1894_v46 = vadd.f32 %v1893_v36, %v1615_v42  ;;  %v3289_v30 = vor.u32 %v4076_v19, %v3288_v18  ;;  %v3293_v31 = vor.u32 %v4074_v21, %v3290_v22  ;;  %v4084_v18 = vld [vmem:[%s6285_s0 + $0x26c] sm:$0xf0]  ;;  %v3322_v21 = vld [vmem:[%s6285_s0 + $0x270] sm:$0xf0]  ;;  %v3328_v22 = vld [vmem:[%s6285_s0 + $0x268] sm:$0xf] }
 0x112   :  { %1932 = vmatmul.bf16.gmra.mxu1 %v3261_v32  ;;  %v3297_v36 = vor.u32 %v4077_v24, %v3296_v23  ;;  %v4085_v23 = vld [vmem:[%s6285_s0 + $0x274] sm:$0xf0]  ;;  %v4083_v24 = vld [vmem:[%s6285_s0 + $0x26c] sm:$0xf] }
 0x113   :  { %v2699_v41 = vmax.f32 %v2449_v39, 0.0  ;;  %2211 = vmatmul.bf16.gmra.mxu2 %v3265_v37  ;;  %v3301_v37 = vor.u32 %v4075_v25, %v3298_v26  ;;  %v3330_v25 = vld [vmem:[%s6285_s0 + $0x278] sm:$0xf0] }
 0x114   :  { %2490 = vmatmul.bf16.gmra.mxu3 %v3269_v38 }
 0x115   :  { %v4287_v43 = vpack.c.bf16 %v2699_v41, %v2698_v40 }
 0x116   :  { %v2172_v44 = vpop.f32.mrf.mxu2  ;;  %v1616_v47 = vpop.f32.mrf.mxu0 }
 0x117   :  { %v2451_v45 = vpop.f32.mrf.mxu3  ;;  %4529 = vst [vmem:[%s6286_s3 + $0x30] sm:$0xff] %v4287_v43   ;;  %v1895_v48 = vpop.f32.mrf.mxu1  ;;  %v1617_v49 = vadd.f32 %v4916_v10, %v1616_v47  ;;  %v2173_v52 = vadd.f32 %v2172_v44, %v1894_v46 }
 0x119   :  { %v1896_v59 = vadd.f32 %v1895_v48, %v1617_v49  ;;  %v2452_v0 = vadd.f32 %v2451_v45, %v2173_v52  ;;  %v3304_v49 = vld [vmem:[%s6285_s0 + $0x240] sm:$0xf]  ;;  %v4078_v52 = vld [vmem:[%s6285_s0 + $0x244] sm:$0xf] }
 0x11b   :  { %v2700_v7 = vmax.f32 %v2452_v0, 0.0 }
 0x11e   :  { %v2174_v60 = vpop.f32.mrf.mxu2  ;;  %v1619_v2 = vpop.f32.mrf.mxu0 }
 0x11f   :  { %v2453_v61 = vpop.f32.mrf.mxu3  ;;  %v2175_v1 = vadd.f32 %v2174_v60, %v1896_v59  ;;  %v1898_v3 = vpop.f32.mrf.mxu1  ;;  %v1620_v9 = vadd.f32 %v4916_v10, %v1619_v2 }
 0x121   :  { %v2454_v6 = vadd.f32 %v2453_v61, %v2175_v1  ;;  %1658 = vmatmul.bf16.gmra.mxu0 %v3273_v62  ;;  %v1899_v14 = vadd.f32 %v1898_v3, %v1620_v9  ;;  %v3305_v61 = vor.u32 %v4080_v50, %v3304_v49  ;;  %v3309_v62 = vor.u32 %v4078_v52, %v3306_v53  ;;  %v4088_v49 = vld [vmem:[%s6285_s0 + $0x28c] sm:$0xf0]  ;;  %v3338_v52 = vld [vmem:[%s6285_s0 + $0x290] sm:$0xf0]  ;;  %v3344_v53 = vld [vmem:[%s6285_s0 + $0x288] sm:$0xf] }
 0x122   :  { %1937 = vmatmul.bf16.gmra.mxu1 %v3277_v63  ;;  %v3313_v3 = vor.u32 %v4081_v55, %v3312_v54  ;;  %v4089_v54 = vld [vmem:[%s6285_s0 + $0x294] sm:$0xf0]  ;;  %v4087_v55 = vld [vmem:[%s6285_s0 + $0x28c] sm:$0xf] }
 0x123   :  { %v2701_v8 = vmax.f32 %v2454_v6, 0.0  ;;  %2216 = vmatmul.bf16.gmra.mxu2 %v3281_v4  ;;  %v3317_v4 = vor.u32 %v4079_v56, %v3314_v57  ;;  %v3346_v56 = vld [vmem:[%s6285_s0 + $0x298] sm:$0xf0] }
 0x124   :  { %2495 = vmatmul.bf16.gmra.mxu3 %v3285_v5 }
 0x125   :  { %v4292_v11 = vpack.c.bf16 %v2701_v8, %v2700_v7 }
 0x126   :  { %v2177_v12 = vpop.f32.mrf.mxu2  ;;  %v1621_v15 = vpop.f32.mrf.mxu0 }
 0x127   :  { %v2456_v13 = vpop.f32.mrf.mxu3  ;;  %4530 = vst [vmem:[%s6286_s3 + $0x38] sm:$0xff] %v4292_v11   ;;  %v1900_v16 = vpop.f32.mrf.mxu1  ;;  %v1622_v17 = vadd.f32 %v4916_v10, %v1621_v15  ;;  %v2178_v20 = vadd.f32 %v2177_v12, %v1899_v14 }
 0x129   :  { %v1901_v27 = vadd.f32 %v1900_v16, %v1622_v17  ;;  %v2457_v32 = vadd.f32 %v2456_v13, %v2178_v20  ;;  %v3320_v17 = vld [vmem:[%s6285_s0 + $0x260] sm:$0xf]  ;;  %v4082_v20 = vld [vmem:[%s6285_s0 + $0x264] sm:$0xf] }
 0x12b   :  { %v2702_v39 = vmax.f32 %v2457_v32, 0.0 }
 0x12e   :  { %v2179_v28 = vpop.f32.mrf.mxu2  ;;  %v1624_v34 = vpop.f32.mrf.mxu0 }
 0x12f   :  { %v2458_v29 = vpop.f32.mrf.mxu3  ;;  %v2180_v33 = vadd.f32 %v2179_v28, %v1901_v27  ;;  %v1903_v35 = vpop.f32.mrf.mxu1  ;;  %v1625_v41 = vadd.f32 %v4916_v10, %v1624_v34 }
 0x131   :  { %v2459_v38 = vadd.f32 %v2458_v29, %v2180_v33  ;;  %1663 = vmatmul.bf16.gmra.mxu0 %v3289_v30  ;;  %v1904_v45 = vadd.f32 %v1903_v35, %v1625_v41  ;;  %v3321_v29 = vor.u32 %v4084_v18, %v3320_v17  ;;  %v3325_v30 = vor.u32 %v4082_v20, %v3322_v21  ;;  %v4092_v17 = vld [vmem:[%s6285_s0 + $0x2ac] sm:$0xf0]  ;;  %v3354_v20 = vld [vmem:[%s6285_s0 + $0x2b0] sm:$0xf0]  ;;  %v3360_v21 = vld [vmem:[%s6285_s0 + $0x2a8] sm:$0xf] }
 0x132   :  { %1942 = vmatmul.bf16.gmra.mxu1 %v3293_v31  ;;  %v3329_v35 = vor.u32 %v4085_v23, %v3328_v22  ;;  %v4093_v22 = vld [vmem:[%s6285_s0 + $0x2b4] sm:$0xf0]  ;;  %v4091_v23 = vld [vmem:[%s6285_s0 + $0x2ac] sm:$0xf] }
 0x133   :  { %v2703_v40 = vmax.f32 %v2459_v38, 0.0  ;;  %2221 = vmatmul.bf16.gmra.mxu2 %v3297_v36  ;;  %v3333_v36 = vor.u32 %v4083_v24, %v3330_v25  ;;  %v3362_v24 = vld [vmem:[%s6285_s0 + $0x2b8] sm:$0xf0] }
 0x134   :  { %2500 = vmatmul.bf16.gmra.mxu3 %v3301_v37 }
 0x135   :  { %v4297_v42 = vpack.c.bf16 %v2703_v40, %v2702_v39 }
 0x136   :  { %v2182_v43 = vpop.f32.mrf.mxu2  ;;  %v1626_v46 = vpop.f32.mrf.mxu0 }
 0x137   :  { %v2461_v44 = vpop.f32.mrf.mxu3  ;;  %4531 = vst [vmem:[%s6286_s3 + $0x40] sm:$0xff] %v4297_v42   ;;  %v1905_v47 = vpop.f32.mrf.mxu1  ;;  %v1627_v48 = vadd.f32 %v4916_v10, %v1626_v46  ;;  %v2183_v51 = vadd.f32 %v2182_v43, %v1904_v45 }
 0x139   :  { %v1906_v58 = vadd.f32 %v1905_v47, %v1627_v48  ;;  %v2462_v63 = vadd.f32 %v2461_v44, %v2183_v51  ;;  %v3336_v48 = vld [vmem:[%s6285_s0 + $0x280] sm:$0xf]  ;;  %v4086_v51 = vld [vmem:[%s6285_s0 + $0x284] sm:$0xf] }
 0x13b   :  { %v2704_v6 = vmax.f32 %v2462_v63, 0.0 }
 0x13e   :  { %v2184_v59 = vpop.f32.mrf.mxu2  ;;  %v1629_v1 = vpop.f32.mrf.mxu0 }
 0x13f   :  { %v2463_v60 = vpop.f32.mrf.mxu3  ;;  %v2185_v0 = vadd.f32 %v2184_v59, %v1906_v58  ;;  %v1908_v2 = vpop.f32.mrf.mxu1  ;;  %v1630_v8 = vadd.f32 %v4916_v10, %v1629_v1 }
 0x141   :  { %v2464_v5 = vadd.f32 %v2463_v60, %v2185_v0  ;;  %1668 = vmatmul.bf16.gmra.mxu0 %v3305_v61  ;;  %v1909_v13 = vadd.f32 %v1908_v2, %v1630_v8  ;;  %v3337_v60 = vor.u32 %v4088_v49, %v3336_v48  ;;  %v3341_v61 = vor.u32 %v4086_v51, %v3338_v52  ;;  %v4096_v48 = vld [vmem:[%s6285_s0 + $0x2cc] sm:$0xf0]  ;;  %v3370_v51 = vld [vmem:[%s6285_s0 + $0x2d0] sm:$0xf0]  ;;  %v3376_v52 = vld [vmem:[%s6285_s0 + $0x2c8] sm:$0xf] }
 0x142   :  { %1947 = vmatmul.bf16.gmra.mxu1 %v3309_v62  ;;  %v3345_v2 = vor.u32 %v4089_v54, %v3344_v53  ;;  %v4097_v53 = vld [vmem:[%s6285_s0 + $0x2d4] sm:$0xf0]  ;;  %v4095_v54 = vld [vmem:[%s6285_s0 + $0x2cc] sm:$0xf] }
 0x143   :  { %v2705_v7 = vmax.f32 %v2464_v5, 0.0  ;;  %2226 = vmatmul.bf16.gmra.mxu2 %v3313_v3  ;;  %v3349_v3 = vor.u32 %v4087_v55, %v3346_v56  ;;  %v3378_v55 = vld [vmem:[%s6285_s0 + $0x2d8] sm:$0xf0] }
 0x144   :  { %2505 = vmatmul.bf16.gmra.mxu3 %v3317_v4 }
 0x145   :  { %v4302_v9 = vpack.c.bf16 %v2705_v7, %v2704_v6 }
 0x146   :  { %v2187_v11 = vpop.f32.mrf.mxu2  ;;  %v1631_v14 = vpop.f32.mrf.mxu0 }
 0x147   :  { %v2466_v12 = vpop.f32.mrf.mxu3  ;;  %4532 = vst [vmem:[%s6286_s3 + $0x48] sm:$0xff] %v4302_v9   ;;  %v1910_v15 = vpop.f32.mrf.mxu1  ;;  %v1632_v16 = vadd.f32 %v4916_v10, %v1631_v14  ;;  %v2188_v19 = vadd.f32 %v2187_v11, %v1909_v13 }
 0x149   :  { %v1911_v26 = vadd.f32 %v1910_v15, %v1632_v16  ;;  %v2467_v31 = vadd.f32 %v2466_v12, %v2188_v19  ;;  %v3352_v16 = vld [vmem:[%s6285_s0 + $0x2a0] sm:$0xf]  ;;  %v4090_v19 = vld [vmem:[%s6285_s0 + $0x2a4] sm:$0xf] }
 0x14b   :  { %v2706_v38 = vmax.f32 %v2467_v31, 0.0 }
 0x14e   :  { %v2189_v27 = vpop.f32.mrf.mxu2  ;;  %v1634_v33 = vpop.f32.mrf.mxu0 }
 0x14f   :  { %v2468_v28 = vpop.f32.mrf.mxu3  ;;  %v2190_v32 = vadd.f32 %v2189_v27, %v1911_v26  ;;  %v1913_v34 = vpop.f32.mrf.mxu1  ;;  %v1635_v40 = vadd.f32 %v4916_v10, %v1634_v33 }
 0x151   :  { %v2469_v37 = vadd.f32 %v2468_v28, %v2190_v32  ;;  %1673 = vmatmul.bf16.gmra.mxu0 %v3321_v29  ;;  %v1914_v44 = vadd.f32 %v1913_v34, %v1635_v40  ;;  %v3353_v28 = vor.u32 %v4092_v17, %v3352_v16  ;;  %v3357_v29 = vor.u32 %v4090_v19, %v3354_v20  ;;  %v4100_v16 = vld [vmem:[%s6285_s0 + $0x2ec] sm:$0xf0]  ;;  %v3386_v19 = vld [vmem:[%s6285_s0 + $0x2f0] sm:$0xf0]  ;;  %v3392_v20 = vld [vmem:[%s6285_s0 + $0x2e8] sm:$0xf] }
 0x152   :  { %1952 = vmatmul.bf16.gmra.mxu1 %v3325_v30  ;;  %v3361_v34 = vor.u32 %v4093_v22, %v3360_v21  ;;  %v4101_v21 = vld [vmem:[%s6285_s0 + $0x2f4] sm:$0xf0]  ;;  %v4099_v22 = vld [vmem:[%s6285_s0 + $0x2ec] sm:$0xf] }
 0x153   :  { %v2707_v39 = vmax.f32 %v2469_v37, 0.0  ;;  %2231 = vmatmul.bf16.gmra.mxu2 %v3329_v35  ;;  %v3365_v35 = vor.u32 %v4091_v23, %v3362_v24  ;;  %v3394_v23 = vld [vmem:[%s6285_s0 + $0x2f8] sm:$0xf0] }
 0x154   :  { %2510 = vmatmul.bf16.gmra.mxu3 %v3333_v36 }
 0x155   :  { %v4307_v41 = vpack.c.bf16 %v2707_v39, %v2706_v38 }
 0x156   :  { %v2192_v42 = vpop.f32.mrf.mxu2  ;;  %v1636_v45 = vpop.f32.mrf.mxu0 }
 0x157   :  { %v2471_v43 = vpop.f32.mrf.mxu3  ;;  %4533 = vst [vmem:[%s6286_s3 + $0x50] sm:$0xff] %v4307_v41   ;;  %v1915_v46 = vpop.f32.mrf.mxu1  ;;  %v1637_v47 = vadd.f32 %v4916_v10, %v1636_v45  ;;  %v2193_v50 = vadd.f32 %v2192_v42, %v1914_v44 }
 0x159   :  { %v1916_v57 = vadd.f32 %v1915_v46, %v1637_v47  ;;  %v2472_v62 = vadd.f32 %v2471_v43, %v2193_v50  ;;  %v3368_v47 = vld [vmem:[%s6285_s0 + $0x2c0] sm:$0xf]  ;;  %v4094_v50 = vld [vmem:[%s6285_s0 + $0x2c4] sm:$0xf] }
 0x15b   :  { %v2708_v5 = vmax.f32 %v2472_v62, 0.0 }
 0x15e   :  { %v2194_v58 = vpop.f32.mrf.mxu2  ;;  %v1639_v0 = vpop.f32.mrf.mxu0 }
 0x15f   :  { %v2473_v59 = vpop.f32.mrf.mxu3  ;;  %v2195_v63 = vadd.f32 %v2194_v58, %v1916_v57  ;;  %v1918_v1 = vpop.f32.mrf.mxu1  ;;  %v1640_v7 = vadd.f32 %v4916_v10, %v1639_v0 }
 0x161   :  { %v2474_v4 = vadd.f32 %v2473_v59, %v2195_v63  ;;  %1678 = vmatmul.bf16.gmra.mxu0 %v3337_v60  ;;  %v1919_v12 = vadd.f32 %v1918_v1, %v1640_v7  ;;  %v3369_v59 = vor.u32 %v4096_v48, %v3368_v47  ;;  %v3373_v60 = vor.u32 %v4094_v50, %v3370_v51  ;;  %v4104_v47 = vld [vmem:[%s6285_s0 + $0x30c] sm:$0xf0]  ;;  %v3402_v50 = vld [vmem:[%s6285_s0 + $0x310] sm:$0xf0]  ;;  %v3408_v51 = vld [vmem:[%s6285_s0 + $0x308] sm:$0xf] }
 0x162   :  { %1957 = vmatmul.bf16.gmra.mxu1 %v3341_v61  ;;  %v3377_v1 = vor.u32 %v4097_v53, %v3376_v52  ;;  %v4105_v52 = vld [vmem:[%s6285_s0 + $0x314] sm:$0xf0]  ;;  %v4103_v53 = vld [vmem:[%s6285_s0 + $0x30c] sm:$0xf] }
 0x163   :  { %v2709_v6 = vmax.f32 %v2474_v4, 0.0  ;;  %2236 = vmatmul.bf16.gmra.mxu2 %v3345_v2  ;;  %v3381_v2 = vor.u32 %v4095_v54, %v3378_v55  ;;  %v3410_v54 = vld [vmem:[%s6285_s0 + $0x318] sm:$0xf0] }
 0x164   :  { %2515 = vmatmul.bf16.gmra.mxu3 %v3349_v3 }
 0x165   :  { %v4312_v8 = vpack.c.bf16 %v2709_v6, %v2708_v5 }
 0x166   :  { %v2197_v9 = vpop.f32.mrf.mxu2  ;;  %v1641_v13 = vpop.f32.mrf.mxu0 }
 0x167   :  { %v2476_v11 = vpop.f32.mrf.mxu3  ;;  %4534 = vst [vmem:[%s6286_s3 + $0x58] sm:$0xff] %v4312_v8   ;;  %v1920_v14 = vpop.f32.mrf.mxu1  ;;  %v1642_v15 = vadd.f32 %v4916_v10, %v1641_v13  ;;  %v2198_v18 = vadd.f32 %v2197_v9, %v1919_v12 }
 0x169   :  { %v1921_v25 = vadd.f32 %v1920_v14, %v1642_v15  ;;  %v2477_v30 = vadd.f32 %v2476_v11, %v2198_v18  ;;  %v5328_v14 = vld [vmem:[%s6284_s2] ss:$0 sm:$0xff]  ;;  %v4098_v18 = vld [vmem:[%s6285_s0 + $0x2e4] sm:$0xf] }
 0x16b   :  { %v2710_v37 = vmax.f32 %v2477_v30, 0.0 }
 0x16e   :  { %v2199_v26 = vpop.f32.mrf.mxu2  ;;  %v1644_v32 = vpop.f32.mrf.mxu0 }
 0x16f   :  { %v2478_v27 = vpop.f32.mrf.mxu3  ;;  %v2200_v31 = vadd.f32 %v2199_v26, %v1921_v25  ;;  %v1923_v33 = vpop.f32.mrf.mxu1  ;;  %v1645_v39 = vadd.f32 %v4916_v10, %v1644_v32 }
 0x171   :  { %v2479_v36 = vadd.f32 %v2478_v27, %v2200_v31  ;;  %1683 = vmatmul.bf16.gmra.mxu0 %v3353_v28  ;;  %v1924_v43 = vadd.f32 %v1923_v33, %v1645_v39  ;;  %v3389_v28 = vor.u32 %v4098_v18, %v3386_v19  ;;  %v3393_v33 = vor.u32 %v4101_v21, %v3392_v20  ;;  %v3418_v18 = vld [vmem:[%s6285_s0 + $0x330] sm:$0xf0]  ;;  %v3424_v19 = vld [vmem:[%s6285_s0 + $0x328] sm:$0xf]  ;;  %v4109_v20 = vld [vmem:[%s6285_s0 + $0x334] sm:$0xf0] }
 0x172   :  { %1962 = vmatmul.bf16.gmra.mxu1 %v3357_v29  ;;  %v4107_v21 = vld [vmem:[%s6285_s0 + $0x32c] sm:$0xf] }
 0x173   :  { %v2711_v38 = vmax.f32 %v2479_v36, 0.0  ;;  %2241 = vmatmul.bf16.gmra.mxu2 %v3361_v34  ;;  %v3397_v34 = vor.u32 %v4099_v22, %v3394_v23  ;;  %v3426_v22 = vld [vmem:[%s6285_s0 + $0x338] sm:$0xf0] }
 0x174   :  { %2520 = vmatmul.bf16.gmra.mxu3 %v3365_v35 }
 0x175   :  { %v4317_v40 = vpack.c.bf16 %v2711_v38, %v2710_v37 }
 0x176   :  { %v2202_v41 = vpop.f32.mrf.mxu2  ;;  %v1646_v44 = vpop.f32.mrf.mxu0 }
 0x177   :  { %v2481_v42 = vpop.f32.mrf.mxu3  ;;  %4535 = vst [vmem:[%s6286_s3 + $0x60] sm:$0xff] %v4317_v40   ;;  %v1925_v45 = vpop.f32.mrf.mxu1  ;;  %v1647_v46 = vadd.f32 %v4916_v10, %v1646_v44  ;;  %v2203_v49 = vadd.f32 %v2202_v41, %v1924_v43 }
 0x179   :  { %v1926_v56 = vadd.f32 %v1925_v45, %v1647_v46  ;;  %v2482_v61 = vadd.f32 %v2481_v42, %v2203_v49  ;;  %v3400_v46 = vld [vmem:[%s6285_s0 + $0x300] sm:$0xf]  ;;  %v4102_v49 = vld [vmem:[%s6285_s0 + $0x304] sm:$0xf] }
 0x17b   :  { %v2712_v4 = vmax.f32 %v2482_v61, 0.0 }
 0x17e   :  { %v2204_v57 = vpop.f32.mrf.mxu2  ;;  %v1649_v63 = vpop.f32.mrf.mxu0 }
 0x17f   :  { %v2483_v58 = vpop.f32.mrf.mxu3  ;;  %v2205_v62 = vadd.f32 %v2204_v57, %v1926_v56  ;;  %v1928_v0 = vpop.f32.mrf.mxu1  ;;  %v1650_v6 = vadd.f32 %v4916_v10, %v1649_v63  ;;  %v3384_v10 = vld [vmem:[%s6285_s0 + $0x2e0] sm:$0xf] }
 0x180   :  { %v3385_v27 = vor.u32 %v4100_v16, %v3384_v10  ;;  %v4108_v10 = vld [vmem:[%s6285_s0 + $0x32c] sm:$0xf0] }
 0x181   :  { %v2484_v3 = vadd.f32 %v2483_v58, %v2205_v62  ;;  %1688 = vmatmul.bf16.gmra.mxu0 %v3369_v59  ;;  %v1929_v11 = vadd.f32 %v1928_v0, %v1650_v6  ;;  %v3401_v58 = vor.u32 %v4104_v47, %v3400_v46  ;;  %v3405_v59 = vor.u32 %v4102_v49, %v3402_v50  ;;  %v4112_v46 = vld [vmem:[%s6285_s0 + $0x34c] sm:$0xf0]  ;;  %v3434_v49 = vld [vmem:[%s6285_s0 + $0x350] sm:$0xf0]  ;;  %v3440_v50 = vld [vmem:[%s6285_s0 + $0x348] sm:$0xf] }
 0x182   :  { %1967 = vmatmul.bf16.gmra.mxu1 %v3373_v60  ;;  %v3409_v0 = vor.u32 %v4105_v52, %v3408_v51  ;;  %v4113_v51 = vld [vmem:[%s6285_s0 + $0x354] sm:$0xf0]  ;;  %v4111_v52 = vld [vmem:[%s6285_s0 + $0x34c] sm:$0xf] }
 0x183   :  { %v2713_v5 = vmax.f32 %v2484_v3, 0.0  ;;  %2246 = vmatmul.bf16.gmra.mxu2 %v3377_v1  ;;  %v3413_v1 = vor.u32 %v4103_v53, %v3410_v54  ;;  %v3442_v53 = vld [vmem:[%s6285_s0 + $0x358] sm:$0xf0] }
 0x184   :  { %2525 = vmatmul.bf16.gmra.mxu3 %v3381_v2 }
 0x185   :  { %v4322_v7 = vpack.c.bf16 %v2713_v5, %v2712_v4 }
 0x186   :  { %v2207_v8 = vpop.f32.mrf.mxu2  ;;  %v1651_v12 = vpop.f32.mrf.mxu0 }
 0x187   :  { %v2486_v9 = vpop.f32.mrf.mxu3  ;;  %4536 = vst [vmem:[%s6286_s3 + $0x68] sm:$0xff] %v4322_v7   ;;  %v1930_v13 = vpop.f32.mrf.mxu1  ;;  %v1652_v15 = vadd.f32 %v5328_v14, %v1651_v12  ;;  %v2208_v17 = vadd.f32 %v2207_v8, %v1929_v11 }
 0x189   :  { %v1931_v24 = vadd.f32 %v1930_v13, %v1652_v15  ;;  %v2487_v29 = vadd.f32 %v2486_v9, %v2208_v17  ;;  %v3416_v15 = vld [vmem:[%s6285_s0 + $0x320] sm:$0xf]  ;;  %v4106_v17 = vld [vmem:[%s6285_s0 + $0x324] sm:$0xf] }
 0x18b   :  { %v2714_v36 = vmax.f32 %v2487_v29, 0.0 }
 0x18e   :  { %v2209_v25 = vpop.f32.mrf.mxu2  ;;  %v1654_v31 = vpop.f32.mrf.mxu0 }
 0x18f   :  { %v2488_v26 = vpop.f32.mrf.mxu3  ;;  %v2210_v30 = vadd.f32 %v2209_v25, %v1931_v24  ;;  %v1933_v32 = vpop.f32.mrf.mxu1  ;;  %v1655_v38 = vadd.f32 %v5328_v14, %v1654_v31 }
 0x191   :  { %v2489_v35 = vadd.f32 %v2488_v26, %v2210_v30  ;;  %1693 = vmatmul.bf16.gmra.mxu0 %v3385_v27  ;;  %v1934_v42 = vadd.f32 %v1933_v32, %v1655_v38  ;;  %v3417_v26 = vor.u32 %v4108_v10, %v3416_v15  ;;  %v3421_v27 = vor.u32 %v4106_v17, %v3418_v18  ;;  %v4116_v15 = vld [vmem:[%s6285_s0 + $0x36c] sm:$0xf0]  ;;  %v3450_v17 = vld [vmem:[%s6285_s0 + $0x370] sm:$0xf0]  ;;  %v3456_v18 = vld [vmem:[%s6285_s0 + $0x368] sm:$0xf] }
 0x192   :  { %1972 = vmatmul.bf16.gmra.mxu1 %v3389_v28  ;;  %v3425_v32 = vor.u32 %v4109_v20, %v3424_v19  ;;  %v4117_v19 = vld [vmem:[%s6285_s0 + $0x374] sm:$0xf0]  ;;  %v4115_v20 = vld [vmem:[%s6285_s0 + $0x36c] sm:$0xf] }
 0x193   :  { %v2715_v37 = vmax.f32 %v2489_v35, 0.0  ;;  %2251 = vmatmul.bf16.gmra.mxu2 %v3393_v33  ;;  %v3429_v33 = vor.u32 %v4107_v21, %v3426_v22  ;;  %v3458_v21 = vld [vmem:[%s6285_s0 + $0x378] sm:$0xf0] }
 0x194   :  { %2530 = vmatmul.bf16.gmra.mxu3 %v3397_v34 }
 0x195   :  { %v4327_v39 = vpack.c.bf16 %v2715_v37, %v2714_v36 }
 0x196   :  { %v2212_v40 = vpop.f32.mrf.mxu2  ;;  %v1656_v43 = vpop.f32.mrf.mxu0 }
 0x197   :  { %v2491_v41 = vpop.f32.mrf.mxu3  ;;  %4537 = vst [vmem:[%s6286_s3 + $0x70] sm:$0xff] %v4327_v39   ;;  %v1935_v44 = vpop.f32.mrf.mxu1  ;;  %v1657_v45 = vadd.f32 %v5328_v14, %v1656_v43  ;;  %v2213_v48 = vadd.f32 %v2212_v40, %v1934_v42 }
 0x199   :  { %v1936_v55 = vadd.f32 %v1935_v44, %v1657_v45  ;;  %v2492_v60 = vadd.f32 %v2491_v41, %v2213_v48  ;;  %v3432_v45 = vld [vmem:[%s6285_s0 + $0x340] sm:$0xf]  ;;  %v4110_v48 = vld [vmem:[%s6285_s0 + $0x344] sm:$0xf] }
 0x19b   :  { %v2716_v3 = vmax.f32 %v2492_v60, 0.0 }
 0x19e   :  { %v2214_v56 = vpop.f32.mrf.mxu2  ;;  %v1659_v62 = vpop.f32.mrf.mxu0 }
 0x19f   :  { %v2493_v57 = vpop.f32.mrf.mxu3  ;;  %v2215_v61 = vadd.f32 %v2214_v56, %v1936_v55  ;;  %v1938_v63 = vpop.f32.mrf.mxu1  ;;  %v1660_v5 = vadd.f32 %v5328_v14, %v1659_v62 }
 0x1a1   :  { %v2494_v2 = vadd.f32 %v2493_v57, %v2215_v61  ;;  %1698 = vmatmul.bf16.gmra.mxu0 %v3401_v58  ;;  %v1939_v9 = vadd.f32 %v1938_v63, %v1660_v5  ;;  %v3433_v57 = vor.u32 %v4112_v46, %v3432_v45  ;;  %v3437_v58 = vor.u32 %v4110_v48, %v3434_v49  ;;  %v4120_v45 = vld [vmem:[%s6285_s0 + $0x38c] sm:$0xf0]  ;;  %v3466_v48 = vld [vmem:[%s6285_s0 + $0x390] sm:$0xf0]  ;;  %v3472_v49 = vld [vmem:[%s6285_s0 + $0x388] sm:$0xf] }
 0x1a2   :  { %1977 = vmatmul.bf16.gmra.mxu1 %v3405_v59  ;;  %v3441_v63 = vor.u32 %v4113_v51, %v3440_v50  ;;  %v4121_v50 = vld [vmem:[%s6285_s0 + $0x394] sm:$0xf0]  ;;  %v4119_v51 = vld [vmem:[%s6285_s0 + $0x38c] sm:$0xf] }
 0x1a3   :  { %v2717_v4 = vmax.f32 %v2494_v2, 0.0  ;;  %2256 = vmatmul.bf16.gmra.mxu2 %v3409_v0  ;;  %v3445_v0 = vor.u32 %v4111_v52, %v3442_v53  ;;  %v3474_v52 = vld [vmem:[%s6285_s0 + $0x398] sm:$0xf0] }
 0x1a4   :  { %2535 = vmatmul.bf16.gmra.mxu3 %v3413_v1 }
 0x1a5   :  { %v4332_v6 = vpack.c.bf16 %v2717_v4, %v2716_v3 }
 0x1a6   :  { %v2217_v7 = vpop.f32.mrf.mxu2  ;;  %v1661_v11 = vpop.f32.mrf.mxu0 }
 0x1a7   :  { %v2496_v8 = vpop.f32.mrf.mxu3  ;;  %4538 = vst [vmem:[%s6286_s3 + $0x78] sm:$0xff] %v4332_v6   ;;  %v1940_v12 = vpop.f32.mrf.mxu1  ;;  %v1662_v13 = vadd.f32 %v5328_v14, %v1661_v11  ;;  %v2218_v16 = vadd.f32 %v2217_v7, %v1939_v9 }
 0x1a9   :  { %v1941_v23 = vadd.f32 %v1940_v12, %v1662_v13  ;;  %v2497_v28 = vadd.f32 %v2496_v8, %v2218_v16  ;;  %v3448_v13 = vld [vmem:[%s6285_s0 + $0x360] sm:$0xf]  ;;  %v4114_v16 = vld [vmem:[%s6285_s0 + $0x364] sm:$0xf] }
 0x1ab   :  { %v2718_v35 = vmax.f32 %v2497_v28, 0.0 }
 0x1ae   :  { %v2219_v24 = vpop.f32.mrf.mxu2  ;;  %v1664_v30 = vpop.f32.mrf.mxu0 }
 0x1af   :  { %v2498_v25 = vpop.f32.mrf.mxu3  ;;  %v2220_v29 = vadd.f32 %v2219_v24, %v1941_v23  ;;  %v1943_v31 = vpop.f32.mrf.mxu1  ;;  %v1665_v37 = vadd.f32 %v5328_v14, %v1664_v30 }
 0x1b1   :  { %v2499_v34 = vadd.f32 %v2498_v25, %v2220_v29  ;;  %1703 = vmatmul.bf16.gmra.mxu0 %v3417_v26  ;;  %v1944_v41 = vadd.f32 %v1943_v31, %v1665_v37  ;;  %v3449_v25 = vor.u32 %v4116_v15, %v3448_v13  ;;  %v3453_v26 = vor.u32 %v4114_v16, %v3450_v17  ;;  %v4124_v13 = vld [vmem:[%s6285_s0 + $0x3ac] sm:$0xf0]  ;;  %v3482_v16 = vld [vmem:[%s6285_s0 + $0x3b0] sm:$0xf0]  ;;  %v3488_v17 = vld [vmem:[%s6285_s0 + $0x3a8] sm:$0xf] }
 0x1b2   :  { %1982 = vmatmul.bf16.gmra.mxu1 %v3421_v27  ;;  %v3457_v31 = vor.u32 %v4117_v19, %v3456_v18  ;;  %v4125_v18 = vld [vmem:[%s6285_s0 + $0x3b4] sm:$0xf0]  ;;  %v4123_v19 = vld [vmem:[%s6285_s0 + $0x3ac] sm:$0xf] }
 0x1b3   :  { %v2719_v36 = vmax.f32 %v2499_v34, 0.0  ;;  %2261 = vmatmul.bf16.gmra.mxu2 %v3425_v32  ;;  %v3461_v32 = vor.u32 %v4115_v20, %v3458_v21  ;;  %v3490_v20 = vld [vmem:[%s6285_s0 + $0x3b8] sm:$0xf0] }
 0x1b4   :  { %2540 = vmatmul.bf16.gmra.mxu3 %v3429_v33 }
 0x1b5   :  { %v4337_v38 = vpack.c.bf16 %v2719_v36, %v2718_v35 }
 0x1b6   :  { %v2222_v39 = vpop.f32.mrf.mxu2  ;;  %v1666_v42 = vpop.f32.mrf.mxu0 }
 0x1b7   :  { %v2501_v40 = vpop.f32.mrf.mxu3  ;;  %4539 = vst [vmem:[%s6286_s3 + $0x80] sm:$0xff] %v4337_v38   ;;  %v1945_v43 = vpop.f32.mrf.mxu1  ;;  %v1667_v44 = vadd.f32 %v5328_v14, %v1666_v42  ;;  %v2223_v47 = vadd.f32 %v2222_v39, %v1944_v41 }
 0x1b9   :  { %v1946_v54 = vadd.f32 %v1945_v43, %v1667_v44  ;;  %v2502_v59 = vadd.f32 %v2501_v40, %v2223_v47  ;;  %v3464_v44 = vld [vmem:[%s6285_s0 + $0x380] sm:$0xf]  ;;  %v4118_v47 = vld [vmem:[%s6285_s0 + $0x384] sm:$0xf] }
 0x1bb   :  { %v2720_v2 = vmax.f32 %v2502_v59, 0.0 }
 0x1be   :  { %v2224_v55 = vpop.f32.mrf.mxu2  ;;  %v1669_v61 = vpop.f32.mrf.mxu0 }
 0x1bf   :  { %v2503_v56 = vpop.f32.mrf.mxu3  ;;  %v2225_v60 = vadd.f32 %v2224_v55, %v1946_v54  ;;  %v1948_v62 = vpop.f32.mrf.mxu1  ;;  %v1670_v4 = vadd.f32 %v5328_v14, %v1669_v61 }
 0x1c1   :  { %v2504_v1 = vadd.f32 %v2503_v56, %v2225_v60  ;;  %1708 = vmatmul.bf16.gmra.mxu0 %v3433_v57  ;;  %v1949_v8 = vadd.f32 %v1948_v62, %v1670_v4  ;;  %v3465_v56 = vor.u32 %v4120_v45, %v3464_v44  ;;  %v3469_v57 = vor.u32 %v4118_v47, %v3466_v48  ;;  %v4128_v44 = vld [vmem:[%s6285_s0 + $0x3cc] sm:$0xf0]  ;;  %v3498_v47 = vld [vmem:[%s6285_s0 + $0x3d0] sm:$0xf0]  ;;  %v3504_v48 = vld [vmem:[%s6285_s0 + $0x3c8] sm:$0xf] }
 0x1c2   :  { %1987 = vmatmul.bf16.gmra.mxu1 %v3437_v58  ;;  %v3473_v62 = vor.u32 %v4121_v50, %v3472_v49  ;;  %v4129_v49 = vld [vmem:[%s6285_s0 + $0x3d4] sm:$0xf0]  ;;  %v4127_v50 = vld [vmem:[%s6285_s0 + $0x3cc] sm:$0xf] }
 0x1c3   :  { %v2721_v3 = vmax.f32 %v2504_v1, 0.0  ;;  %2266 = vmatmul.bf16.gmra.mxu2 %v3441_v63  ;;  %v3477_v63 = vor.u32 %v4119_v51, %v3474_v52  ;;  %v3506_v51 = vld [vmem:[%s6285_s0 + $0x3d8] sm:$0xf0] }
 0x1c4   :  { %2545 = vmatmul.bf16.gmra.mxu3 %v3445_v0 }
 0x1c5   :  { %v4342_v5 = vpack.c.bf16 %v2721_v3, %v2720_v2 }
 0x1c6   :  { %v2227_v6 = vpop.f32.mrf.mxu2  ;;  %v1671_v9 = vpop.f32.mrf.mxu0 }
 0x1c7   :  { %v2506_v7 = vpop.f32.mrf.mxu3  ;;  %4540 = vst [vmem:[%s6286_s3 + $0x88] sm:$0xff] %v4342_v5   ;;  %v1950_v11 = vpop.f32.mrf.mxu1  ;;  %v1672_v12 = vadd.f32 %v5328_v14, %v1671_v9  ;;  %v2228_v10 = vadd.f32 %v2227_v6, %v1949_v8 }
 0x1c9   :  { %v1951_v22 = vadd.f32 %v1950_v11, %v1672_v12  ;;  %v2507_v27 = vadd.f32 %v2506_v7, %v2228_v10  ;;  %v3480_v12 = vld [vmem:[%s6285_s0 + $0x3a0] sm:$0xf]  ;;  %v4122_v10 = vld [vmem:[%s6285_s0 + $0x3a4] sm:$0xf] }
 0x1cb   :  { %v2722_v34 = vmax.f32 %v2507_v27, 0.0 }
 0x1ce   :  { %v2229_v23 = vpop.f32.mrf.mxu2  ;;  %v1674_v29 = vpop.f32.mrf.mxu0 }
 0x1cf   :  { %v2508_v24 = vpop.f32.mrf.mxu3  ;;  %v2230_v28 = vadd.f32 %v2229_v23, %v1951_v22  ;;  %v1953_v30 = vpop.f32.mrf.mxu1  ;;  %v1675_v36 = vadd.f32 %v5328_v14, %v1674_v29 }
 0x1d1   :  { %v2509_v33 = vadd.f32 %v2508_v24, %v2230_v28  ;;  %1713 = vmatmul.bf16.gmra.mxu0 %v3449_v25  ;;  %v1954_v40 = vadd.f32 %v1953_v30, %v1675_v36  ;;  %v3481_v24 = vor.u32 %v4124_v13, %v3480_v12  ;;  %v3485_v25 = vor.u32 %v4122_v10, %v3482_v16  ;;  %v4132_v12 = vld [vmem:[%s6285_s0 + $0x3ec] sm:$0xf0]  ;;  %v3514_v10 = vld [vmem:[%s6285_s0 + $0x3f0] sm:$0xf0]  ;;  %v3520_v16 = vld [vmem:[%s6285_s0 + $0x3e8] sm:$0xf] }
 0x1d2   :  { %1992 = vmatmul.bf16.gmra.mxu1 %v3453_v26  ;;  %v3489_v30 = vor.u32 %v4125_v18, %v3488_v17  ;;  %v4133_v17 = vld [vmem:[%s6285_s0 + $0x3f4] sm:$0xf0]  ;;  %v4131_v18 = vld [vmem:[%s6285_s0 + $0x3ec] sm:$0xf] }
 0x1d3   :  { %v2723_v35 = vmax.f32 %v2509_v33, 0.0  ;;  %2271 = vmatmul.bf16.gmra.mxu2 %v3457_v31  ;;  %v3493_v31 = vor.u32 %v4123_v19, %v3490_v20  ;;  %v3522_v19 = vld [vmem:[%s6285_s0 + $0x3f8] sm:$0xf0] }
 0x1d4   :  { %2550 = vmatmul.bf16.gmra.mxu3 %v3461_v32 }
 0x1d5   :  { %v4347_v37 = vpack.c.bf16 %v2723_v35, %v2722_v34 }
 0x1d6   :  { %v2232_v38 = vpop.f32.mrf.mxu2  ;;  %v1676_v41 = vpop.f32.mrf.mxu0 }
 0x1d7   :  { %v2511_v39 = vpop.f32.mrf.mxu3  ;;  %4541 = vst [vmem:[%s6286_s3 + $0x90] sm:$0xff] %v4347_v37   ;;  %v1955_v42 = vpop.f32.mrf.mxu1  ;;  %v1677_v43 = vadd.f32 %v5328_v14, %v1676_v41  ;;  %v2233_v46 = vadd.f32 %v2232_v38, %v1954_v40 }
 0x1d9   :  { %v1956_v53 = vadd.f32 %v1955_v42, %v1677_v43  ;;  %v2512_v58 = vadd.f32 %v2511_v39, %v2233_v46  ;;  %v3496_v43 = vld [vmem:[%s6285_s0 + $0x3c0] sm:$0xf]  ;;  %v4126_v46 = vld [vmem:[%s6285_s0 + $0x3c4] sm:$0xf] }
 0x1db   :  { %v2724_v1 = vmax.f32 %v2512_v58, 0.0 }
 0x1de   :  { %v2234_v54 = vpop.f32.mrf.mxu2  ;;  %v1679_v60 = vpop.f32.mrf.mxu0 }
 0x1df   :  { %v2513_v55 = vpop.f32.mrf.mxu3  ;;  %v2235_v59 = vadd.f32 %v2234_v54, %v1956_v53  ;;  %v1958_v61 = vpop.f32.mrf.mxu1  ;;  %v1680_v3 = vadd.f32 %v5328_v14, %v1679_v60 }
 0x1e1   :  { %v2514_v0 = vadd.f32 %v2513_v55, %v2235_v59  ;;  %1718 = vmatmul.bf16.gmra.mxu0 %v3465_v56  ;;  %v1959_v7 = vadd.f32 %v1958_v61, %v1680_v3  ;;  %v3497_v55 = vor.u32 %v4128_v44, %v3496_v43  ;;  %v3501_v56 = vor.u32 %v4126_v46, %v3498_v47  ;;  %v4136_v43 = vld [vmem:[%s6285_s0 + $0x40c] sm:$0xf0]  ;;  %v3530_v46 = vld [vmem:[%s6285_s0 + $0x410] sm:$0xf0]  ;;  %v3536_v47 = vld [vmem:[%s6285_s0 + $0x408] sm:$0xf] }
 0x1e2   :  { %1997 = vmatmul.bf16.gmra.mxu1 %v3469_v57  ;;  %v3505_v61 = vor.u32 %v4129_v49, %v3504_v48  ;;  %v4137_v48 = vld [vmem:[%s6285_s0 + $0x414] sm:$0xf0]  ;;  %v4135_v49 = vld [vmem:[%s6285_s0 + $0x40c] sm:$0xf] }
 0x1e3   :  { %v2725_v2 = vmax.f32 %v2514_v0, 0.0  ;;  %2276 = vmatmul.bf16.gmra.mxu2 %v3473_v62  ;;  %v3509_v62 = vor.u32 %v4127_v50, %v3506_v51  ;;  %v3538_v50 = vld [vmem:[%s6285_s0 + $0x418] sm:$0xf0] }
 0x1e4   :  { %2555 = vmatmul.bf16.gmra.mxu3 %v3477_v63 }
 0x1e5   :  { %v4352_v4 = vpack.c.bf16 %v2725_v2, %v2724_v1 }
 0x1e6   :  { %v2237_v5 = vpop.f32.mrf.mxu2  ;;  %v1681_v8 = vpop.f32.mrf.mxu0 }
 0x1e7   :  { %v2516_v6 = vpop.f32.mrf.mxu3  ;;  %4542 = vst [vmem:[%s6286_s3 + $0x98] sm:$0xff] %v4352_v4   ;;  %v1960_v9 = vpop.f32.mrf.mxu1  ;;  %v1682_v11 = vadd.f32 %v5328_v14, %v1681_v8  ;;  %v2238_v15 = vadd.f32 %v2237_v5, %v1959_v7 }
 0x1e9   :  { %v1961_v21 = vadd.f32 %v1960_v9, %v1682_v11  ;;  %v2517_v26 = vadd.f32 %v2516_v6, %v2238_v15  ;;  %v3512_v11 = vld [vmem:[%s6285_s0 + $0x3e0] sm:$0xf]  ;;  %v4130_v15 = vld [vmem:[%s6285_s0 + $0x3e4] sm:$0xf] }
 0x1eb   :  { %v2726_v33 = vmax.f32 %v2517_v26, 0.0 }
 0x1ee   :  { %v2239_v22 = vpop.f32.mrf.mxu2  ;;  %v1684_v28 = vpop.f32.mrf.mxu0 }
 0x1ef   :  { %v2518_v23 = vpop.f32.mrf.mxu3  ;;  %v2240_v27 = vadd.f32 %v2239_v22, %v1961_v21  ;;  %v1963_v29 = vpop.f32.mrf.mxu1  ;;  %v1685_v35 = vadd.f32 %v5328_v14, %v1684_v28 }
 0x1f1   :  { %v2519_v32 = vadd.f32 %v2518_v23, %v2240_v27  ;;  %1723 = vmatmul.bf16.gmra.mxu0 %v3481_v24  ;;  %v1964_v39 = vadd.f32 %v1963_v29, %v1685_v35  ;;  %v3513_v23 = vor.u32 %v4132_v12, %v3512_v11  ;;  %v3517_v24 = vor.u32 %v4130_v15, %v3514_v10  ;;  %v4140_v11 = vld [vmem:[%s6285_s0 + $0x42c] sm:$0xf0]  ;;  %v3546_v15 = vld [vmem:[%s6285_s0 + $0x430] sm:$0xf0]  ;;  %v3552_v10 = vld [vmem:[%s6285_s0 + $0x428] sm:$0xf] }
 0x1f2   :  { %2002 = vmatmul.bf16.gmra.mxu1 %v3485_v25  ;;  %v3521_v29 = vor.u32 %v4133_v17, %v3520_v16  ;;  %v4141_v16 = vld [vmem:[%s6285_s0 + $0x434] sm:$0xf0]  ;;  %v4139_v17 = vld [vmem:[%s6285_s0 + $0x42c] sm:$0xf] }
 0x1f3   :  { %v2727_v34 = vmax.f32 %v2519_v32, 0.0  ;;  %2281 = vmatmul.bf16.gmra.mxu2 %v3489_v30  ;;  %v3525_v30 = vor.u32 %v4131_v18, %v3522_v19  ;;  %v3554_v18 = vld [vmem:[%s6285_s0 + $0x438] sm:$0xf0] }
 0x1f4   :  { %2560 = vmatmul.bf16.gmra.mxu3 %v3493_v31 }
 0x1f5   :  { %v4357_v36 = vpack.c.bf16 %v2727_v34, %v2726_v33 }
 0x1f6   :  { %v2242_v37 = vpop.f32.mrf.mxu2  ;;  %v1686_v40 = vpop.f32.mrf.mxu0 }
 0x1f7   :  { %v2521_v38 = vpop.f32.mrf.mxu3  ;;  %4543 = vst [vmem:[%s6286_s3 + $0xa0] sm:$0xff] %v4357_v36   ;;  %v1965_v41 = vpop.f32.mrf.mxu1  ;;  %v1687_v42 = vadd.f32 %v5328_v14, %v1686_v40  ;;  %v2243_v45 = vadd.f32 %v2242_v37, %v1964_v39 }
 0x1f9   :  { %v1966_v52 = vadd.f32 %v1965_v41, %v1687_v42  ;;  %v2522_v57 = vadd.f32 %v2521_v38, %v2243_v45  ;;  %v3528_v42 = vld [vmem:[%s6285_s0 + $0x400] sm:$0xf]  ;;  %v4134_v45 = vld [vmem:[%s6285_s0 + $0x404] sm:$0xf] }
 0x1fb   :  { %v2728_v0 = vmax.f32 %v2522_v57, 0.0 }
 0x1fe   :  { %v2244_v53 = vpop.f32.mrf.mxu2  ;;  %v1689_v59 = vpop.f32.mrf.mxu0 }
 0x1ff   :  { %v2523_v54 = vpop.f32.mrf.mxu3  ;;  %v2245_v58 = vadd.f32 %v2244_v53, %v1966_v52  ;;  %v1968_v60 = vpop.f32.mrf.mxu1  ;;  %v1690_v2 = vadd.f32 %v5328_v14, %v1689_v59 }
 0x201   :  { %v2524_v63 = vadd.f32 %v2523_v54, %v2245_v58  ;;  %1728 = vmatmul.bf16.gmra.mxu0 %v3497_v55  ;;  %v1969_v6 = vadd.f32 %v1968_v60, %v1690_v2  ;;  %v3529_v54 = vor.u32 %v4136_v43, %v3528_v42  ;;  %v3533_v55 = vor.u32 %v4134_v45, %v3530_v46  ;;  %v4144_v42 = vld [vmem:[%s6285_s0 + $0x44c] sm:$0xf0]  ;;  %v3562_v45 = vld [vmem:[%s6285_s0 + $0x450] sm:$0xf0]  ;;  %v3568_v46 = vld [vmem:[%s6285_s0 + $0x448] sm:$0xf] }
 0x202   :  { %2007 = vmatmul.bf16.gmra.mxu1 %v3501_v56  ;;  %v3537_v60 = vor.u32 %v4137_v48, %v3536_v47  ;;  %v4145_v47 = vld [vmem:[%s6285_s0 + $0x454] sm:$0xf0]  ;;  %v4143_v48 = vld [vmem:[%s6285_s0 + $0x44c] sm:$0xf] }
 0x203   :  { %v2729_v1 = vmax.f32 %v2524_v63, 0.0  ;;  %2286 = vmatmul.bf16.gmra.mxu2 %v3505_v61  ;;  %v3541_v61 = vor.u32 %v4135_v49, %v3538_v50  ;;  %v3570_v49 = vld [vmem:[%s6285_s0 + $0x458] sm:$0xf0] }
 0x204   :  { %2565 = vmatmul.bf16.gmra.mxu3 %v3509_v62 }
 0x205   :  { %v4362_v3 = vpack.c.bf16 %v2729_v1, %v2728_v0 }
 0x206   :  { %v2247_v4 = vpop.f32.mrf.mxu2  ;;  %v1691_v7 = vpop.f32.mrf.mxu0 }
 0x207   :  { %v2526_v5 = vpop.f32.mrf.mxu3  ;;  %4544 = vst [vmem:[%s6286_s3 + $0xa8] sm:$0xff] %v4362_v3   ;;  %v1970_v8 = vpop.f32.mrf.mxu1  ;;  %v1692_v9 = vadd.f32 %v5328_v14, %v1691_v7  ;;  %v2248_v13 = vadd.f32 %v2247_v4, %v1969_v6 }
 0x209   :  { %v1971_v20 = vadd.f32 %v1970_v8, %v1692_v9  ;;  %v2527_v25 = vadd.f32 %v2526_v5, %v2248_v13  ;;  %v3544_v9 = vld [vmem:[%s6285_s0 + $0x420] sm:$0xf]  ;;  %v4138_v13 = vld [vmem:[%s6285_s0 + $0x424] sm:$0xf] }
 0x20b   :  { %v2730_v32 = vmax.f32 %v2527_v25, 0.0 }
 0x20e   :  { %v2249_v21 = vpop.f32.mrf.mxu2  ;;  %v1694_v27 = vpop.f32.mrf.mxu0 }
 0x20f   :  { %v2528_v22 = vpop.f32.mrf.mxu3  ;;  %v2250_v26 = vadd.f32 %v2249_v21, %v1971_v20  ;;  %v1973_v28 = vpop.f32.mrf.mxu1  ;;  %v1695_v34 = vadd.f32 %v5328_v14, %v1694_v27 }
 0x211   :  { %v2529_v31 = vadd.f32 %v2528_v22, %v2250_v26  ;;  %1733 = vmatmul.bf16.gmra.mxu0 %v3513_v23  ;;  %v1974_v38 = vadd.f32 %v1973_v28, %v1695_v34  ;;  %v3545_v22 = vor.u32 %v4140_v11, %v3544_v9  ;;  %v3549_v23 = vor.u32 %v4138_v13, %v3546_v15  ;;  %v4148_v9 = vld [vmem:[%s6285_s0 + $0x46c] sm:$0xf0]  ;;  %v3578_v13 = vld [vmem:[%s6285_s0 + $0x470] sm:$0xf0]  ;;  %v3584_v15 = vld [vmem:[%s6285_s0 + $0x468] sm:$0xf] }
 0x212   :  { %2012 = vmatmul.bf16.gmra.mxu1 %v3517_v24  ;;  %v3553_v28 = vor.u32 %v4141_v16, %v3552_v10  ;;  %v4149_v10 = vld [vmem:[%s6285_s0 + $0x474] sm:$0xf0]  ;;  %v4147_v16 = vld [vmem:[%s6285_s0 + $0x46c] sm:$0xf] }
 0x213   :  { %v2731_v33 = vmax.f32 %v2529_v31, 0.0  ;;  %2291 = vmatmul.bf16.gmra.mxu2 %v3521_v29  ;;  %v3557_v29 = vor.u32 %v4139_v17, %v3554_v18  ;;  %v3586_v17 = vld [vmem:[%s6285_s0 + $0x478] sm:$0xf0] }
 0x214   :  { %2570 = vmatmul.bf16.gmra.mxu3 %v3525_v30 }
 0x215   :  { %v4367_v35 = vpack.c.bf16 %v2731_v33, %v2730_v32 }
 0x216   :  { %v2252_v36 = vpop.f32.mrf.mxu2  ;;  %v1696_v39 = vpop.f32.mrf.mxu0 }
 0x217   :  { %v2531_v37 = vpop.f32.mrf.mxu3  ;;  %4545 = vst [vmem:[%s6286_s3 + $0xb0] sm:$0xff] %v4367_v35   ;;  %v1975_v40 = vpop.f32.mrf.mxu1  ;;  %v1697_v41 = vadd.f32 %v5328_v14, %v1696_v39  ;;  %v2253_v44 = vadd.f32 %v2252_v36, %v1974_v38 }
 0x219   :  { %v1976_v51 = vadd.f32 %v1975_v40, %v1697_v41  ;;  %v2532_v56 = vadd.f32 %v2531_v37, %v2253_v44  ;;  %v3560_v41 = vld [vmem:[%s6285_s0 + $0x440] sm:$0xf]  ;;  %v4142_v44 = vld [vmem:[%s6285_s0 + $0x444] sm:$0xf] }
 0x21b   :  { %v2732_v63 = vmax.f32 %v2532_v56, 0.0 }
 0x21e   :  { %v2254_v52 = vpop.f32.mrf.mxu2  ;;  %v1699_v58 = vpop.f32.mrf.mxu0 }
 0x21f   :  { %v2533_v53 = vpop.f32.mrf.mxu3  ;;  %v2255_v57 = vadd.f32 %v2254_v52, %v1976_v51  ;;  %v1978_v59 = vpop.f32.mrf.mxu1  ;;  %v1700_v1 = vadd.f32 %v5328_v14, %v1699_v58 }
 0x221   :  { %v2534_v62 = vadd.f32 %v2533_v53, %v2255_v57  ;;  %1738 = vmatmul.bf16.gmra.mxu0 %v3529_v54  ;;  %v1979_v5 = vadd.f32 %v1978_v59, %v1700_v1  ;;  %v3561_v53 = vor.u32 %v4144_v42, %v3560_v41  ;;  %v3565_v54 = vor.u32 %v4142_v44, %v3562_v45  ;;  %v4152_v41 = vld [vmem:[%s6285_s0 + $0x48c] sm:$0xf0]  ;;  %v3594_v44 = vld [vmem:[%s6285_s0 + $0x490] sm:$0xf0]  ;;  %v3600_v45 = vld [vmem:[%s6285_s0 + $0x488] sm:$0xf] }
 0x222   :  { %2017 = vmatmul.bf16.gmra.mxu1 %v3533_v55  ;;  %v3569_v59 = vor.u32 %v4145_v47, %v3568_v46  ;;  %v4153_v46 = vld [vmem:[%s6285_s0 + $0x494] sm:$0xf0]  ;;  %v4151_v47 = vld [vmem:[%s6285_s0 + $0x48c] sm:$0xf] }
 0x223   :  { %v2733_v0 = vmax.f32 %v2534_v62, 0.0  ;;  %2296 = vmatmul.bf16.gmra.mxu2 %v3537_v60  ;;  %v3573_v60 = vor.u32 %v4143_v48, %v3570_v49  ;;  %v3602_v48 = vld [vmem:[%s6285_s0 + $0x498] sm:$0xf0] }
 0x224   :  { %2575 = vmatmul.bf16.gmra.mxu3 %v3541_v61 }
 0x225   :  { %v4372_v2 = vpack.c.bf16 %v2733_v0, %v2732_v63 }
 0x226   :  { %v2257_v3 = vpop.f32.mrf.mxu2  ;;  %v1701_v6 = vpop.f32.mrf.mxu0 }
 0x227   :  { %v2536_v4 = vpop.f32.mrf.mxu3  ;;  %4546 = vst [vmem:[%s6286_s3 + $0xb8] sm:$0xff] %v4372_v2   ;;  %v1980_v7 = vpop.f32.mrf.mxu1  ;;  %v1702_v8 = vadd.f32 %v5328_v14, %v1701_v6  ;;  %v2258_v12 = vadd.f32 %v2257_v3, %v1979_v5 }
 0x229   :  { %v1981_v19 = vadd.f32 %v1980_v7, %v1702_v8  ;;  %v2537_v24 = vadd.f32 %v2536_v4, %v2258_v12  ;;  %v3576_v8 = vld [vmem:[%s6285_s0 + $0x460] sm:$0xf]  ;;  %v4146_v12 = vld [vmem:[%s6285_s0 + $0x464] sm:$0xf] }
 0x22b   :  { %v2734_v31 = vmax.f32 %v2537_v24, 0.0 }
 0x22e   :  { %v2259_v20 = vpop.f32.mrf.mxu2  ;;  %v1704_v26 = vpop.f32.mrf.mxu0 }
 0x22f   :  { %v2538_v21 = vpop.f32.mrf.mxu3  ;;  %v2260_v25 = vadd.f32 %v2259_v20, %v1981_v19  ;;  %v1983_v27 = vpop.f32.mrf.mxu1  ;;  %v1705_v33 = vadd.f32 %v5328_v14, %v1704_v26 }
 0x231   :  { %v2539_v30 = vadd.f32 %v2538_v21, %v2260_v25  ;;  %1743 = vmatmul.bf16.gmra.mxu0 %v3545_v22  ;;  %v1984_v37 = vadd.f32 %v1983_v27, %v1705_v33  ;;  %v3577_v21 = vor.u32 %v4148_v9, %v3576_v8  ;;  %v3581_v22 = vor.u32 %v4146_v12, %v3578_v13  ;;  %v4156_v8 = vld [vmem:[%s6285_s0 + $0x4ac] sm:$0xf0]  ;;  %v3610_v12 = vld [vmem:[%s6285_s0 + $0x4b0] sm:$0xf0]  ;;  %v4157_v13 = vld [vmem:[%s6285_s0 + $0x4b4] sm:$0xf0] }
 0x232   :  { %2022 = vmatmul.bf16.gmra.mxu1 %v3549_v23  ;;  %v3585_v27 = vor.u32 %v4149_v10, %v3584_v15  ;;  %v4155_v15 = vld [vmem:[%s6285_s0 + $0x4ac] sm:$0xf]  ;;  %v3618_v10 = vld [vmem:[%s6285_s0 + $0x4b8] sm:$0xf0] }
 0x233   :  { %v2735_v32 = vmax.f32 %v2539_v30, 0.0  ;;  %2301 = vmatmul.bf16.gmra.mxu2 %v3553_v28  ;;  %v3589_v28 = vor.u32 %v4147_v16, %v3586_v17 }
 0x234   :  { %2580 = vmatmul.bf16.gmra.mxu3 %v3557_v29 }
 0x235   :  { %v4377_v34 = vpack.c.bf16 %v2735_v32, %v2734_v31 }
 0x236   :  { %v2262_v35 = vpop.f32.mrf.mxu2  ;;  %v1706_v38 = vpop.f32.mrf.mxu0 }
 0x237   :  { %v2541_v36 = vpop.f32.mrf.mxu3  ;;  %4547 = vst [vmem:[%s6286_s3 + $0xc0] sm:$0xff] %v4377_v34   ;;  %v1985_v39 = vpop.f32.mrf.mxu1  ;;  %v1707_v40 = vadd.f32 %v5328_v14, %v1706_v38  ;;  %v2263_v43 = vadd.f32 %v2262_v35, %v1984_v37 }
 0x239   :  { %v1986_v50 = vadd.f32 %v1985_v39, %v1707_v40  ;;  %v2542_v55 = vadd.f32 %v2541_v36, %v2263_v43  ;;  %v3592_v40 = vld [vmem:[%s6285_s0 + $0x480] sm:$0xf]  ;;  %v4150_v43 = vld [vmem:[%s6285_s0 + $0x484] sm:$0xf] }
 0x23b   :  { %v2736_v62 = vmax.f32 %v2542_v55, 0.0 }
 0x23e   :  { %v2264_v51 = vpop.f32.mrf.mxu2  ;;  %v1709_v57 = vpop.f32.mrf.mxu0 }
 0x23f   :  { %v2543_v52 = vpop.f32.mrf.mxu3  ;;  %v2265_v56 = vadd.f32 %v2264_v51, %v1986_v50  ;;  %v1988_v58 = vpop.f32.mrf.mxu1  ;;  %v1710_v0 = vadd.f32 %v5328_v14, %v1709_v57 }
 0x241   :  { %v2544_v61 = vadd.f32 %v2543_v52, %v2265_v56  ;;  %1748 = vmatmul.bf16.gmra.mxu0 %v3561_v53  ;;  %v1989_v4 = vadd.f32 %v1988_v58, %v1710_v0  ;;  %v3593_v52 = vor.u32 %v4152_v41, %v3592_v40  ;;  %v3597_v53 = vor.u32 %v4150_v43, %v3594_v44  ;;  %v4160_v40 = vld [vmem:[%s6285_s0 + $0x4cc] sm:$0xf0]  ;;  %v3626_v43 = vld [vmem:[%s6285_s0 + $0x4d0] sm:$0xf0]  ;;  %v3632_v44 = vld [vmem:[%s6285_s0 + $0x4c8] sm:$0xf] }
 0x242   :  { %2027 = vmatmul.bf16.gmra.mxu1 %v3565_v54  ;;  %v3601_v58 = vor.u32 %v4153_v46, %v3600_v45  ;;  %v4161_v45 = vld [vmem:[%s6285_s0 + $0x4d4] sm:$0xf0]  ;;  %v4159_v46 = vld [vmem:[%s6285_s0 + $0x4cc] sm:$0xf] }
 0x243   :  { %v2737_v63 = vmax.f32 %v2544_v61, 0.0  ;;  %2306 = vmatmul.bf16.gmra.mxu2 %v3569_v59  ;;  %v3605_v59 = vor.u32 %v4151_v47, %v3602_v48  ;;  %v3634_v47 = vld [vmem:[%s6285_s0 + $0x4d8] sm:$0xf0] }
 0x244   :  { %2585 = vmatmul.bf16.gmra.mxu3 %v3573_v60 }
 0x245   :  { %v4382_v1 = vpack.c.bf16 %v2737_v63, %v2736_v62 }
 0x246   :  { %v2267_v2 = vpop.f32.mrf.mxu2  ;;  %v1711_v5 = vpop.f32.mrf.mxu0 }
 0x247   :  { %v2546_v3 = vpop.f32.mrf.mxu3  ;;  %4548 = vst [vmem:[%s6286_s3 + $0xc8] sm:$0xff] %v4382_v1   ;;  %v1990_v6 = vpop.f32.mrf.mxu1  ;;  %v1712_v7 = vadd.f32 %v5328_v14, %v1711_v5  ;;  %v2268_v11 = vadd.f32 %v2267_v2, %v1989_v4 }
 0x249   :  { %v1991_v18 = vadd.f32 %v1990_v6, %v1712_v7  ;;  %v2547_v23 = vadd.f32 %v2546_v3, %v2268_v11  ;;  %v3608_v7 = vld [vmem:[%s6285_s0 + $0x4a0] sm:$0xf]  ;;  %v4154_v11 = vld [vmem:[%s6285_s0 + $0x4a4] sm:$0xf] }
 0x24b   :  { %v2738_v30 = vmax.f32 %v2547_v23, 0.0 }
 0x24e   :  { %v2269_v19 = vpop.f32.mrf.mxu2  ;;  %v1714_v25 = vpop.f32.mrf.mxu0 }
 0x24f   :  { %v2548_v20 = vpop.f32.mrf.mxu3  ;;  %v2270_v24 = vadd.f32 %v2269_v19, %v1991_v18  ;;  %v1993_v26 = vpop.f32.mrf.mxu1  ;;  %v1715_v32 = vadd.f32 %v5328_v14, %v1714_v25  ;;  %v3609_v19 = vor.u32 %v4156_v8, %v3608_v7  ;;  %v4164_v7 = vld [vmem:[%s6285_s0 + $0x4ec] sm:$0xf0] }
 0x251   :  { %v2549_v29 = vadd.f32 %v2548_v20, %v2270_v24  ;;  %1753 = vmatmul.bf16.gmra.mxu0 %v3577_v21  ;;  %v1994_v36 = vadd.f32 %v1993_v26, %v1715_v32  ;;  %v3613_v20 = vor.u32 %v4154_v11, %v3610_v12  ;;  %v3621_v26 = vor.u32 %v4155_v15, %v3618_v10  ;;  %v3642_v11 = vld [vmem:[%s6285_s0 + $0x4f0] sm:$0xf0]  ;;  %v3648_v12 = vld [vmem:[%s6285_s0 + $0x4e8] sm:$0xf]  ;;  %v3650_v15 = vld [vmem:[%s6285_s0 + $0x4f8] sm:$0xf0] }
 0x252   :  { %2032 = vmatmul.bf16.gmra.mxu1 %v3581_v22 }
 0x253   :  { %v2739_v31 = vmax.f32 %v2549_v29, 0.0  ;;  %2311 = vmatmul.bf16.gmra.mxu2 %v3585_v27 }
 0x254   :  { %2590 = vmatmul.bf16.gmra.mxu3 %v3589_v28 }
 0x255   :  { %v4387_v33 = vpack.c.bf16 %v2739_v31, %v2738_v30  ;;  %v5764_v30 = vld [vmem:[%s6284_s2] ss:$0 sm:$0xff] }
 0x256   :  { %v2272_v34 = vpop.f32.mrf.mxu2  ;;  %v1716_v37 = vpop.f32.mrf.mxu0 }
 0x257   :  { %v2551_v35 = vpop.f32.mrf.mxu3  ;;  %4549 = vst [vmem:[%s6286_s3 + $0xd0] sm:$0xff] %v4387_v33   ;;  %v1995_v38 = vpop.f32.mrf.mxu1  ;;  %v1717_v39 = vadd.f32 %v5328_v14, %v1716_v37  ;;  %v2273_v42 = vadd.f32 %v2272_v34, %v1994_v36 }
 0x259   :  { %v1996_v49 = vadd.f32 %v1995_v38, %v1717_v39  ;;  %v2552_v54 = vadd.f32 %v2551_v35, %v2273_v42  ;;  %v3624_v39 = vld [vmem:[%s6285_s0 + $0x4c0] sm:$0xf]  ;;  %v4158_v42 = vld [vmem:[%s6285_s0 + $0x4c4] sm:$0xf] }
 0x25b   :  { %v2740_v61 = vmax.f32 %v2552_v54, 0.0 }
 0x25e   :  { %v2274_v50 = vpop.f32.mrf.mxu2  ;;  %v1719_v56 = vpop.f32.mrf.mxu0 }
 0x25f   :  { %v2553_v51 = vpop.f32.mrf.mxu3  ;;  %v2275_v55 = vadd.f32 %v2274_v50, %v1996_v49  ;;  %v1998_v57 = vpop.f32.mrf.mxu1  ;;  %v1720_v63 = vadd.f32 %v5328_v14, %v1719_v56 }
 0x261   :  { %v2554_v60 = vadd.f32 %v2553_v51, %v2275_v55  ;;  %1758 = vmatmul.bf16.gmra.mxu0 %v3593_v52  ;;  %v1999_v3 = vadd.f32 %v1998_v57, %v1720_v63  ;;  %v3625_v51 = vor.u32 %v4160_v40, %v3624_v39  ;;  %v3629_v52 = vor.u32 %v4158_v42, %v3626_v43  ;;  %v4168_v39 = vld [vmem:[%s6285_s0 + $0x50c] sm:$0xf0]  ;;  %v3658_v42 = vld [vmem:[%s6285_s0 + $0x510] sm:$0xf0]  ;;  %v3664_v43 = vld [vmem:[%s6285_s0 + $0x508] sm:$0xf] }
 0x262   :  { %2037 = vmatmul.bf16.gmra.mxu1 %v3597_v53  ;;  %v3633_v57 = vor.u32 %v4161_v45, %v3632_v44  ;;  %v4169_v44 = vld [vmem:[%s6285_s0 + $0x514] sm:$0xf0]  ;;  %v4167_v45 = vld [vmem:[%s6285_s0 + $0x50c] sm:$0xf] }
 0x263   :  { %v2741_v62 = vmax.f32 %v2554_v60, 0.0  ;;  %2316 = vmatmul.bf16.gmra.mxu2 %v3601_v58  ;;  %v3637_v58 = vor.u32 %v4159_v46, %v3634_v47  ;;  %v3666_v46 = vld [vmem:[%s6285_s0 + $0x518] sm:$0xf0] }
 0x264   :  { %2595 = vmatmul.bf16.gmra.mxu3 %v3605_v59 }
 0x265   :  { %v4392_v0 = vpack.c.bf16 %v2741_v62, %v2740_v61 }
 0x266   :  { %v2277_v1 = vpop.f32.mrf.mxu2  ;;  %v1721_v4 = vpop.f32.mrf.mxu0 }
 0x267   :  { %v2556_v2 = vpop.f32.mrf.mxu3  ;;  %4550 = vst [vmem:[%s6286_s3 + $0xd8] sm:$0xff] %v4392_v0   ;;  %v2000_v5 = vpop.f32.mrf.mxu1  ;;  %v1722_v6 = vadd.f32 %v5328_v14, %v1721_v4  ;;  %v2278_v9 = vadd.f32 %v2277_v1, %v1999_v3  ;;  %v3616_v14 = vld [vmem:[%s6285_s0 + $0x4a8] sm:$0xf] }
 0x268   :  { %v3617_v25 = vor.u32 %v4157_v13, %v3616_v14  ;;  %v4165_v14 = vld [vmem:[%s6285_s0 + $0x4f4] sm:$0xf0]  ;;  %v4163_v13 = vld [vmem:[%s6285_s0 + $0x4ec] sm:$0xf] }
 0x269   :  { %v2001_v16 = vadd.f32 %v2000_v5, %v1722_v6  ;;  %v2557_v21 = vadd.f32 %v2556_v2, %v2278_v9  ;;  %v3640_v6 = vld [vmem:[%s6285_s0 + $0x4e0] sm:$0xf]  ;;  %v4162_v9 = vld [vmem:[%s6285_s0 + $0x4e4] sm:$0xf] }
 0x26b   :  { %v2742_v28 = vmax.f32 %v2557_v21, 0.0 }
 0x26e   :  { %v2279_v17 = vpop.f32.mrf.mxu2  ;;  %v1724_v23 = vpop.f32.mrf.mxu0 }
 0x26f   :  { %v2558_v18 = vpop.f32.mrf.mxu3  ;;  %v2280_v22 = vadd.f32 %v2279_v17, %v2001_v16  ;;  %v2003_v24 = vpop.f32.mrf.mxu1  ;;  %v1725_v31 = vadd.f32 %v5764_v30, %v1724_v23 }
 0x271   :  { %v2559_v27 = vadd.f32 %v2558_v18, %v2280_v22  ;;  %1763 = vmatmul.bf16.gmra.mxu0 %v3609_v19  ;;  %v2004_v35 = vadd.f32 %v2003_v24, %v1725_v31  ;;  %v3641_v18 = vor.u32 %v4164_v7, %v3640_v6  ;;  %v3645_v19 = vor.u32 %v4162_v9, %v3642_v11  ;;  %v4172_v6 = vld [vmem:[%s6285_s0 + $0x52c] sm:$0xf0]  ;;  %v3674_v9 = vld [vmem:[%s6285_s0 + $0x530] sm:$0xf0]  ;;  %v3680_v11 = vld [vmem:[%s6285_s0 + $0x528] sm:$0xf] }
 0x272   :  { %2042 = vmatmul.bf16.gmra.mxu1 %v3613_v20  ;;  %v3649_v24 = vor.u32 %v4165_v14, %v3648_v12  ;;  %v4173_v12 = vld [vmem:[%s6285_s0 + $0x534] sm:$0xf0]  ;;  %v4171_v14 = vld [vmem:[%s6285_s0 + $0x52c] sm:$0xf] }
 0x273   :  { %v2743_v29 = vmax.f32 %v2559_v27, 0.0  ;;  %2321 = vmatmul.bf16.gmra.mxu2 %v3617_v25  ;;  %v3653_v25 = vor.u32 %v4163_v13, %v3650_v15  ;;  %v3682_v13 = vld [vmem:[%s6285_s0 + $0x538] sm:$0xf0] }
 0x274   :  { %2600 = vmatmul.bf16.gmra.mxu3 %v3621_v26 }
 0x275   :  { %v4397_v32 = vpack.c.bf16 %v2743_v29, %v2742_v28 }
 0x276   :  { %v2282_v33 = vpop.f32.mrf.mxu2  ;;  %v1726_v36 = vpop.f32.mrf.mxu0 }
 0x277   :  { %v2561_v34 = vpop.f32.mrf.mxu3  ;;  %4551 = vst [vmem:[%s6286_s3 + $0xe0] sm:$0xff] %v4397_v32   ;;  %v2005_v37 = vpop.f32.mrf.mxu1  ;;  %v1727_v38 = vadd.f32 %v5764_v30, %v1726_v36  ;;  %v2283_v41 = vadd.f32 %v2282_v33, %v2004_v35 }
 0x279   :  { %v2006_v48 = vadd.f32 %v2005_v37, %v1727_v38  ;;  %v2562_v53 = vadd.f32 %v2561_v34, %v2283_v41  ;;  %v3656_v38 = vld [vmem:[%s6285_s0 + $0x500] sm:$0xf]  ;;  %v4166_v41 = vld [vmem:[%s6285_s0 + $0x504] sm:$0xf] }
 0x27b   :  { %v2744_v60 = vmax.f32 %v2562_v53, 0.0 }
 0x27e   :  { %v2284_v49 = vpop.f32.mrf.mxu2  ;;  %v1729_v55 = vpop.f32.mrf.mxu0 }
 0x27f   :  { %v2563_v50 = vpop.f32.mrf.mxu3  ;;  %v2285_v54 = vadd.f32 %v2284_v49, %v2006_v48  ;;  %v2008_v56 = vpop.f32.mrf.mxu1  ;;  %v1730_v62 = vadd.f32 %v5764_v30, %v1729_v55 }
 0x281   :  { %v2564_v59 = vadd.f32 %v2563_v50, %v2285_v54  ;;  %1768 = vmatmul.bf16.gmra.mxu0 %v3625_v51  ;;  %v2009_v2 = vadd.f32 %v2008_v56, %v1730_v62  ;;  %v3657_v50 = vor.u32 %v4168_v39, %v3656_v38  ;;  %v3661_v51 = vor.u32 %v4166_v41, %v3658_v42  ;;  %v4176_v38 = vld [vmem:[%s6285_s0 + $0x54c] sm:$0xf0]  ;;  %v3690_v41 = vld [vmem:[%s6285_s0 + $0x550] sm:$0xf0]  ;;  %v3696_v42 = vld [vmem:[%s6285_s0 + $0x548] sm:$0xf] }
 0x282   :  { %2047 = vmatmul.bf16.gmra.mxu1 %v3629_v52  ;;  %v3665_v56 = vor.u32 %v4169_v44, %v3664_v43  ;;  %v4177_v43 = vld [vmem:[%s6285_s0 + $0x554] sm:$0xf0]  ;;  %v4175_v44 = vld [vmem:[%s6285_s0 + $0x54c] sm:$0xf] }
 0x283   :  { %v2745_v61 = vmax.f32 %v2564_v59, 0.0  ;;  %2326 = vmatmul.bf16.gmra.mxu2 %v3633_v57  ;;  %v3669_v57 = vor.u32 %v4167_v45, %v3666_v46  ;;  %v3698_v45 = vld [vmem:[%s6285_s0 + $0x558] sm:$0xf0] }
 0x284   :  { %2605 = vmatmul.bf16.gmra.mxu3 %v3637_v58 }
 0x285   :  { %v4402_v63 = vpack.c.bf16 %v2745_v61, %v2744_v60 }
 0x286   :  { %v2287_v0 = vpop.f32.mrf.mxu2  ;;  %v1731_v3 = vpop.f32.mrf.mxu0 }
 0x287   :  { %v2566_v1 = vpop.f32.mrf.mxu3  ;;  %4552 = vst [vmem:[%s6286_s3 + $0xe8] sm:$0xff] %v4402_v63   ;;  %v2010_v4 = vpop.f32.mrf.mxu1  ;;  %v1732_v5 = vadd.f32 %v5764_v30, %v1731_v3  ;;  %v2288_v8 = vadd.f32 %v2287_v0, %v2009_v2 }
 0x289   :  { %v2011_v10 = vadd.f32 %v2010_v4, %v1732_v5  ;;  %v2567_v20 = vadd.f32 %v2566_v1, %v2288_v8  ;;  %v3672_v5 = vld [vmem:[%s6285_s0 + $0x520] sm:$0xf]  ;;  %v4170_v8 = vld [vmem:[%s6285_s0 + $0x524] sm:$0xf] }
 0x28b   :  { %v2746_v27 = vmax.f32 %v2567_v20, 0.0 }
 0x28e   :  { %v2289_v16 = vpop.f32.mrf.mxu2  ;;  %v1734_v22 = vpop.f32.mrf.mxu0 }
 0x28f   :  { %v2568_v17 = vpop.f32.mrf.mxu3  ;;  %v2290_v21 = vadd.f32 %v2289_v16, %v2011_v10  ;;  %v2013_v23 = vpop.f32.mrf.mxu1  ;;  %v1735_v29 = vadd.f32 %v5764_v30, %v1734_v22 }
 0x291   :  { %v2569_v26 = vadd.f32 %v2568_v17, %v2290_v21  ;;  %1773 = vmatmul.bf16.gmra.mxu0 %v3641_v18  ;;  %v2014_v34 = vadd.f32 %v2013_v23, %v1735_v29  ;;  %v3673_v17 = vor.u32 %v4172_v6, %v3672_v5  ;;  %v3677_v18 = vor.u32 %v4170_v8, %v3674_v9  ;;  %v4180_v5 = vld [vmem:[%s6285_s0 + $0x56c] sm:$0xf0]  ;;  %v3706_v8 = vld [vmem:[%s6285_s0 + $0x570] sm:$0xf0]  ;;  %v3712_v9 = vld [vmem:[%s6285_s0 + $0x568] sm:$0xf] }
 0x292   :  { %2052 = vmatmul.bf16.gmra.mxu1 %v3645_v19  ;;  %v3681_v23 = vor.u32 %v4173_v12, %v3680_v11  ;;  %v4181_v11 = vld [vmem:[%s6285_s0 + $0x574] sm:$0xf0]  ;;  %v4179_v12 = vld [vmem:[%s6285_s0 + $0x56c] sm:$0xf] }
 0x293   :  { %v2747_v28 = vmax.f32 %v2569_v26, 0.0  ;;  %2331 = vmatmul.bf16.gmra.mxu2 %v3649_v24  ;;  %v3685_v24 = vor.u32 %v4171_v14, %v3682_v13  ;;  %v3714_v14 = vld [vmem:[%s6285_s0 + $0x578] sm:$0xf0] }
 0x294   :  { %2610 = vmatmul.bf16.gmra.mxu3 %v3653_v25 }
 0x295   :  { %v4407_v31 = vpack.c.bf16 %v2747_v28, %v2746_v27 }
 0x296   :  { %v2292_v32 = vpop.f32.mrf.mxu2  ;;  %v1736_v35 = vpop.f32.mrf.mxu0 }
 0x297   :  { %v2571_v33 = vpop.f32.mrf.mxu3  ;;  %4553 = vst [vmem:[%s6286_s3 + $0xf0] sm:$0xff] %v4407_v31   ;;  %v2015_v36 = vpop.f32.mrf.mxu1  ;;  %v1737_v37 = vadd.f32 %v5764_v30, %v1736_v35  ;;  %v2293_v40 = vadd.f32 %v2292_v32, %v2014_v34 }
 0x299   :  { %v2016_v47 = vadd.f32 %v2015_v36, %v1737_v37  ;;  %v2572_v52 = vadd.f32 %v2571_v33, %v2293_v40  ;;  %v3688_v37 = vld [vmem:[%s6285_s0 + $0x540] sm:$0xf]  ;;  %v4174_v40 = vld [vmem:[%s6285_s0 + $0x544] sm:$0xf] }
 0x29b   :  { %v2748_v59 = vmax.f32 %v2572_v52, 0.0 }
 0x29e   :  { %v2294_v48 = vpop.f32.mrf.mxu2  ;;  %v1739_v54 = vpop.f32.mrf.mxu0 }
 0x29f   :  { %v2573_v49 = vpop.f32.mrf.mxu3  ;;  %v2295_v53 = vadd.f32 %v2294_v48, %v2016_v47  ;;  %v2018_v55 = vpop.f32.mrf.mxu1  ;;  %v1740_v61 = vadd.f32 %v5764_v30, %v1739_v54 }
 0x2a1   :  { %v2574_v58 = vadd.f32 %v2573_v49, %v2295_v53  ;;  %1778 = vmatmul.bf16.gmra.mxu0 %v3657_v50  ;;  %v2019_v1 = vadd.f32 %v2018_v55, %v1740_v61  ;;  %v3689_v49 = vor.u32 %v4176_v38, %v3688_v37  ;;  %v3693_v50 = vor.u32 %v4174_v40, %v3690_v41  ;;  %v4184_v37 = vld [vmem:[%s6285_s0 + $0x58c] sm:$0xf0]  ;;  %v3722_v40 = vld [vmem:[%s6285_s0 + $0x590] sm:$0xf0]  ;;  %v3728_v41 = vld [vmem:[%s6285_s0 + $0x588] sm:$0xf] }
 0x2a2   :  { %2057 = vmatmul.bf16.gmra.mxu1 %v3661_v51  ;;  %v3697_v55 = vor.u32 %v4177_v43, %v3696_v42  ;;  %v4185_v42 = vld [vmem:[%s6285_s0 + $0x594] sm:$0xf0]  ;;  %v4183_v43 = vld [vmem:[%s6285_s0 + $0x58c] sm:$0xf] }
 0x2a3   :  { %v2749_v60 = vmax.f32 %v2574_v58, 0.0  ;;  %2336 = vmatmul.bf16.gmra.mxu2 %v3665_v56  ;;  %v3701_v56 = vor.u32 %v4175_v44, %v3698_v45  ;;  %v3730_v44 = vld [vmem:[%s6285_s0 + $0x598] sm:$0xf0] }
 0x2a4   :  { %2615 = vmatmul.bf16.gmra.mxu3 %v3669_v57 }
 0x2a5   :  { %v4412_v62 = vpack.c.bf16 %v2749_v60, %v2748_v59 }
 0x2a6   :  { %v2297_v63 = vpop.f32.mrf.mxu2  ;;  %v1741_v2 = vpop.f32.mrf.mxu0 }
 0x2a7   :  { %v2576_v0 = vpop.f32.mrf.mxu3  ;;  %4554 = vst [vmem:[%s6286_s3 + $0xf8] sm:$0xff] %v4412_v62   ;;  %v2020_v3 = vpop.f32.mrf.mxu1  ;;  %v1742_v4 = vadd.f32 %v5764_v30, %v1741_v2  ;;  %v2298_v7 = vadd.f32 %v2297_v63, %v2019_v1 }
 0x2a9   :  { %v2021_v15 = vadd.f32 %v2020_v3, %v1742_v4  ;;  %v2577_v19 = vadd.f32 %v2576_v0, %v2298_v7  ;;  %v3704_v4 = vld [vmem:[%s6285_s0 + $0x560] sm:$0xf]  ;;  %v4178_v7 = vld [vmem:[%s6285_s0 + $0x564] sm:$0xf] }
 0x2ab   :  { %v2750_v26 = vmax.f32 %v2577_v19, 0.0 }
 0x2ae   :  { %v2299_v10 = vpop.f32.mrf.mxu2  ;;  %v1744_v21 = vpop.f32.mrf.mxu0 }
 0x2af   :  { %v2578_v16 = vpop.f32.mrf.mxu3  ;;  %v2300_v20 = vadd.f32 %v2299_v10, %v2021_v15  ;;  %v2023_v22 = vpop.f32.mrf.mxu1  ;;  %v1745_v28 = vadd.f32 %v5764_v30, %v1744_v21 }
 0x2b1   :  { %v2579_v25 = vadd.f32 %v2578_v16, %v2300_v20  ;;  %1783 = vmatmul.bf16.gmra.mxu0 %v3673_v17  ;;  %v2024_v33 = vadd.f32 %v2023_v22, %v1745_v28  ;;  %v3705_v16 = vor.u32 %v4180_v5, %v3704_v4  ;;  %v3709_v17 = vor.u32 %v4178_v7, %v3706_v8  ;;  %v4188_v4 = vld [vmem:[%s6285_s0 + $0x5ac] sm:$0xf0]  ;;  %v3738_v7 = vld [vmem:[%s6285_s0 + $0x5b0] sm:$0xf0]  ;;  %v3744_v8 = vld [vmem:[%s6285_s0 + $0x5a8] sm:$0xf] }
 0x2b2   :  { %2062 = vmatmul.bf16.gmra.mxu1 %v3677_v18  ;;  %v3713_v22 = vor.u32 %v4181_v11, %v3712_v9  ;;  %v4189_v9 = vld [vmem:[%s6285_s0 + $0x5b4] sm:$0xf0]  ;;  %v4187_v11 = vld [vmem:[%s6285_s0 + $0x5ac] sm:$0xf] }
 0x2b3   :  { %v2751_v27 = vmax.f32 %v2579_v25, 0.0  ;;  %2341 = vmatmul.bf16.gmra.mxu2 %v3681_v23  ;;  %v3717_v23 = vor.u32 %v4179_v12, %v3714_v14  ;;  %v3746_v12 = vld [vmem:[%s6285_s0 + $0x5b8] sm:$0xf0] }
 0x2b4   :  { %2620 = vmatmul.bf16.gmra.mxu3 %v3685_v24 }
 0x2b5   :  { %v4417_v29 = vpack.c.bf16 %v2751_v27, %v2750_v26 }
 0x2b6   :  { %v2302_v31 = vpop.f32.mrf.mxu2  ;;  %v1746_v34 = vpop.f32.mrf.mxu0 }
 0x2b7   :  { %v2581_v32 = vpop.f32.mrf.mxu3  ;;  %4555 = vst [vmem:[%s6286_s3 + $0x100] sm:$0xff] %v4417_v29   ;;  %v2025_v35 = vpop.f32.mrf.mxu1  ;;  %v1747_v36 = vadd.f32 %v5764_v30, %v1746_v34  ;;  %v2303_v39 = vadd.f32 %v2302_v31, %v2024_v33 }
 0x2b9   :  { %v2026_v46 = vadd.f32 %v2025_v35, %v1747_v36  ;;  %v2582_v51 = vadd.f32 %v2581_v32, %v2303_v39  ;;  %v3720_v36 = vld [vmem:[%s6285_s0 + $0x580] sm:$0xf]  ;;  %v4182_v39 = vld [vmem:[%s6285_s0 + $0x584] sm:$0xf] }
 0x2bb   :  { %v2752_v58 = vmax.f32 %v2582_v51, 0.0 }
 0x2be   :  { %v2304_v47 = vpop.f32.mrf.mxu2  ;;  %v1749_v53 = vpop.f32.mrf.mxu0 }
 0x2bf   :  { %v2583_v48 = vpop.f32.mrf.mxu3  ;;  %v2305_v52 = vadd.f32 %v2304_v47, %v2026_v46  ;;  %v2028_v54 = vpop.f32.mrf.mxu1  ;;  %v1750_v60 = vadd.f32 %v5764_v30, %v1749_v53 }
 0x2c1   :  { %v2584_v57 = vadd.f32 %v2583_v48, %v2305_v52  ;;  %1788 = vmatmul.bf16.gmra.mxu0 %v3689_v49  ;;  %v2029_v0 = vadd.f32 %v2028_v54, %v1750_v60  ;;  %v3721_v48 = vor.u32 %v4184_v37, %v3720_v36  ;;  %v3725_v49 = vor.u32 %v4182_v39, %v3722_v40  ;;  %v4192_v36 = vld [vmem:[%s6285_s0 + $0x5cc] sm:$0xf0]  ;;  %v3754_v39 = vld [vmem:[%s6285_s0 + $0x5d0] sm:$0xf0]  ;;  %v3760_v40 = vld [vmem:[%s6285_s0 + $0x5c8] sm:$0xf] }
 0x2c2   :  { %2067 = vmatmul.bf16.gmra.mxu1 %v3693_v50  ;;  %v3729_v54 = vor.u32 %v4185_v42, %v3728_v41  ;;  %v4193_v41 = vld [vmem:[%s6285_s0 + $0x5d4] sm:$0xf0]  ;;  %v4191_v42 = vld [vmem:[%s6285_s0 + $0x5cc] sm:$0xf] }
 0x2c3   :  { %v2753_v59 = vmax.f32 %v2584_v57, 0.0  ;;  %2346 = vmatmul.bf16.gmra.mxu2 %v3697_v55  ;;  %v3733_v55 = vor.u32 %v4183_v43, %v3730_v44  ;;  %v3762_v43 = vld [vmem:[%s6285_s0 + $0x5d8] sm:$0xf0] }
 0x2c4   :  { %2625 = vmatmul.bf16.gmra.mxu3 %v3701_v56 }
 0x2c5   :  { %v4422_v61 = vpack.c.bf16 %v2753_v59, %v2752_v58 }
 0x2c6   :  { %v2307_v62 = vpop.f32.mrf.mxu2  ;;  %v1751_v1 = vpop.f32.mrf.mxu0 }
 0x2c7   :  { %v2586_v63 = vpop.f32.mrf.mxu3  ;;  %4556 = vst [vmem:[%s6286_s3 + $0x108] sm:$0xff] %v4422_v61   ;;  %v2030_v2 = vpop.f32.mrf.mxu1  ;;  %v1752_v3 = vadd.f32 %v5764_v30, %v1751_v1  ;;  %v2308_v6 = vadd.f32 %v2307_v62, %v2029_v0 }
 0x2c9   :  { %v2031_v13 = vadd.f32 %v2030_v2, %v1752_v3  ;;  %v2587_v18 = vadd.f32 %v2586_v63, %v2308_v6  ;;  %v3736_v3 = vld [vmem:[%s6285_s0 + $0x5a0] sm:$0xf]  ;;  %v4186_v6 = vld [vmem:[%s6285_s0 + $0x5a4] sm:$0xf] }
 0x2cb   :  { %v2754_v25 = vmax.f32 %v2587_v18, 0.0 }
 0x2ce   :  { %v2309_v15 = vpop.f32.mrf.mxu2  ;;  %v1754_v20 = vpop.f32.mrf.mxu0 }
 0x2cf   :  { %v2588_v10 = vpop.f32.mrf.mxu3  ;;  %v2310_v19 = vadd.f32 %v2309_v15, %v2031_v13  ;;  %v2033_v21 = vpop.f32.mrf.mxu1  ;;  %v1755_v27 = vadd.f32 %v5764_v30, %v1754_v20 }
 0x2d1   :  { %v2589_v24 = vadd.f32 %v2588_v10, %v2310_v19  ;;  %1793 = vmatmul.bf16.gmra.mxu0 %v3705_v16  ;;  %v2034_v32 = vadd.f32 %v2033_v21, %v1755_v27  ;;  %v3737_v10 = vor.u32 %v4188_v4, %v3736_v3  ;;  %v3741_v16 = vor.u32 %v4186_v6, %v3738_v7  ;;  %v4196_v3 = vld [vmem:[%s6285_s0 + $0x5ec] sm:$0xf0]  ;;  %v3770_v6 = vld [vmem:[%s6285_s0 + $0x5f0] sm:$0xf0]  ;;  %v3776_v7 = vld [vmem:[%s6285_s0 + $0x5e8] sm:$0xf] }
 0x2d2   :  { %2072 = vmatmul.bf16.gmra.mxu1 %v3709_v17  ;;  %v3745_v21 = vor.u32 %v4189_v9, %v3744_v8  ;;  %v4197_v8 = vld [vmem:[%s6285_s0 + $0x5f4] sm:$0xf0]  ;;  %v4195_v9 = vld [vmem:[%s6285_s0 + $0x5ec] sm:$0xf] }
 0x2d3   :  { %v2755_v26 = vmax.f32 %v2589_v24, 0.0  ;;  %2351 = vmatmul.bf16.gmra.mxu2 %v3713_v22  ;;  %v3749_v22 = vor.u32 %v4187_v11, %v3746_v12  ;;  %v3778_v11 = vld [vmem:[%s6285_s0 + $0x5f8] sm:$0xf0] }
 0x2d4   :  { %2630 = vmatmul.bf16.gmra.mxu3 %v3717_v23 }
 0x2d5   :  { %v4427_v28 = vpack.c.bf16 %v2755_v26, %v2754_v25 }
 0x2d6   :  { %v2312_v29 = vpop.f32.mrf.mxu2  ;;  %v1756_v33 = vpop.f32.mrf.mxu0 }
 0x2d7   :  { %v2591_v31 = vpop.f32.mrf.mxu3  ;;  %4557 = vst [vmem:[%s6286_s3 + $0x110] sm:$0xff] %v4427_v28   ;;  %v2035_v34 = vpop.f32.mrf.mxu1  ;;  %v1757_v35 = vadd.f32 %v5764_v30, %v1756_v33  ;;  %v2313_v38 = vadd.f32 %v2312_v29, %v2034_v32 }
 0x2d9   :  { %v2036_v45 = vadd.f32 %v2035_v34, %v1757_v35  ;;  %v2592_v50 = vadd.f32 %v2591_v31, %v2313_v38  ;;  %v3752_v35 = vld [vmem:[%s6285_s0 + $0x5c0] sm:$0xf]  ;;  %v4190_v38 = vld [vmem:[%s6285_s0 + $0x5c4] sm:$0xf] }
 0x2db   :  { %v2756_v57 = vmax.f32 %v2592_v50, 0.0 }
 0x2de   :  { %v2314_v46 = vpop.f32.mrf.mxu2  ;;  %v1759_v52 = vpop.f32.mrf.mxu0 }
 0x2df   :  { %v2593_v47 = vpop.f32.mrf.mxu3  ;;  %v2315_v51 = vadd.f32 %v2314_v46, %v2036_v45  ;;  %v2038_v53 = vpop.f32.mrf.mxu1  ;;  %v1760_v59 = vadd.f32 %v5764_v30, %v1759_v52 }
 0x2e1   :  { %v2594_v56 = vadd.f32 %v2593_v47, %v2315_v51  ;;  %1798 = vmatmul.bf16.gmra.mxu0 %v3721_v48  ;;  %v2039_v63 = vadd.f32 %v2038_v53, %v1760_v59  ;;  %v3753_v47 = vor.u32 %v4192_v36, %v3752_v35  ;;  %v3757_v48 = vor.u32 %v4190_v38, %v3754_v39  ;;  %v4200_v35 = vld [vmem:[%s6285_s0 + $0x60c] sm:$0xf0]  ;;  %v3786_v38 = vld [vmem:[%s6285_s0 + $0x610] sm:$0xf0]  ;;  %v3792_v39 = vld [vmem:[%s6285_s0 + $0x608] sm:$0xf] }
 0x2e2   :  { %2077 = vmatmul.bf16.gmra.mxu1 %v3725_v49  ;;  %v3761_v53 = vor.u32 %v4193_v41, %v3760_v40  ;;  %v4201_v40 = vld [vmem:[%s6285_s0 + $0x614] sm:$0xf0]  ;;  %v4199_v41 = vld [vmem:[%s6285_s0 + $0x60c] sm:$0xf] }
 0x2e3   :  { %v2757_v58 = vmax.f32 %v2594_v56, 0.0  ;;  %2356 = vmatmul.bf16.gmra.mxu2 %v3729_v54  ;;  %v3765_v54 = vor.u32 %v4191_v42, %v3762_v43  ;;  %v3794_v42 = vld [vmem:[%s6285_s0 + $0x618] sm:$0xf0] }
 0x2e4   :  { %2635 = vmatmul.bf16.gmra.mxu3 %v3733_v55 }
 0x2e5   :  { %v4432_v60 = vpack.c.bf16 %v2757_v58, %v2756_v57 }
 0x2e6   :  { %v2317_v61 = vpop.f32.mrf.mxu2  ;;  %v1761_v0 = vpop.f32.mrf.mxu0 }
 0x2e7   :  { %v2596_v62 = vpop.f32.mrf.mxu3  ;;  %4558 = vst [vmem:[%s6286_s3 + $0x118] sm:$0xff] %v4432_v60   ;;  %v2040_v1 = vpop.f32.mrf.mxu1  ;;  %v1762_v2 = vadd.f32 %v5764_v30, %v1761_v0  ;;  %v2318_v5 = vadd.f32 %v2317_v61, %v2039_v63 }
 0x2e9   :  { %v2041_v14 = vadd.f32 %v2040_v1, %v1762_v2  ;;  %v2597_v17 = vadd.f32 %v2596_v62, %v2318_v5  ;;  %v3768_v2 = vld [vmem:[%s6285_s0 + $0x5e0] sm:$0xf]  ;;  %v4194_v5 = vld [vmem:[%s6285_s0 + $0x5e4] sm:$0xf] }
 0x2eb   :  { %v2758_v24 = vmax.f32 %v2597_v17, 0.0 }
 0x2ee   :  { %v2319_v13 = vpop.f32.mrf.mxu2  ;;  %v1764_v19 = vpop.f32.mrf.mxu0 }
 0x2ef   :  { %v2598_v15 = vpop.f32.mrf.mxu3  ;;  %v2320_v18 = vadd.f32 %v2319_v13, %v2041_v14  ;;  %v2043_v20 = vpop.f32.mrf.mxu1  ;;  %v1765_v26 = vadd.f32 %v5764_v30, %v1764_v19 }
 0x2f1   :  { %v2599_v23 = vadd.f32 %v2598_v15, %v2320_v18  ;;  %1803 = vmatmul.bf16.gmra.mxu0 %v3737_v10  ;;  %v2044_v31 = vadd.f32 %v2043_v20, %v1765_v26  ;;  %v3769_v15 = vor.u32 %v4196_v3, %v3768_v2  ;;  %v3773_v10 = vor.u32 %v4194_v5, %v3770_v6  ;;  %v4204_v2 = vld [vmem:[%s6285_s0 + $0x62c] sm:$0xf0]  ;;  %v3802_v5 = vld [vmem:[%s6285_s0 + $0x630] sm:$0xf0]  ;;  %v3808_v6 = vld [vmem:[%s6285_s0 + $0x628] sm:$0xf] }
 0x2f2   :  { %2082 = vmatmul.bf16.gmra.mxu1 %v3741_v16  ;;  %v3777_v20 = vor.u32 %v4197_v8, %v3776_v7  ;;  %v4205_v7 = vld [vmem:[%s6285_s0 + $0x634] sm:$0xf0]  ;;  %v4203_v8 = vld [vmem:[%s6285_s0 + $0x62c] sm:$0xf] }
 0x2f3   :  { %v2759_v25 = vmax.f32 %v2599_v23, 0.0  ;;  %2361 = vmatmul.bf16.gmra.mxu2 %v3745_v21  ;;  %v3781_v21 = vor.u32 %v4195_v9, %v3778_v11  ;;  %v3810_v9 = vld [vmem:[%s6285_s0 + $0x638] sm:$0xf0] }
 0x2f4   :  { %2640 = vmatmul.bf16.gmra.mxu3 %v3749_v22 }
 0x2f5   :  { %v4437_v27 = vpack.c.bf16 %v2759_v25, %v2758_v24 }
 0x2f6   :  { %v2322_v28 = vpop.f32.mrf.mxu2  ;;  %v1766_v32 = vpop.f32.mrf.mxu0 }
 0x2f7   :  { %v2601_v29 = vpop.f32.mrf.mxu3  ;;  %4559 = vst [vmem:[%s6286_s3 + $0x120] sm:$0xff] %v4437_v27   ;;  %v2045_v33 = vpop.f32.mrf.mxu1  ;;  %v1767_v34 = vadd.f32 %v5764_v30, %v1766_v32  ;;  %v2323_v37 = vadd.f32 %v2322_v28, %v2044_v31 }
 0x2f9   :  { %v2046_v44 = vadd.f32 %v2045_v33, %v1767_v34  ;;  %v2602_v49 = vadd.f32 %v2601_v29, %v2323_v37  ;;  %v3784_v34 = vld [vmem:[%s6285_s0 + $0x600] sm:$0xf]  ;;  %v4198_v37 = vld [vmem:[%s6285_s0 + $0x604] sm:$0xf] }
 0x2fb   :  { %v2760_v56 = vmax.f32 %v2602_v49, 0.0 }
 0x2fe   :  { %v2324_v45 = vpop.f32.mrf.mxu2  ;;  %v1769_v51 = vpop.f32.mrf.mxu0 }
 0x2ff   :  { %v2603_v46 = vpop.f32.mrf.mxu3  ;;  %v2325_v50 = vadd.f32 %v2324_v45, %v2046_v44  ;;  %v2048_v52 = vpop.f32.mrf.mxu1  ;;  %v1770_v58 = vadd.f32 %v5764_v30, %v1769_v51 }
 0x301   :  { %v2604_v55 = vadd.f32 %v2603_v46, %v2325_v50  ;;  %1808 = vmatmul.bf16.gmra.mxu0 %v3753_v47  ;;  %v2049_v62 = vadd.f32 %v2048_v52, %v1770_v58  ;;  %v3785_v46 = vor.u32 %v4200_v35, %v3784_v34  ;;  %v3789_v47 = vor.u32 %v4198_v37, %v3786_v38  ;;  %v4208_v34 = vld [vmem:[%s6285_s0 + $0x64c] sm:$0xf0]  ;;  %v3818_v37 = vld [vmem:[%s6285_s0 + $0x650] sm:$0xf0]  ;;  %v3824_v38 = vld [vmem:[%s6285_s0 + $0x648] sm:$0xf] }
 0x302   :  { %2087 = vmatmul.bf16.gmra.mxu1 %v3757_v48  ;;  %v3793_v52 = vor.u32 %v4201_v40, %v3792_v39  ;;  %v4209_v39 = vld [vmem:[%s6285_s0 + $0x654] sm:$0xf0]  ;;  %v4207_v40 = vld [vmem:[%s6285_s0 + $0x64c] sm:$0xf] }
 0x303   :  { %v2761_v57 = vmax.f32 %v2604_v55, 0.0  ;;  %2366 = vmatmul.bf16.gmra.mxu2 %v3761_v53  ;;  %v3797_v53 = vor.u32 %v4199_v41, %v3794_v42  ;;  %v3826_v41 = vld [vmem:[%s6285_s0 + $0x658] sm:$0xf0] }
 0x304   :  { %2645 = vmatmul.bf16.gmra.mxu3 %v3765_v54 }
 0x305   :  { %v4442_v59 = vpack.c.bf16 %v2761_v57, %v2760_v56 }
 0x306   :  { %v2327_v60 = vpop.f32.mrf.mxu2  ;;  %v1771_v63 = vpop.f32.mrf.mxu0 }
 0x307   :  { %v2606_v61 = vpop.f32.mrf.mxu3  ;;  %4560 = vst [vmem:[%s6286_s3 + $0x128] sm:$0xff] %v4442_v59   ;;  %v2050_v0 = vpop.f32.mrf.mxu1  ;;  %v1772_v1 = vadd.f32 %v5764_v30, %v1771_v63  ;;  %v2328_v4 = vadd.f32 %v2327_v60, %v2049_v62 }
 0x309   :  { %v2051_v12 = vadd.f32 %v2050_v0, %v1772_v1  ;;  %v2607_v16 = vadd.f32 %v2606_v61, %v2328_v4  ;;  %v3800_v1 = vld [vmem:[%s6285_s0 + $0x620] sm:$0xf]  ;;  %v4202_v4 = vld [vmem:[%s6285_s0 + $0x624] sm:$0xf] }
 0x30b   :  { %v2762_v23 = vmax.f32 %v2607_v16, 0.0 }
 0x30e   :  { %v2329_v14 = vpop.f32.mrf.mxu2  ;;  %v1774_v18 = vpop.f32.mrf.mxu0 }
 0x30f   :  { %v2608_v13 = vpop.f32.mrf.mxu3  ;;  %v2330_v17 = vadd.f32 %v2329_v14, %v2051_v12  ;;  %v2053_v19 = vpop.f32.mrf.mxu1  ;;  %v1775_v25 = vadd.f32 %v5764_v30, %v1774_v18 }
 0x311   :  { %v2609_v22 = vadd.f32 %v2608_v13, %v2330_v17  ;;  %1813 = vmatmul.bf16.gmra.mxu0 %v3769_v15  ;;  %v2054_v29 = vadd.f32 %v2053_v19, %v1775_v25  ;;  %v3801_v13 = vor.u32 %v4204_v2, %v3800_v1  ;;  %v3805_v15 = vor.u32 %v4202_v4, %v3802_v5  ;;  %v4212_v1 = vld [vmem:[%s6285_s0 + $0x66c] sm:$0xf0]  ;;  %v3834_v4 = vld [vmem:[%s6285_s0 + $0x670] sm:$0xf0]  ;;  %v3840_v5 = vld [vmem:[%s6285_s0 + $0x668] sm:$0xf] }
 0x312   :  { %2092 = vmatmul.bf16.gmra.mxu1 %v3773_v10  ;;  %v3809_v19 = vor.u32 %v4205_v7, %v3808_v6  ;;  %v4213_v6 = vld [vmem:[%s6285_s0 + $0x674] sm:$0xf0]  ;;  %v4211_v7 = vld [vmem:[%s6285_s0 + $0x66c] sm:$0xf] }
 0x313   :  { %v2763_v24 = vmax.f32 %v2609_v22, 0.0  ;;  %2371 = vmatmul.bf16.gmra.mxu2 %v3777_v20  ;;  %v3813_v20 = vor.u32 %v4203_v8, %v3810_v9  ;;  %v3842_v8 = vld [vmem:[%s6285_s0 + $0x678] sm:$0xf0] }
 0x314   :  { %2650 = vmatmul.bf16.gmra.mxu3 %v3781_v21 }
 0x315   :  { %v4447_v26 = vpack.c.bf16 %v2763_v24, %v2762_v23 }
 0x316   :  { %v2332_v27 = vpop.f32.mrf.mxu2  ;;  %v1776_v31 = vpop.f32.mrf.mxu0 }
 0x317   :  { %v2611_v28 = vpop.f32.mrf.mxu3  ;;  %4561 = vst [vmem:[%s6286_s3 + $0x130] sm:$0xff] %v4447_v26   ;;  %v2055_v32 = vpop.f32.mrf.mxu1  ;;  %v1777_v33 = vadd.f32 %v5764_v30, %v1776_v31  ;;  %v2333_v36 = vadd.f32 %v2332_v27, %v2054_v29 }
 0x319   :  { %v2056_v43 = vadd.f32 %v2055_v32, %v1777_v33  ;;  %v2612_v48 = vadd.f32 %v2611_v28, %v2333_v36  ;;  %v3816_v33 = vld [vmem:[%s6285_s0 + $0x640] sm:$0xf]  ;;  %v4206_v36 = vld [vmem:[%s6285_s0 + $0x644] sm:$0xf] }
 0x31b   :  { %v2764_v55 = vmax.f32 %v2612_v48, 0.0 }
 0x31e   :  { %v2334_v44 = vpop.f32.mrf.mxu2  ;;  %v1779_v50 = vpop.f32.mrf.mxu0 }
 0x31f   :  { %v2613_v45 = vpop.f32.mrf.mxu3  ;;  %v2335_v49 = vadd.f32 %v2334_v44, %v2056_v43  ;;  %v2058_v51 = vpop.f32.mrf.mxu1  ;;  %v1780_v57 = vadd.f32 %v5764_v30, %v1779_v50 }
 0x321   :  { %v2614_v54 = vadd.f32 %v2613_v45, %v2335_v49  ;;  %1818 = vmatmul.bf16.gmra.mxu0 %v3785_v46  ;;  %v2059_v61 = vadd.f32 %v2058_v51, %v1780_v57  ;;  %v3817_v45 = vor.u32 %v4208_v34, %v3816_v33  ;;  %v3821_v46 = vor.u32 %v4206_v36, %v3818_v37  ;;  %v4216_v33 = vld [vmem:[%s6285_s0 + $0x68c] sm:$0xf0]  ;;  %v3850_v36 = vld [vmem:[%s6285_s0 + $0x690] sm:$0xf0]  ;;  %v3856_v37 = vld [vmem:[%s6285_s0 + $0x688] sm:$0xf] }
 0x322   :  { %2097 = vmatmul.bf16.gmra.mxu1 %v3789_v47  ;;  %v3825_v51 = vor.u32 %v4209_v39, %v3824_v38  ;;  %v4217_v38 = vld [vmem:[%s6285_s0 + $0x694] sm:$0xf0]  ;;  %v4215_v39 = vld [vmem:[%s6285_s0 + $0x68c] sm:$0xf] }
 0x323   :  { %v2765_v56 = vmax.f32 %v2614_v54, 0.0  ;;  %2376 = vmatmul.bf16.gmra.mxu2 %v3793_v52  ;;  %v3829_v52 = vor.u32 %v4207_v40, %v3826_v41  ;;  %v3858_v40 = vld [vmem:[%s6285_s0 + $0x698] sm:$0xf0] }
 0x324   :  { %2655 = vmatmul.bf16.gmra.mxu3 %v3797_v53 }
 0x325   :  { %v4452_v58 = vpack.c.bf16 %v2765_v56, %v2764_v55 }
 0x326   :  { %v2337_v59 = vpop.f32.mrf.mxu2  ;;  %v1781_v62 = vpop.f32.mrf.mxu0 }
 0x327   :  { %v2616_v60 = vpop.f32.mrf.mxu3  ;;  %4562 = vst [vmem:[%s6286_s3 + $0x138] sm:$0xff] %v4452_v58   ;;  %v2060_v63 = vpop.f32.mrf.mxu1  ;;  %v1782_v0 = vadd.f32 %v5764_v30, %v1781_v62  ;;  %v2338_v3 = vadd.f32 %v2337_v59, %v2059_v61 }
 0x329   :  { %v2061_v11 = vadd.f32 %v2060_v63, %v1782_v0  ;;  %v2617_v10 = vadd.f32 %v2616_v60, %v2338_v3  ;;  %v3832_v0 = vld [vmem:[%s6285_s0 + $0x660] sm:$0xf]  ;;  %v4210_v3 = vld [vmem:[%s6285_s0 + $0x664] sm:$0xf] }
 0x32b   :  { %v2766_v22 = vmax.f32 %v2617_v10, 0.0 }
 0x32e   :  { %v2339_v12 = vpop.f32.mrf.mxu2  ;;  %v1784_v17 = vpop.f32.mrf.mxu0 }
 0x32f   :  { %v2618_v14 = vpop.f32.mrf.mxu3  ;;  %v2340_v16 = vadd.f32 %v2339_v12, %v2061_v11  ;;  %v2063_v18 = vpop.f32.mrf.mxu1  ;;  %v1785_v24 = vadd.f32 %v5764_v30, %v1784_v17 }
 0x331   :  { %v2619_v21 = vadd.f32 %v2618_v14, %v2340_v16  ;;  %1823 = vmatmul.bf16.gmra.mxu0 %v3801_v13  ;;  %v2064_v28 = vadd.f32 %v2063_v18, %v1785_v24  ;;  %v3833_v14 = vor.u32 %v4212_v1, %v3832_v0  ;;  %v3837_v13 = vor.u32 %v4210_v3, %v3834_v4  ;;  %v4220_v0 = vld [vmem:[%s6285_s0 + $0x6ac] sm:$0xf0]  ;;  %v3866_v3 = vld [vmem:[%s6285_s0 + $0x6b0] sm:$0xf0]  ;;  %v3872_v4 = vld [vmem:[%s6285_s0 + $0x6a8] sm:$0xf] }
 0x332   :  { %2102 = vmatmul.bf16.gmra.mxu1 %v3805_v15  ;;  %v3841_v18 = vor.u32 %v4213_v6, %v3840_v5  ;;  %v4221_v5 = vld [vmem:[%s6285_s0 + $0x6b4] sm:$0xf0]  ;;  %v4219_v6 = vld [vmem:[%s6285_s0 + $0x6ac] sm:$0xf] }
 0x333   :  { %v2767_v23 = vmax.f32 %v2619_v21, 0.0  ;;  %2381 = vmatmul.bf16.gmra.mxu2 %v3809_v19  ;;  %v3845_v19 = vor.u32 %v4211_v7, %v3842_v8  ;;  %v3874_v7 = vld [vmem:[%s6285_s0 + $0x6b8] sm:$0xf0] }
 0x334   :  { %2660 = vmatmul.bf16.gmra.mxu3 %v3813_v20 }
 0x335   :  { %v4457_v25 = vpack.c.bf16 %v2767_v23, %v2766_v22 }
 0x336   :  { %v2342_v26 = vpop.f32.mrf.mxu2  ;;  %v1786_v29 = vpop.f32.mrf.mxu0 }
 0x337   :  { %v2621_v27 = vpop.f32.mrf.mxu3  ;;  %4563 = vst [vmem:[%s6286_s3 + $0x140] sm:$0xff] %v4457_v25   ;;  %v2065_v31 = vpop.f32.mrf.mxu1  ;;  %v1787_v32 = vadd.f32 %v5764_v30, %v1786_v29  ;;  %v2343_v35 = vadd.f32 %v2342_v26, %v2064_v28 }
 0x339   :  { %v2066_v42 = vadd.f32 %v2065_v31, %v1787_v32  ;;  %v2622_v47 = vadd.f32 %v2621_v27, %v2343_v35  ;;  %v6179_v31 = vld [vmem:[%s6284_s2] ss:$0 sm:$0xff]  ;;  %v4214_v35 = vld [vmem:[%s6285_s0 + $0x684] sm:$0xf] }
 0x33b   :  { %v2768_v54 = vmax.f32 %v2622_v47, 0.0 }
 0x33e   :  { %v2344_v43 = vpop.f32.mrf.mxu2  ;;  %v1789_v49 = vpop.f32.mrf.mxu0 }
 0x33f   :  { %v2623_v44 = vpop.f32.mrf.mxu3  ;;  %v2345_v48 = vadd.f32 %v2344_v43, %v2066_v42  ;;  %v2068_v50 = vpop.f32.mrf.mxu1  ;;  %v1790_v56 = vadd.f32 %v5764_v30, %v1789_v49 }
 0x341   :  { %v2624_v53 = vadd.f32 %v2623_v44, %v2345_v48  ;;  %1828 = vmatmul.bf16.gmra.mxu0 %v3817_v45  ;;  %v2069_v60 = vadd.f32 %v2068_v50, %v1790_v56  ;;  %v3853_v45 = vor.u32 %v4214_v35, %v3850_v36  ;;  %v3857_v50 = vor.u32 %v4217_v38, %v3856_v37 }
 0x342   :  { %2107 = vmatmul.bf16.gmra.mxu1 %v3821_v46 }
 0x343   :  { %v2769_v55 = vmax.f32 %v2624_v53, 0.0  ;;  %2386 = vmatmul.bf16.gmra.mxu2 %v3825_v51  ;;  %v3861_v51 = vor.u32 %v4215_v39, %v3858_v40 }
 0x344   :  { %2665 = vmatmul.bf16.gmra.mxu3 %v3829_v52 }
 0x345   :  { %v4462_v57 = vpack.c.bf16 %v2769_v55, %v2768_v54 }
 0x346   :  { %v2347_v58 = vpop.f32.mrf.mxu2  ;;  %v1791_v61 = vpop.f32.mrf.mxu0 }
 0x347   :  { %v2626_v59 = vpop.f32.mrf.mxu3  ;;  %4564 = vst [vmem:[%s6286_s3 + $0x148] sm:$0xff] %v4462_v57   ;;  %v2070_v62 = vpop.f32.mrf.mxu1  ;;  %v1792_v63 = vadd.f32 %v5764_v30, %v1791_v61  ;;  %v2348_v2 = vadd.f32 %v2347_v58, %v2069_v60 }
 0x349   :  { %v2071_v9 = vadd.f32 %v2070_v62, %v1792_v63  ;;  %v2627_v15 = vadd.f32 %v2626_v59, %v2348_v2  ;;  %v3864_v63 = vld [vmem:[%s6285_s0 + $0x6a0] sm:$0xf]  ;;  %v4218_v2 = vld [vmem:[%s6285_s0 + $0x6a4] sm:$0xf] }
 0x34b   :  { %v2770_v21 = vmax.f32 %v2627_v15, 0.0 }
 0x34e   :  { %v2349_v11 = vpop.f32.mrf.mxu2  ;;  %v1794_v16 = vpop.f32.mrf.mxu0 }
 0x34f   :  { %v2628_v12 = vpop.f32.mrf.mxu3  ;;  %v2350_v10 = vadd.f32 %v2349_v11, %v2071_v9  ;;  %v2073_v17 = vpop.f32.mrf.mxu1  ;;  %v1795_v23 = vadd.f32 %v5764_v30, %v1794_v16  ;;  %v3848_v30 = vld [vmem:[%s6285_s0 + $0x680] sm:$0xf] }
 0x350   :  { %v3849_v44 = vor.u32 %v4216_v33, %v3848_v30 }
 0x351   :  { %v2629_v20 = vadd.f32 %v2628_v12, %v2350_v10  ;;  %1833 = vmatmul.bf16.gmra.mxu0 %v3833_v14  ;;  %v2074_v27 = vadd.f32 %v2073_v17, %v1795_v23  ;;  %v3865_v12 = vor.u32 %v4220_v0, %v3864_v63  ;;  %v3869_v14 = vor.u32 %v4218_v2, %v3866_v3 }
 0x352   :  { %2112 = vmatmul.bf16.gmra.mxu1 %v3837_v13  ;;  %v3873_v17 = vor.u32 %v4221_v5, %v3872_v4 }
 0x353   :  { %v2771_v22 = vmax.f32 %v2629_v20, 0.0  ;;  %2391 = vmatmul.bf16.gmra.mxu2 %v3841_v18  ;;  %v3877_v18 = vor.u32 %v4219_v6, %v3874_v7 }
 0x354   :  { %2670 = vmatmul.bf16.gmra.mxu3 %v3845_v19 }
 0x355   :  { %v4467_v24 = vpack.c.bf16 %v2771_v22, %v2770_v21 }
 0x356   :  { %v2352_v25 = vpop.f32.mrf.mxu2  ;;  %v1796_v28 = vpop.f32.mrf.mxu0 }
 0x357   :  { %v2631_v26 = vpop.f32.mrf.mxu3  ;;  %4565 = vst [vmem:[%s6286_s3 + $0x150] sm:$0xff] %v4467_v24   ;;  %v2075_v29 = vpop.f32.mrf.mxu1  ;;  %v1797_v32 = vadd.f32 %v6179_v31, %v1796_v28  ;;  %v2353_v34 = vadd.f32 %v2352_v25, %v2074_v27 }
 0x359   :  { %v2076_v41 = vadd.f32 %v2075_v29, %v1797_v32  ;;  %v2632_v46 = vadd.f32 %v2631_v26, %v2353_v34 }
 0x35b   :  { %v2772_v53 = vmax.f32 %v2632_v46, 0.0 }
 0x35e   :  { %v2354_v42 = vpop.f32.mrf.mxu2  ;;  %v1799_v48 = vpop.f32.mrf.mxu0 }
 0x35f   :  { %v2633_v43 = vpop.f32.mrf.mxu3  ;;  %v2355_v47 = vadd.f32 %v2354_v42, %v2076_v41  ;;  %v2078_v49 = vpop.f32.mrf.mxu1  ;;  %v1800_v55 = vadd.f32 %v6179_v31, %v1799_v48 }
 0x361   :  { %v2634_v52 = vadd.f32 %v2633_v43, %v2355_v47  ;;  %1838 = vmatmul.bf16.gmra.mxu0 %v3849_v44  ;;  %v2079_v59 = vadd.f32 %v2078_v49, %v1800_v55 }
 0x362   :  { %2117 = vmatmul.bf16.gmra.mxu1 %v3853_v45 }
 0x363   :  { %v2773_v54 = vmax.f32 %v2634_v52, 0.0  ;;  %2396 = vmatmul.bf16.gmra.mxu2 %v3857_v50 }
 0x364   :  { %2675 = vmatmul.bf16.gmra.mxu3 %v3861_v51 }
 0x365   :  { %v4472_v56 = vpack.c.bf16 %v2773_v54, %v2772_v53 }
 0x366   :  { %v2357_v57 = vpop.f32.mrf.mxu2  ;;  %v1801_v60 = vpop.f32.mrf.mxu0 }
 0x367   :  { %v2636_v58 = vpop.f32.mrf.mxu3  ;;  %4566 = vst [vmem:[%s6286_s3 + $0x158] sm:$0xff] %v4472_v56   ;;  %v2080_v61 = vpop.f32.mrf.mxu1  ;;  %v1802_v62 = vadd.f32 %v6179_v31, %v1801_v60  ;;  %v2358_v1 = vadd.f32 %v2357_v57, %v2079_v59 }
 0x369   :  { %v2081_v8 = vadd.f32 %v2080_v61, %v1802_v62  ;;  %v2637_v13 = vadd.f32 %v2636_v58, %v2358_v1 }
 0x36b   :  { %v2774_v20 = vmax.f32 %v2637_v13, 0.0 }
 0x36e   :  { %v2359_v9 = vpop.f32.mrf.mxu2  ;;  %v1804_v10 = vpop.f32.mrf.mxu0 }
 0x36f   :  { %v2638_v11 = vpop.f32.mrf.mxu3  ;;  %v2360_v15 = vadd.f32 %v2359_v9, %v2081_v8  ;;  %v2083_v16 = vpop.f32.mrf.mxu1  ;;  %v1805_v22 = vadd.f32 %v6179_v31, %v1804_v10 }
 0x371   :  { %v2639_v19 = vadd.f32 %v2638_v11, %v2360_v15  ;;  %1843 = vmatmul.bf16.gmra.mxu0 %v3865_v12  ;;  %v2084_v26 = vadd.f32 %v2083_v16, %v1805_v22 }
 0x372   :  { %2122 = vmatmul.bf16.gmra.mxu1 %v3869_v14 }
 0x373   :  { %v2775_v21 = vmax.f32 %v2639_v19, 0.0  ;;  %2401 = vmatmul.bf16.gmra.mxu2 %v3873_v17 }
 0x374   :  { %2680 = vmatmul.bf16.gmra.mxu3 %v3877_v18 }
 0x375   :  { %v4477_v23 = vpack.c.bf16 %v2775_v21, %v2774_v20 }
 0x376   :  { %v2362_v24 = vpop.f32.mrf.mxu2  ;;  %v1806_v27 = vpop.f32.mrf.mxu0 }
 0x377   :  { %v2641_v25 = vpop.f32.mrf.mxu3  ;;  %4567 = vst [vmem:[%s6286_s3 + $0x160] sm:$0xff] %v4477_v23   ;;  %v2085_v28 = vpop.f32.mrf.mxu1  ;;  %v1807_v29 = vadd.f32 %v6179_v31, %v1806_v27  ;;  %v2363_v32 = vadd.f32 %v2362_v24, %v2084_v26 }
 0x379   :  { %v2086_v30 = vadd.f32 %v2085_v28, %v1807_v29  ;;  %v2642_v35 = vadd.f32 %v2641_v25, %v2363_v32 }
 0x37b   :  { %v2776_v40 = vmax.f32 %v2642_v35, 0.0 }
 0x37e   :  { %v2364_v33 = vpop.f32.mrf.mxu2  ;;  %v1809_v37 = vpop.f32.mrf.mxu0 }
 0x37f   :  { %v2643_v34 = vpop.f32.mrf.mxu3  ;;  %v2365_v36 = vadd.f32 %v2364_v33, %v2086_v30  ;;  %v2088_v38 = vpop.f32.mrf.mxu1  ;;  %v1810_v42 = vadd.f32 %v6179_v31, %v1809_v37 }
 0x381   :  { %v2644_v39 = vadd.f32 %v2643_v34, %v2365_v36  ;;  %v2089_v46 = vadd.f32 %v2088_v38, %v1810_v42 }
 0x383   :  { %v2777_v41 = vmax.f32 %v2644_v39, 0.0 }
 0x385   :  { %v4482_v43 = vpack.c.bf16 %v2777_v41, %v2776_v40 }
 0x386   :  { %v2367_v44 = vpop.f32.mrf.mxu2  ;;  %v1811_v47 = vpop.f32.mrf.mxu0 }
 0x387   :  { %v2646_v45 = vpop.f32.mrf.mxu3  ;;  %4568 = vst [vmem:[%s6286_s3 + $0x168] sm:$0xff] %v4482_v43   ;;  %v2090_v48 = vpop.f32.mrf.mxu1  ;;  %v1812_v49 = vadd.f32 %v6179_v31, %v1811_v47  ;;  %v2368_v50 = vadd.f32 %v2367_v44, %v2089_v46 }
 0x389   :  { %v2091_v51 = vadd.f32 %v2090_v48, %v1812_v49  ;;  %v2647_v54 = vadd.f32 %v2646_v45, %v2368_v50 }
 0x38b   :  { %v2778_v59 = vmax.f32 %v2647_v54, 0.0 }
 0x38e   :  { %v2369_v52 = vpop.f32.mrf.mxu2  ;;  %v1814_v56 = vpop.f32.mrf.mxu0 }
 0x38f   :  { %v2648_v53 = vpop.f32.mrf.mxu3  ;;  %v2370_v55 = vadd.f32 %v2369_v52, %v2091_v51  ;;  %v2093_v57 = vpop.f32.mrf.mxu1  ;;  %v1815_v61 = vadd.f32 %v6179_v31, %v1814_v56 }
 0x391   :  { %v2649_v58 = vadd.f32 %v2648_v53, %v2370_v55  ;;  %v2094_v1 = vadd.f32 %v2093_v57, %v1815_v61 }
 0x393   :  { %v2779_v60 = vmax.f32 %v2649_v58, 0.0 }
 0x395   :  { %v4487_v62 = vpack.c.bf16 %v2779_v60, %v2778_v59 }
 0x396   :  { %v2372_v63 = vpop.f32.mrf.mxu2  ;;  %v1816_v2 = vpop.f32.mrf.mxu0 }
 0x397   :  { %v2651_v0 = vpop.f32.mrf.mxu3  ;;  %4569 = vst [vmem:[%s6286_s3 + $0x170] sm:$0xff] %v4487_v62   ;;  %v2095_v3 = vpop.f32.mrf.mxu1  ;;  %v1817_v4 = vadd.f32 %v6179_v31, %v1816_v2  ;;  %v2373_v5 = vadd.f32 %v2372_v63, %v2094_v1 }
 0x399   :  { %v2096_v6 = vadd.f32 %v2095_v3, %v1817_v4  ;;  %v2652_v9 = vadd.f32 %v2651_v0, %v2373_v5 }
 0x39b   :  { %v2780_v15 = vmax.f32 %v2652_v9, 0.0 }
 0x39e   :  { %v2374_v7 = vpop.f32.mrf.mxu2  ;;  %v1819_v12 = vpop.f32.mrf.mxu0 }
 0x39f   :  { %v2653_v8 = vpop.f32.mrf.mxu3  ;;  %v2375_v11 = vadd.f32 %v2374_v7, %v2096_v6  ;;  %v2098_v14 = vpop.f32.mrf.mxu1  ;;  %v1820_v16 = vadd.f32 %v6179_v31, %v1819_v12 }
 0x3a1   :  { %v2654_v13 = vadd.f32 %v2653_v8, %v2375_v11  ;;  %v2099_v20 = vadd.f32 %v2098_v14, %v1820_v16 }
 0x3a3   :  { %v2781_v10 = vmax.f32 %v2654_v13, 0.0 }
 0x3a5   :  { %v4492_v17 = vpack.c.bf16 %v2781_v10, %v2780_v15 }
 0x3a6   :  { %v2377_v18 = vpop.f32.mrf.mxu2  ;;  %v1821_v21 = vpop.f32.mrf.mxu0 }
 0x3a7   :  { %v2656_v19 = vpop.f32.mrf.mxu3  ;;  %4570 = vst [vmem:[%s6286_s3 + $0x178] sm:$0xff] %v4492_v17   ;;  %v2100_v22 = vpop.f32.mrf.mxu1  ;;  %v1822_v23 = vadd.f32 %v6179_v31, %v1821_v21  ;;  %v2378_v24 = vadd.f32 %v2377_v18, %v2099_v20 }
 0x3a9   :  { %v2101_v25 = vadd.f32 %v2100_v22, %v1822_v23  ;;  %v2657_v28 = vadd.f32 %v2656_v19, %v2378_v24 }
 0x3ab   :  { %v2782_v34 = vmax.f32 %v2657_v28, 0.0 }
 0x3ae   :  { %v2379_v26 = vpop.f32.mrf.mxu2  ;;  %v1824_v32 = vpop.f32.mrf.mxu0 }
 0x3af   :  { %v2658_v27 = vpop.f32.mrf.mxu3  ;;  %v2380_v29 = vadd.f32 %v2379_v26, %v2101_v25  ;;  %v2103_v30 = vpop.f32.mrf.mxu1  ;;  %v1825_v36 = vadd.f32 %v6179_v31, %v1824_v32 }
 0x3b1   :  { %v2659_v33 = vadd.f32 %v2658_v27, %v2380_v29  ;;  %v2104_v40 = vadd.f32 %v2103_v30, %v1825_v36 }
 0x3b3   :  { %v2783_v35 = vmax.f32 %v2659_v33, 0.0 }
 0x3b5   :  { %v4497_v37 = vpack.c.bf16 %v2783_v35, %v2782_v34 }
 0x3b6   :  { %v2382_v38 = vpop.f32.mrf.mxu2  ;;  %v1826_v41 = vpop.f32.mrf.mxu0 }
 0x3b7   :  { %v2661_v39 = vpop.f32.mrf.mxu3  ;;  %4571 = vst [vmem:[%s6286_s3 + $0x180] sm:$0xff] %v4497_v37   ;;  %v2105_v42 = vpop.f32.mrf.mxu1  ;;  %v1827_v43 = vadd.f32 %v6179_v31, %v1826_v41  ;;  %v2383_v44 = vadd.f32 %v2382_v38, %v2104_v40 }
 0x3b9   :  { %v2106_v45 = vadd.f32 %v2105_v42, %v1827_v43  ;;  %v2662_v48 = vadd.f32 %v2661_v39, %v2383_v44 }
 0x3bb   :  { %v2784_v53 = vmax.f32 %v2662_v48, 0.0 }
 0x3be   :  { %v2384_v46 = vpop.f32.mrf.mxu2  ;;  %v1829_v50 = vpop.f32.mrf.mxu0 }
 0x3bf   :  { %v2663_v47 = vpop.f32.mrf.mxu3  ;;  %v2385_v49 = vadd.f32 %v2384_v46, %v2106_v45  ;;  %v2108_v51 = vpop.f32.mrf.mxu1  ;;  %v1830_v55 = vadd.f32 %v6179_v31, %v1829_v50 }
 0x3c1   :  { %v2664_v52 = vadd.f32 %v2663_v47, %v2385_v49  ;;  %v2109_v59 = vadd.f32 %v2108_v51, %v1830_v55 }
 0x3c3   :  { %v2785_v54 = vmax.f32 %v2664_v52, 0.0 }
 0x3c5   :  { %v4502_v56 = vpack.c.bf16 %v2785_v54, %v2784_v53 }
 0x3c6   :  { %v2387_v57 = vpop.f32.mrf.mxu2  ;;  %v1831_v60 = vpop.f32.mrf.mxu0 }
 0x3c7   :  { %v2666_v58 = vpop.f32.mrf.mxu3  ;;  %4572 = vst [vmem:[%s6286_s3 + $0x188] sm:$0xff] %v4502_v56   ;;  %v2110_v61 = vpop.f32.mrf.mxu1  ;;  %v1832_v62 = vadd.f32 %v6179_v31, %v1831_v60  ;;  %v2388_v63 = vadd.f32 %v2387_v57, %v2109_v59 }
 0x3c9   :  { %v2111_v0 = vadd.f32 %v2110_v61, %v1832_v62  ;;  %v2667_v3 = vadd.f32 %v2666_v58, %v2388_v63 }
 0x3cb   :  { %v2786_v8 = vmax.f32 %v2667_v3, 0.0 }
 0x3ce   :  { %v2389_v1 = vpop.f32.mrf.mxu2  ;;  %v1834_v5 = vpop.f32.mrf.mxu0 }
 0x3cf   :  { %v2668_v2 = vpop.f32.mrf.mxu3  ;;  %v2390_v4 = vadd.f32 %v2389_v1, %v2111_v0  ;;  %v2113_v6 = vpop.f32.mrf.mxu1  ;;  %v1835_v11 = vadd.f32 %v6179_v31, %v1834_v5 }
 0x3d1   :  { %v2669_v7 = vadd.f32 %v2668_v2, %v2390_v4  ;;  %v2114_v15 = vadd.f32 %v2113_v6, %v1835_v11 }
 0x3d3   :  { %v2787_v9 = vmax.f32 %v2669_v7, 0.0 }
 0x3d5   :  { %v4507_v12 = vpack.c.bf16 %v2787_v9, %v2786_v8 }
 0x3d6   :  { %v2392_v14 = vpop.f32.mrf.mxu2  ;;  %v1836_v10 = vpop.f32.mrf.mxu0 }
 0x3d7   :  { %v2671_v13 = vpop.f32.mrf.mxu3  ;;  %4573 = vst [vmem:[%s6286_s3 + $0x190] sm:$0xff] %v4507_v12   ;;  %v2115_v16 = vpop.f32.mrf.mxu1  ;;  %v1837_v17 = vadd.f32 %v6179_v31, %v1836_v10  ;;  %v2393_v18 = vadd.f32 %v2392_v14, %v2114_v15 }
 0x3d9   :  { %v2116_v19 = vadd.f32 %v2115_v16, %v1837_v17  ;;  %v2672_v22 = vadd.f32 %v2671_v13, %v2393_v18 }
 0x3db   :  { %v2788_v27 = vmax.f32 %v2672_v22, 0.0 }
 0x3de   :  { %v2394_v20 = vpop.f32.mrf.mxu2  ;;  %v1839_v24 = vpop.f32.mrf.mxu0 }
 0x3df   :  { %v2673_v21 = vpop.f32.mrf.mxu3  ;;  %v2395_v23 = vadd.f32 %v2394_v20, %v2116_v19  ;;  %v2118_v25 = vpop.f32.mrf.mxu1  ;;  %v1840_v29 = vadd.f32 %v6179_v31, %v1839_v24 }
 0x3e1   :  { %v2674_v26 = vadd.f32 %v2673_v21, %v2395_v23  ;;  %v2119_v34 = vadd.f32 %v2118_v25, %v1840_v29 }
 0x3e3   :  { %v2789_v28 = vmax.f32 %v2674_v26, 0.0 }
 0x3e5   :  { %v4512_v32 = vpack.c.bf16 %v2789_v28, %v2788_v27 }
 0x3e6   :  { %v2397_v30 = vpop.f32.mrf.mxu2  ;;  %v1841_v35 = vpop.f32.mrf.mxu0 }
 0x3e7   :  { %v2676_v33 = vpop.f32.mrf.mxu3  ;;  %4574 = vst [vmem:[%s6286_s3 + $0x198] sm:$0xff] %v4512_v32   ;;  %v2120_v36 = vpop.f32.mrf.mxu1  ;;  %v1842_v37 = vadd.f32 %v6179_v31, %v1841_v35  ;;  %v2398_v38 = vadd.f32 %v2397_v30, %v2119_v34 }
 0x3e9   :  { %v2121_v39 = vadd.f32 %v2120_v36, %v1842_v37  ;;  %v2677_v42 = vadd.f32 %v2676_v33, %v2398_v38 }
 0x3eb   :  { %v2790_v47 = vmax.f32 %v2677_v42, 0.0 }
 0x3ee   :  { %v2399_v40 = vpop.f32.mrf.mxu2  ;;  %v1844_v44 = vpop.f32.mrf.mxu0 }
 0x3ef   :  { %v2678_v41 = vpop.f32.mrf.mxu3  ;;  %v2400_v43 = vadd.f32 %v2399_v40, %v2121_v39  ;;  %v2123_v46 = vpop.f32.mrf.mxu1  ;;  %v1845_v49 = vadd.f32 %v6179_v31, %v1844_v44 }
 0x3f1   :  { %v2679_v45 = vadd.f32 %v2678_v41, %v2400_v43  ;;  %v2124_v53 = vadd.f32 %v2123_v46, %v1845_v49 }
 0x3f3   :  { %v2791_v48 = vmax.f32 %v2679_v45, 0.0 }
 0x3f5   :  { %v4517_v50 = vpack.c.bf16 %v2791_v48, %v2790_v47 }
 0x3f6   :  { %v2402_v51 = vpop.f32.mrf.mxu2  ;;  %v1846_v54 = vpop.f32.mrf.mxu0 }
 0x3f7   :  { %v2681_v52 = vpop.f32.mrf.mxu3  ;;  %4575 = vst [vmem:[%s6286_s3 + $0x1a0] sm:$0xff] %v4517_v50   ;;  %v1847_v55 = vadd.f32 %v6179_v31, %v1846_v54  ;;  %v2403_v56 = vadd.f32 %v2402_v51, %v2124_v53  ;;  %v2125_v57 = vpop.f32.mrf.mxu1 }
 0x3f9   :  { %v2126_v58 = vadd.f32 %v2125_v57, %v1847_v55  ;;  %v2682_v60 = vadd.f32 %v2681_v52, %v2403_v56 }
 0x3fb   :  { %v2792_v0 = vmax.f32 %v2682_v60, 0.0 }
 0x3fe   :  { %v2404_v59 = vpop.f32.mrf.mxu2 }
 0x3ff   :  { %v2405_v61 = vadd.f32 %v2404_v59, %v2126_v58  ;;  %v2683_v62 = vpop.f32.mrf.mxu3 }
 0x401   :  { %v2684_v63 = vadd.f32 %v2683_v62, %v2405_v61 }
 0x403   :  { %v2793_v1 = vmax.f32 %v2684_v63, 0.0 }
 0x405   :  { %v4522_v2 = vpack.c.bf16 %v2793_v1, %v2792_v0 }
 0x407   :  { %4576 = vst [vmem:[%s6286_s3 + $0x1a8] sm:$0xff] %v4522_v2  }

// kernel: value_network_forward.6
= control target key start
LH: loop header
LB: loop body
LE: loop exit
PB: predicated region body
PF: predicated region fallthrough
CT: control target
= control target key end

     0   :  { %s6708_s1 = inlined_call_operand.vmem [shape: bf16[640,128], index: 1, kind: input, shape index: {}]   ;;  %s6709_s2 = inlined_call_operand.vmem [shape: f32[1,128], index: 2, kind: input, shape index: {}]   ;;  %s6710_s0 = inlined_call_operand.vmem [shape: bf16[704,640], index: 0, kind: input, shape index: {}]   ;;  %s6711_s3 = inlined_call_operand.vmem [shape: bf16[704,128], index: 3, kind: output, shape index: {}]  }
   0x1   :  { %v4426_v0 = vld [vmem:[%s6708_s1 + $0x38] sm:$0xff]  ;;  %v4425_v1 = vld [vmem:[%s6708_s1 + $0x30] sm:$0xff]  ;;  %v4424_v2 = vld [vmem:[%s6708_s1 + $0x28] sm:$0xff] }
   0x2   :  { %4722 = vmatpush.bf16.msra.mxu1 %v4426_v0  ;;  %4723 = vmatpush.bf16.msra.mxu2 %v4426_v0  ;;  %v4423_v3 = vld [vmem:[%s6708_s1 + $0x20] sm:$0xff]  ;;  %v4422_v4 = vld [vmem:[%s6708_s1 + $0x18] sm:$0xff]  ;;  %v4421_v5 = vld [vmem:[%s6708_s1 + $0x10] sm:$0xff] }
   0x3   :  { %4724 = vmatpush.bf16.msra.mxu3 %v4426_v0  ;;  %1746 = vmatpush.bf16.msra.mxu0 %v4426_v0  ;;  %v4420_v6 = vld [vmem:[%s6708_s1 + $0x8] sm:$0xff]  ;;  %v4419_v7 = vld [vmem:[%s6708_s1] sm:$0xff]  ;;  %v3381_v8 = vld [vmem:[%s6710_s0 + $0x1b8] sm:$0xf] }
   0x4   :  { %v4256_v9 = vld [vmem:[%s6710_s0 + $0x1c8] sm:$0xf0]  ;;  %v3601_v10 = vld [vmem:[%s6710_s0 + $0x370] sm:$0xf]  ;;  %v4311_v11 = vld [vmem:[%s6710_s0 + $0x380] sm:$0xf0] }
   0x5   :  { %v3821_v12 = vld [vmem:[%s6710_s0 + $0x528] sm:$0xf]  ;;  %v4366_v13 = vld [vmem:[%s6710_s0 + $0x538] sm:$0xf0]  ;;  %v3161_v14 = vld [vmem:[%s6710_s0] sm:$0xf]  ;;  %v3382_v18 = vor.u32 %v4256_v9, %v3381_v8  ;;  %v3602_v19 = vor.u32 %v4311_v11, %v3601_v10 }
   0x6   :  { %4725 = vmatpush.bf16.msra.mxu1 %v4425_v1  ;;  %4726 = vmatpush.bf16.msra.mxu2 %v4425_v1  ;;  %v4201_v15 = vld [vmem:[%s6710_s0 + $0x10] sm:$0xf0]  ;;  %v4442_v16 = vld [vmem:[%s6708_s1 + $0xb8] sm:$0xff]  ;;  %v3822_v20 = vor.u32 %v4366_v13, %v3821_v12  ;;  %v4440_v28 = vld [vmem:[%s6708_s1 + $0xa8] sm:$0xff] }
   0x7   :  { %4727 = vmatpush.bf16.msra.mxu3 %v4425_v1  ;;  %1747 = vmatpush.bf16.msra.mxu0 %v4425_v1  ;;  %v4450_v17 = vld [vmem:[%s6708_s1 + $0xf8] sm:$0xff]  ;;  %v3162_v21 = vor.u32 %v4201_v15, %v3161_v14  ;;  %v4441_v24 = vld [vmem:[%s6708_s1 + $0xb0] sm:$0xff]  ;;  %v4448_v29 = vld [vmem:[%s6708_s1 + $0xe8] sm:$0xff] }
   0x8   :  { %v4434_v22 = vld [vmem:[%s6708_s1 + $0x78] sm:$0xff]  ;;  %v4449_v25 = vld [vmem:[%s6708_s1 + $0xf0] sm:$0xff]  ;;  %v3401_v30 = vld [vmem:[%s6710_s0 + $0x1e0] sm:$0xf] }
   0x9   :  { %v4458_v23 = vld [vmem:[%s6708_s1 + $0x138] sm:$0xff]  ;;  %v4433_v26 = vld [vmem:[%s6708_s1 + $0x70] sm:$0xff]  ;;  %v4316_v33 = vld [vmem:[%s6710_s0 + $0x3a8] sm:$0xf0] }
   0xa   :  { %4728 = vmatpush.bf16.msra.mxu1 %v4424_v2  ;;  %4729 = vmatpush.bf16.msra.mxu2 %v4424_v2  ;;  %v4457_v27 = vld [vmem:[%s6708_s1 + $0x130] sm:$0xff]  ;;  %v3621_v32 = vld [vmem:[%s6710_s0 + $0x398] sm:$0xf]  ;;  %v4371_v35 = vld [vmem:[%s6710_s0 + $0x560] sm:$0xf0] }
   0xb   :  { %4730 = vmatpush.bf16.msra.mxu3 %v4424_v2  ;;  %1748 = vmatpush.bf16.msra.mxu0 %v4424_v2  ;;  %v4261_v31 = vld [vmem:[%s6710_s0 + $0x1f0] sm:$0xf0]  ;;  %v3841_v34 = vld [vmem:[%s6710_s0 + $0x550] sm:$0xf]  ;;  %v3181_v36 = vld [vmem:[%s6710_s0 + $0x28] sm:$0xf]  ;;  %v3622_v39 = vor.u32 %v4316_v33, %v3621_v32 }
   0xc   :  { %v4206_v37 = vld [vmem:[%s6710_s0 + $0x38] sm:$0xf0]  ;;  %v3402_v38 = vor.u32 %v4261_v31, %v3401_v30  ;;  %v3842_v40 = vor.u32 %v4371_v35, %v3841_v34  ;;  %v4432_v42 = vld [vmem:[%s6708_s1 + $0x68] sm:$0xff]  ;;  %v3641_v46 = vld [vmem:[%s6710_s0 + $0x3c0] sm:$0xf] }
   0xd   :  { %v3182_v41 = vor.u32 %v4206_v37, %v3181_v36  ;;  %v4456_v43 = vld [vmem:[%s6708_s1 + $0x128] sm:$0xff]  ;;  %v4266_v45 = vld [vmem:[%s6710_s0 + $0x218] sm:$0xf0]  ;;  %v4321_v47 = vld [vmem:[%s6710_s0 + $0x3d0] sm:$0xf0] }
   0xe   :  { %4731 = vmatpush.bf16.msra.mxu1 %v4423_v3  ;;  %4732 = vmatpush.bf16.msra.mxu2 %v4423_v3  ;;  %v3421_v44 = vld [vmem:[%s6710_s0 + $0x208] sm:$0xf]  ;;  %v3861_v48 = vld [vmem:[%s6710_s0 + $0x578] sm:$0xf]  ;;  %v4376_v49 = vld [vmem:[%s6710_s0 + $0x588] sm:$0xf0]  ;;  %v3642_v53 = vor.u32 %v4321_v47, %v3641_v46 }
   0xf   :  { %4733 = vmatpush.bf16.msra.mxu3 %v4423_v3  ;;  %1749 = vmatpush.bf16.msra.mxu0 %v4423_v3  ;;  %v3201_v50 = vld [vmem:[%s6710_s0 + $0x50] sm:$0xf]  ;;  %v4211_v51 = vld [vmem:[%s6710_s0 + $0x60] sm:$0xf0]  ;;  %v3422_v52 = vor.u32 %v4266_v45, %v3421_v44  ;;  %v3862_v54 = vor.u32 %v4376_v49, %v3861_v48  ;;  %v3661_v62 = vld [vmem:[%s6710_s0 + $0x3e8] sm:$0xf] }
  0x10   :  { %v3202_v55 = vor.u32 %v4211_v51, %v3201_v50  ;;  %v4439_v56 = vld [vmem:[%s6708_s1 + $0xa0] sm:$0xff]  ;;  %v3441_v60 = vld [vmem:[%s6710_s0 + $0x230] sm:$0xf]  ;;  %v4326_v63 = vld [vmem:[%s6710_s0 + $0x3f8] sm:$0xf0] }
  0x11   :  { %v4447_v57 = vld [vmem:[%s6708_s1 + $0xe0] sm:$0xff]  ;;  %v4381_v1 = vld [vmem:[%s6710_s0 + $0x5b0] sm:$0xf0]  ;;  %v3221_v2 = vld [vmem:[%s6710_s0 + $0x78] sm:$0xf] }
  0x12   :  { %4734 = vmatpush.bf16.msra.mxu1 %v4422_v4  ;;  %4735 = vmatpush.bf16.msra.mxu2 %v4422_v4  ;;  %v4431_v58 = vld [vmem:[%s6708_s1 + $0x60] sm:$0xff]  ;;  %v4216_v3 = vld [vmem:[%s6710_s0 + $0x88] sm:$0xf0]  ;;  %v4438_v8 = vld [vmem:[%s6708_s1 + $0x98] sm:$0xff] }
  0x13   :  { %4736 = vmatpush.bf16.msra.mxu3 %v4422_v4  ;;  %1750 = vmatpush.bf16.msra.mxu0 %v4422_v4  ;;  %v4455_v59 = vld [vmem:[%s6708_s1 + $0x120] sm:$0xff]  ;;  %v4446_v9 = vld [vmem:[%s6708_s1 + $0xd8] sm:$0xff]  ;;  %v4276_v12 = vld [vmem:[%s6710_s0 + $0x268] sm:$0xf0] }
  0x14   :  { %v4271_v61 = vld [vmem:[%s6710_s0 + $0x240] sm:$0xf0]  ;;  %v3881_v0 = vld [vmem:[%s6710_s0 + $0x5a0] sm:$0xf]  ;;  %v4430_v10 = vld [vmem:[%s6708_s1 + $0x58] sm:$0xff] }
  0x15   :  { %v3442_v4 = vor.u32 %v4271_v61, %v3441_v60  ;;  %v3461_v11 = vld [vmem:[%s6710_s0 + $0x258] sm:$0xf]  ;;  %v3681_v13 = vld [vmem:[%s6710_s0 + $0x410] sm:$0xf]  ;;  %v4331_v14 = vld [vmem:[%s6710_s0 + $0x420] sm:$0xf0] }
  0x16   :  { %4737 = vmatpush.bf16.msra.mxu1 %v4421_v5  ;;  %4738 = vmatpush.bf16.msra.mxu2 %v4421_v5  ;;  %v3901_v15 = vld [vmem:[%s6710_s0 + $0x5c8] sm:$0xf]  ;;  %v4391_v30 = vld [vmem:[%s6710_s0 + $0x600] sm:$0xf0]  ;;  %v4226_v32 = vld [vmem:[%s6710_s0 + $0xd8] sm:$0xf0] }
  0x17   :  { %4739 = vmatpush.bf16.msra.mxu3 %v4421_v5  ;;  %1751 = vmatpush.bf16.msra.mxu0 %v4421_v5  ;;  %v3662_v5 = vor.u32 %v4326_v63, %v3661_v62  ;;  %v3261_v31 = vld [vmem:[%s6710_s0 + $0xc8] sm:$0xf]  ;;  %v4445_v37 = vld [vmem:[%s6708_s1 + $0xd0] sm:$0xff]  ;;  %v3941_v44 = vld [vmem:[%s6710_s0 + $0x618] sm:$0xf] }
  0x18   :  { %v3262_v36 = vor.u32 %v4226_v32, %v3261_v31  ;;  %v4396_v45 = vld [vmem:[%s6710_s0 + $0x628] sm:$0xf0]  ;;  %v3281_v46 = vld [vmem:[%s6710_s0 + $0xf0] sm:$0xf]  ;;  %v4231_v47 = vld [vmem:[%s6710_s0 + $0x100] sm:$0xf0] }
  0x19   :  { %v3942_v50 = vor.u32 %v4396_v45, %v3941_v44  ;;  %v3282_v51 = vor.u32 %v4231_v47, %v3281_v46  ;;  %v4401_v60 = vld [vmem:[%s6710_s0 + $0x650] sm:$0xf0]  ;;  %v3301_v61 = vld [vmem:[%s6710_s0 + $0x118] sm:$0xf]  ;;  %v4236_v62 = vld [vmem:[%s6710_s0 + $0x128] sm:$0xf0] }
  0x1a   :  { %4740 = vmatpush.bf16.msra.mxu1 %v4420_v6  ;;  %4741 = vmatpush.bf16.msra.mxu2 %v4420_v6  ;;  %v4411_v31 = vld [vmem:[%s6710_s0 + $0x6a0] sm:$0xf0]  ;;  %v3341_v32 = vld [vmem:[%s6710_s0 + $0x168] sm:$0xf]  ;;  %v4306_v47 = vld [vmem:[%s6710_s0 + $0x358] sm:$0xf0] }
  0x1b   :  { %4742 = vmatpush.bf16.msra.mxu3 %v4420_v6  ;;  %1752 = vmatpush.bf16.msra.mxu0 %v4420_v6  ;;  %v3882_v6 = vor.u32 %v4381_v1, %v3881_v0  ;;  %v3581_v46 = vld [vmem:[%s6710_s0 + $0x348] sm:$0xf] }
  0x1e   :  { %4743 = vmatpush.bf16.msra.mxu1 %v4419_v7  ;;  %4744 = vmatpush.bf16.msra.mxu2 %v4419_v7 }
  0x1f   :  { %4745 = vmatpush.bf16.msra.mxu3 %v4419_v7  ;;  %1753 = vmatpush.bf16.msra.mxu0 %v4419_v7  ;;  %v3222_v7 = vor.u32 %v4216_v3, %v3221_v2  ;;  %v3302_v2 = vor.u32 %v4236_v62, %v3301_v61  ;;  %v4452_v3 = vld [vmem:[%s6708_s1 + $0x108] sm:$0xff] }
  0x21   :  { %1809 = vmatmul.bf16.vlgmr.msra.gmra.mxu1 %v3382_v18  ;;  %1864 = vmatmul.bf16.vlgmr.msra.gmra.mxu2 %v3602_v19  ;;  %v4221_v18 = vld [vmem:[%s6710_s0 + $0xb0] sm:$0xf0]  ;;  %v3462_v19 = vor.u32 %v4276_v12, %v3461_v11  ;;  %v3321_v11 = vld [vmem:[%s6710_s0 + $0x140] sm:$0xf] }
  0x22   :  { %2204 = vmatpush.bf16.msrb.mxu2 %v4442_v16  ;;  %1919 = vmatmul.bf16.vlgmr.msra.gmra.mxu3 %v3822_v20  ;;  %v4386_v16 = vld [vmem:[%s6710_s0 + $0x5d8] sm:$0xf0]  ;;  %v3682_v20 = vor.u32 %v4331_v14, %v3681_v13  ;;  %v4241_v12 = vld [vmem:[%s6710_s0 + $0x150] sm:$0xf0] }
  0x23   :  { %2433 = vmatpush.bf16.msrb.mxu3 %v4450_v17  ;;  %1754 = vmatmul.bf16.vlgmr.msra.gmra.mxu0 %v3162_v21  ;;  %v3241_v17 = vld [vmem:[%s6710_s0 + $0xa0] sm:$0xf]  ;;  %v3902_v21 = vor.u32 %v4386_v16, %v3901_v15 }
  0x24   :  { %1975 = vmatpush.bf16.msrb.mxu1 %v4434_v22  ;;  %2662 = vmatpush.bf16.msrb.mxu0 %v4458_v23  ;;  %v3242_v22 = vor.u32 %v4221_v18, %v3241_v17  ;;  %v4454_v23 = vld [vmem:[%s6708_s1 + $0x118] sm:$0xff]  ;;  %v3322_v17 = vor.u32 %v4241_v12, %v3321_v11  ;;  %v4443_v18 = vld [vmem:[%s6708_s1 + $0xc0] sm:$0xff] }
  0x26   :  { %2205 = vmatpush.bf16.msrb.mxu2 %v4441_v24  ;;  %v4437_v24 = vld [vmem:[%s6708_s1 + $0x90] sm:$0xff] }
  0x27   :  { %2434 = vmatpush.bf16.msrb.mxu3 %v4449_v25  ;;  %v3481_v25 = vld [vmem:[%s6710_s0 + $0x280] sm:$0xf] }
  0x28   :  { %1976 = vmatpush.bf16.msrb.mxu1 %v4433_v26  ;;  %2663 = vmatpush.bf16.msrb.mxu0 %v4457_v27  ;;  %v4281_v26 = vld [vmem:[%s6710_s0 + $0x290] sm:$0xf0]  ;;  %v3701_v27 = vld [vmem:[%s6710_s0 + $0x438] sm:$0xf] }
  0x29   :  { %v3482_v33 = vor.u32 %v4281_v26, %v3481_v25  ;;  %v3561_v26 = vld [vmem:[%s6710_s0 + $0x320] sm:$0xf] }
  0x2a   :  { %2206 = vmatpush.bf16.msrb.mxu2 %v4440_v28  ;;  %v4336_v28 = vld [vmem:[%s6710_s0 + $0x448] sm:$0xf0] }
  0x2b   :  { %2435 = vmatpush.bf16.msrb.mxu3 %v4448_v29  ;;  %v3921_v29 = vld [vmem:[%s6710_s0 + $0x5f0] sm:$0xf]  ;;  %v3702_v34 = vor.u32 %v4336_v28, %v3701_v27  ;;  %v4301_v27 = vld [vmem:[%s6710_s0 + $0x330] sm:$0xf0]  ;;  %v3781_v28 = vld [vmem:[%s6710_s0 + $0x4d8] sm:$0xf] }
  0x2c   :  { %1977 = vmatpush.bf16.msrb.mxu1 %v4432_v42  ;;  %2664 = vmatpush.bf16.msrb.mxu0 %v4456_v43  ;;  %v3922_v35 = vor.u32 %v4391_v30, %v3921_v29  ;;  %v3721_v42 = vld [vmem:[%s6710_s0 + $0x460] sm:$0xf]  ;;  %v4341_v43 = vld [vmem:[%s6710_s0 + $0x470] sm:$0xf0]  ;;  %v4356_v29 = vld [vmem:[%s6710_s0 + $0x4e8] sm:$0xf0] }
  0x2d   :  { %v3722_v49 = vor.u32 %v4341_v43, %v3721_v42  ;;  %v4001_v30 = vld [vmem:[%s6710_s0 + $0x690] sm:$0xf] }
  0x2e   :  { %2207 = vmatpush.bf16.msrb.mxu2 %v4439_v56  ;;  %v4291_v56 = vld [vmem:[%s6710_s0 + $0x2e0] sm:$0xf0] }
  0x2f   :  { %2436 = vmatpush.bf16.msrb.mxu3 %v4447_v57  ;;  %v3741_v57 = vld [vmem:[%s6710_s0 + $0x488] sm:$0xf] }
  0x30   :  { %1978 = vmatpush.bf16.msrb.mxu1 %v4431_v58  ;;  %2665 = vmatpush.bf16.msrb.mxu0 %v4455_v59  ;;  %v4346_v58 = vld [vmem:[%s6710_s0 + $0x498] sm:$0xf0]  ;;  %v3961_v59 = vld [vmem:[%s6710_s0 + $0x640] sm:$0xf] }
  0x31   :  { %1814 = vmatmul.bf16.gmra.mxu1 %v3402_v38  ;;  %1869 = vmatmul.bf16.gmra.mxu2 %v3622_v39  ;;  %v4429_v38 = vld [vmem:[%s6708_s1 + $0x50] sm:$0xff]  ;;  %v3742_v0 = vor.u32 %v4346_v58, %v3741_v57  ;;  %v3962_v1 = vor.u32 %v4401_v60, %v3961_v59 }
  0x32   :  { %1924 = vmatmul.bf16.gmra.mxu3 %v3842_v40  ;;  %2208 = vmatpush.bf16.msrb.mxu2 %v4438_v8  ;;  %v4453_v39 = vld [vmem:[%s6708_s1 + $0x110] sm:$0xff]  ;;  %v3501_v40 = vld [vmem:[%s6710_s0 + $0x2a8] sm:$0xf]  ;;  %v4351_v8 = vld [vmem:[%s6710_s0 + $0x4c0] sm:$0xf0] }
  0x33   :  { %1759 = vmatmul.bf16.gmra.mxu0 %v3182_v41  ;;  %2437 = vmatpush.bf16.msrb.mxu3 %v4446_v9  ;;  %v4286_v41 = vld [vmem:[%s6710_s0 + $0x2b8] sm:$0xf0]  ;;  %v3981_v9 = vld [vmem:[%s6710_s0 + $0x668] sm:$0xf] }
  0x34   :  { %1979 = vmatpush.bf16.msrb.mxu1 %v4430_v10  ;;  %2666 = vmatpush.bf16.msrb.mxu0 %v4454_v23  ;;  %v3502_v48 = vor.u32 %v4286_v41, %v3501_v40  ;;  %v4406_v10 = vld [vmem:[%s6710_s0 + $0x678] sm:$0xf0] }
  0x35   :  { %v3982_v16 = vor.u32 %v4406_v10, %v3981_v9  ;;  %v4203_v9 = vld [vmem:[%s6710_s0 + $0x20] sm:$0xf0] }
  0x36   :  { %2209 = vmatpush.bf16.msrb.mxu2 %v4437_v24  ;;  %v4451_v24 = vld [vmem:[%s6708_s1 + $0x100] sm:$0xff] }
  0x37   :  { %2438 = vmatpush.bf16.msrb.mxu3 %v4445_v37  ;;  %v3782_v37 = vor.u32 %v4356_v29, %v3781_v28  ;;  %v4204_v28 = vld [vmem:[%s6710_s0 + $0x2c] sm:$0xf]  ;;  %v3183_v29 = vld [vmem:[%s6710_s0 + $0x3c] sm:$0xf0] }
  0x38   :  { %1980 = vmatpush.bf16.msrb.mxu1 %v4429_v38  ;;  %2667 = vmatpush.bf16.msrb.mxu0 %v4453_v39  ;;  %v4002_v39 = vor.u32 %v4411_v31, %v4001_v30  ;;  %v3189_v30 = vld [vmem:[%s6710_s0 + $0x30] sm:$0xf]  ;;  %v4207_v31 = vld [vmem:[%s6710_s0 + $0x40] sm:$0xf0] }
  0x3c   :  { %2668 = vmatpush.bf16.msrb.mxu0 %v4452_v3  ;;  %v3163_v3 = vld [vmem:[%s6710_s0 + $0x14] sm:$0xf0] }
  0x40   :  { %2669 = vmatpush.bf16.msrb.mxu0 %v4451_v24 }
  0x41   :  { %1819 = vmatmul.bf16.gmra.mxu1 %v3422_v52  ;;  %1874 = vmatmul.bf16.gmra.mxu2 %v3642_v53  ;;  %v4436_v52 = vld [vmem:[%s6708_s1 + $0x88] sm:$0xff] }
  0x42   :  { %1929 = vmatmul.bf16.gmra.mxu3 %v3862_v54  ;;  %v4444_v53 = vld [vmem:[%s6708_s1 + $0xc8] sm:$0xff]  ;;  %2210 = vmatpush.bf16.msrb.mxu2 %v4436_v52  ;;  %v3361_v52 = vld [vmem:[%s6710_s0 + $0x190] sm:$0xf] }
  0x43   :  { %1764 = vmatmul.bf16.gmra.mxu0 %v3202_v55  ;;  %v4428_v54 = vld [vmem:[%s6708_s1 + $0x48] sm:$0xff]  ;;  %v3521_v55 = vld [vmem:[%s6710_s0 + $0x2d0] sm:$0xf]  ;;  %2439 = vmatpush.bf16.msrb.mxu3 %v4444_v53  ;;  %v4251_v53 = vld [vmem:[%s6710_s0 + $0x1a0] sm:$0xf0] }
  0x44   :  { %1981 = vmatpush.bf16.msrb.mxu1 %v4428_v54  ;;  %v3522_v63 = vor.u32 %v4291_v56, %v3521_v55  ;;  %v3582_v56 = vor.u32 %v4306_v47, %v3581_v46  ;;  %v3362_v60 = vor.u32 %v4251_v53, %v3361_v52  ;;  %v3186_v46 = vor.u32 %v4204_v28, %v3183_v29 }
  0x45   :  { %v3190_v47 = vor.u32 %v4207_v31, %v3189_v30 }
  0x47   :  { %2440 = vmatpush.bf16.msrb.mxu3 %v4443_v18 }
  0x51   :  { %1824 = vmatmul.bf16.gmra.mxu1 %v3442_v4  ;;  %1879 = vmatmul.bf16.gmra.mxu2 %v3662_v5  ;;  %v4435_v4 = vld [vmem:[%s6708_s1 + $0x80] sm:$0xff]  ;;  %v3541_v5 = vld [vmem:[%s6710_s0 + $0x2f8] sm:$0xf] }
  0x52   :  { %1934 = vmatmul.bf16.gmra.mxu3 %v3882_v6  ;;  %v4296_v6 = vld [vmem:[%s6710_s0 + $0x308] sm:$0xf0]  ;;  %2211 = vmatpush.bf16.msrb.mxu2 %v4435_v4  ;;  %v3169_v4 = vld [vmem:[%s6710_s0 + $0x8] sm:$0xf] }
  0x53   :  { %1769 = vmatmul.bf16.gmra.mxu0 %v3222_v7  ;;  %v3761_v7 = vld [vmem:[%s6710_s0 + $0x4b0] sm:$0xf]  ;;  %v3542_v13 = vor.u32 %v4296_v6, %v3541_v5  ;;  %v4202_v5 = vld [vmem:[%s6710_s0 + $0x18] sm:$0xf0]  ;;  %v4200_v6 = vld [vmem:[%s6710_s0 + $0xc] sm:$0xf] }
  0x54   :  { %v3762_v14 = vor.u32 %v4351_v8, %v3761_v7  ;;  %v3171_v7 = vld [vmem:[%s6710_s0 + $0x1c] sm:$0xf0]  ;;  %v3177_v8 = vld [vmem:[%s6710_s0 + $0x10] sm:$0xf] }
  0x61   :  { %1829 = vmatmul.bf16.gmra.mxu1 %v3462_v19  ;;  %1884 = vmatmul.bf16.gmra.mxu2 %v3682_v20  ;;  %v4427_v20 = vld [vmem:[%s6708_s1 + $0x40] sm:$0xff] }
  0x62   :  { %1939 = vmatmul.bf16.gmra.mxu3 %v3902_v21  ;;  %1982 = vmatpush.bf16.msrb.mxu1 %v4427_v20 }
  0x63   :  { %1774 = vmatmul.bf16.gmra.mxu0 %v3242_v22 }
  0x71   :  { %1834 = vmatmul.bf16.gmra.mxu1 %v3482_v33  ;;  %1889 = vmatmul.bf16.gmra.mxu2 %v3702_v34  ;;  %v4246_v33 = vld [vmem:[%s6710_s0 + $0x178] sm:$0xf0] }
  0x72   :  { %1944 = vmatmul.bf16.gmra.mxu3 %v3922_v35  ;;  %v3342_v40 = vor.u32 %v4246_v33, %v3341_v32  ;;  %v4205_v32 = vld [vmem:[%s6710_s0 + $0x34] sm:$0xf]  ;;  %v3191_v33 = vld [vmem:[%s6710_s0 + $0x44] sm:$0xf0] }
  0x73   :  { %1779 = vmatmul.bf16.gmra.mxu0 %v3262_v36  ;;  %v3562_v36 = vor.u32 %v4301_v27, %v3561_v26 }
  0x81   :  { %1839 = vmatmul.bf16.gmra.mxu1 %v3502_v48  ;;  %1894 = vmatmul.bf16.gmra.mxu2 %v3722_v49  ;;  %v3801_v48 = vld [vmem:[%s6710_s0 + $0x500] sm:$0xf]  ;;  %v4361_v49 = vld [vmem:[%s6710_s0 + $0x510] sm:$0xf0] }
  0x82   :  { %1949 = vmatmul.bf16.gmra.mxu3 %v3942_v50  ;;  %v4021_v50 = vld [vmem:[%s6710_s0 + $0x6b8] sm:$0xf]  ;;  %v3802_v57 = vor.u32 %v4361_v49, %v3801_v48  ;;  %v3194_v49 = vor.u32 %v4205_v32, %v3191_v33 }
  0x83   :  { %1784 = vmatmul.bf16.gmra.mxu0 %v3282_v51  ;;  %v4416_v51 = vld [vmem:[%s6710_s0 + $0x6c8] sm:$0xf0] }
  0x84   :  { %v4022_v59 = vor.u32 %v4416_v51, %v4021_v50 }
  0x91   :  { %1844 = vmatmul.bf16.gmra.mxu1 %v3522_v63  ;;  %1899 = vmatmul.bf16.gmra.mxu2 %v3742_v0 }
  0x92   :  { %1954 = vmatmul.bf16.gmra.mxu3 %v3962_v1 }
  0x93   :  { %1789 = vmatmul.bf16.gmra.mxu0 %v3302_v2  ;;  %v4199_v2 = vld [vmem:[%s6710_s0 + $0x4] sm:$0xf] }
  0x94   :  { %v3166_v12 = vor.u32 %v4199_v2, %v3163_v3  ;;  %v3209_v2 = vld [vmem:[%s6710_s0 + $0x58] sm:$0xf]  ;;  %v4212_v3 = vld [vmem:[%s6710_s0 + $0x68] sm:$0xf0] }
  0x9e   :  { %v5096_v15 = vpop.f32.mrf.mxu1 }
  0xa0   :  { %v5101_v19 = vpop.f32.mrf.mxu0 }
  0xa1   :  { %1849 = vmatmul.bf16.gmra.mxu1 %v3542_v13  ;;  %1904 = vmatmul.bf16.gmra.mxu2 %v3762_v14  ;;  %v3170_v13 = vor.u32 %v4202_v5, %v3169_v4  ;;  %v4210_v4 = vld [vmem:[%s6710_s0 + $0x5c] sm:$0xf]  ;;  %v3211_v5 = vld [vmem:[%s6710_s0 + $0x6c] sm:$0xf0] }
  0xa2   :  { %1959 = vmatmul.bf16.gmra.mxu3 %v3982_v16  ;;  %v3174_v16 = vor.u32 %v4200_v6, %v3171_v7  ;;  %v3217_v6 = vld [vmem:[%s6710_s0 + $0x60] sm:$0xf]  ;;  %v4213_v7 = vld [vmem:[%s6710_s0 + $0x70] sm:$0xf0] }
  0xa3   :  { %1794 = vmatmul.bf16.gmra.mxu0 %v3322_v17  ;;  %v3178_v17 = vor.u32 %v4203_v9, %v3177_v8  ;;  %v3218_v28 = vor.u32 %v4213_v7, %v3217_v6 }
  0xa4   :  { %v5106_v21 = vpop.f32.mrf.mxu2 }
  0xa5   :  { %6712 = vst [vmem:[#allocation2_spill] sm:$0xff] %v5106_v21  ;;  %v5108_v22 = vpop.f32.mrf.mxu3 }
  0xa6   :  { %6713 = vst [vmem:[#allocation3_spill] sm:$0xff] %v5108_v22  ;;  %v5110_v23 = vpop.f32.mrf.mxu1 }
  0xa8   :  { %v5115_v25 = vpop.f32.mrf.mxu0 }
  0xac   :  { %v5141_v34 = vpop.f32.mrf.mxu2 }
  0xad   :  { %6714 = vst [vmem:[#allocation4_spill] sm:$0xff] %v5141_v34  ;;  %v5143_v35 = vpop.f32.mrf.mxu3 }
  0xae   :  { %6715 = vst [vmem:[#allocation5_spill] sm:$0xff] %v5143_v35  ;;  %v5145_v38 = vpop.f32.mrf.mxu1 }
  0xb0   :  { %v5147_v41 = vpop.f32.mrf.mxu0 }
  0xb1   :  { %1854 = vmatmul.bf16.gmra.mxu1 %v3562_v36  ;;  %1909 = vmatmul.bf16.gmra.mxu2 %v3782_v37  ;;  %v3197_v36 = vld [vmem:[%s6710_s0 + $0x38] sm:$0xf]  ;;  %v4208_v37 = vld [vmem:[%s6710_s0 + $0x48] sm:$0xf0] }
  0xb2   :  { %1964 = vmatmul.bf16.gmra.mxu3 %v4002_v39  ;;  %v3198_v50 = vor.u32 %v4208_v37, %v3197_v36  ;;  %v4214_v36 = vld [vmem:[%s6710_s0 + $0x7c] sm:$0xf]  ;;  %v3223_v37 = vld [vmem:[%s6710_s0 + $0x8c] sm:$0xf0] }
  0xb3   :  { %1799 = vmatmul.bf16.gmra.mxu0 %v3342_v40 }
  0xb4   :  { %v5149_v42 = vpop.f32.mrf.mxu2 }
  0xb5   :  { %6716 = vst [vmem:[#allocation6_spill] sm:$0xff] %v5149_v42  ;;  %v5151_v43 = vpop.f32.mrf.mxu3 }
  0xb6   :  { %6717 = vst [vmem:[#allocation7_spill] sm:$0xff] %v5151_v43  ;;  %v5153_v44 = vpop.f32.mrf.mxu1 }
  0xb8   :  { %v5155_v45 = vpop.f32.mrf.mxu0 }
  0xbc   :  { %v5181_v54 = vpop.f32.mrf.mxu2 }
  0xbd   :  { %6718 = vst [vmem:[#allocation8_spill] sm:$0xff] %v5181_v54  ;;  %v5183_v55 = vpop.f32.mrf.mxu3  ;;  %v5548_v54 = vld [vmem:[%s6709_s2] ss:$0 sm:$0xff] }
  0xbe   :  { %6719 = vst [vmem:[#allocation9_spill] sm:$0xff] %v5183_v55  ;;  %v5185_v58 = vpop.f32.mrf.mxu1 }
  0xc0   :  { %v5187_v61 = vpop.f32.mrf.mxu0 }
  0xc1   :  { %1859 = vmatmul.bf16.gmra.mxu1 %v3582_v56  ;;  %1914 = vmatmul.bf16.gmra.mxu2 %v3802_v57 }
  0xc2   :  { %1969 = vmatmul.bf16.gmra.mxu3 %v4022_v59  ;;  %v4209_v59 = vld [vmem:[%s6710_s0 + $0x54] sm:$0xf] }
  0xc3   :  { %1804 = vmatmul.bf16.gmra.mxu0 %v3362_v60  ;;  %v3203_v60 = vld [vmem:[%s6710_s0 + $0x64] sm:$0xf0] }
  0xc4   :  { %v5189_v62 = vpop.f32.mrf.mxu2 }
  0xc5   :  { %6720 = vst [vmem:[#allocation10_spill] sm:$0xff] %v5189_v62  ;;  %v5191_v63 = vpop.f32.mrf.mxu3 }
  0xc6   :  { %6721 = vst [vmem:[#allocation11_spill] sm:$0xff] %v5191_v63  ;;  %v5193_v0 = vpop.f32.mrf.mxu1 }
  0xc8   :  { %v5195_v1 = vpop.f32.mrf.mxu0 }
  0xcc   :  { %v5221_v10 = vpop.f32.mrf.mxu2 }
  0xcd   :  { %6722 = vst [vmem:[#allocation12_spill] sm:$0xff] %v5221_v10  ;;  %v5223_v11 = vpop.f32.mrf.mxu3 }
  0xce   :  { %6723 = vst [vmem:[#allocation13_spill] sm:$0xff] %v5223_v11  ;;  %v5225_v14 = vpop.f32.mrf.mxu1 }
  0xd0   :  { %v5227_v18 = vpop.f32.mrf.mxu0 }
  0xd1   :  { %1983 = vmatmul.bf16.vlgmr.msrb.gmra.mxu1 %v3166_v12  ;;  %2212 = vmatmul.bf16.vlgmr.msrb.gmra.mxu2 %v3170_v13  ;;  %v3206_v12 = vor.u32 %v4209_v59, %v3203_v60  ;;  %v3210_v13 = vor.u32 %v4212_v3, %v3209_v2  ;;  %v3237_v59 = vld [vmem:[%s6710_s0 + $0x88] sm:$0xf]  ;;  %v4218_v60 = vld [vmem:[%s6710_s0 + $0x98] sm:$0xf0] }
  0xd2   :  { %2441 = vmatmul.bf16.vlgmr.msrb.gmra.mxu3 %v3174_v16 }
  0xd3   :  { %2670 = vmatmul.bf16.vlgmr.msrb.gmra.mxu0 %v3178_v17  ;;  %v3214_v17 = vor.u32 %v4210_v4, %v3211_v5  ;;  %v3226_v4 = vor.u32 %v4214_v36, %v3223_v37  ;;  %v4219_v36 = vld [vmem:[%s6710_s0 + $0xa4] sm:$0xf]  ;;  %v3243_v37 = vld [vmem:[%s6710_s0 + $0xb4] sm:$0xf0] }
  0xd4   :  { %v5229_v20 = vpop.f32.mrf.mxu2 }
  0xd5   :  { %6724 = vst [vmem:[#allocation14_spill] sm:$0xff] %v5229_v20  ;;  %v5231_v24 = vpop.f32.mrf.mxu3 }
  0xd6   :  { %6725 = vst [vmem:[#allocation15_spill] sm:$0xff] %v5231_v24  ;;  %v5233_v26 = vpop.f32.mrf.mxu1 }
  0xd8   :  { %v5235_v27 = vpop.f32.mrf.mxu0 }
  0xdc   :  { %v5261_v39 = vpop.f32.mrf.mxu2 }
  0xdd   :  { %6726 = vst [vmem:[#allocation16_spill] sm:$0xff] %v5261_v39  ;;  %v5263_v40 = vpop.f32.mrf.mxu3 }
  0xde   :  { %6727 = vst [vmem:[#allocation17_spill] sm:$0xff] %v5263_v40  ;;  %v5265_v48 = vpop.f32.mrf.mxu1 }
  0xe0   :  { %v5267_v51 = vpop.f32.mrf.mxu0 }
  0xe1   :  { %1988 = vmatmul.bf16.gmra.mxu1 %v3186_v46  ;;  %2217 = vmatmul.bf16.gmra.mxu2 %v3190_v47  ;;  %v3229_v46 = vld [vmem:[%s6710_s0 + $0x80] sm:$0xf]  ;;  %v4217_v47 = vld [vmem:[%s6710_s0 + $0x90] sm:$0xf0] }
  0xe2   :  { %2446 = vmatmul.bf16.gmra.mxu3 %v3194_v49  ;;  %v4215_v49 = vld [vmem:[%s6710_s0 + $0x84] sm:$0xf]  ;;  %v3230_v5 = vor.u32 %v4217_v47, %v3229_v46  ;;  %v3249_v46 = vld [vmem:[%s6710_s0 + $0xa8] sm:$0xf]  ;;  %v4222_v47 = vld [vmem:[%s6710_s0 + $0xb8] sm:$0xf0] }
  0xe3   :  { %2675 = vmatmul.bf16.gmra.mxu0 %v3198_v50  ;;  %v3231_v50 = vld [vmem:[%s6710_s0 + $0x94] sm:$0xf0] }
  0xe4   :  { %v5269_v52 = vpop.f32.mrf.mxu2  ;;  %v3234_v7 = vor.u32 %v4215_v49, %v3231_v50  ;;  %v4220_v49 = vld [vmem:[%s6710_s0 + $0xac] sm:$0xf]  ;;  %v3251_v50 = vld [vmem:[%s6710_s0 + $0xbc] sm:$0xf0] }
  0xe5   :  { %6728 = vst [vmem:[#allocation18_spill] sm:$0xff] %v5269_v52  ;;  %v5271_v53 = vpop.f32.mrf.mxu3 }
  0xe6   :  { %6729 = vst [vmem:[#allocation19_spill] sm:$0xff] %v5271_v53  ;;  %v5273_v56 = vpop.f32.mrf.mxu1 }
  0xe8   :  { %v5275_v57 = vpop.f32.mrf.mxu0 }
  0xec   :  { %v5301_v8 = vpop.f32.mrf.mxu2 }
  0xed   :  { %6730 = vst [vmem:[#allocation20_spill] sm:$0xff] %v5301_v8  ;;  %v5303_v9 = vpop.f32.mrf.mxu3 }
  0xee   :  { %6731 = vst [vmem:[#allocation21_spill] sm:$0xff] %v5303_v9  ;;  %v5305_v16 = vpop.f32.mrf.mxu1 }
  0xf0   :  { %v5307_v29 = vpop.f32.mrf.mxu0 }
  0xf1   :  { %1993 = vmatmul.bf16.gmra.mxu1 %v3206_v12  ;;  %2222 = vmatmul.bf16.gmra.mxu2 %v3210_v13  ;;  %v3238_v12 = vor.u32 %v4218_v60, %v3237_v59  ;;  %v3257_v59 = vld [vmem:[%s6710_s0 + $0xb0] sm:$0xf]  ;;  %v4223_v60 = vld [vmem:[%s6710_s0 + $0xc0] sm:$0xf0] }
  0xf2   :  { %2451 = vmatmul.bf16.gmra.mxu3 %v3214_v17  ;;  %v3258_v53 = vor.u32 %v4223_v60, %v3257_v59 }
  0xf3   :  { %2680 = vmatmul.bf16.gmra.mxu0 %v3218_v28 }
  0xf4   :  { %v5309_v30 = vpop.f32.mrf.mxu2 }
  0xf5   :  { %6732 = vst [vmem:[#allocation22_spill] sm:$0xff] %v5309_v30  ;;  %v5311_v31 = vpop.f32.mrf.mxu3 }
  0xf6   :  { %6733 = vst [vmem:[#allocation23_spill] sm:$0xff] %v5311_v31  ;;  %v5313_v32 = vpop.f32.mrf.mxu1 }
  0xf8   :  { %v5315_v33 = vpop.f32.mrf.mxu0 }
  0xfc   :  { %v5341_v2 = vpop.f32.mrf.mxu2 }
  0xfd   :  { %6734 = vst [vmem:[#allocation24_spill] sm:$0xff] %v5341_v2  ;;  %v5343_v3 = vpop.f32.mrf.mxu3 }
  0xfe   :  { %6735 = vst [vmem:[#allocation25_spill] sm:$0xff] %v5343_v3  ;;  %v5345_v6 = vpop.f32.mrf.mxu1  ;;  %v3254_v3 = vor.u32 %v4220_v49, %v3251_v50  ;;  %v3277_v49 = vld [vmem:[%s6710_s0 + $0xd8] sm:$0xf]  ;;  %v4228_v50 = vld [vmem:[%s6710_s0 + $0xe8] sm:$0xf0] }
  0xff   :  { %v3278_v43 = vor.u32 %v4228_v50, %v3277_v49 }
 0x100   :  { %v5347_v13 = vpop.f32.mrf.mxu0 }
 0x101   :  { %1998 = vmatmul.bf16.gmra.mxu1 %v3226_v4  ;;  %2227 = vmatmul.bf16.gmra.mxu2 %v3230_v5 }
 0x102   :  { %2456 = vmatmul.bf16.gmra.mxu3 %v3234_v7  ;;  %v3246_v7 = vor.u32 %v4219_v36, %v3243_v37  ;;  %v4224_v36 = vld [vmem:[%s6710_s0 + $0xcc] sm:$0xf]  ;;  %v3263_v37 = vld [vmem:[%s6710_s0 + $0xdc] sm:$0xf0] }
 0x103   :  { %2685 = vmatmul.bf16.gmra.mxu0 %v3238_v12  ;;  %v3250_v12 = vor.u32 %v4222_v47, %v3249_v46  ;;  %v4225_v46 = vld [vmem:[%s6710_s0 + $0xd4] sm:$0xf]  ;;  %v3271_v47 = vld [vmem:[%s6710_s0 + $0xe4] sm:$0xf0] }
 0x104   :  { %v5349_v17 = vpop.f32.mrf.mxu2 }
 0x105   :  { %6736 = vst [vmem:[#allocation26_spill] sm:$0xff] %v5349_v17  ;;  %v5351_v28 = vpop.f32.mrf.mxu3 }
 0x106   :  { %6737 = vst [vmem:[#allocation27_spill] sm:$0xff] %v5351_v28  ;;  %v5353_v31 = vpop.f32.mrf.mxu1 }
 0x108   :  { %v5355_v9 = vpop.f32.mrf.mxu0 }
 0x10c   :  { %v5381_v4 = vpop.f32.mrf.mxu2 }
 0x10d   :  { %6738 = vst [vmem:[#allocation28_spill] sm:$0xff] %v5381_v4  ;;  %v5383_v5 = vpop.f32.mrf.mxu3 }
 0x10e   :  { %6739 = vst [vmem:[#allocation29_spill] sm:$0xff] %v5383_v5  ;;  %v5385_v28 = vpop.f32.mrf.mxu1  ;;  %v3274_v5 = vor.u32 %v4225_v46, %v3271_v47  ;;  %v3297_v46 = vld [vmem:[%s6710_s0 + $0x100] sm:$0xf]  ;;  %v4233_v47 = vld [vmem:[%s6710_s0 + $0x110] sm:$0xf0] }
 0x110   :  { %v5387_v40 = vpop.f32.mrf.mxu0 }
 0x111   :  { %2003 = vmatmul.bf16.gmra.mxu1 %v3246_v7  ;;  %2232 = vmatmul.bf16.gmra.mxu2 %v3250_v12  ;;  %v3266_v7 = vor.u32 %v4224_v36, %v3263_v37  ;;  %v4229_v36 = vld [vmem:[%s6710_s0 + $0xf4] sm:$0xf]  ;;  %v3283_v37 = vld [vmem:[%s6710_s0 + $0x104] sm:$0xf0] }
 0x112   :  { %2461 = vmatmul.bf16.gmra.mxu3 %v3254_v3  ;;  %v4227_v3 = vld [vmem:[%s6710_s0 + $0xe0] sm:$0xf0] }
 0x113   :  { %2690 = vmatmul.bf16.gmra.mxu0 %v3258_v53  ;;  %v3269_v53 = vld [vmem:[%s6710_s0 + $0xd0] sm:$0xf] }
 0x114   :  { %v5389_v24 = vpop.f32.mrf.mxu2  ;;  %v3270_v12 = vor.u32 %v4227_v3, %v3269_v53  ;;  %v4230_v53 = vld [vmem:[%s6710_s0 + $0xfc] sm:$0xf]  ;;  %v3291_v3 = vld [vmem:[%s6710_s0 + $0x10c] sm:$0xf0] }
 0x115   :  { %6740 = vst [vmem:[#allocation30_spill] sm:$0xff] %v5389_v24  ;;  %v5391_v11 = vpop.f32.mrf.mxu3 }
 0x116   :  { %6741 = vst [vmem:[#allocation31_spill] sm:$0xff] %v5391_v11  ;;  %v5393_v63 = vpop.f32.mrf.mxu1 }
 0x118   :  { %v5395_v55 = vpop.f32.mrf.mxu0 }
 0x11c   :  { %v5421_v59 = vpop.f32.mrf.mxu2 }
 0x11d   :  { %6742 = vst [vmem:[#allocation32_spill] sm:$0xff] %v5421_v59  ;;  %v5423_v60 = vpop.f32.mrf.mxu3 }
 0x11e   :  { %6743 = vst [vmem:[#allocation33_spill] sm:$0xff] %v5423_v60  ;;  %v5425_v11 = vpop.f32.mrf.mxu1  ;;  %v3294_v60 = vor.u32 %v4230_v53, %v3291_v3  ;;  %v3317_v53 = vld [vmem:[%s6710_s0 + $0x128] sm:$0xf]  ;;  %v4238_v3 = vld [vmem:[%s6710_s0 + $0x138] sm:$0xf0] }
 0x11f   :  { %6744 = vst [vmem:[#allocation34_spill] sm:$0xff] %v5425_v11 }
 0x120   :  { %v5427_v35 = vpop.f32.mrf.mxu0 }
 0x121   :  { %2008 = vmatmul.bf16.gmra.mxu1 %v3266_v7  ;;  %2237 = vmatmul.bf16.gmra.mxu2 %v3270_v12  ;;  %v3286_v7 = vor.u32 %v4229_v36, %v3283_v37  ;;  %v4234_v36 = vld [vmem:[%s6710_s0 + $0x11c] sm:$0xf]  ;;  %v3303_v37 = vld [vmem:[%s6710_s0 + $0x12c] sm:$0xf0] }
 0x122   :  { %2466 = vmatmul.bf16.gmra.mxu3 %v3274_v5  ;;  %v4232_v5 = vld [vmem:[%s6710_s0 + $0x108] sm:$0xf0] }
 0x123   :  { %2695 = vmatmul.bf16.gmra.mxu0 %v3278_v43  ;;  %v3289_v43 = vld [vmem:[%s6710_s0 + $0xf8] sm:$0xf] }
 0x124   :  { %v5429_v22 = vpop.f32.mrf.mxu2  ;;  %v3290_v12 = vor.u32 %v4232_v5, %v3289_v43  ;;  %v4235_v43 = vld [vmem:[%s6710_s0 + $0x124] sm:$0xf]  ;;  %v3311_v5 = vld [vmem:[%s6710_s0 + $0x134] sm:$0xf0] }
 0x125   :  { %6745 = vst [vmem:[#allocation35_spill] sm:$0xff] %v5429_v22  ;;  %v5431_v24 = vpop.f32.mrf.mxu3  ;;  %v3298_v22 = vor.u32 %v4233_v47, %v3297_v46 }
 0x126   :  { %6746 = vst [vmem:[#allocation36_spill] sm:$0xff] %v5431_v24  ;;  %v5433_v4 = vpop.f32.mrf.mxu1 }
 0x127   :  { %6747 = vst [vmem:[#allocation37_spill] sm:$0xff] %v5433_v4 }
 0x128   :  { %v5435_v59 = vpop.f32.mrf.mxu0 }
 0x12c   :  { %v5461_v49 = vpop.f32.mrf.mxu2 }
 0x12d   :  { %6748 = vst [vmem:[#allocation38_spill] sm:$0xff] %v5461_v49  ;;  %v5463_v50 = vpop.f32.mrf.mxu3 }
 0x12e   :  { %6749 = vst [vmem:[#allocation39_spill] sm:$0xff] %v5463_v50  ;;  %v5465_v24 = vpop.f32.mrf.mxu1  ;;  %v3314_v50 = vor.u32 %v4235_v43, %v3311_v5  ;;  %v3337_v43 = vld [vmem:[%s6710_s0 + $0x150] sm:$0xf]  ;;  %v4243_v5 = vld [vmem:[%s6710_s0 + $0x160] sm:$0xf0] }
 0x12f   :  { %6750 = vst [vmem:[#allocation40_spill] sm:$0xff] %v5465_v24  ;;  %v1761_v24 = vadd.f32 %v5548_v54, %v5147_v41  ;;  %v3363_v41 = vld [vmem:[%s6710_s0 + $0x1a4] sm:$0xf0] }
 0x130   :  { %v5467_v17 = vpop.f32.mrf.mxu0 }
 0x131   :  { %2013 = vmatmul.bf16.gmra.mxu1 %v3286_v7  ;;  %2242 = vmatmul.bf16.gmra.mxu2 %v3290_v12  ;;  %v3306_v7 = vor.u32 %v4234_v36, %v3303_v37  ;;  %v4239_v36 = vld [vmem:[%s6710_s0 + $0x144] sm:$0xf]  ;;  %v3323_v37 = vld [vmem:[%s6710_s0 + $0x154] sm:$0xf0] }
 0x132   :  { %2471 = vmatmul.bf16.gmra.mxu3 %v3294_v60  ;;  %v4237_v60 = vld [vmem:[%s6710_s0 + $0x130] sm:$0xf0] }
 0x133   :  { %2700 = vmatmul.bf16.gmra.mxu0 %v3298_v22  ;;  %v3309_v22 = vld [vmem:[%s6710_s0 + $0x120] sm:$0xf] }
 0x134   :  { %v5469_v2 = vpop.f32.mrf.mxu2  ;;  %v3310_v12 = vor.u32 %v4237_v60, %v3309_v22  ;;  %v4240_v22 = vld [vmem:[%s6710_s0 + $0x14c] sm:$0xf]  ;;  %v3331_v60 = vld [vmem:[%s6710_s0 + $0x15c] sm:$0xf0] }
 0x135   :  { %6751 = vst [vmem:[#allocation41_spill] sm:$0xff] %v5469_v2  ;;  %v5471_v30 = vpop.f32.mrf.mxu3  ;;  %v3318_v2 = vor.u32 %v4238_v3, %v3317_v53 }
 0x136   :  { %6752 = vst [vmem:[#allocation42_spill] sm:$0xff] %v5471_v30  ;;  %v5473_v8 = vpop.f32.mrf.mxu1 }
 0x137   :  { %6753 = vst [vmem:[#allocation43_spill] sm:$0xff] %v5473_v8 }
 0x138   :  { %v5475_v49 = vpop.f32.mrf.mxu0 }
 0x13c   :  { %v5501_v46 = vpop.f32.mrf.mxu2 }
 0x13d   :  { %6754 = vst [vmem:[#allocation44_spill] sm:$0xff] %v5501_v46  ;;  %v5503_v47 = vpop.f32.mrf.mxu3 }
 0x13e   :  { %6755 = vst [vmem:[#allocation45_spill] sm:$0xff] %v5503_v47  ;;  %v5505_v30 = vpop.f32.mrf.mxu1  ;;  %v3334_v47 = vor.u32 %v4240_v22, %v3331_v60  ;;  %v1758_v22 = vadd.f32 %v5548_v54, %v5115_v25  ;;  %v4244_v60 = vld [vmem:[%s6710_s0 + $0x16c] sm:$0xf]  ;;  %v4245_v25 = vld [vmem:[%s6710_s0 + $0x174] sm:$0xf] }
 0x13f   :  { %6756 = vst [vmem:[#allocation46_spill] sm:$0xff] %v5505_v30 }
 0x140   :  { %v5507_v52 = vpop.f32.mrf.mxu0 }
 0x141   :  { %2018 = vmatmul.bf16.gmra.mxu1 %v3306_v7  ;;  %2247 = vmatmul.bf16.gmra.mxu2 %v3310_v12  ;;  %v3326_v7 = vor.u32 %v4239_v36, %v3323_v37 }
 0x142   :  { %2476 = vmatmul.bf16.gmra.mxu3 %v3314_v50  ;;  %v4242_v50 = vld [vmem:[%s6710_s0 + $0x158] sm:$0xf0] }
 0x143   :  { %2705 = vmatmul.bf16.gmra.mxu0 %v3318_v2  ;;  %v3329_v2 = vld [vmem:[%s6710_s0 + $0x148] sm:$0xf] }
 0x144   :  { %v5509_v39 = vpop.f32.mrf.mxu2  ;;  %v3330_v12 = vor.u32 %v4242_v50, %v3329_v2 }
 0x145   :  { %6757 = vst [vmem:[#allocation47_spill] sm:$0xff] %v5509_v39  ;;  %v5511_v20 = vpop.f32.mrf.mxu3  ;;  %v3338_v39 = vor.u32 %v4243_v5, %v3337_v43  ;;  %v3351_v43 = vld [vmem:[%s6710_s0 + $0x184] sm:$0xf0]  ;;  %v3357_v5 = vld [vmem:[%s6710_s0 + $0x178] sm:$0xf] }
 0x146   :  { %6758 = vst [vmem:[#allocation48_spill] sm:$0xff] %v5511_v20  ;;  %v5513_v10 = vpop.f32.mrf.mxu1 }
 0x147   :  { %6759 = vst [vmem:[#allocation49_spill] sm:$0xff] %v5513_v10 }
 0x148   :  { %v5515_v46 = vpop.f32.mrf.mxu0 }
 0x14c   :  { %v5541_v53 = vpop.f32.mrf.mxu2 }
 0x14d   :  { %6760 = vst [vmem:[#allocation50_spill] sm:$0xff] %v5541_v53  ;;  %v5543_v3 = vpop.f32.mrf.mxu3  ;;  %v1756_v53 = vadd.f32 %v5548_v54, %v5101_v19  ;;  %v3349_v19 = vld [vmem:[%s6710_s0 + $0x170] sm:$0xf] }
 0x14e   :  { %6761 = vst [vmem:[#allocation51_spill] sm:$0xff] %v5543_v3  ;;  %v1984_v20 = vpop.f32.mrf.mxu1 }
 0x14f   :  { %v1985_v3 = vadd.f32 %v1984_v20, %v1756_v53  ;;  %v4248_v53 = vld [vmem:[%s6710_s0 + $0x188] sm:$0xf0] }
 0x150   :  { %v2671_v62 = vpop.f32.mrf.mxu0 }
 0x151   :  { %2023 = vmatmul.bf16.gmra.mxu1 %v3326_v7  ;;  %2252 = vmatmul.bf16.gmra.mxu2 %v3330_v12 }
 0x152   :  { %2481 = vmatmul.bf16.gmra.mxu3 %v3334_v47 }
 0x153   :  { %2710 = vmatmul.bf16.gmra.mxu0 %v3338_v39  ;;  %v3343_v39 = vld [vmem:[%s6710_s0 + $0x17c] sm:$0xf0] }
 0x154   :  { %v2213_v42 = vpop.f32.mrf.mxu2  ;;  %v3346_v34 = vor.u32 %v4244_v60, %v3343_v39 }
 0x155   :  { %v2442_v36 = vpop.f32.mrf.mxu3  ;;  %v2214_v2 = vadd.f32 %v2213_v42, %v1985_v3  ;;  %v4247_v42 = vld [vmem:[%s6710_s0 + $0x180] sm:$0xf0] }
 0x156   :  { %v1986_v37 = vpop.f32.mrf.mxu1  ;;  %v3350_v21 = vor.u32 %v4247_v42, %v3349_v19  ;;  %v3377_v42 = vld [vmem:[%s6710_s0 + $0x1a0] sm:$0xf] }
 0x157   :  { %v2443_v20 = vadd.f32 %v2442_v36, %v2214_v2  ;;  %v1987_v47 = vadd.f32 %v1986_v37, %v1758_v22  ;;  %v3354_v36 = vor.u32 %v4245_v25, %v3351_v43  ;;  %v3358_v37 = vor.u32 %v4248_v53, %v3357_v5  ;;  %v4253_v25 = vld [vmem:[%s6710_s0 + $0x1b0] sm:$0xf0] }
 0x158   :  { %v2673_v50 = vpop.f32.mrf.mxu0 }
 0x159   :  { %v2672_v2 = vadd.f32 %v2671_v62, %v2443_v20 }
 0x15b   :  { %v2891_v4 = vmax.f32 %v2672_v2, 0.0 }
 0x15c   :  { %v2215_v3 = vpop.f32.mrf.mxu2 }
 0x15d   :  { %v2216_v7 = vadd.f32 %v2215_v3, %v1987_v47  ;;  %v2444_v12 = vpop.f32.mrf.mxu3 }
 0x15e   :  { %v1989_v10 = vpop.f32.mrf.mxu1 }
 0x15f   :  { %v2445_v22 = vadd.f32 %v2444_v12, %v2216_v7  ;;  %v1990_v60 = vadd.f32 %v1989_v10, %v1761_v24  ;;  %v3369_v10 = vld [vmem:[%s6710_s0 + $0x198] sm:$0xf] }
 0x160   :  { %v2676_v30 = vpop.f32.mrf.mxu0 }
 0x161   :  { %v2674_v8 = vadd.f32 %v2673_v50, %v2445_v22  ;;  %2028 = vmatmul.bf16.gmra.mxu1 %v3346_v34  ;;  %2257 = vmatmul.bf16.gmra.mxu2 %v3350_v21  ;;  %v1763_v21 = vadd.f32 %v5548_v54, %v5155_v45  ;;  %v4249_v34 = vld [vmem:[%s6710_s0 + $0x194] sm:$0xf]  ;;  %v4250_v45 = vld [vmem:[%s6710_s0 + $0x19c] sm:$0xf] }
 0x162   :  { %2486 = vmatmul.bf16.gmra.mxu3 %v3354_v36  ;;  %v3366_v53 = vor.u32 %v4249_v34, %v3363_v41 }
 0x163   :  { %2715 = vmatmul.bf16.gmra.mxu0 %v3358_v37  ;;  %v2892_v11 = vmax.f32 %v2674_v8, 0.0  ;;  %v3378_v37 = vor.u32 %v4253_v25, %v3377_v42  ;;  %v3391_v25 = vld [vmem:[%s6710_s0 + $0x1d4] sm:$0xf0] }
 0x164   :  { %v2218_v47 = vpop.f32.mrf.mxu2 }
 0x165   :  { %v4462_v3 = vpack.c.bf16 %v2892_v11, %v2891_v4  ;;  %v2447_v39 = vpop.f32.mrf.mxu3  ;;  %v2219_v62 = vadd.f32 %v2218_v47, %v1990_v60  ;;  %v4252_v11 = vld [vmem:[%s6710_s0 + $0x1a8] sm:$0xf0]  ;;  %v3371_v4 = vld [vmem:[%s6710_s0 + $0x1ac] sm:$0xf0]  ;;  %v1766_v60 = vadd.f32 %v5548_v54, %v5187_v61  ;;  %v4254_v61 = vld [vmem:[%s6710_s0 + $0x1bc] sm:$0xf] }
 0x166   :  { %v1991_v19 = vpop.f32.mrf.mxu1  ;;  %v3370_v7 = vor.u32 %v4252_v11, %v3369_v10  ;;  %v3374_v36 = vor.u32 %v4250_v45, %v3371_v4  ;;  %v1768_v11 = vadd.f32 %v5548_v54, %v5195_v1  ;;  %v3383_v45 = vld [vmem:[%s6710_s0 + $0x1cc] sm:$0xf0]  ;;  %v4255_v1 = vld [vmem:[%s6710_s0 + $0x1c4] sm:$0xf] }
 0x167   :  { %4463 = vst [vmem:[%s6711_s3] sm:$0xff] %v4462_v3   ;;  %v2448_v24 = vadd.f32 %v2447_v39, %v2219_v62  ;;  %v1992_v8 = vadd.f32 %v1991_v19, %v1763_v21 }
 0x168   :  { %v2678_v50 = vpop.f32.mrf.mxu0 }
 0x169   :  { %v2677_v2 = vadd.f32 %v2676_v30, %v2448_v24  ;;  %v3389_v24 = vld [vmem:[%s6710_s0 + $0x1c0] sm:$0xf] }
 0x16b   :  { %v2893_v39 = vmax.f32 %v2677_v2, 0.0  ;;  %v3394_v2 = vor.u32 %v4255_v1, %v3391_v25  ;;  %v4262_v1 = vld [vmem:[%s6710_s0 + $0x1f8] sm:$0xf0]  ;;  %v3411_v25 = vld [vmem:[%s6710_s0 + $0x1fc] sm:$0xf0] }
 0x16c   :  { %v2220_v20 = vpop.f32.mrf.mxu2 }
 0x16d   :  { %v2221_v43 = vadd.f32 %v2220_v20, %v1992_v8  ;;  %v2449_v5 = vpop.f32.mrf.mxu3  ;;  %v4257_v8 = vld [vmem:[%s6710_s0 + $0x1d0] sm:$0xf0]  ;;  %v3397_v20 = vld [vmem:[%s6710_s0 + $0x1c8] sm:$0xf] }
 0x16e   :  { %v1994_v12 = vpop.f32.mrf.mxu1 }
 0x16f   :  { %v2450_v22 = vadd.f32 %v2449_v5, %v2221_v43  ;;  %v1995_v34 = vadd.f32 %v1994_v12, %v1766_v60  ;;  %v4258_v43 = vld [vmem:[%s6710_s0 + $0x1d8] sm:$0xf0]  ;;  %v3386_v12 = vor.u32 %v4254_v61, %v3383_v45  ;;  %v1773_v45 = vadd.f32 %v5548_v54, %v5235_v27  ;;  %v4260_v27 = vld [vmem:[%s6710_s0 + $0x1ec] sm:$0xf] }
 0x170   :  { %v2681_v47 = vpop.f32.mrf.mxu0 }
 0x171   :  { %v2679_v3 = vadd.f32 %v2678_v50, %v2450_v22  ;;  %2033 = vmatmul.bf16.gmra.mxu1 %v3366_v53  ;;  %2262 = vmatmul.bf16.gmra.mxu2 %v3370_v7  ;;  %v3398_v22 = vor.u32 %v4258_v43, %v3397_v20  ;;  %v3417_v20 = vld [vmem:[%s6710_s0 + $0x1f0] sm:$0xf]  ;;  %v4263_v43 = vld [vmem:[%s6710_s0 + $0x200] sm:$0xf0] }
 0x172   :  { %2491 = vmatmul.bf16.gmra.mxu3 %v3374_v36  ;;  %v3390_v36 = vor.u32 %v4257_v8, %v3389_v24  ;;  %v3403_v24 = vld [vmem:[%s6710_s0 + $0x1f4] sm:$0xf0]  ;;  %v3409_v8 = vld [vmem:[%s6710_s0 + $0x1e8] sm:$0xf] }
 0x173   :  { %2720 = vmatmul.bf16.gmra.mxu0 %v3378_v37  ;;  %v2894_v19 = vmax.f32 %v2679_v3, 0.0 }
 0x174   :  { %v2223_v62 = vpop.f32.mrf.mxu2 }
 0x175   :  { %v4467_v21 = vpack.c.bf16 %v2894_v19, %v2893_v39  ;;  %v2452_v41 = vpop.f32.mrf.mxu3  ;;  %v2224_v30 = vadd.f32 %v2223_v62, %v1995_v34  ;;  %v1771_v62 = vadd.f32 %v5548_v54, %v5227_v18  ;;  %v4259_v18 = vld [vmem:[%s6710_s0 + $0x1e4] sm:$0xf] }
 0x176   :  { %v1996_v10 = vpop.f32.mrf.mxu1 }
 0x177   :  { %4679 = vst [vmem:[%s6711_s3 + $0x8] sm:$0xff] %v4467_v21   ;;  %v2453_v4 = vadd.f32 %v2452_v41, %v2224_v30  ;;  %v1997_v42 = vadd.f32 %v1996_v10, %v1768_v11 }
 0x178   :  { %v2683_v50 = vpop.f32.mrf.mxu0 }
 0x179   :  { %v2682_v3 = vadd.f32 %v2681_v47, %v2453_v4 }
 0x17b   :  { %v2895_v21 = vmax.f32 %v2682_v3, 0.0 }
 0x17c   :  { %v2225_v5 = vpop.f32.mrf.mxu2 }
 0x17d   :  { %v2226_v53 = vadd.f32 %v2225_v5, %v1997_v42  ;;  %v2454_v7 = vpop.f32.mrf.mxu3 }
 0x17e   :  { %v1999_v37 = vpop.f32.mrf.mxu1 }
 0x17f   :  { %v2455_v60 = vadd.f32 %v2454_v7, %v2226_v53  ;;  %v2000_v30 = vadd.f32 %v1999_v37, %v1771_v62 }
 0x180   :  { %v2686_v39 = vpop.f32.mrf.mxu0 }
 0x181   :  { %v2684_v19 = vadd.f32 %v2683_v50, %v2455_v60  ;;  %2038 = vmatmul.bf16.gmra.mxu1 %v3386_v12  ;;  %2267 = vmatmul.bf16.gmra.mxu2 %v3390_v36  ;;  %v3406_v12 = vor.u32 %v4259_v18, %v3403_v24  ;;  %v3410_v36 = vor.u32 %v4262_v1, %v3409_v8  ;;  %v3423_v18 = vld [vmem:[%s6710_s0 + $0x21c] sm:$0xf0]  ;;  %v3429_v24 = vld [vmem:[%s6710_s0 + $0x210] sm:$0xf]  ;;  %v4267_v8 = vld [vmem:[%s6710_s0 + $0x220] sm:$0xf0] }
 0x182   :  { %2496 = vmatmul.bf16.gmra.mxu3 %v3394_v2  ;;  %v3414_v2 = vor.u32 %v4260_v27, %v3411_v25  ;;  %v4268_v25 = vld [vmem:[%s6710_s0 + $0x228] sm:$0xf0] }
 0x183   :  { %2725 = vmatmul.bf16.gmra.mxu0 %v3398_v22  ;;  %v2896_v34 = vmax.f32 %v2684_v19, 0.0  ;;  %v3418_v22 = vor.u32 %v4263_v43, %v3417_v20 }
 0x184   :  { %v2228_v41 = vpop.f32.mrf.mxu2 }
 0x185   :  { %v4472_v10 = vpack.c.bf16 %v2896_v34, %v2895_v21  ;;  %v2457_v11 = vpop.f32.mrf.mxu3  ;;  %v2229_v47 = vadd.f32 %v2228_v41, %v2000_v30  ;;  %v1776_v21 = vadd.f32 %v5548_v54, %v5267_v51  ;;  %v4264_v51 = vld [vmem:[%s6710_s0 + $0x20c] sm:$0xf] }
 0x186   :  { %v2001_v61 = vpop.f32.mrf.mxu1 }
 0x187   :  { %4680 = vst [vmem:[%s6711_s3 + $0x10] sm:$0xff] %v4472_v10   ;;  %v2458_v4 = vadd.f32 %v2457_v11, %v2229_v47  ;;  %v2002_v42 = vadd.f32 %v2001_v61, %v1773_v45  ;;  %v1778_v45 = vadd.f32 %v5548_v54, %v5275_v57  ;;  %v4265_v57 = vld [vmem:[%s6710_s0 + $0x214] sm:$0xf] }
 0x188   :  { %v2688_v50 = vpop.f32.mrf.mxu0 }
 0x189   :  { %v2687_v3 = vadd.f32 %v2686_v39, %v2458_v4  ;;  %v3431_v4 = vld [vmem:[%s6710_s0 + $0x224] sm:$0xf0] }
 0x18b   :  { %v2897_v34 = vmax.f32 %v2687_v3, 0.0 }
 0x18c   :  { %v2230_v5 = vpop.f32.mrf.mxu2 }
 0x18d   :  { %v2231_v53 = vadd.f32 %v2230_v5, %v2002_v42  ;;  %v2459_v7 = vpop.f32.mrf.mxu3  ;;  %v3437_v42 = vld [vmem:[%s6710_s0 + $0x218] sm:$0xf] }
 0x18e   :  { %v2004_v37 = vpop.f32.mrf.mxu1 }
 0x18f   :  { %v2460_v60 = vadd.f32 %v2459_v7, %v2231_v53  ;;  %v2005_v11 = vadd.f32 %v2004_v37, %v1776_v21  ;;  %v3426_v53 = vor.u32 %v4264_v51, %v3423_v18  ;;  %v3430_v7 = vor.u32 %v4267_v8, %v3429_v24  ;;  %v4272_v51 = vld [vmem:[%s6710_s0 + $0x248] sm:$0xf0]  ;;  %v3451_v8 = vld [vmem:[%s6710_s0 + $0x24c] sm:$0xf0] }
 0x190   :  { %v2691_v19 = vpop.f32.mrf.mxu0  ;;  %v3438_v37 = vor.u32 %v4268_v25, %v3437_v42 }
 0x191   :  { %v2689_v62 = vadd.f32 %v2688_v50, %v2460_v60  ;;  %2043 = vmatmul.bf16.gmra.mxu1 %v3406_v12  ;;  %2272 = vmatmul.bf16.gmra.mxu2 %v3410_v36  ;;  %v3434_v36 = vor.u32 %v4265_v57, %v3431_v4  ;;  %v3457_v57 = vld [vmem:[%s6710_s0 + $0x240] sm:$0xf] }
 0x192   :  { %2501 = vmatmul.bf16.gmra.mxu3 %v3414_v2 }
 0x193   :  { %2730 = vmatmul.bf16.gmra.mxu0 %v3418_v22  ;;  %v2898_v41 = vmax.f32 %v2689_v62, 0.0  ;;  %v1781_v62 = vadd.f32 %v5548_v54, %v5307_v29  ;;  %v4269_v29 = vld [vmem:[%s6710_s0 + $0x234] sm:$0xf] }
 0x194   :  { %v2233_v10 = vpop.f32.mrf.mxu2 }
 0x195   :  { %v4477_v30 = vpack.c.bf16 %v2898_v41, %v2897_v34  ;;  %v2462_v61 = vpop.f32.mrf.mxu3  ;;  %v2234_v39 = vadd.f32 %v2233_v10, %v2005_v11 }
 0x196   :  { %v2006_v47 = vpop.f32.mrf.mxu1 }
 0x197   :  { %4681 = vst [vmem:[%s6711_s3 + $0x18] sm:$0xff] %v4477_v30   ;;  %v2463_v1 = vadd.f32 %v2462_v61, %v2234_v39  ;;  %v2007_v27 = vadd.f32 %v2006_v47, %v1778_v45  ;;  %v1783_v39 = vadd.f32 %v5548_v54, %v5315_v33  ;;  %v3449_v45 = vld [vmem:[%s6710_s0 + $0x238] sm:$0xf]  ;;  %v4270_v33 = vld [vmem:[%s6710_s0 + $0x23c] sm:$0xf] }
 0x198   :  { %v2693_v50 = vpop.f32.mrf.mxu0 }
 0x199   :  { %v2692_v2 = vadd.f32 %v2691_v19, %v2463_v1  ;;  %v4273_v1 = vld [vmem:[%s6710_s0 + $0x250] sm:$0xf0] }
 0x19b   :  { %v2899_v21 = vmax.f32 %v2692_v2, 0.0  ;;  %v1786_v2 = vadd.f32 %v5548_v54, %v5347_v13  ;;  %v4274_v13 = vld [vmem:[%s6710_s0 + $0x25c] sm:$0xf] }
 0x19c   :  { %v2235_v20 = vpop.f32.mrf.mxu2 }
 0x19d   :  { %v2236_v43 = vadd.f32 %v2235_v20, %v2007_v27  ;;  %v2464_v5 = vpop.f32.mrf.mxu3  ;;  %v3450_v20 = vor.u32 %v4272_v51, %v3449_v45  ;;  %v3477_v45 = vld [vmem:[%s6710_s0 + $0x268] sm:$0xf]  ;;  %v4278_v51 = vld [vmem:[%s6710_s0 + $0x278] sm:$0xf0] }
 0x19e   :  { %v2009_v12 = vpop.f32.mrf.mxu1 }
 0x19f   :  { %v2465_v22 = vadd.f32 %v2464_v5, %v2236_v43  ;;  %v2010_v30 = vadd.f32 %v2009_v12, %v1781_v62  ;;  %v3454_v5 = vor.u32 %v4270_v33, %v3451_v8 }
 0x1a0   :  { %v2696_v3 = vpop.f32.mrf.mxu0 }
 0x1a1   :  { %v2694_v60 = vadd.f32 %v2693_v50, %v2465_v22  ;;  %2048 = vmatmul.bf16.gmra.mxu1 %v3426_v53  ;;  %2277 = vmatmul.bf16.gmra.mxu2 %v3430_v7  ;;  %v3443_v50 = vld [vmem:[%s6710_s0 + $0x244] sm:$0xf0]  ;;  %v3458_v53 = vor.u32 %v4273_v1, %v3457_v57 }
 0x1a2   :  { %2506 = vmatmul.bf16.gmra.mxu3 %v3434_v36  ;;  %v3446_v25 = vor.u32 %v4269_v29, %v3443_v50  ;;  %v3471_v50 = vld [vmem:[%s6710_s0 + $0x274] sm:$0xf0] }
 0x1a3   :  { %2735 = vmatmul.bf16.gmra.mxu0 %v3438_v37  ;;  %v2900_v34 = vmax.f32 %v2694_v60, 0.0 }
 0x1a4   :  { %v2238_v41 = vpop.f32.mrf.mxu2 }
 0x1a5   :  { %v4482_v10 = vpack.c.bf16 %v2900_v34, %v2899_v21  ;;  %v2467_v11 = vpop.f32.mrf.mxu3  ;;  %v2239_v19 = vadd.f32 %v2238_v41, %v2010_v30 }
 0x1a6   :  { %v2011_v61 = vpop.f32.mrf.mxu1 }
 0x1a7   :  { %4682 = vst [vmem:[%s6711_s3 + $0x20] sm:$0xff] %v4482_v10   ;;  %v2468_v18 = vadd.f32 %v2467_v11, %v2239_v19  ;;  %v2012_v24 = vadd.f32 %v2011_v61, %v1783_v39  ;;  %v1788_v11 = vadd.f32 %v5548_v54, %v5355_v9  ;;  %v3463_v61 = vld [vmem:[%s6710_s0 + $0x26c] sm:$0xf0]  ;;  %v3469_v19 = vld [vmem:[%s6710_s0 + $0x260] sm:$0xf] }
 0x1a8   :  { %v2698_v47 = vpop.f32.mrf.mxu0  ;;  %v4275_v9 = vld [vmem:[%s6710_s0 + $0x264] sm:$0xf]  ;;  %v3466_v8 = vor.u32 %v4274_v13, %v3463_v61  ;;  %v3497_v13 = vld [vmem:[%s6710_s0 + $0x290] sm:$0xf] }
 0x1a9   :  { %v2697_v7 = vadd.f32 %v2696_v3, %v2468_v18  ;;  %v4283_v61 = vld [vmem:[%s6710_s0 + $0x2a0] sm:$0xf0] }
 0x1ab   :  { %v2901_v22 = vmax.f32 %v2697_v7, 0.0 }
 0x1ac   :  { %v2240_v27 = vpop.f32.mrf.mxu2 }
 0x1ad   :  { %v2241_v4 = vadd.f32 %v2240_v27, %v2012_v24  ;;  %v2469_v42 = vpop.f32.mrf.mxu3  ;;  %v3474_v27 = vor.u32 %v4275_v9, %v3471_v50 }
 0x1ae   :  { %v2014_v43 = vpop.f32.mrf.mxu1 }
 0x1af   :  { %v2470_v12 = vadd.f32 %v2469_v42, %v2241_v4  ;;  %v2015_v34 = vadd.f32 %v2014_v43, %v1786_v2  ;;  %v3478_v4 = vor.u32 %v4278_v51, %v3477_v45  ;;  %v3498_v51 = vor.u32 %v4283_v61, %v3497_v13 }
 0x1b0   :  { %v2701_v36 = vpop.f32.mrf.mxu0 }
 0x1b1   :  { %v2699_v37 = vadd.f32 %v2698_v47, %v2470_v12  ;;  %2053 = vmatmul.bf16.gmra.mxu1 %v3446_v25  ;;  %2282 = vmatmul.bf16.gmra.mxu2 %v3450_v20  ;;  %v4277_v47 = vld [vmem:[%s6710_s0 + $0x270] sm:$0xf0] }
 0x1b2   :  { %2511 = vmatmul.bf16.gmra.mxu3 %v3454_v5  ;;  %v3470_v57 = vor.u32 %v4277_v47, %v3469_v19  ;;  %v1791_v5 = vadd.f32 %v5548_v54, %v5387_v40  ;;  %v4279_v40 = vld [vmem:[%s6710_s0 + $0x284] sm:$0xf] }
 0x1b3   :  { %2740 = vmatmul.bf16.gmra.mxu0 %v3458_v53  ;;  %v2902_v60 = vmax.f32 %v2699_v37, 0.0 }
 0x1b4   :  { %v2243_v62 = vpop.f32.mrf.mxu2 }
 0x1b5   :  { %v4487_v21 = vpack.c.bf16 %v2902_v60, %v2901_v22  ;;  %v2472_v41 = vpop.f32.mrf.mxu3  ;;  %v2244_v3 = vadd.f32 %v2243_v62, %v2015_v34  ;;  %v3483_v34 = vld [vmem:[%s6710_s0 + $0x294] sm:$0xf0] }
 0x1b6   :  { %v2016_v10 = vpop.f32.mrf.mxu1 }
 0x1b7   :  { %4683 = vst [vmem:[%s6711_s3 + $0x28] sm:$0xff] %v4487_v21   ;;  %v2473_v39 = vadd.f32 %v2472_v41, %v2244_v3  ;;  %v2017_v29 = vadd.f32 %v2016_v10, %v1788_v11  ;;  %v1793_v21 = vadd.f32 %v5548_v54, %v5395_v55  ;;  %v3489_v41 = vld [vmem:[%s6710_s0 + $0x288] sm:$0xf]  ;;  %v4282_v10 = vld [vmem:[%s6710_s0 + $0x298] sm:$0xf0] }
 0x1b8   :  { %v2703_v30 = vpop.f32.mrf.mxu0  ;;  %v4280_v55 = vld [vmem:[%s6710_s0 + $0x28c] sm:$0xf]  ;;  %v3491_v11 = vld [vmem:[%s6710_s0 + $0x29c] sm:$0xf0] }
 0x1b9   :  { %v2702_v42 = vadd.f32 %v2701_v36, %v2473_v39  ;;  %v3486_v39 = vor.u32 %v4279_v40, %v3483_v34  ;;  %v3494_v45 = vor.u32 %v4280_v55, %v3491_v11 }
 0x1bb   :  { %v2903_v53 = vmax.f32 %v2702_v42, 0.0 }
 0x1bc   :  { %v2245_v33 = vpop.f32.mrf.mxu2 }
 0x1bd   :  { %v2246_v18 = vadd.f32 %v2245_v33, %v2017_v29  ;;  %v2474_v24 = vpop.f32.mrf.mxu3  ;;  %v3490_v29 = vor.u32 %v4282_v10, %v3489_v41 }
 0x1be   :  { %v2019_v1 = vpop.f32.mrf.mxu1 }
 0x1bf   :  { %v2475_v25 = vadd.f32 %v2474_v24, %v2246_v18  ;;  %v2020_v2 = vadd.f32 %v2019_v1, %v1791_v5 }
 0x1c0   :  { %v2706_v20 = vpop.f32.mrf.mxu0 }
 0x1c1   :  { %v2704_v43 = vadd.f32 %v2703_v30, %v2475_v25  ;;  %2058 = vmatmul.bf16.gmra.mxu1 %v3466_v8  ;;  %2287 = vmatmul.bf16.gmra.mxu2 %v3470_v57  ;;  %v1796_v57 = vadd.f32 %v5548_v54, %v5427_v35  ;;  %v4284_v35 = vld [vmem:[%s6710_s0 + $0x2ac] sm:$0xf] }
 0x1c2   :  { %2516 = vmatmul.bf16.gmra.mxu3 %v3474_v27 }
 0x1c3   :  { %2745 = vmatmul.bf16.gmra.mxu0 %v3478_v4  ;;  %v2904_v7 = vmax.f32 %v2704_v43, 0.0 }
 0x1c4   :  { %v2248_v12 = vpop.f32.mrf.mxu2 }
 0x1c5   :  { %v4492_v37 = vpack.c.bf16 %v2904_v7, %v2903_v53  ;;  %v2477_v22 = vpop.f32.mrf.mxu3  ;;  %v2249_v36 = vadd.f32 %v2248_v12, %v2020_v2  ;;  %v1798_v7 = vadd.f32 %v5548_v54, %v5435_v59  ;;  %v3503_v12 = vld [vmem:[%s6710_s0 + $0x2bc] sm:$0xf0]  ;;  %v4287_v2 = vld [vmem:[%s6710_s0 + $0x2c0] sm:$0xf0]  ;;  %v4285_v59 = vld [vmem:[%s6710_s0 + $0x2b4] sm:$0xf] }
 0x1c6   :  { %v2021_v60 = vpop.f32.mrf.mxu1  ;;  %v3506_v10 = vor.u32 %v4284_v35, %v3503_v12 }
 0x1c7   :  { %4684 = vst [vmem:[%s6711_s3 + $0x30] sm:$0xff] %v4492_v37   ;;  %v2478_v3 = vadd.f32 %v2477_v22, %v2249_v36  ;;  %v2022_v30 = vadd.f32 %v2021_v60, %v1793_v21  ;;  %v3509_v37 = vld [vmem:[%s6710_s0 + $0x2b0] sm:$0xf]  ;;  %v3511_v36 = vld [vmem:[%s6710_s0 + $0x2c4] sm:$0xf0] }
 0x1c8   :  { %v2708_v62 = vpop.f32.mrf.mxu0  ;;  %v4288_v21 = vld [vmem:[%s6710_s0 + $0x2c8] sm:$0xf0]  ;;  %v3510_v55 = vor.u32 %v4287_v2, %v3509_v37 }
 0x1c9   :  { %v2707_v33 = vadd.f32 %v2706_v20, %v2478_v3 }
 0x1cb   :  { %v2905_v1 = vmax.f32 %v2707_v33, 0.0 }
 0x1cc   :  { %v2250_v19 = vpop.f32.mrf.mxu2 }
 0x1cd   :  { %v2251_v47 = vadd.f32 %v2250_v19, %v2022_v30  ;;  %v2479_v9 = vpop.f32.mrf.mxu3  ;;  %v3514_v30 = vor.u32 %v4285_v59, %v3511_v36 }
 0x1ce   :  { %v2024_v50 = vpop.f32.mrf.mxu1 }
 0x1cf   :  { %v2480_v18 = vadd.f32 %v2479_v9, %v2251_v47  ;;  %v2025_v25 = vadd.f32 %v2024_v50, %v1796_v57  ;;  %v1801_v9 = vadd.f32 %v5548_v54, %v5467_v17  ;;  %v1803_v57 = vadd.f32 %v5548_v54, %v5475_v49  ;;  %v4289_v17 = vld [vmem:[%s6710_s0 + $0x2d4] sm:$0xf]  ;;  %v4290_v49 = vld [vmem:[%s6710_s0 + $0x2dc] sm:$0xf] }
 0x1d0   :  { %v2711_v24 = vpop.f32.mrf.mxu0 }
 0x1d1   :  { %v2709_v8 = vadd.f32 %v2708_v62, %v2480_v18  ;;  %2063 = vmatmul.bf16.gmra.mxu1 %v3486_v39  ;;  %2292 = vmatmul.bf16.gmra.mxu2 %v3490_v29  ;;  %v3517_v62 = vld [vmem:[%s6710_s0 + $0x2b8] sm:$0xf] }
 0x1d2   :  { %2521 = vmatmul.bf16.gmra.mxu3 %v3494_v45  ;;  %v3518_v11 = vor.u32 %v4288_v21, %v3517_v62 }
 0x1d3   :  { %2750 = vmatmul.bf16.gmra.mxu0 %v3498_v51  ;;  %v2906_v27 = vmax.f32 %v2709_v8, 0.0 }
 0x1d4   :  { %v2253_v4 = vpop.f32.mrf.mxu2 }
 0x1d5   :  { %v4497_v42 = vpack.c.bf16 %v2906_v27, %v2905_v1  ;;  %v2482_v43 = vpop.f32.mrf.mxu3  ;;  %v2254_v20 = vadd.f32 %v2253_v4, %v2025_v25  ;;  %v3523_v1 = vld [vmem:[%s6710_s0 + $0x2e4] sm:$0xf0]  ;;  %v3529_v27 = vld [vmem:[%s6710_s0 + $0x2d8] sm:$0xf]  ;;  %v4292_v4 = vld [vmem:[%s6710_s0 + $0x2e8] sm:$0xf0] }
 0x1d6   :  { %v2026_v5 = vpop.f32.mrf.mxu1  ;;  %v3526_v12 = vor.u32 %v4289_v17, %v3523_v1  ;;  %v3530_v37 = vor.u32 %v4292_v4, %v3529_v27 }
 0x1d7   :  { %4685 = vst [vmem:[%s6711_s3 + $0x38] sm:$0xff] %v4497_v42   ;;  %v2483_v22 = vadd.f32 %v2482_v43, %v2254_v20  ;;  %v2027_v60 = vadd.f32 %v2026_v5, %v1798_v7  ;;  %v3531_v43 = vld [vmem:[%s6710_s0 + $0x2ec] sm:$0xf0]  ;;  %v3537_v5 = vld [vmem:[%s6710_s0 + $0x2e0] sm:$0xf] }
 0x1d8   :  { %v2713_v53 = vpop.f32.mrf.mxu0  ;;  %v4293_v20 = vld [vmem:[%s6710_s0 + $0x2f0] sm:$0xf0]  ;;  %v3534_v59 = vor.u32 %v4290_v49, %v3531_v43 }
 0x1d9   :  { %v2712_v13 = vadd.f32 %v2711_v24, %v2483_v22  ;;  %v3538_v22 = vor.u32 %v4293_v20, %v3537_v5  ;;  %v1811_v5 = vadd.f32 %v5548_v54, %v5096_v15  ;;  %v4299_v15 = vld [vmem:[%s6710_s0 + $0x324] sm:$0xf] }
 0x1db   :  { %v2907_v39 = vmax.f32 %v2712_v13, 0.0 }
 0x1dc   :  { %v2255_v40 = vpop.f32.mrf.mxu2 }
 0x1dd   :  { %v2256_v34 = vadd.f32 %v2255_v40, %v2027_v60  ;;  %v2484_v41 = vpop.f32.mrf.mxu3  ;;  %v1806_v40 = vadd.f32 %v5548_v54, %v5507_v52  ;;  %v4294_v52 = vld [vmem:[%s6710_s0 + $0x2fc] sm:$0xf] }
 0x1de   :  { %v2029_v3 = vpop.f32.mrf.mxu1 }
 0x1df   :  { %v2485_v61 = vadd.f32 %v2484_v41, %v2256_v34  ;;  %v2030_v51 = vadd.f32 %v2029_v3, %v1801_v9  ;;  %v3549_v9 = vld [vmem:[%s6710_s0 + $0x300] sm:$0xf] }
 0x1e0   :  { %v2716_v19 = vpop.f32.mrf.mxu0 }
 0x1e1   :  { %v2714_v47 = vadd.f32 %v2713_v53, %v2485_v61  ;;  %2068 = vmatmul.bf16.gmra.mxu1 %v3506_v10  ;;  %2297 = vmatmul.bf16.gmra.mxu2 %v3510_v55 }
 0x1e2   :  { %2526 = vmatmul.bf16.gmra.mxu3 %v3514_v30 }
 0x1e3   :  { %2755 = vmatmul.bf16.gmra.mxu0 %v3518_v11  ;;  %v2908_v29 = vmax.f32 %v2714_v47, 0.0  ;;  %v3543_v47 = vld [vmem:[%s6710_s0 + $0x30c] sm:$0xf0] }
 0x1e4   :  { %v2258_v50 = vpop.f32.mrf.mxu2 }
 0x1e5   :  { %v4502_v45 = vpack.c.bf16 %v2908_v29, %v2907_v39  ;;  %v2487_v33 = vpop.f32.mrf.mxu3  ;;  %v2259_v24 = vadd.f32 %v2258_v50, %v2030_v51  ;;  %v4297_v39 = vld [vmem:[%s6710_s0 + $0x310] sm:$0xf0]  ;;  %v3557_v51 = vld [vmem:[%s6710_s0 + $0x308] sm:$0xf] }
 0x1e6   :  { %v2031_v18 = vpop.f32.mrf.mxu1  ;;  %v3550_v17 = vor.u32 %v4297_v39, %v3549_v9 }
 0x1e7   :  { %4686 = vst [vmem:[%s6711_s3 + $0x40] sm:$0xff] %v4502_v45   ;;  %v2488_v42 = vadd.f32 %v2487_v33, %v2259_v24  ;;  %v2032_v25 = vadd.f32 %v2031_v18, %v1803_v57  ;;  %v3551_v45 = vld [vmem:[%s6710_s0 + $0x314] sm:$0xf0]  ;;  %v4298_v33 = vld [vmem:[%s6710_s0 + $0x318] sm:$0xf0]  ;;  %v3546_v57 = vor.u32 %v4294_v52, %v3543_v47 }
 0x1e8   :  { %v2718_v8 = vpop.f32.mrf.mxu0  ;;  %v3558_v4 = vor.u32 %v4298_v33, %v3557_v51 }
 0x1e9   :  { %v2717_v60 = vadd.f32 %v2716_v19, %v2488_v42  ;;  %v1808_v19 = vadd.f32 %v5548_v54, %v5515_v46  ;;  %v4295_v46 = vld [vmem:[%s6710_s0 + $0x304] sm:$0xf] }
 0x1ea   :  { %v3554_v27 = vor.u32 %v4295_v46, %v3551_v45 }
 0x1eb   :  { %v2909_v34 = vmax.f32 %v2717_v60, 0.0  ;;  %v1813_v60 = vadd.f32 %v5548_v54, %v5110_v23  ;;  %v4300_v23 = vld [vmem:[%s6710_s0 + $0x32c] sm:$0xf] }
 0x1ec   :  { %v2260_v53 = vpop.f32.mrf.mxu2 }
 0x1ed   :  { %v2261_v7 = vadd.f32 %v2260_v53, %v2032_v25  ;;  %v2489_v35 = vpop.f32.mrf.mxu3 }
 0x1ee   :  { %v2034_v2 = vpop.f32.mrf.mxu1 }
 0x1ef   :  { %v2490_v36 = vadd.f32 %v2489_v35, %v2261_v7  ;;  %v2035_v3 = vadd.f32 %v2034_v2, %v1806_v40 }
 0x1f0   :  { %v2721_v62 = vpop.f32.mrf.mxu0 }
 0x1f1   :  { %v2719_v21 = vadd.f32 %v2718_v8, %v2490_v36  ;;  %2073 = vmatmul.bf16.gmra.mxu1 %v3526_v12  ;;  %2302 = vmatmul.bf16.gmra.mxu2 %v3530_v37  ;;  %v3563_v36 = vld [vmem:[%s6710_s0 + $0x334] sm:$0xf0] }
 0x1f2   :  { %2531 = vmatmul.bf16.gmra.mxu3 %v3534_v59 }
 0x1f3   :  { %2760 = vmatmul.bf16.gmra.mxu0 %v3538_v22  ;;  %v2910_v41 = vmax.f32 %v2719_v21, 0.0  ;;  %v4302_v21 = vld [vmem:[%s6710_s0 + $0x338] sm:$0xf0] }
 0x1f4   :  { %v2263_v10 = vpop.f32.mrf.mxu2 }
 0x1f5   :  { %v4507_v55 = vpack.c.bf16 %v2910_v41, %v2909_v34  ;;  %v2492_v30 = vpop.f32.mrf.mxu3  ;;  %v2264_v13 = vadd.f32 %v2263_v10, %v2035_v3  ;;  %v3571_v41 = vld [vmem:[%s6710_s0 + $0x33c] sm:$0xf0]  ;;  %v3577_v10 = vld [vmem:[%s6710_s0 + $0x330] sm:$0xf] }
 0x1f6   :  { %v2036_v11 = vpop.f32.mrf.mxu1  ;;  %v3574_v52 = vor.u32 %v4300_v23, %v3571_v41  ;;  %v1821_v23 = vadd.f32 %v5548_v54, %v5185_v58  ;;  %v4309_v58 = vld [vmem:[%s6710_s0 + $0x374] sm:$0xf] }
 0x1f7   :  { %4687 = vst [vmem:[%s6711_s3 + $0x48] sm:$0xff] %v4507_v55   ;;  %v2493_v29 = vadd.f32 %v2492_v30, %v2264_v13  ;;  %v2037_v50 = vadd.f32 %v2036_v11, %v1808_v19  ;;  %v4303_v55 = vld [vmem:[%s6710_s0 + $0x340] sm:$0xf0]  ;;  %v3566_v13 = vor.u32 %v4299_v15, %v3563_v36 }
 0x1f8   :  { %v2723_v61 = vpop.f32.mrf.mxu0  ;;  %v3578_v47 = vor.u32 %v4303_v55, %v3577_v10 }
 0x1f9   :  { %v2722_v49 = vadd.f32 %v2721_v62, %v2493_v29  ;;  %v3569_v62 = vld [vmem:[%s6710_s0 + $0x328] sm:$0xf] }
 0x1fb   :  { %v2911_v20 = vmax.f32 %v2722_v49, 0.0  ;;  %v3589_v49 = vld [vmem:[%s6710_s0 + $0x350] sm:$0xf] }
 0x1fc   :  { %v2265_v18 = vpop.f32.mrf.mxu2 }
 0x1fd   :  { %v2266_v24 = vadd.f32 %v2265_v18, %v2037_v50  ;;  %v2494_v8 = vpop.f32.mrf.mxu3  ;;  %v1816_v50 = vadd.f32 %v5548_v54, %v5145_v38  ;;  %v4304_v38 = vld [vmem:[%s6710_s0 + $0x34c] sm:$0xf] }
 0x1fe   :  { %v2039_v1 = vpop.f32.mrf.mxu1 }
 0x1ff   :  { %v2495_v42 = vadd.f32 %v2494_v8, %v2266_v24  ;;  %v2040_v12 = vadd.f32 %v2039_v1, %v1811_v5  ;;  %v3591_v5 = vld [vmem:[%s6710_s0 + $0x364] sm:$0xf0] }
 0x200   :  { %v2726_v25 = vpop.f32.mrf.mxu0 }
 0x201   :  { %v2724_v43 = vadd.f32 %v2723_v61, %v2495_v42  ;;  %2078 = vmatmul.bf16.gmra.mxu1 %v3546_v57  ;;  %2307 = vmatmul.bf16.gmra.mxu2 %v3550_v17  ;;  %v3570_v61 = vor.u32 %v4302_v21, %v3569_v62  ;;  %v4307_v42 = vld [vmem:[%s6710_s0 + $0x360] sm:$0xf0] }
 0x202   :  { %2536 = vmatmul.bf16.gmra.mxu3 %v3554_v27  ;;  %v1818_v27 = vadd.f32 %v5548_v54, %v5153_v44  ;;  %v4305_v44 = vld [vmem:[%s6710_s0 + $0x354] sm:$0xf] }
 0x203   :  { %2765 = vmatmul.bf16.gmra.mxu0 %v3558_v4  ;;  %v2912_v53 = vmax.f32 %v2724_v43, 0.0  ;;  %v3583_v4 = vld [vmem:[%s6710_s0 + $0x35c] sm:$0xf0] }
 0x204   :  { %v2268_v7 = vpop.f32.mrf.mxu2 }
 0x205   :  { %v4512_v35 = vpack.c.bf16 %v2912_v53, %v2911_v20  ;;  %v2497_v37 = vpop.f32.mrf.mxu3  ;;  %v2269_v59 = vadd.f32 %v2268_v7, %v2040_v12  ;;  %v3597_v20 = vld [vmem:[%s6710_s0 + $0x358] sm:$0xf]  ;;  %v4308_v53 = vld [vmem:[%s6710_s0 + $0x368] sm:$0xf0] }
 0x206   :  { %v2041_v2 = vpop.f32.mrf.mxu1 }
 0x207   :  { %4688 = vst [vmem:[%s6711_s3 + $0x50] sm:$0xff] %v4512_v35   ;;  %v2498_v40 = vadd.f32 %v2497_v37, %v2269_v59  ;;  %v2042_v34 = vadd.f32 %v2041_v2, %v1813_v60  ;;  %v3586_v37 = vor.u32 %v4304_v38, %v3583_v4  ;;  %v3590_v2 = vor.u32 %v4307_v42, %v3589_v49  ;;  %v5984_v4 = vld [vmem:[%s6709_s2] ss:$0 sm:$0xff] }
 0x208   :  { %v2728_v22 = vpop.f32.mrf.mxu0  ;;  %v3598_v60 = vor.u32 %v4308_v53, %v3597_v20  ;;  %v1826_v49 = vadd.f32 %v5984_v4, %v5225_v14  ;;  %v4314_v14 = vld [vmem:[%s6710_s0 + $0x39c] sm:$0xf] }
 0x209   :  { %v2727_v9 = vadd.f32 %v2726_v25, %v2498_v40 }
 0x20b   :  { %v2913_v45 = vmax.f32 %v2727_v9, 0.0 }
 0x20c   :  { %v2270_v3 = vpop.f32.mrf.mxu2 }
 0x20d   :  { %v2271_v30 = vadd.f32 %v2270_v3, %v2042_v34  ;;  %v2499_v11 = vpop.f32.mrf.mxu3 }
 0x20e   :  { %v2044_v19 = vpop.f32.mrf.mxu1 }
 0x20f   :  { %v2500_v39 = vadd.f32 %v2499_v11, %v2271_v30  ;;  %v2045_v24 = vadd.f32 %v2044_v19, %v1816_v50  ;;  %v3603_v19 = vld [vmem:[%s6710_s0 + $0x384] sm:$0xf0] }
 0x210   :  { %v2731_v46 = vpop.f32.mrf.mxu0 }
 0x211   :  { %v2729_v29 = vadd.f32 %v2728_v22, %v2500_v39  ;;  %2083 = vmatmul.bf16.gmra.mxu1 %v3566_v13  ;;  %2312 = vmatmul.bf16.gmra.mxu2 %v3570_v61  ;;  %v3594_v22 = vor.u32 %v4305_v44, %v3591_v5  ;;  %v1823_v61 = vadd.f32 %v5548_v54, %v5193_v0  ;;  %v4310_v54 = vld [vmem:[%s6710_s0 + $0x37c] sm:$0xf]  ;;  %v3611_v39 = vld [vmem:[%s6710_s0 + $0x38c] sm:$0xf0] }
 0x212   :  { %2541 = vmatmul.bf16.gmra.mxu3 %v3574_v52  ;;  %v3609_v52 = vld [vmem:[%s6710_s0 + $0x378] sm:$0xf] }
 0x213   :  { %2770 = vmatmul.bf16.gmra.mxu0 %v3578_v47  ;;  %v2914_v51 = vmax.f32 %v2729_v29, 0.0  ;;  %v4312_v47 = vld [vmem:[%s6710_s0 + $0x388] sm:$0xf0]  ;;  %v4313_v29 = vld [vmem:[%s6710_s0 + $0x390] sm:$0xf0] }
 0x214   :  { %v2273_v33 = vpop.f32.mrf.mxu2 }
 0x215   :  { %v4517_v18 = vpack.c.bf16 %v2914_v51, %v2913_v45  ;;  %v2502_v8 = vpop.f32.mrf.mxu3  ;;  %v2274_v17 = vadd.f32 %v2273_v33, %v2045_v24  ;;  %v3606_v33 = vor.u32 %v4309_v58, %v3603_v19  ;;  %v1831_v58 = vadd.f32 %v5984_v4, %v5265_v48  ;;  %v4319_v48 = vld [vmem:[%s6710_s0 + $0x3c4] sm:$0xf] }
 0x216   :  { %v2046_v57 = vpop.f32.mrf.mxu1 }
 0x217   :  { %4689 = vst [vmem:[%s6711_s3 + $0x58] sm:$0xff] %v4517_v18   ;;  %v2503_v25 = vadd.f32 %v2502_v8, %v2274_v17  ;;  %v2047_v43 = vadd.f32 %v2046_v57, %v1818_v27  ;;  %v3610_v18 = vor.u32 %v4312_v47, %v3609_v52  ;;  %v3614_v8 = vor.u32 %v4310_v54, %v3611_v39 }
 0x218   :  { %v2733_v1 = vpop.f32.mrf.mxu0 }
 0x219   :  { %v2732_v15 = vadd.f32 %v2731_v46, %v2503_v25  ;;  %v3617_v46 = vld [vmem:[%s6710_s0 + $0x380] sm:$0xf] }
 0x21a   :  { %v3618_v57 = vor.u32 %v4313_v29, %v3617_v46 }
 0x21b   :  { %v2915_v40 = vmax.f32 %v2732_v15, 0.0  ;;  %v3631_v15 = vld [vmem:[%s6710_s0 + $0x3b4] sm:$0xf0] }
 0x21c   :  { %v2275_v7 = vpop.f32.mrf.mxu2 }
 0x21d   :  { %v2276_v35 = vadd.f32 %v2275_v7, %v2047_v43  ;;  %v2504_v12 = vpop.f32.mrf.mxu3 }
 0x21e   :  { %v2049_v59 = vpop.f32.mrf.mxu1 }
 0x21f   :  { %v2505_v36 = vadd.f32 %v2504_v12, %v2276_v35  ;;  %v2050_v55 = vadd.f32 %v2049_v59, %v1821_v23  ;;  %v1828_v12 = vadd.f32 %v5984_v4, %v5233_v26  ;;  %v4317_v59 = vld [vmem:[%s6710_s0 + $0x3b0] sm:$0xf0]  ;;  %v4315_v26 = vld [vmem:[%s6710_s0 + $0x3a4] sm:$0xf] }
 0x220   :  { %v2736_v62 = vpop.f32.mrf.mxu0 }
 0x221   :  { %v2734_v21 = vadd.f32 %v2733_v1, %v2505_v36  ;;  %2088 = vmatmul.bf16.gmra.mxu1 %v3586_v37  ;;  %2317 = vmatmul.bf16.gmra.mxu2 %v3590_v2  ;;  %v3623_v37 = vld [vmem:[%s6710_s0 + $0x3ac] sm:$0xf0]  ;;  %v3629_v2 = vld [vmem:[%s6710_s0 + $0x3a0] sm:$0xf]  ;;  %v3637_v36 = vld [vmem:[%s6710_s0 + $0x3a8] sm:$0xf] }
 0x222   :  { %2546 = vmatmul.bf16.gmra.mxu3 %v3594_v22 }
 0x223   :  { %2775 = vmatmul.bf16.gmra.mxu0 %v3598_v60  ;;  %v2916_v34 = vmax.f32 %v2734_v21, 0.0 }
 0x224   :  { %v2278_v41 = vpop.f32.mrf.mxu2 }
 0x225   :  { %v4522_v10 = vpack.c.bf16 %v2916_v34, %v2915_v40  ;;  %v2507_v3 = vpop.f32.mrf.mxu3  ;;  %v2279_v11 = vadd.f32 %v2278_v41, %v2050_v55  ;;  %v3626_v34 = vor.u32 %v4314_v14, %v3623_v37  ;;  %v3630_v41 = vor.u32 %v4317_v59, %v3629_v2 }
 0x226   :  { %v2051_v30 = vpop.f32.mrf.mxu1  ;;  %v3634_v55 = vor.u32 %v4315_v26, %v3631_v15 }
 0x227   :  { %4690 = vst [vmem:[%s6711_s3 + $0x60] sm:$0xff] %v4522_v10   ;;  %v2508_v0 = vadd.f32 %v2507_v3, %v2279_v11  ;;  %v2052_v9 = vadd.f32 %v2051_v30, %v1823_v61 }
 0x228   :  { %v2738_v13 = vpop.f32.mrf.mxu0 }
 0x229   :  { %v2737_v17 = vadd.f32 %v2736_v62, %v2508_v0  ;;  %v4318_v62 = vld [vmem:[%s6710_s0 + $0x3b8] sm:$0xf0] }
 0x22a   :  { %v3638_v3 = vor.u32 %v4318_v62, %v3637_v36  ;;  %v1838_v36 = vadd.f32 %v5984_v4, %v5313_v32  ;;  %v3663_v62 = vld [vmem:[%s6710_s0 + $0x3fc] sm:$0xf0]  ;;  %v4325_v32 = vld [vmem:[%s6710_s0 + $0x3f4] sm:$0xf] }
 0x22b   :  { %v2917_v42 = vmax.f32 %v2737_v17, 0.0  ;;  %v4323_v17 = vld [vmem:[%s6710_s0 + $0x3e0] sm:$0xf0] }
 0x22c   :  { %v2280_v50 = vpop.f32.mrf.mxu2 }
 0x22d   :  { %v2281_v45 = vadd.f32 %v2280_v50, %v2052_v9  ;;  %v2509_v51 = vpop.f32.mrf.mxu3  ;;  %v1833_v50 = vadd.f32 %v5984_v4, %v5273_v56  ;;  %v4320_v56 = vld [vmem:[%s6710_s0 + $0x3cc] sm:$0xf] }
 0x22e   :  { %v2054_v24 = vpop.f32.mrf.mxu1 }
 0x22f   :  { %v2510_v1 = vadd.f32 %v2509_v51, %v2281_v45  ;;  %v2055_v5 = vadd.f32 %v2054_v24, %v1826_v49  ;;  %v3643_v45 = vld [vmem:[%s6710_s0 + $0x3d4] sm:$0xf0]  ;;  %v3649_v51 = vld [vmem:[%s6710_s0 + $0x3c8] sm:$0xf] }
 0x230   :  { %v2741_v27 = vpop.f32.mrf.mxu0  ;;  %v3646_v49 = vor.u32 %v4319_v48, %v3643_v45 }
 0x231   :  { %v2739_v38 = vadd.f32 %v2738_v13, %v2510_v1  ;;  %2093 = vmatmul.bf16.gmra.mxu1 %v3606_v33  ;;  %2322 = vmatmul.bf16.gmra.mxu2 %v3610_v18  ;;  %v4322_v33 = vld [vmem:[%s6710_s0 + $0x3d8] sm:$0xf0] }
 0x232   :  { %2551 = vmatmul.bf16.gmra.mxu3 %v3614_v8  ;;  %v3651_v8 = vld [vmem:[%s6710_s0 + $0x3dc] sm:$0xf0] }
 0x233   :  { %2780 = vmatmul.bf16.gmra.mxu0 %v3618_v57  ;;  %v2918_v44 = vmax.f32 %v2739_v38, 0.0  ;;  %v3657_v57 = vld [vmem:[%s6710_s0 + $0x3d0] sm:$0xf] }
 0x234   :  { %v2283_v25 = vpop.f32.mrf.mxu2 }
 0x235   :  { %v4527_v43 = vpack.c.bf16 %v2918_v44, %v2917_v42  ;;  %v2512_v20 = vpop.f32.mrf.mxu3  ;;  %v2284_v7 = vadd.f32 %v2283_v25, %v2055_v5  ;;  %v3650_v42 = vor.u32 %v4322_v33, %v3649_v51  ;;  %v3654_v25 = vor.u32 %v4320_v56, %v3651_v8  ;;  %v3683_v8 = vld [vmem:[%s6710_s0 + $0x424] sm:$0xf0] }
 0x236   :  { %v2056_v53 = vpop.f32.mrf.mxu1 }
 0x237   :  { %4691 = vst [vmem:[%s6711_s3 + $0x68] sm:$0xff] %v4527_v43   ;;  %v2513_v22 = vadd.f32 %v2512_v20, %v2284_v7  ;;  %v2057_v60 = vadd.f32 %v2056_v53, %v1828_v12  ;;  %v3658_v43 = vor.u32 %v4323_v17, %v3657_v57  ;;  %v3689_v57 = vld [vmem:[%s6710_s0 + $0x418] sm:$0xf]  ;;  %v4332_v17 = vld [vmem:[%s6710_s0 + $0x428] sm:$0xf0] }
 0x238   :  { %v2743_v35 = vpop.f32.mrf.mxu0 }
 0x239   :  { %v2742_v30 = vadd.f32 %v2741_v27, %v2513_v22 }
 0x23b   :  { %v2919_v19 = vmax.f32 %v2742_v30, 0.0 }
 0x23c   :  { %v2285_v21 = vpop.f32.mrf.mxu2 }
 0x23d   :  { %v2286_v23 = vadd.f32 %v2285_v21, %v2057_v60  ;;  %v2514_v40 = vpop.f32.mrf.mxu3  ;;  %v3669_v21 = vld [vmem:[%s6710_s0 + $0x3f0] sm:$0xf] }
 0x23e   :  { %v2059_v10 = vpop.f32.mrf.mxu1 }
 0x23f   :  { %v2515_v11 = vadd.f32 %v2514_v40, %v2286_v23  ;;  %v2060_v0 = vadd.f32 %v2059_v10, %v1831_v58  ;;  %v4327_v23 = vld [vmem:[%s6710_s0 + $0x400] sm:$0xf0]  ;;  %v3677_v10 = vld [vmem:[%s6710_s0 + $0x3f8] sm:$0xf] }
 0x240   :  { %v2746_v13 = vpop.f32.mrf.mxu0 }
 0x241   :  { %v2744_v61 = vadd.f32 %v2743_v35, %v2515_v11  ;;  %2098 = vmatmul.bf16.gmra.mxu1 %v3626_v34  ;;  %2327 = vmatmul.bf16.gmra.mxu2 %v3630_v41  ;;  %v1836_v35 = vadd.f32 %v5984_v4, %v5305_v16  ;;  %v4324_v16 = vld [vmem:[%s6710_s0 + $0x3ec] sm:$0xf]  ;;  %v3671_v41 = vld [vmem:[%s6710_s0 + $0x404] sm:$0xf0] }
 0x242   :  { %2556 = vmatmul.bf16.gmra.mxu3 %v3634_v55  ;;  %v4328_v55 = vld [vmem:[%s6710_s0 + $0x408] sm:$0xf0] }
 0x243   :  { %2785 = vmatmul.bf16.gmra.mxu0 %v3638_v3  ;;  %v2920_v52 = vmax.f32 %v2744_v61, 0.0  ;;  %v3670_v61 = vor.u32 %v4327_v23, %v3669_v21 }
 0x244   :  { %v2288_v47 = vpop.f32.mrf.mxu2 }
 0x245   :  { %v4532_v54 = vpack.c.bf16 %v2920_v52, %v2919_v19  ;;  %v2517_v9 = vpop.f32.mrf.mxu3  ;;  %v2289_v46 = vadd.f32 %v2288_v47, %v2060_v0  ;;  %v3674_v19 = vor.u32 %v4325_v32, %v3671_v41  ;;  %v3678_v52 = vor.u32 %v4328_v55, %v3677_v10  ;;  %v4337_v41 = vld [vmem:[%s6710_s0 + $0x450] sm:$0xf0] }
 0x246   :  { %v2061_v39 = vpop.f32.mrf.mxu1  ;;  %v1848_v32 = vadd.f32 %v5984_v4, %v5393_v63  ;;  %v4335_v63 = vld [vmem:[%s6710_s0 + $0x444] sm:$0xf] }
 0x247   :  { %4692 = vst [vmem:[%s6711_s3 + $0x70] sm:$0xff] %v4532_v54   ;;  %v2518_v18 = vadd.f32 %v2517_v9, %v2289_v46  ;;  %v2062_v24 = vadd.f32 %v2061_v39, %v1833_v50  ;;  %v1841_v39 = vadd.f32 %v5984_v4, %v5345_v6  ;;  %v4329_v6 = vld [vmem:[%s6710_s0 + $0x414] sm:$0xf] }
 0x248   :  { %v2748_v29 = vpop.f32.mrf.mxu0 }
 0x249   :  { %v2747_v5 = vadd.f32 %v2746_v13, %v2518_v18  ;;  %v3666_v13 = vor.u32 %v4324_v16, %v3663_v62 }
 0x24b   :  { %v2921_v12 = vmax.f32 %v2747_v5, 0.0  ;;  %v3686_v5 = vor.u32 %v4329_v6, %v3683_v8 }
 0x24c   :  { %v2290_v1 = vpop.f32.mrf.mxu2 }
 0x24d   :  { %v2291_v27 = vadd.f32 %v2290_v1, %v2062_v24  ;;  %v2519_v38 = vpop.f32.mrf.mxu3  ;;  %v1843_v24 = vadd.f32 %v5984_v4, %v5353_v31  ;;  %v4330_v31 = vld [vmem:[%s6710_s0 + $0x41c] sm:$0xf] }
 0x24e   :  { %v2064_v44 = vpop.f32.mrf.mxu1 }
 0x24f   :  { %v2520_v20 = vadd.f32 %v2519_v38, %v2291_v27  ;;  %v2065_v59 = vadd.f32 %v2064_v44, %v1836_v35  ;;  %v3691_v38 = vld [vmem:[%s6710_s0 + $0x42c] sm:$0xf0] }
 0x250   :  { %v2751_v53 = vpop.f32.mrf.mxu0 }
 0x251   :  { %v2749_v7 = vadd.f32 %v2748_v29, %v2520_v20  ;;  %2103 = vmatmul.bf16.gmra.mxu1 %v3646_v49  ;;  %2332 = vmatmul.bf16.gmra.mxu2 %v3650_v42  ;;  %v3697_v49 = vld [vmem:[%s6710_s0 + $0x420] sm:$0xf]  ;;  %v4333_v42 = vld [vmem:[%s6710_s0 + $0x430] sm:$0xf0]  ;;  %v3690_v20 = vor.u32 %v4332_v17, %v3689_v57  ;;  %v6763_v17 = vld [vmem:[#allocation37_spill] sm:$0xff] }
 0x252   :  { %2561 = vmatmul.bf16.gmra.mxu3 %v3654_v25  ;;  %v3698_v35 = vor.u32 %v4333_v42, %v3697_v49  ;;  %v4342_v49 = vld [vmem:[%s6710_s0 + $0x478] sm:$0xf0]  ;;  %v4340_v42 = vld [vmem:[%s6710_s0 + $0x46c] sm:$0xf] }
 0x253   :  { %2790 = vmatmul.bf16.gmra.mxu0 %v3658_v43  ;;  %v2922_v14 = vmax.f32 %v2749_v7, 0.0  ;;  %v3694_v7 = vor.u32 %v4330_v31, %v3691_v38  ;;  %v1853_v31 = vadd.f32 %v5984_v4, %v6763_v17  ;;  %v3729_v38 = vld [vmem:[%s6710_s0 + $0x468] sm:$0xf] }
 0x254   :  { %v2293_v37 = vpop.f32.mrf.mxu2 }
 0x255   :  { %v4537_v2 = vpack.c.bf16 %v2922_v14, %v2921_v12  ;;  %v2522_v26 = vpop.f32.mrf.mxu3  ;;  %v2294_v60 = vadd.f32 %v2293_v37, %v2065_v59  ;;  %v1846_v59 = vadd.f32 %v5984_v4, %v5385_v28  ;;  %v4334_v28 = vld [vmem:[%s6710_s0 + $0x43c] sm:$0xf] }
 0x256   :  { %v2066_v22 = vpop.f32.mrf.mxu1 }
 0x257   :  { %4693 = vst [vmem:[%s6711_s3 + $0x78] sm:$0xff] %v4537_v2   ;;  %v2523_v40 = vadd.f32 %v2522_v26, %v2294_v60  ;;  %v2067_v34 = vadd.f32 %v2066_v22, %v1838_v36 }
 0x258   :  { %v2753_v15 = vpop.f32.mrf.mxu0 }
 0x259   :  { %v2752_v47 = vadd.f32 %v2751_v53, %v2523_v40  ;;  %v3703_v40 = vld [vmem:[%s6710_s0 + $0x44c] sm:$0xf0] }
 0x25b   :  { %v2923_v46 = vmax.f32 %v2752_v47, 0.0 }
 0x25c   :  { %v2295_v3 = vpop.f32.mrf.mxu2 }
 0x25d   :  { %v2296_v30 = vadd.f32 %v2295_v3, %v2067_v34  ;;  %v2524_v11 = vpop.f32.mrf.mxu3  ;;  %v3709_v34 = vld [vmem:[%s6710_s0 + $0x440] sm:$0xf]  ;;  %v3711_v3 = vld [vmem:[%s6710_s0 + $0x454] sm:$0xf0] }
 0x25e   :  { %v2069_v58 = vpop.f32.mrf.mxu1 }
 0x25f   :  { %v2525_v54 = vadd.f32 %v2524_v11, %v2296_v30  ;;  %v2070_v45 = vadd.f32 %v2069_v58, %v1841_v39  ;;  %v3717_v30 = vld [vmem:[%s6710_s0 + $0x448] sm:$0xf]  ;;  %v4338_v11 = vld [vmem:[%s6710_s0 + $0x458] sm:$0xf0] }
 0x260   :  { %v2756_v0 = vpop.f32.mrf.mxu0 }
 0x261   :  { %v2754_v9 = vadd.f32 %v2753_v15, %v2525_v54  ;;  %2108 = vmatmul.bf16.gmra.mxu1 %v3666_v13  ;;  %2337 = vmatmul.bf16.gmra.mxu2 %v3670_v61  ;;  %v3714_v54 = vor.u32 %v4335_v63, %v3711_v3  ;;  %v4344_v3 = vld [vmem:[%s6710_s0 + $0x48c] sm:$0xf] }
 0x262   :  { %2566 = vmatmul.bf16.gmra.mxu3 %v3674_v19  ;;  %v3706_v19 = vor.u32 %v4334_v28, %v3703_v40 }
 0x263   :  { %2795 = vmatmul.bf16.gmra.mxu0 %v3678_v52  ;;  %v2924_v29 = vmax.f32 %v2754_v9, 0.0  ;;  %v3710_v52 = vor.u32 %v4337_v41, %v3709_v34 }
 0x264   :  { %v2298_v50 = vpop.f32.mrf.mxu2 }
 0x265   :  { %v4542_v48 = vpack.c.bf16 %v2924_v29, %v2923_v46  ;;  %v2527_v51 = vpop.f32.mrf.mxu3  ;;  %v2299_v56 = vadd.f32 %v2298_v50, %v2070_v45  ;;  %v6762_v50 = vld [vmem:[#allocation34_spill] sm:$0xff] }
 0x266   :  { %v2071_v33 = vpop.f32.mrf.mxu1 }
 0x267   :  { %4694 = vst [vmem:[%s6711_s3 + $0x80] sm:$0xff] %v4542_v48   ;;  %v2528_v1 = vadd.f32 %v2527_v51, %v2299_v56  ;;  %v2072_v27 = vadd.f32 %v2071_v33, %v1843_v24  ;;  %v1851_v48 = vadd.f32 %v5984_v4, %v6762_v50 }
 0x268   :  { %v2758_v18 = vpop.f32.mrf.mxu0 }
 0x269   :  { %v2757_v12 = vadd.f32 %v2756_v0, %v2528_v1  ;;  %v3718_v0 = vor.u32 %v4338_v11, %v3717_v30  ;;  %v4339_v1 = vld [vmem:[%s6710_s0 + $0x464] sm:$0xf]  ;;  %v3743_v30 = vld [vmem:[%s6710_s0 + $0x49c] sm:$0xf0]  ;;  %v3749_v11 = vld [vmem:[%s6710_s0 + $0x490] sm:$0xf] }
 0x26b   :  { %v2925_v26 = vmax.f32 %v2757_v12, 0.0 }
 0x26c   :  { %v2300_v44 = vpop.f32.mrf.mxu2 }
 0x26d   :  { %v2301_v25 = vadd.f32 %v2300_v44, %v2072_v27  ;;  %v2529_v43 = vpop.f32.mrf.mxu3  ;;  %v3723_v27 = vld [vmem:[%s6710_s0 + $0x474] sm:$0xf0] }
 0x26e   :  { %v2074_v53 = vpop.f32.mrf.mxu1  ;;  %v3726_v12 = vor.u32 %v4339_v1, %v3723_v27 }
 0x26f   :  { %v2530_v14 = vadd.f32 %v2529_v43, %v2301_v25  ;;  %v2075_v36 = vadd.f32 %v2074_v53, %v1846_v59  ;;  %v3731_v43 = vld [vmem:[%s6710_s0 + $0x47c] sm:$0xf0] }
 0x270   :  { %v2761_v37 = vpop.f32.mrf.mxu0 }
 0x271   :  { %v2759_v2 = vadd.f32 %v2758_v18, %v2530_v14  ;;  %2113 = vmatmul.bf16.gmra.mxu1 %v3686_v5  ;;  %2342 = vmatmul.bf16.gmra.mxu2 %v3690_v20  ;;  %v3737_v5 = vld [vmem:[%s6710_s0 + $0x470] sm:$0xf]  ;;  %v4343_v20 = vld [vmem:[%s6710_s0 + $0x480] sm:$0xf0]  ;;  %v3730_v14 = vor.u32 %v4342_v49, %v3729_v38 }
 0x272   :  { %2571 = vmatmul.bf16.gmra.mxu3 %v3694_v7  ;;  %v3738_v59 = vor.u32 %v4343_v20, %v3737_v5  ;;  %v3763_v5 = vld [vmem:[%s6710_s0 + $0x4c4] sm:$0xf0]  ;;  %v3769_v20 = vld [vmem:[%s6710_s0 + $0x4b8] sm:$0xf] }
 0x273   :  { %2800 = vmatmul.bf16.gmra.mxu0 %v3698_v35  ;;  %v2926_v22 = vmax.f32 %v2759_v2, 0.0  ;;  %v3734_v2 = vor.u32 %v4340_v42, %v3731_v43  ;;  %v4349_v43 = vld [vmem:[%s6710_s0 + $0x4b4] sm:$0xf] }
 0x274   :  { %v2303_v60 = vpop.f32.mrf.mxu2 }
 0x275   :  { %v4547_v15 = vpack.c.bf16 %v2926_v22, %v2925_v26  ;;  %v2532_v16 = vpop.f32.mrf.mxu3  ;;  %v2304_v21 = vadd.f32 %v2303_v60, %v2075_v36  ;;  %v6764_v36 = vld [vmem:[#allocation40_spill] sm:$0xff] }
 0x276   :  { %v2076_v62 = vpop.f32.mrf.mxu1 }
 0x277   :  { %4695 = vst [vmem:[%s6711_s3 + $0x88] sm:$0xff] %v4547_v15   ;;  %v2533_v10 = vadd.f32 %v2532_v16, %v2304_v21  ;;  %v2077_v55 = vadd.f32 %v2076_v62, %v1848_v32  ;;  %v1856_v16 = vadd.f32 %v5984_v4, %v6764_v36 }
 0x278   :  { %v2763_v23 = vpop.f32.mrf.mxu0 }
 0x279   :  { %v2762_v9 = vadd.f32 %v2761_v37, %v2533_v10  ;;  %v6765_v10 = vld [vmem:[#allocation43_spill] sm:$0xff] }
 0x27b   :  { %v2927_v45 = vmax.f32 %v2762_v9, 0.0 }
 0x27c   :  { %v2305_v13 = vpop.f32.mrf.mxu2 }
 0x27d   :  { %v2306_v61 = vadd.f32 %v2305_v13, %v2077_v55  ;;  %v2534_v58 = vpop.f32.mrf.mxu3  ;;  %v1858_v55 = vadd.f32 %v5984_v4, %v6765_v10  ;;  %v4347_v13 = vld [vmem:[%s6710_s0 + $0x4a0] sm:$0xf0] }
 0x27e   :  { %v2079_v47 = vpop.f32.mrf.mxu1 }
 0x27f   :  { %v2535_v39 = vadd.f32 %v2534_v58, %v2306_v61  ;;  %v2080_v18 = vadd.f32 %v2079_v47, %v1851_v48  ;;  %v4345_v61 = vld [vmem:[%s6710_s0 + $0x494] sm:$0xf]  ;;  %v3757_v47 = vld [vmem:[%s6710_s0 + $0x498] sm:$0xf] }
 0x280   :  { %v2766_v46 = vpop.f32.mrf.mxu0 }
 0x281   :  { %v2764_v29 = vadd.f32 %v2763_v23, %v2535_v39  ;;  %2118 = vmatmul.bf16.gmra.mxu1 %v3706_v19  ;;  %2347 = vmatmul.bf16.gmra.mxu2 %v3710_v52  ;;  %v3751_v52 = vld [vmem:[%s6710_s0 + $0x4a4] sm:$0xf0] }
 0x282   :  { %2576 = vmatmul.bf16.gmra.mxu3 %v3714_v54  ;;  %v4348_v54 = vld [vmem:[%s6710_s0 + $0x4a8] sm:$0xf0]  ;;  %v3754_v48 = vor.u32 %v4345_v61, %v3751_v52  ;;  %v4354_v52 = vld [vmem:[%s6710_s0 + $0x4dc] sm:$0xf] }
 0x283   :  { %2805 = vmatmul.bf16.gmra.mxu0 %v3718_v0  ;;  %v2928_v51 = vmax.f32 %v2764_v29, 0.0  ;;  %v3750_v29 = vor.u32 %v4347_v13, %v3749_v11 }
 0x284   :  { %v2308_v33 = vpop.f32.mrf.mxu2 }
 0x285   :  { %v4552_v56 = vpack.c.bf16 %v2928_v51, %v2927_v45  ;;  %v2537_v24 = vpop.f32.mrf.mxu3  ;;  %v2309_v8 = vadd.f32 %v2308_v33, %v2080_v18  ;;  %v3758_v45 = vor.u32 %v4348_v54, %v3757_v47  ;;  %v3783_v47 = vld [vmem:[%s6710_s0 + $0x4ec] sm:$0xf0]  ;;  %v3789_v54 = vld [vmem:[%s6710_s0 + $0x4e0] sm:$0xf] }
 0x286   :  { %v2081_v6 = vpop.f32.mrf.mxu1 }
 0x287   :  { %4696 = vst [vmem:[%s6711_s3 + $0x90] sm:$0xff] %v4552_v56   ;;  %v2538_v44 = vadd.f32 %v2537_v24, %v2309_v8  ;;  %v2082_v25 = vadd.f32 %v2081_v6, %v1853_v31  ;;  %v6766_v24 = vld [vmem:[#allocation46_spill] sm:$0xff] }
 0x288   :  { %v2768_v57 = vpop.f32.mrf.mxu0  ;;  %v1861_v6 = vadd.f32 %v5984_v4, %v6766_v24 }
 0x289   :  { %v2767_v26 = vadd.f32 %v2766_v46, %v2538_v44  ;;  %v3746_v46 = vor.u32 %v4344_v3, %v3743_v30  ;;  %v6767_v44 = vld [vmem:[#allocation49_spill] sm:$0xff] }
 0x28b   :  { %v2929_v62 = vmax.f32 %v2767_v26, 0.0 }
 0x28c   :  { %v2310_v53 = vpop.f32.mrf.mxu2 }
 0x28d   :  { %v2311_v7 = vadd.f32 %v2310_v53, %v2082_v25  ;;  %v2539_v35 = vpop.f32.mrf.mxu3  ;;  %v1863_v25 = vadd.f32 %v5984_v4, %v6767_v44  ;;  %v4352_v53 = vld [vmem:[%s6710_s0 + $0x4c8] sm:$0xf0] }
 0x28e   :  { %v2084_v37 = vpop.f32.mrf.mxu1 }
 0x28f   :  { %v2540_v22 = vadd.f32 %v2539_v35, %v2311_v7  ;;  %v2085_v28 = vadd.f32 %v2084_v37, %v1856_v16  ;;  %v4350_v7 = vld [vmem:[%s6710_s0 + $0x4bc] sm:$0xf]  ;;  %v3777_v37 = vld [vmem:[%s6710_s0 + $0x4c0] sm:$0xf] }
 0x290   :  { %v2771_v60 = vpop.f32.mrf.mxu0 }
 0x291   :  { %v2769_v15 = vadd.f32 %v2768_v57, %v2540_v22  ;;  %2123 = vmatmul.bf16.gmra.mxu1 %v3726_v12  ;;  %2352 = vmatmul.bf16.gmra.mxu2 %v3730_v14  ;;  %v3771_v14 = vld [vmem:[%s6710_s0 + $0x4cc] sm:$0xf0] }
 0x292   :  { %2581 = vmatmul.bf16.gmra.mxu3 %v3734_v2  ;;  %v4353_v2 = vld [vmem:[%s6710_s0 + $0x4d0] sm:$0xf0]  ;;  %v3774_v16 = vor.u32 %v4350_v7, %v3771_v14  ;;  %v4359_v14 = vld [vmem:[%s6710_s0 + $0x504] sm:$0xf] }
 0x293   :  { %2810 = vmatmul.bf16.gmra.mxu0 %v3738_v59  ;;  %v2930_v21 = vmax.f32 %v2769_v15, 0.0  ;;  %v3770_v15 = vor.u32 %v4352_v53, %v3769_v20 }
 0x294   :  { %v2313_v23 = vpop.f32.mrf.mxu2 }
 0x295   :  { %v4557_v32 = vpack.c.bf16 %v2930_v21, %v2929_v62  ;;  %v2542_v40 = vpop.f32.mrf.mxu3  ;;  %v2314_v41 = vadd.f32 %v2313_v23, %v2085_v28  ;;  %v3778_v62 = vor.u32 %v4353_v2, %v3777_v37  ;;  %v3803_v37 = vld [vmem:[%s6710_s0 + $0x514] sm:$0xf0]  ;;  %v3809_v2 = vld [vmem:[%s6710_s0 + $0x508] sm:$0xf] }
 0x296   :  { %v2086_v34 = vpop.f32.mrf.mxu1 }
 0x297   :  { %4697 = vst [vmem:[%s6711_s3 + $0x98] sm:$0xff] %v4557_v32   ;;  %v2543_v58 = vadd.f32 %v2542_v40, %v2314_v41  ;;  %v2087_v19 = vadd.f32 %v2086_v34, %v1858_v55  ;;  %v6768_v40 = vld [vmem:[#allocation2_spill] sm:$0xff] }
 0x298   :  { %v2773_v63 = vpop.f32.mrf.mxu0  ;;  %v1866_v34 = vadd.f32 %v5984_v4, %v6768_v40 }
 0x299   :  { %v2772_v51 = vadd.f32 %v2771_v60, %v2543_v58  ;;  %v3766_v60 = vor.u32 %v4349_v43, %v3763_v5  ;;  %v6769_v58 = vld [vmem:[#allocation4_spill] sm:$0xff] }
 0x29b   :  { %v2931_v8 = vmax.f32 %v2772_v51, 0.0 }
 0x29c   :  { %v2315_v0 = vpop.f32.mrf.mxu2 }
 0x29d   :  { %v2316_v9 = vadd.f32 %v2315_v0, %v2087_v19  ;;  %v2544_v39 = vpop.f32.mrf.mxu3  ;;  %v1868_v19 = vadd.f32 %v5984_v4, %v6769_v58  ;;  %v4357_v0 = vld [vmem:[%s6710_s0 + $0x4f0] sm:$0xf0] }
 0x29e   :  { %v2089_v50 = vpop.f32.mrf.mxu1 }
 0x29f   :  { %v2545_v33 = vadd.f32 %v2544_v39, %v2316_v9  ;;  %v2090_v1 = vadd.f32 %v2089_v50, %v1861_v6  ;;  %v4355_v9 = vld [vmem:[%s6710_s0 + $0x4e4] sm:$0xf]  ;;  %v3797_v50 = vld [vmem:[%s6710_s0 + $0x4e8] sm:$0xf] }
 0x2a0   :  { %v2776_v56 = vpop.f32.mrf.mxu0 }
 0x2a1   :  { %v2774_v18 = vadd.f32 %v2773_v63, %v2545_v33  ;;  %2128 = vmatmul.bf16.gmra.mxu1 %v3746_v46  ;;  %2357 = vmatmul.bf16.gmra.mxu2 %v3750_v29  ;;  %v3791_v29 = vld [vmem:[%s6710_s0 + $0x4f4] sm:$0xf0] }
 0x2a2   :  { %2586 = vmatmul.bf16.gmra.mxu3 %v3754_v48  ;;  %v4358_v48 = vld [vmem:[%s6710_s0 + $0x4f8] sm:$0xf0]  ;;  %v3794_v6 = vor.u32 %v4355_v9, %v3791_v29  ;;  %v4364_v29 = vld [vmem:[%s6710_s0 + $0x52c] sm:$0xf] }
 0x2a3   :  { %2815 = vmatmul.bf16.gmra.mxu0 %v3758_v45  ;;  %v2932_v57 = vmax.f32 %v2774_v18, 0.0  ;;  %v3790_v18 = vor.u32 %v4357_v0, %v3789_v54 }
 0x2a4   :  { %v2318_v17 = vpop.f32.mrf.mxu2 }
 0x2a5   :  { %v4562_v31 = vpack.c.bf16 %v2932_v57, %v2931_v8  ;;  %v2547_v27 = vpop.f32.mrf.mxu3  ;;  %v2319_v49 = vadd.f32 %v2318_v17, %v2090_v1  ;;  %v3798_v8 = vor.u32 %v4358_v48, %v3797_v50  ;;  %v3823_v50 = vld [vmem:[%s6710_s0 + $0x53c] sm:$0xf0]  ;;  %v3829_v48 = vld [vmem:[%s6710_s0 + $0x530] sm:$0xf] }
 0x2a6   :  { %v2091_v38 = vpop.f32.mrf.mxu1 }
 0x2a7   :  { %4698 = vst [vmem:[%s6711_s3 + $0xa0] sm:$0xff] %v4562_v31   ;;  %v2548_v35 = vadd.f32 %v2547_v27, %v2319_v49  ;;  %v2092_v12 = vadd.f32 %v2091_v38, %v1863_v25  ;;  %v6770_v27 = vld [vmem:[#allocation6_spill] sm:$0xff] }
 0x2a8   :  { %v2778_v42 = vpop.f32.mrf.mxu0  ;;  %v1871_v38 = vadd.f32 %v5984_v4, %v6770_v27 }
 0x2a9   :  { %v2777_v21 = vadd.f32 %v2776_v56, %v2548_v35  ;;  %v3786_v56 = vor.u32 %v4354_v52, %v3783_v47  ;;  %v6771_v35 = vld [vmem:[#allocation8_spill] sm:$0xff] }
 0x2ab   :  { %v2933_v41 = vmax.f32 %v2777_v21, 0.0 }
 0x2ac   :  { %v2320_v59 = vpop.f32.mrf.mxu2 }
 0x2ad   :  { %v2321_v26 = vadd.f32 %v2320_v59, %v2092_v12  ;;  %v2549_v22 = vpop.f32.mrf.mxu3  ;;  %v1873_v12 = vadd.f32 %v5984_v4, %v6771_v35  ;;  %v4362_v59 = vld [vmem:[%s6710_s0 + $0x518] sm:$0xf0] }
 0x2ae   :  { %v2094_v36 = vpop.f32.mrf.mxu1 }
 0x2af   :  { %v2550_v23 = vadd.f32 %v2549_v22, %v2321_v26  ;;  %v2095_v3 = vadd.f32 %v2094_v36, %v1866_v34  ;;  %v4360_v26 = vld [vmem:[%s6710_s0 + $0x50c] sm:$0xf]  ;;  %v3817_v36 = vld [vmem:[%s6710_s0 + $0x510] sm:$0xf] }
 0x2b0   :  { %v2781_v32 = vpop.f32.mrf.mxu0 }
 0x2b1   :  { %v2779_v28 = vadd.f32 %v2778_v42, %v2550_v23  ;;  %2133 = vmatmul.bf16.gmra.mxu1 %v3766_v60  ;;  %2362 = vmatmul.bf16.gmra.mxu2 %v3770_v15  ;;  %v3811_v15 = vld [vmem:[%s6710_s0 + $0x51c] sm:$0xf0] }
 0x2b2   :  { %2591 = vmatmul.bf16.gmra.mxu3 %v3774_v16  ;;  %v4363_v16 = vld [vmem:[%s6710_s0 + $0x520] sm:$0xf0]  ;;  %v3814_v34 = vor.u32 %v4360_v26, %v3811_v15  ;;  %v4369_v15 = vld [vmem:[%s6710_s0 + $0x554] sm:$0xf] }
 0x2b3   :  { %2820 = vmatmul.bf16.gmra.mxu0 %v3778_v62  ;;  %v2934_v63 = vmax.f32 %v2779_v28, 0.0  ;;  %v3810_v28 = vor.u32 %v4362_v59, %v3809_v2 }
 0x2b4   :  { %v2323_v10 = vpop.f32.mrf.mxu2 }
 0x2b5   :  { %v4567_v55 = vpack.c.bf16 %v2934_v63, %v2933_v41  ;;  %v2552_v30 = vpop.f32.mrf.mxu3  ;;  %v2324_v13 = vadd.f32 %v2323_v10, %v2095_v3  ;;  %v3818_v41 = vor.u32 %v4363_v16, %v3817_v36  ;;  %v3843_v36 = vld [vmem:[%s6710_s0 + $0x564] sm:$0xf0]  ;;  %v3849_v16 = vld [vmem:[%s6710_s0 + $0x558] sm:$0xf] }
 0x2b6   :  { %v2096_v11 = vpop.f32.mrf.mxu1 }
 0x2b7   :  { %4699 = vst [vmem:[%s6711_s3 + $0xa8] sm:$0xff] %v4567_v55   ;;  %v2553_v39 = vadd.f32 %v2552_v30, %v2324_v13  ;;  %v2097_v46 = vadd.f32 %v2096_v11, %v1868_v19  ;;  %v6772_v30 = vld [vmem:[#allocation10_spill] sm:$0xff] }
 0x2b8   :  { %v2783_v61 = vpop.f32.mrf.mxu0  ;;  %v1876_v11 = vadd.f32 %v5984_v4, %v6772_v30 }
 0x2b9   :  { %v2782_v57 = vadd.f32 %v2781_v32, %v2553_v39  ;;  %v3806_v32 = vor.u32 %v4359_v14, %v3803_v37  ;;  %v6773_v39 = vld [vmem:[#allocation12_spill] sm:$0xff] }
 0x2bb   :  { %v2935_v49 = vmax.f32 %v2782_v57, 0.0 }
 0x2bc   :  { %v2325_v45 = vpop.f32.mrf.mxu2 }
 0x2bd   :  { %v2326_v51 = vadd.f32 %v2325_v45, %v2097_v46  ;;  %v2554_v33 = vpop.f32.mrf.mxu3  ;;  %v1878_v46 = vadd.f32 %v5984_v4, %v6773_v39  ;;  %v4367_v45 = vld [vmem:[%s6710_s0 + $0x540] sm:$0xf0] }
 0x2be   :  { %v2099_v24 = vpop.f32.mrf.mxu1 }
 0x2bf   :  { %v2555_v17 = vadd.f32 %v2554_v33, %v2326_v51  ;;  %v2100_v43 = vadd.f32 %v2099_v24, %v1871_v38  ;;  %v4365_v51 = vld [vmem:[%s6710_s0 + $0x534] sm:$0xf]  ;;  %v3837_v24 = vld [vmem:[%s6710_s0 + $0x538] sm:$0xf] }
 0x2c0   :  { %v2786_v31 = vpop.f32.mrf.mxu0 }
 0x2c1   :  { %v2784_v1 = vadd.f32 %v2783_v61, %v2555_v17  ;;  %2138 = vmatmul.bf16.gmra.mxu1 %v3786_v56  ;;  %2367 = vmatmul.bf16.gmra.mxu2 %v3790_v18  ;;  %v3831_v18 = vld [vmem:[%s6710_s0 + $0x544] sm:$0xf0] }
 0x2c2   :  { %2596 = vmatmul.bf16.gmra.mxu3 %v3794_v6  ;;  %v4368_v6 = vld [vmem:[%s6710_s0 + $0x548] sm:$0xf0]  ;;  %v3834_v38 = vor.u32 %v4365_v51, %v3831_v18  ;;  %v4374_v18 = vld [vmem:[%s6710_s0 + $0x57c] sm:$0xf] }
 0x2c3   :  { %2825 = vmatmul.bf16.gmra.mxu0 %v3798_v8  ;;  %v2936_v42 = vmax.f32 %v2784_v1, 0.0  ;;  %v3830_v1 = vor.u32 %v4367_v45, %v3829_v48 }
 0x2c4   :  { %v2328_v44 = vpop.f32.mrf.mxu2 }
 0x2c5   :  { %v4572_v25 = vpack.c.bf16 %v2936_v42, %v2935_v49  ;;  %v2557_v5 = vpop.f32.mrf.mxu3  ;;  %v2329_v53 = vadd.f32 %v2328_v44, %v2100_v43  ;;  %v3838_v49 = vor.u32 %v4368_v6, %v3837_v24  ;;  %v3863_v24 = vld [vmem:[%s6710_s0 + $0x58c] sm:$0xf0]  ;;  %v3869_v6 = vld [vmem:[%s6710_s0 + $0x580] sm:$0xf] }
 0x2c6   :  { %v2101_v20 = vpop.f32.mrf.mxu1 }
 0x2c7   :  { %4700 = vst [vmem:[%s6711_s3 + $0xb0] sm:$0xff] %v4572_v25   ;;  %v2558_v22 = vadd.f32 %v2557_v5, %v2329_v53  ;;  %v2102_v60 = vadd.f32 %v2101_v20, %v1873_v12  ;;  %v6774_v5 = vld [vmem:[#allocation14_spill] sm:$0xff] }
 0x2c8   :  { %v2788_v7 = vpop.f32.mrf.mxu0  ;;  %v1881_v20 = vadd.f32 %v5984_v4, %v6774_v5 }
 0x2c9   :  { %v2787_v63 = vadd.f32 %v2786_v31, %v2558_v22  ;;  %v3826_v31 = vor.u32 %v4364_v29, %v3823_v50  ;;  %v6775_v22 = vld [vmem:[#allocation16_spill] sm:$0xff] }
 0x2cb   :  { %v2937_v13 = vmax.f32 %v2787_v63, 0.0 }
 0x2cc   :  { %v2330_v62 = vpop.f32.mrf.mxu2 }
 0x2cd   :  { %v2331_v21 = vadd.f32 %v2330_v62, %v2102_v60  ;;  %v2559_v23 = vpop.f32.mrf.mxu3  ;;  %v1883_v60 = vadd.f32 %v5984_v4, %v6775_v22  ;;  %v4372_v62 = vld [vmem:[%s6710_s0 + $0x568] sm:$0xf0] }
 0x2ce   :  { %v2104_v40 = vpop.f32.mrf.mxu1 }
 0x2cf   :  { %v2560_v10 = vadd.f32 %v2559_v23, %v2331_v21  ;;  %v2105_v52 = vadd.f32 %v2104_v40, %v1876_v11  ;;  %v4370_v21 = vld [vmem:[%s6710_s0 + $0x55c] sm:$0xf]  ;;  %v3857_v40 = vld [vmem:[%s6710_s0 + $0x560] sm:$0xf] }
 0x2d0   :  { %v2791_v55 = vpop.f32.mrf.mxu0 }
 0x2d1   :  { %v2789_v3 = vadd.f32 %v2788_v7, %v2560_v10  ;;  %2143 = vmatmul.bf16.gmra.mxu1 %v3806_v32  ;;  %2372 = vmatmul.bf16.gmra.mxu2 %v3810_v28  ;;  %v3851_v28 = vld [vmem:[%s6710_s0 + $0x56c] sm:$0xf0] }
 0x2d2   :  { %2601 = vmatmul.bf16.gmra.mxu3 %v3814_v34  ;;  %v4373_v34 = vld [vmem:[%s6710_s0 + $0x570] sm:$0xf0]  ;;  %v3854_v11 = vor.u32 %v4370_v21, %v3851_v28  ;;  %v4379_v28 = vld [vmem:[%s6710_s0 + $0x5a4] sm:$0xf] }
 0x2d3   :  { %2830 = vmatmul.bf16.gmra.mxu0 %v3818_v41  ;;  %v2938_v61 = vmax.f32 %v2789_v3, 0.0  ;;  %v3850_v3 = vor.u32 %v4372_v62, %v3849_v16 }
 0x2d4   :  { %v2333_v58 = vpop.f32.mrf.mxu2 }
 0x2d5   :  { %v4577_v19 = vpack.c.bf16 %v2938_v61, %v2937_v13  ;;  %v2562_v47 = vpop.f32.mrf.mxu3  ;;  %v2334_v0 = vadd.f32 %v2333_v58, %v2105_v52  ;;  %v3858_v13 = vor.u32 %v4373_v34, %v3857_v40  ;;  %v3883_v40 = vld [vmem:[%s6710_s0 + $0x5b4] sm:$0xf0]  ;;  %v3889_v34 = vld [vmem:[%s6710_s0 + $0x5a8] sm:$0xf] }
 0x2d6   :  { %v2106_v54 = vpop.f32.mrf.mxu1 }
 0x2d7   :  { %4701 = vst [vmem:[%s6711_s3 + $0xb8] sm:$0xff] %v4577_v19   ;;  %v2563_v33 = vadd.f32 %v2562_v47, %v2334_v0  ;;  %v2107_v56 = vadd.f32 %v2106_v54, %v1878_v46  ;;  %v6776_v47 = vld [vmem:[#allocation18_spill] sm:$0xff] }
 0x2d8   :  { %v2793_v9 = vpop.f32.mrf.mxu0  ;;  %v1886_v54 = vadd.f32 %v5984_v4, %v6776_v47 }
 0x2d9   :  { %v2792_v42 = vadd.f32 %v2791_v55, %v2563_v33  ;;  %v3846_v55 = vor.u32 %v4369_v15, %v3843_v36  ;;  %v6777_v33 = vld [vmem:[#allocation20_spill] sm:$0xff] }
 0x2db   :  { %v2939_v53 = vmax.f32 %v2792_v42, 0.0 }
 0x2dc   :  { %v2335_v8 = vpop.f32.mrf.mxu2 }
 0x2dd   :  { %v2336_v57 = vadd.f32 %v2335_v8, %v2107_v56  ;;  %v2564_v17 = vpop.f32.mrf.mxu3  ;;  %v1888_v56 = vadd.f32 %v5984_v4, %v6777_v33  ;;  %v4377_v8 = vld [vmem:[%s6710_s0 + $0x590] sm:$0xf0] }
 0x2de   :  { %v2109_v27 = vpop.f32.mrf.mxu1 }
 0x2df   :  { %v2565_v44 = vadd.f32 %v2564_v17, %v2336_v57  ;;  %v2110_v14 = vadd.f32 %v2109_v27, %v1881_v20  ;;  %v4375_v57 = vld [vmem:[%s6710_s0 + $0x584] sm:$0xf]  ;;  %v3877_v27 = vld [vmem:[%s6710_s0 + $0x588] sm:$0xf] }
 0x2e0   :  { %v2796_v25 = vpop.f32.mrf.mxu0 }
 0x2e1   :  { %v2794_v43 = vadd.f32 %v2793_v9, %v2565_v44  ;;  %2148 = vmatmul.bf16.gmra.mxu1 %v3826_v31  ;;  %2377 = vmatmul.bf16.gmra.mxu2 %v3830_v1  ;;  %v3871_v1 = vld [vmem:[%s6710_s0 + $0x594] sm:$0xf0] }
 0x2e2   :  { %2606 = vmatmul.bf16.gmra.mxu3 %v3834_v38  ;;  %v4378_v38 = vld [vmem:[%s6710_s0 + $0x598] sm:$0xf0]  ;;  %v3874_v20 = vor.u32 %v4375_v57, %v3871_v1  ;;  %v4384_v1 = vld [vmem:[%s6710_s0 + $0x5cc] sm:$0xf] }
 0x2e3   :  { %2835 = vmatmul.bf16.gmra.mxu0 %v3838_v49  ;;  %v2940_v7 = vmax.f32 %v2794_v43, 0.0  ;;  %v3870_v43 = vor.u32 %v4377_v8, %v3869_v6 }
 0x2e4   :  { %v2338_v35 = vpop.f32.mrf.mxu2 }
 0x2e5   :  { %v4582_v12 = vpack.c.bf16 %v2940_v7, %v2939_v53  ;;  %v2567_v37 = vpop.f32.mrf.mxu3  ;;  %v2339_v59 = vadd.f32 %v2338_v35, %v2110_v14  ;;  %v3878_v53 = vor.u32 %v4378_v38, %v3877_v27  ;;  %v3903_v27 = vld [vmem:[%s6710_s0 + $0x5dc] sm:$0xf0]  ;;  %v3909_v38 = vld [vmem:[%s6710_s0 + $0x5d0] sm:$0xf] }
 0x2e6   :  { %v2111_v2 = vpop.f32.mrf.mxu1 }
 0x2e7   :  { %4702 = vst [vmem:[%s6711_s3 + $0xc0] sm:$0xff] %v4582_v12   ;;  %v2568_v23 = vadd.f32 %v2567_v37, %v2339_v59  ;;  %v2112_v32 = vadd.f32 %v2111_v2, %v1883_v60  ;;  %v6778_v37 = vld [vmem:[#allocation22_spill] sm:$0xff] }
 0x2e8   :  { %v2798_v26 = vpop.f32.mrf.mxu0  ;;  %v1891_v2 = vadd.f32 %v5984_v4, %v6778_v37 }
 0x2e9   :  { %v2797_v61 = vadd.f32 %v2796_v25, %v2568_v23  ;;  %v3866_v25 = vor.u32 %v4374_v18, %v3863_v24  ;;  %v6779_v23 = vld [vmem:[#allocation24_spill] sm:$0xff] }
 0x2eb   :  { %v2941_v0 = vmax.f32 %v2797_v61, 0.0 }
 0x2ec   :  { %v2340_v41 = vpop.f32.mrf.mxu2 }
 0x2ed   :  { %v2341_v63 = vadd.f32 %v2340_v41, %v2112_v32  ;;  %v2569_v10 = vpop.f32.mrf.mxu3  ;;  %v1893_v32 = vadd.f32 %v5984_v4, %v6779_v23  ;;  %v4382_v41 = vld [vmem:[%s6710_s0 + $0x5b8] sm:$0xf0]  ;;  %v4380_v4 = vld [vmem:[%s6710_s0 + $0x5ac] sm:$0xf] }
 0x2ee   :  { %v2114_v30 = vpop.f32.mrf.mxu1 }
 0x2ef   :  { %v2570_v58 = vadd.f32 %v2569_v10, %v2341_v63  ;;  %v2115_v29 = vadd.f32 %v2114_v30, %v1886_v54  ;;  %v4383_v30 = vld [vmem:[%s6710_s0 + $0x5c0] sm:$0xf0] }
 0x2f0   :  { %v2801_v19 = vpop.f32.mrf.mxu0 }
 0x2f1   :  { %v2799_v52 = vadd.f32 %v2798_v26, %v2570_v58  ;;  %2153 = vmatmul.bf16.gmra.mxu1 %v3846_v55  ;;  %2382 = vmatmul.bf16.gmra.mxu2 %v3850_v3  ;;  %v3891_v55 = vld [vmem:[%s6710_s0 + $0x5bc] sm:$0xf0]  ;;  %v3897_v3 = vld [vmem:[%s6710_s0 + $0x5b0] sm:$0xf]  ;;  %v3886_v58 = vor.u32 %v4379_v28, %v3883_v40 }
 0x2f2   :  { %2611 = vmatmul.bf16.gmra.mxu3 %v3854_v11  ;;  %v3894_v47 = vor.u32 %v4380_v4, %v3891_v55  ;;  %v3898_v54 = vor.u32 %v4383_v30, %v3897_v3  ;;  %v4389_v55 = vld [vmem:[%s6710_s0 + $0x5f4] sm:$0xf]  ;;  %v3923_v3 = vld [vmem:[%s6710_s0 + $0x604] sm:$0xf0]  ;;  %v3929_v30 = vld [vmem:[%s6710_s0 + $0x5f8] sm:$0xf] }
 0x2f3   :  { %2840 = vmatmul.bf16.gmra.mxu0 %v3858_v13  ;;  %v2942_v9 = vmax.f32 %v2799_v52, 0.0 }
 0x2f4   :  { %v2343_v39 = vpop.f32.mrf.mxu2 }
 0x2f5   :  { %v4587_v46 = vpack.c.bf16 %v2942_v9, %v2941_v0  ;;  %v2572_v50 = vpop.f32.mrf.mxu3  ;;  %v2344_v45 = vadd.f32 %v2343_v39, %v2115_v29  ;;  %v6423_v29 = vld [vmem:[%s6709_s2] ss:$0 sm:$0xff] }
 0x2f6   :  { %v2116_v48 = vpop.f32.mrf.mxu1 }
 0x2f7   :  { %4703 = vst [vmem:[%s6711_s3 + $0xc8] sm:$0xff] %v4587_v46   ;;  %v2573_v17 = vadd.f32 %v2572_v50, %v2344_v45  ;;  %v2117_v31 = vadd.f32 %v2116_v48, %v1888_v56  ;;  %v6780_v50 = vld [vmem:[#allocation26_spill] sm:$0xff] }
 0x2f8   :  { %v2803_v51 = vpop.f32.mrf.mxu0  ;;  %v1896_v48 = vadd.f32 %v6423_v29, %v6780_v50 }
 0x2f9   :  { %v2802_v7 = vadd.f32 %v2801_v19, %v2573_v17  ;;  %v3890_v19 = vor.u32 %v4382_v41, %v3889_v34  ;;  %v6781_v17 = vld [vmem:[#allocation28_spill] sm:$0xff] }
 0x2fb   :  { %v2943_v59 = vmax.f32 %v2802_v7, 0.0 }
 0x2fc   :  { %v2345_v49 = vpop.f32.mrf.mxu2 }
 0x2fd   :  { %v2346_v42 = vadd.f32 %v2345_v49, %v2117_v31  ;;  %v2574_v44 = vpop.f32.mrf.mxu3  ;;  %v1898_v31 = vadd.f32 %v6423_v29, %v6781_v17  ;;  %v4387_v49 = vld [vmem:[%s6710_s0 + $0x5e0] sm:$0xf0] }
 0x2fe   :  { %v2119_v5 = vpop.f32.mrf.mxu1 }
 0x2ff   :  { %v2575_v35 = vadd.f32 %v2574_v44, %v2346_v42  ;;  %v2120_v15 = vadd.f32 %v2119_v5, %v1891_v2  ;;  %v4385_v42 = vld [vmem:[%s6710_s0 + $0x5d4] sm:$0xf]  ;;  %v3917_v5 = vld [vmem:[%s6710_s0 + $0x5d8] sm:$0xf] }
 0x300   :  { %v2806_v12 = vpop.f32.mrf.mxu0 }
 0x301   :  { %v2804_v14 = vadd.f32 %v2803_v51, %v2575_v35  ;;  %2158 = vmatmul.bf16.gmra.mxu1 %v3866_v25  ;;  %2387 = vmatmul.bf16.gmra.mxu2 %v3870_v43  ;;  %v3911_v43 = vld [vmem:[%s6710_s0 + $0x5e4] sm:$0xf0] }
 0x302   :  { %2616 = vmatmul.bf16.gmra.mxu3 %v3874_v20  ;;  %v4388_v20 = vld [vmem:[%s6710_s0 + $0x5e8] sm:$0xf0]  ;;  %v3914_v2 = vor.u32 %v4385_v42, %v3911_v43  ;;  %v4394_v43 = vld [vmem:[%s6710_s0 + $0x61c] sm:$0xf] }
 0x303   :  { %2845 = vmatmul.bf16.gmra.mxu0 %v3878_v53  ;;  %v2944_v26 = vmax.f32 %v2804_v14, 0.0  ;;  %v3910_v14 = vor.u32 %v4387_v49, %v3909_v38 }
 0x304   :  { %v2348_v22 = vpop.f32.mrf.mxu2 }
 0x305   :  { %v4592_v60 = vpack.c.bf16 %v2944_v26, %v2943_v59  ;;  %v2577_v36 = vpop.f32.mrf.mxu3  ;;  %v2349_v62 = vadd.f32 %v2348_v22, %v2120_v15  ;;  %v3918_v59 = vor.u32 %v4388_v20, %v3917_v5  ;;  %v3943_v5 = vld [vmem:[%s6710_s0 + $0x62c] sm:$0xf0]  ;;  %v3949_v20 = vld [vmem:[%s6710_s0 + $0x620] sm:$0xf] }
 0x306   :  { %v2121_v16 = vpop.f32.mrf.mxu1 }
 0x307   :  { %4704 = vst [vmem:[%s6711_s3 + $0xd0] sm:$0xff] %v4592_v60   ;;  %v2578_v63 = vadd.f32 %v2577_v36, %v2349_v62  ;;  %v2122_v10 = vadd.f32 %v2121_v16, %v1893_v32  ;;  %v6782_v36 = vld [vmem:[#allocation30_spill] sm:$0xff] }
 0x308   :  { %v2808_v21 = vpop.f32.mrf.mxu0  ;;  %v1901_v16 = vadd.f32 %v6423_v29, %v6782_v36 }
 0x309   :  { %v2807_v0 = vadd.f32 %v2806_v12, %v2578_v63  ;;  %v3906_v12 = vor.u32 %v4384_v1, %v3903_v27  ;;  %v6783_v63 = vld [vmem:[#allocation32_spill] sm:$0xff] }
 0x30b   :  { %v2945_v45 = vmax.f32 %v2807_v0, 0.0 }
 0x30c   :  { %v2350_v11 = vpop.f32.mrf.mxu2 }
 0x30d   :  { %v2351_v13 = vadd.f32 %v2350_v11, %v2122_v10  ;;  %v2579_v61 = vpop.f32.mrf.mxu3  ;;  %v1903_v10 = vadd.f32 %v6423_v29, %v6783_v63  ;;  %v4392_v11 = vld [vmem:[%s6710_s0 + $0x608] sm:$0xf0] }
 0x30e   :  { %v2124_v52 = vpop.f32.mrf.mxu1 }
 0x30f   :  { %v2580_v9 = vadd.f32 %v2579_v61, %v2351_v13  ;;  %v2125_v18 = vadd.f32 %v2124_v52, %v1896_v48  ;;  %v4390_v13 = vld [vmem:[%s6710_s0 + $0x5fc] sm:$0xf]  ;;  %v3937_v52 = vld [vmem:[%s6710_s0 + $0x600] sm:$0xf] }
 0x310   :  { %v2811_v39 = vpop.f32.mrf.mxu0 }
 0x311   :  { %v2809_v46 = vadd.f32 %v2808_v21, %v2580_v9  ;;  %2163 = vmatmul.bf16.gmra.mxu1 %v3886_v58  ;;  %2392 = vmatmul.bf16.gmra.mxu2 %v3890_v19  ;;  %v3931_v19 = vld [vmem:[%s6710_s0 + $0x60c] sm:$0xf0] }
 0x312   :  { %2621 = vmatmul.bf16.gmra.mxu3 %v3894_v47  ;;  %v4393_v47 = vld [vmem:[%s6710_s0 + $0x610] sm:$0xf0]  ;;  %v3934_v48 = vor.u32 %v4390_v13, %v3931_v19  ;;  %v4399_v19 = vld [vmem:[%s6710_s0 + $0x644] sm:$0xf] }
 0x313   :  { %2850 = vmatmul.bf16.gmra.mxu0 %v3898_v54  ;;  %v2946_v51 = vmax.f32 %v2809_v46, 0.0  ;;  %v3930_v46 = vor.u32 %v4392_v11, %v3929_v30 }
 0x314   :  { %v2353_v33 = vpop.f32.mrf.mxu2 }
 0x315   :  { %v4597_v56 = vpack.c.bf16 %v2946_v51, %v2945_v45  ;;  %v2582_v24 = vpop.f32.mrf.mxu3  ;;  %v2354_v8 = vadd.f32 %v2353_v33, %v2125_v18  ;;  %v3938_v45 = vor.u32 %v4393_v47, %v3937_v52  ;;  %v3963_v52 = vld [vmem:[%s6710_s0 + $0x654] sm:$0xf0]  ;;  %v3969_v47 = vld [vmem:[%s6710_s0 + $0x648] sm:$0xf] }
 0x316   :  { %v2126_v6 = vpop.f32.mrf.mxu1 }
 0x317   :  { %4705 = vst [vmem:[%s6711_s3 + $0xd8] sm:$0xff] %v4597_v56   ;;  %v2583_v44 = vadd.f32 %v2582_v24, %v2354_v8  ;;  %v2127_v25 = vadd.f32 %v2126_v6, %v1898_v31  ;;  %v6784_v24 = vld [vmem:[#allocation35_spill] sm:$0xff] }
 0x318   :  { %v2813_v57 = vpop.f32.mrf.mxu0  ;;  %v1906_v6 = vadd.f32 %v6423_v29, %v6784_v24 }
 0x319   :  { %v2812_v26 = vadd.f32 %v2811_v39, %v2583_v44  ;;  %v3926_v39 = vor.u32 %v4389_v55, %v3923_v3  ;;  %v6785_v44 = vld [vmem:[#allocation38_spill] sm:$0xff] }
 0x31b   :  { %v2947_v62 = vmax.f32 %v2812_v26, 0.0 }
 0x31c   :  { %v2355_v53 = vpop.f32.mrf.mxu2 }
 0x31d   :  { %v2356_v7 = vadd.f32 %v2355_v53, %v2127_v25  ;;  %v2584_v35 = vpop.f32.mrf.mxu3  ;;  %v1908_v25 = vadd.f32 %v6423_v29, %v6785_v44  ;;  %v4397_v53 = vld [vmem:[%s6710_s0 + $0x630] sm:$0xf0] }
 0x31e   :  { %v2129_v37 = vpop.f32.mrf.mxu1 }
 0x31f   :  { %v2585_v22 = vadd.f32 %v2584_v35, %v2356_v7  ;;  %v2130_v28 = vadd.f32 %v2129_v37, %v1901_v16  ;;  %v4395_v7 = vld [vmem:[%s6710_s0 + $0x624] sm:$0xf]  ;;  %v3957_v37 = vld [vmem:[%s6710_s0 + $0x628] sm:$0xf] }
 0x320   :  { %v2816_v60 = vpop.f32.mrf.mxu0 }
 0x321   :  { %v2814_v15 = vadd.f32 %v2813_v57, %v2585_v22  ;;  %2168 = vmatmul.bf16.gmra.mxu1 %v3906_v12  ;;  %2397 = vmatmul.bf16.gmra.mxu2 %v3910_v14  ;;  %v3951_v14 = vld [vmem:[%s6710_s0 + $0x634] sm:$0xf0] }
 0x322   :  { %2626 = vmatmul.bf16.gmra.mxu3 %v3914_v2  ;;  %v4398_v2 = vld [vmem:[%s6710_s0 + $0x638] sm:$0xf0]  ;;  %v3954_v16 = vor.u32 %v4395_v7, %v3951_v14  ;;  %v4404_v14 = vld [vmem:[%s6710_s0 + $0x66c] sm:$0xf] }
 0x323   :  { %2855 = vmatmul.bf16.gmra.mxu0 %v3918_v59  ;;  %v2948_v21 = vmax.f32 %v2814_v15, 0.0  ;;  %v3950_v15 = vor.u32 %v4397_v53, %v3949_v20 }
 0x324   :  { %v2358_v23 = vpop.f32.mrf.mxu2 }
 0x325   :  { %v4602_v32 = vpack.c.bf16 %v2948_v21, %v2947_v62  ;;  %v2587_v40 = vpop.f32.mrf.mxu3  ;;  %v2359_v41 = vadd.f32 %v2358_v23, %v2130_v28  ;;  %v3958_v62 = vor.u32 %v4398_v2, %v3957_v37  ;;  %v3983_v37 = vld [vmem:[%s6710_s0 + $0x67c] sm:$0xf0]  ;;  %v3989_v2 = vld [vmem:[%s6710_s0 + $0x670] sm:$0xf] }
 0x326   :  { %v2131_v34 = vpop.f32.mrf.mxu1 }
 0x327   :  { %4706 = vst [vmem:[%s6711_s3 + $0xe0] sm:$0xff] %v4602_v32   ;;  %v2588_v61 = vadd.f32 %v2587_v40, %v2359_v41  ;;  %v2132_v58 = vadd.f32 %v2131_v34, %v1903_v10  ;;  %v6786_v40 = vld [vmem:[#allocation41_spill] sm:$0xff] }
 0x328   :  { %v2818_v4 = vpop.f32.mrf.mxu0  ;;  %v1911_v34 = vadd.f32 %v6423_v29, %v6786_v40 }
 0x329   :  { %v2817_v51 = vadd.f32 %v2816_v60, %v2588_v61  ;;  %v3946_v60 = vor.u32 %v4394_v43, %v3943_v5  ;;  %v6787_v61 = vld [vmem:[#allocation44_spill] sm:$0xff] }
 0x32b   :  { %v2949_v8 = vmax.f32 %v2817_v51, 0.0 }
 0x32c   :  { %v2360_v54 = vpop.f32.mrf.mxu2 }
 0x32d   :  { %v2361_v0 = vadd.f32 %v2360_v54, %v2132_v58  ;;  %v2589_v9 = vpop.f32.mrf.mxu3  ;;  %v1913_v58 = vadd.f32 %v6423_v29, %v6787_v61  ;;  %v4402_v54 = vld [vmem:[%s6710_s0 + $0x658] sm:$0xf0] }
 0x32e   :  { %v2134_v50 = vpop.f32.mrf.mxu1 }
 0x32f   :  { %v2590_v33 = vadd.f32 %v2589_v9, %v2361_v0  ;;  %v2135_v1 = vadd.f32 %v2134_v50, %v1906_v6  ;;  %v4400_v0 = vld [vmem:[%s6710_s0 + $0x64c] sm:$0xf]  ;;  %v3977_v50 = vld [vmem:[%s6710_s0 + $0x650] sm:$0xf] }
 0x330   :  { %v2821_v56 = vpop.f32.mrf.mxu0 }
 0x331   :  { %v2819_v18 = vadd.f32 %v2818_v4, %v2590_v33  ;;  %2173 = vmatmul.bf16.gmra.mxu1 %v3926_v39  ;;  %2402 = vmatmul.bf16.gmra.mxu2 %v3930_v46  ;;  %v3971_v46 = vld [vmem:[%s6710_s0 + $0x65c] sm:$0xf0] }
 0x332   :  { %2631 = vmatmul.bf16.gmra.mxu3 %v3934_v48  ;;  %v4403_v48 = vld [vmem:[%s6710_s0 + $0x660] sm:$0xf0]  ;;  %v3974_v6 = vor.u32 %v4400_v0, %v3971_v46  ;;  %v4409_v46 = vld [vmem:[%s6710_s0 + $0x694] sm:$0xf] }
 0x333   :  { %2860 = vmatmul.bf16.gmra.mxu0 %v3938_v45  ;;  %v2950_v57 = vmax.f32 %v2819_v18, 0.0  ;;  %v3970_v18 = vor.u32 %v4402_v54, %v3969_v47 }
 0x334   :  { %v2363_v17 = vpop.f32.mrf.mxu2 }
 0x335   :  { %v4607_v31 = vpack.c.bf16 %v2950_v57, %v2949_v8  ;;  %v2592_v27 = vpop.f32.mrf.mxu3  ;;  %v2364_v49 = vadd.f32 %v2363_v17, %v2135_v1  ;;  %v3978_v8 = vor.u32 %v4403_v48, %v3977_v50  ;;  %v4003_v50 = vld [vmem:[%s6710_s0 + $0x6a4] sm:$0xf0]  ;;  %v4009_v48 = vld [vmem:[%s6710_s0 + $0x698] sm:$0xf] }
 0x336   :  { %v2136_v38 = vpop.f32.mrf.mxu1 }
 0x337   :  { %4707 = vst [vmem:[%s6711_s3 + $0xe8] sm:$0xff] %v4607_v31   ;;  %v2593_v35 = vadd.f32 %v2592_v27, %v2364_v49  ;;  %v2137_v12 = vadd.f32 %v2136_v38, %v1908_v25  ;;  %v6788_v27 = vld [vmem:[#allocation47_spill] sm:$0xff] }
 0x338   :  { %v2823_v42 = vpop.f32.mrf.mxu0  ;;  %v1916_v38 = vadd.f32 %v6423_v29, %v6788_v27 }
 0x339   :  { %v2822_v21 = vadd.f32 %v2821_v56, %v2593_v35  ;;  %v3966_v56 = vor.u32 %v4399_v19, %v3963_v52  ;;  %v6789_v35 = vld [vmem:[#allocation50_spill] sm:$0xff] }
 0x33b   :  { %v2951_v41 = vmax.f32 %v2822_v21, 0.0 }
 0x33c   :  { %v2365_v59 = vpop.f32.mrf.mxu2 }
 0x33d   :  { %v2366_v26 = vadd.f32 %v2365_v59, %v2137_v12  ;;  %v2594_v22 = vpop.f32.mrf.mxu3  ;;  %v1918_v12 = vadd.f32 %v6423_v29, %v6789_v35  ;;  %v4407_v59 = vld [vmem:[%s6710_s0 + $0x680] sm:$0xf0] }
 0x33e   :  { %v2139_v36 = vpop.f32.mrf.mxu1 }
 0x33f   :  { %v2595_v23 = vadd.f32 %v2594_v22, %v2366_v26  ;;  %v2140_v55 = vadd.f32 %v2139_v36, %v1911_v34  ;;  %v4405_v26 = vld [vmem:[%s6710_s0 + $0x674] sm:$0xf]  ;;  %v3997_v36 = vld [vmem:[%s6710_s0 + $0x678] sm:$0xf] }
 0x340   :  { %v2826_v32 = vpop.f32.mrf.mxu0 }
 0x341   :  { %v2824_v28 = vadd.f32 %v2823_v42, %v2595_v23  ;;  %2178 = vmatmul.bf16.gmra.mxu1 %v3946_v60  ;;  %2407 = vmatmul.bf16.gmra.mxu2 %v3950_v15  ;;  %v3991_v15 = vld [vmem:[%s6710_s0 + $0x684] sm:$0xf0] }
 0x342   :  { %2636 = vmatmul.bf16.gmra.mxu3 %v3954_v16  ;;  %v4408_v16 = vld [vmem:[%s6710_s0 + $0x688] sm:$0xf0]  ;;  %v3994_v34 = vor.u32 %v4405_v26, %v3991_v15  ;;  %v4414_v15 = vld [vmem:[%s6710_s0 + $0x6bc] sm:$0xf] }
 0x343   :  { %2865 = vmatmul.bf16.gmra.mxu0 %v3958_v62  ;;  %v2952_v4 = vmax.f32 %v2824_v28, 0.0  ;;  %v3990_v28 = vor.u32 %v4407_v59, %v3989_v2 }
 0x344   :  { %v2368_v63 = vpop.f32.mrf.mxu2 }
 0x345   :  { %v4612_v10 = vpack.c.bf16 %v2952_v4, %v2951_v41  ;;  %v2597_v3 = vpop.f32.mrf.mxu3  ;;  %v2369_v11 = vadd.f32 %v2368_v63, %v2140_v55  ;;  %v3998_v41 = vor.u32 %v4408_v16, %v3997_v36  ;;  %v4023_v36 = vld [vmem:[%s6710_s0 + $0x6cc] sm:$0xf0]  ;;  %v4029_v16 = vld [vmem:[%s6710_s0 + $0x6c0] sm:$0xf] }
 0x346   :  { %v2141_v30 = vpop.f32.mrf.mxu1 }
 0x347   :  { %4708 = vst [vmem:[%s6711_s3 + $0xf0] sm:$0xff] %v4612_v10   ;;  %v2598_v9 = vadd.f32 %v2597_v3, %v2369_v11  ;;  %v2142_v39 = vadd.f32 %v2141_v30, %v1913_v58  ;;  %v6790_v3 = vld [vmem:[#allocation3_spill] sm:$0xff] }
 0x348   :  { %v2828_v13 = vpop.f32.mrf.mxu0  ;;  %v1921_v30 = vadd.f32 %v6423_v29, %v6790_v3 }
 0x349   :  { %v2827_v57 = vadd.f32 %v2826_v32, %v2598_v9  ;;  %v3986_v32 = vor.u32 %v4404_v14, %v3983_v37  ;;  %v6791_v9 = vld [vmem:[#allocation5_spill] sm:$0xff] }
 0x34b   :  { %v2953_v49 = vmax.f32 %v2827_v57, 0.0 }
 0x34c   :  { %v2370_v45 = vpop.f32.mrf.mxu2 }
 0x34d   :  { %v2371_v51 = vadd.f32 %v2370_v45, %v2142_v39  ;;  %v2599_v33 = vpop.f32.mrf.mxu3  ;;  %v1923_v39 = vadd.f32 %v6423_v29, %v6791_v9  ;;  %v4412_v45 = vld [vmem:[%s6710_s0 + $0x6a8] sm:$0xf0] }
 0x34e   :  { %v2144_v24 = vpop.f32.mrf.mxu1 }
 0x34f   :  { %v2600_v17 = vadd.f32 %v2599_v33, %v2371_v51  ;;  %v2145_v43 = vadd.f32 %v2144_v24, %v1916_v38  ;;  %v4410_v51 = vld [vmem:[%s6710_s0 + $0x69c] sm:$0xf]  ;;  %v4017_v24 = vld [vmem:[%s6710_s0 + $0x6a0] sm:$0xf] }
 0x350   :  { %v2831_v31 = vpop.f32.mrf.mxu0 }
 0x351   :  { %v2829_v1 = vadd.f32 %v2828_v13, %v2600_v17  ;;  %2183 = vmatmul.bf16.gmra.mxu1 %v3966_v56  ;;  %2412 = vmatmul.bf16.gmra.mxu2 %v3970_v18  ;;  %v4011_v18 = vld [vmem:[%s6710_s0 + $0x6ac] sm:$0xf0] }
 0x352   :  { %2641 = vmatmul.bf16.gmra.mxu3 %v3974_v6  ;;  %v4413_v6 = vld [vmem:[%s6710_s0 + $0x6b0] sm:$0xf0]  ;;  %v4014_v38 = vor.u32 %v4410_v51, %v4011_v18 }
 0x353   :  { %2870 = vmatmul.bf16.gmra.mxu0 %v3978_v8  ;;  %v2954_v42 = vmax.f32 %v2829_v1, 0.0  ;;  %v4010_v1 = vor.u32 %v4412_v45, %v4009_v48 }
 0x354   :  { %v2373_v44 = vpop.f32.mrf.mxu2 }
 0x355   :  { %v4617_v25 = vpack.c.bf16 %v2954_v42, %v2953_v49  ;;  %v2602_v5 = vpop.f32.mrf.mxu3  ;;  %v2374_v53 = vadd.f32 %v2373_v44, %v2145_v43  ;;  %v4018_v49 = vor.u32 %v4413_v6, %v4017_v24 }
 0x356   :  { %v2146_v20 = vpop.f32.mrf.mxu1 }
 0x357   :  { %4709 = vst [vmem:[%s6711_s3 + $0xf8] sm:$0xff] %v4617_v25   ;;  %v2603_v22 = vadd.f32 %v2602_v5, %v2374_v53  ;;  %v2147_v60 = vadd.f32 %v2146_v20, %v1918_v12  ;;  %v6792_v5 = vld [vmem:[#allocation7_spill] sm:$0xff] }
 0x358   :  { %v2833_v7 = vpop.f32.mrf.mxu0  ;;  %v1926_v20 = vadd.f32 %v6423_v29, %v6792_v5 }
 0x359   :  { %v2832_v4 = vadd.f32 %v2831_v31, %v2603_v22  ;;  %v4006_v31 = vor.u32 %v4409_v46, %v4003_v50  ;;  %v6793_v22 = vld [vmem:[#allocation9_spill] sm:$0xff] }
 0x35b   :  { %v2955_v11 = vmax.f32 %v2832_v4, 0.0 }
 0x35c   :  { %v2375_v62 = vpop.f32.mrf.mxu2 }
 0x35d   :  { %v2376_v21 = vadd.f32 %v2375_v62, %v2147_v60  ;;  %v2604_v23 = vpop.f32.mrf.mxu3  ;;  %v1928_v60 = vadd.f32 %v6423_v29, %v6793_v22  ;;  %v4417_v62 = vld [vmem:[%s6710_s0 + $0x6d0] sm:$0xf0] }
 0x35e   :  { %v2149_v40 = vpop.f32.mrf.mxu1 }
 0x35f   :  { %v2605_v63 = vadd.f32 %v2604_v23, %v2376_v21  ;;  %v2150_v19 = vadd.f32 %v2149_v40, %v1921_v30  ;;  %v4415_v21 = vld [vmem:[%s6710_s0 + $0x6c4] sm:$0xf]  ;;  %v4037_v40 = vld [vmem:[%s6710_s0 + $0x6c8] sm:$0xf] }
 0x360   :  { %v2836_v10 = vpop.f32.mrf.mxu0 }
 0x361   :  { %v2834_v55 = vadd.f32 %v2833_v7, %v2605_v63  ;;  %2188 = vmatmul.bf16.gmra.mxu1 %v3986_v32  ;;  %2417 = vmatmul.bf16.gmra.mxu2 %v3990_v28  ;;  %v4031_v28 = vld [vmem:[%s6710_s0 + $0x6d4] sm:$0xf0] }
 0x362   :  { %2646 = vmatmul.bf16.gmra.mxu3 %v3994_v34  ;;  %v4418_v34 = vld [vmem:[%s6710_s0 + $0x6d8] sm:$0xf0]  ;;  %v4034_v30 = vor.u32 %v4415_v21, %v4031_v28 }
 0x363   :  { %2875 = vmatmul.bf16.gmra.mxu0 %v3998_v41  ;;  %v2956_v13 = vmax.f32 %v2834_v55, 0.0  ;;  %v4030_v55 = vor.u32 %v4417_v62, %v4029_v16 }
 0x364   :  { %v2378_v61 = vpop.f32.mrf.mxu2 }
 0x365   :  { %v4622_v58 = vpack.c.bf16 %v2956_v13, %v2955_v11  ;;  %v2607_v52 = vpop.f32.mrf.mxu3  ;;  %v2379_v54 = vadd.f32 %v2378_v61, %v2150_v19  ;;  %v4038_v11 = vor.u32 %v4418_v34, %v4037_v40 }
 0x366   :  { %v2151_v47 = vpop.f32.mrf.mxu1 }
 0x367   :  { %4710 = vst [vmem:[%s6711_s3 + $0x100] sm:$0xff] %v4622_v58   ;;  %v2608_v33 = vadd.f32 %v2607_v52, %v2379_v54  ;;  %v2152_v56 = vadd.f32 %v2151_v47, %v1923_v39  ;;  %v6794_v52 = vld [vmem:[#allocation11_spill] sm:$0xff] }
 0x368   :  { %v2838_v0 = vpop.f32.mrf.mxu0  ;;  %v1931_v47 = vadd.f32 %v6423_v29, %v6794_v52 }
 0x369   :  { %v2837_v42 = vadd.f32 %v2836_v10, %v2608_v33  ;;  %v4026_v10 = vor.u32 %v4414_v15, %v4023_v36  ;;  %v6795_v33 = vld [vmem:[#allocation13_spill] sm:$0xff] }
 0x36b   :  { %v2957_v53 = vmax.f32 %v2837_v42, 0.0 }
 0x36c   :  { %v2380_v8 = vpop.f32.mrf.mxu2 }
 0x36d   :  { %v2381_v57 = vadd.f32 %v2380_v8, %v2152_v56  ;;  %v2609_v17 = vpop.f32.mrf.mxu3  ;;  %v1933_v56 = vadd.f32 %v6423_v29, %v6795_v33 }
 0x36e   :  { %v2154_v27 = vpop.f32.mrf.mxu1 }
 0x36f   :  { %v2610_v44 = vadd.f32 %v2609_v17, %v2381_v57  ;;  %v2155_v14 = vadd.f32 %v2154_v27, %v1926_v20 }
 0x370   :  { %v2841_v25 = vpop.f32.mrf.mxu0 }
 0x371   :  { %v2839_v43 = vadd.f32 %v2838_v0, %v2610_v44  ;;  %2193 = vmatmul.bf16.gmra.mxu1 %v4006_v31  ;;  %2422 = vmatmul.bf16.gmra.mxu2 %v4010_v1 }
 0x372   :  { %2651 = vmatmul.bf16.gmra.mxu3 %v4014_v38 }
 0x373   :  { %2880 = vmatmul.bf16.gmra.mxu0 %v4018_v49  ;;  %v2958_v7 = vmax.f32 %v2839_v43, 0.0  ;;  %v6796_v49 = vld [vmem:[#allocation15_spill] sm:$0xff] }
 0x374   :  { %v2383_v35 = vpop.f32.mrf.mxu2  ;;  %v1936_v42 = vadd.f32 %v6423_v29, %v6796_v49 }
 0x375   :  { %v4627_v12 = vpack.c.bf16 %v2958_v7, %v2957_v53  ;;  %v2612_v37 = vpop.f32.mrf.mxu3  ;;  %v2384_v59 = vadd.f32 %v2383_v35, %v2155_v14  ;;  %v6797_v14 = vld [vmem:[#allocation17_spill] sm:$0xff] }
 0x376   :  { %v2156_v2 = vpop.f32.mrf.mxu1 }
 0x377   :  { %4711 = vst [vmem:[%s6711_s3 + $0x108] sm:$0xff] %v4627_v12   ;;  %v2613_v23 = vadd.f32 %v2612_v37, %v2384_v59  ;;  %v2157_v32 = vadd.f32 %v2156_v2, %v1928_v60  ;;  %v1938_v37 = vadd.f32 %v6423_v29, %v6797_v14 }
 0x378   :  { %v2843_v26 = vpop.f32.mrf.mxu0 }
 0x379   :  { %v2842_v13 = vadd.f32 %v2841_v25, %v2613_v23  ;;  %v6798_v23 = vld [vmem:[#allocation19_spill] sm:$0xff] }
 0x37b   :  { %v2959_v54 = vmax.f32 %v2842_v13, 0.0 }
 0x37c   :  { %v2385_v41 = vpop.f32.mrf.mxu2 }
 0x37d   :  { %v2386_v4 = vadd.f32 %v2385_v41, %v2157_v32  ;;  %v2614_v63 = vpop.f32.mrf.mxu3  ;;  %v1941_v32 = vadd.f32 %v6423_v29, %v6798_v23 }
 0x37e   :  { %v2159_v3 = vpop.f32.mrf.mxu1 }
 0x37f   :  { %v2615_v61 = vadd.f32 %v2614_v63, %v2386_v4  ;;  %v2160_v46 = vadd.f32 %v2159_v3, %v1931_v47 }
 0x380   :  { %v2846_v58 = vpop.f32.mrf.mxu0 }
 0x381   :  { %v2844_v19 = vadd.f32 %v2843_v26, %v2615_v61  ;;  %2198 = vmatmul.bf16.gmra.mxu1 %v4026_v10  ;;  %2427 = vmatmul.bf16.gmra.mxu2 %v4030_v55 }
 0x382   :  { %2656 = vmatmul.bf16.gmra.mxu3 %v4034_v30  ;;  %v6799_v30 = vld [vmem:[#allocation21_spill] sm:$0xff] }
 0x383   :  { %2885 = vmatmul.bf16.gmra.mxu0 %v4038_v11  ;;  %v2960_v0 = vmax.f32 %v2844_v19, 0.0  ;;  %v1943_v11 = vadd.f32 %v6423_v29, %v6799_v30 }
 0x384   :  { %v2388_v9 = vpop.f32.mrf.mxu2 }
 0x385   :  { %v4632_v39 = vpack.c.bf16 %v2960_v0, %v2959_v54  ;;  %v2617_v50 = vpop.f32.mrf.mxu3  ;;  %v2389_v45 = vadd.f32 %v2388_v9, %v2160_v46  ;;  %v6800_v46 = vld [vmem:[#allocation23_spill] sm:$0xff] }
 0x386   :  { %v2161_v48 = vpop.f32.mrf.mxu1 }
 0x387   :  { %4712 = vst [vmem:[%s6711_s3 + $0x110] sm:$0xff] %v4632_v39   ;;  %v2618_v18 = vadd.f32 %v2617_v50, %v2389_v45  ;;  %v2162_v24 = vadd.f32 %v2161_v48, %v1933_v56  ;;  %v1946_v50 = vadd.f32 %v6423_v29, %v6800_v46 }
 0x388   :  { %v2848_v51 = vpop.f32.mrf.mxu0 }
 0x389   :  { %v2847_v31 = vadd.f32 %v2846_v58, %v2618_v18 }
 0x38b   :  { %v2961_v44 = vmax.f32 %v2847_v31, 0.0 }
 0x38c   :  { %v2390_v6 = vpop.f32.mrf.mxu2 }
 0x38d   :  { %v2391_v8 = vadd.f32 %v2390_v6, %v2162_v24  ;;  %v2619_v57 = vpop.f32.mrf.mxu3 }
 0x38e   :  { %v2164_v17 = vpop.f32.mrf.mxu1 }
 0x38f   :  { %v2620_v1 = vadd.f32 %v2619_v57, %v2391_v8  ;;  %v2165_v20 = vadd.f32 %v2164_v17, %v1936_v42  ;;  %v6801_v57 = vld [vmem:[#allocation25_spill] sm:$0xff] }
 0x390   :  { %v2851_v27 = vpop.f32.mrf.mxu0  ;;  %v1948_v17 = vadd.f32 %v6423_v29, %v6801_v57 }
 0x391   :  { %v2849_v38 = vadd.f32 %v2848_v51, %v2620_v1 }
 0x393   :  { %v2962_v25 = vmax.f32 %v2849_v38, 0.0 }
 0x394   :  { %v2393_v43 = vpop.f32.mrf.mxu2 }
 0x395   :  { %v4637_v5 = vpack.c.bf16 %v2962_v25, %v2961_v44  ;;  %v2622_v53 = vpop.f32.mrf.mxu3  ;;  %v2394_v35 = vadd.f32 %v2393_v43, %v2165_v20  ;;  %v6802_v20 = vld [vmem:[#allocation27_spill] sm:$0xff] }
 0x396   :  { %v2166_v7 = vpop.f32.mrf.mxu1 }
 0x397   :  { %4713 = vst [vmem:[%s6711_s3 + $0x118] sm:$0xff] %v4637_v5   ;;  %v2623_v2 = vadd.f32 %v2622_v53, %v2394_v35  ;;  %v2167_v59 = vadd.f32 %v2166_v7, %v1938_v37  ;;  %v1951_v53 = vadd.f32 %v6423_v29, %v6802_v20 }
 0x398   :  { %v2853_v12 = vpop.f32.mrf.mxu0 }
 0x399   :  { %v2852_v36 = vadd.f32 %v2851_v27, %v2623_v2 }
 0x39b   :  { %v2963_v28 = vmax.f32 %v2852_v36, 0.0 }
 0x39c   :  { %v2395_v26 = vpop.f32.mrf.mxu2 }
 0x39d   :  { %v2396_v22 = vadd.f32 %v2395_v26, %v2167_v59  ;;  %v2624_v60 = vpop.f32.mrf.mxu3 }
 0x39e   :  { %v2169_v15 = vpop.f32.mrf.mxu1 }
 0x39f   :  { %v2625_v16 = vadd.f32 %v2624_v60, %v2396_v22  ;;  %v2170_v4 = vadd.f32 %v2169_v15, %v1941_v32  ;;  %v6803_v60 = vld [vmem:[#allocation29_spill] sm:$0xff] }
 0x3a0   :  { %v2856_v62 = vpop.f32.mrf.mxu0  ;;  %v1953_v15 = vadd.f32 %v6423_v29, %v6803_v60 }
 0x3a1   :  { %v2854_v21 = vadd.f32 %v2853_v12, %v2625_v16 }
 0x3a3   :  { %v2964_v40 = vmax.f32 %v2854_v21, 0.0 }
 0x3a4   :  { %v2398_v34 = vpop.f32.mrf.mxu2 }
 0x3a5   :  { %v4642_v41 = vpack.c.bf16 %v2964_v40, %v2963_v28  ;;  %v2627_v63 = vpop.f32.mrf.mxu3  ;;  %v2399_v55 = vadd.f32 %v2398_v34, %v2170_v4  ;;  %v6804_v4 = vld [vmem:[#allocation31_spill] sm:$0xff] }
 0x3a6   :  { %v2171_v10 = vpop.f32.mrf.mxu1 }
 0x3a7   :  { %4714 = vst [vmem:[%s6711_s3 + $0x120] sm:$0xff] %v4642_v41   ;;  %v2628_v13 = vadd.f32 %v2627_v63, %v2399_v55  ;;  %v2172_v61 = vadd.f32 %v2171_v10, %v1943_v11  ;;  %v1956_v63 = vadd.f32 %v6423_v29, %v6804_v4 }
 0x3a8   :  { %v2858_v3 = vpop.f32.mrf.mxu0 }
 0x3a9   :  { %v2857_v54 = vadd.f32 %v2856_v62, %v2628_v13 }
 0x3ab   :  { %v2965_v48 = vmax.f32 %v2857_v54, 0.0 }
 0x3ac   :  { %v2400_v58 = vpop.f32.mrf.mxu2 }
 0x3ad   :  { %v2401_v19 = vadd.f32 %v2400_v58, %v2172_v61  ;;  %v2629_v52 = vpop.f32.mrf.mxu3 }
 0x3ae   :  { %v2174_v47 = vpop.f32.mrf.mxu1 }
 0x3af   :  { %v2630_v0 = vadd.f32 %v2629_v52, %v2401_v19  ;;  %v2175_v56 = vadd.f32 %v2174_v47, %v1946_v50  ;;  %v6805_v52 = vld [vmem:[#allocation33_spill] sm:$0xff] }
 0x3b0   :  { %v2861_v9 = vpop.f32.mrf.mxu0  ;;  %v1958_v47 = vadd.f32 %v6423_v29, %v6805_v52 }
 0x3b1   :  { %v2859_v39 = vadd.f32 %v2858_v3, %v2630_v0 }
 0x3b3   :  { %v2966_v45 = vmax.f32 %v2859_v39, 0.0 }
 0x3b4   :  { %v2403_v51 = vpop.f32.mrf.mxu2 }
 0x3b5   :  { %v4647_v33 = vpack.c.bf16 %v2966_v45, %v2965_v48  ;;  %v2632_v18 = vpop.f32.mrf.mxu3  ;;  %v2404_v6 = vadd.f32 %v2403_v51, %v2175_v56  ;;  %v6806_v56 = vld [vmem:[#allocation36_spill] sm:$0xff] }
 0x3b6   :  { %v2176_v24 = vpop.f32.mrf.mxu1 }
 0x3b7   :  { %4715 = vst [vmem:[%s6711_s3 + $0x128] sm:$0xff] %v4647_v33   ;;  %v2633_v31 = vadd.f32 %v2632_v18, %v2404_v6  ;;  %v2177_v1 = vadd.f32 %v2176_v24, %v1948_v17  ;;  %v1961_v18 = vadd.f32 %v6423_v29, %v6806_v56 }
 0x3b8   :  { %v2863_v8 = vpop.f32.mrf.mxu0 }
 0x3b9   :  { %v2862_v44 = vadd.f32 %v2861_v9, %v2633_v31 }
 0x3bb   :  { %v2967_v7 = vmax.f32 %v2862_v44, 0.0 }
 0x3bc   :  { %v2405_v27 = vpop.f32.mrf.mxu2 }
 0x3bd   :  { %v2406_v38 = vadd.f32 %v2405_v27, %v2177_v1  ;;  %v2634_v49 = vpop.f32.mrf.mxu3 }
 0x3be   :  { %v2179_v42 = vpop.f32.mrf.mxu1 }
 0x3bf   :  { %v2635_v25 = vadd.f32 %v2634_v49, %v2406_v38  ;;  %v2180_v37 = vadd.f32 %v2179_v42, %v1951_v53  ;;  %v6807_v49 = vld [vmem:[#allocation39_spill] sm:$0xff] }
 0x3c0   :  { %v2866_v43 = vpop.f32.mrf.mxu0  ;;  %v1963_v42 = vadd.f32 %v6423_v29, %v6807_v49 }
 0x3c1   :  { %v2864_v5 = vadd.f32 %v2863_v8, %v2635_v25 }
 0x3c3   :  { %v2968_v35 = vmax.f32 %v2864_v5, 0.0 }
 0x3c4   :  { %v2408_v12 = vpop.f32.mrf.mxu2 }
 0x3c5   :  { %v4652_v14 = vpack.c.bf16 %v2968_v35, %v2967_v7  ;;  %v2637_v2 = vpop.f32.mrf.mxu3  ;;  %v2409_v26 = vadd.f32 %v2408_v12, %v2180_v37  ;;  %v6808_v37 = vld [vmem:[#allocation42_spill] sm:$0xff] }
 0x3c6   :  { %v2181_v59 = vpop.f32.mrf.mxu1 }
 0x3c7   :  { %4716 = vst [vmem:[%s6711_s3 + $0x130] sm:$0xff] %v4652_v14   ;;  %v2638_v36 = vadd.f32 %v2637_v2, %v2409_v26  ;;  %v2182_v16 = vadd.f32 %v2181_v59, %v1953_v15  ;;  %v1966_v2 = vadd.f32 %v6423_v29, %v6808_v37 }
 0x3c8   :  { %v2868_v22 = vpop.f32.mrf.mxu0 }
 0x3c9   :  { %v2867_v28 = vadd.f32 %v2866_v43, %v2638_v36 }
 0x3cb   :  { %v2969_v10 = vmax.f32 %v2867_v28, 0.0 }
 0x3cc   :  { %v2410_v62 = vpop.f32.mrf.mxu2 }
 0x3cd   :  { %v2411_v21 = vadd.f32 %v2410_v62, %v2182_v16  ;;  %v2639_v23 = vpop.f32.mrf.mxu3 }
 0x3ce   :  { %v2184_v32 = vpop.f32.mrf.mxu1 }
 0x3cf   :  { %v2640_v40 = vadd.f32 %v2639_v23, %v2411_v21  ;;  %v2185_v11 = vadd.f32 %v2184_v32, %v1956_v63  ;;  %v6809_v21 = vld [vmem:[#allocation45_spill] sm:$0xff] }
 0x3d0   :  { %v2871_v34 = vpop.f32.mrf.mxu0  ;;  %v1968_v23 = vadd.f32 %v6423_v29, %v6809_v21 }
 0x3d1   :  { %v2869_v41 = vadd.f32 %v2868_v22, %v2640_v40 }
 0x3d3   :  { %v2970_v55 = vmax.f32 %v2869_v41, 0.0 }
 0x3d4   :  { %v2413_v3 = vpop.f32.mrf.mxu2 }
 0x3d5   :  { %v4657_v30 = vpack.c.bf16 %v2970_v55, %v2969_v10  ;;  %v2642_v13 = vpop.f32.mrf.mxu3  ;;  %v2414_v58 = vadd.f32 %v2413_v3, %v2185_v11 }
 0x3d6   :  { %v2186_v61 = vpop.f32.mrf.mxu1 }
 0x3d7   :  { %4717 = vst [vmem:[%s6711_s3 + $0x138] sm:$0xff] %v4657_v30   ;;  %v2643_v54 = vadd.f32 %v2642_v13, %v2414_v58  ;;  %v2187_v0 = vadd.f32 %v2186_v61, %v1958_v47  ;;  %v6810_v30 = vld [vmem:[#allocation48_spill] sm:$0xff] }
 0x3d8   :  { %v2873_v19 = vpop.f32.mrf.mxu0  ;;  %v1971_v11 = vadd.f32 %v6423_v29, %v6810_v30 }
 0x3d9   :  { %v2872_v48 = vadd.f32 %v2871_v34, %v2643_v54 }
 0x3db   :  { %v2971_v24 = vmax.f32 %v2872_v48, 0.0 }
 0x3dc   :  { %v2415_v9 = vpop.f32.mrf.mxu2 }
 0x3dd   :  { %v2416_v39 = vadd.f32 %v2415_v9, %v2187_v0  ;;  %v2644_v46 = vpop.f32.mrf.mxu3 }
 0x3de   :  { %v2189_v50 = vpop.f32.mrf.mxu1 }
 0x3df   :  { %v2645_v45 = vadd.f32 %v2644_v46, %v2416_v39  ;;  %v2190_v17 = vadd.f32 %v2189_v50, %v1961_v18  ;;  %v6811_v39 = vld [vmem:[#allocation51_spill] sm:$0xff] }
 0x3e0   :  { %v2876_v51 = vpop.f32.mrf.mxu0  ;;  %v1973_v46 = vadd.f32 %v6423_v29, %v6811_v39 }
 0x3e1   :  { %v2874_v33 = vadd.f32 %v2873_v19, %v2645_v45 }
 0x3e3   :  { %v2972_v6 = vmax.f32 %v2874_v33, 0.0 }
 0x3e4   :  { %v2418_v8 = vpop.f32.mrf.mxu2 }
 0x3e5   :  { %v4662_v57 = vpack.c.bf16 %v2972_v6, %v2971_v24  ;;  %v2647_v31 = vpop.f32.mrf.mxu3  ;;  %v2419_v27 = vadd.f32 %v2418_v8, %v2190_v17 }
 0x3e6   :  { %v2191_v1 = vpop.f32.mrf.mxu1 }
 0x3e7   :  { %4718 = vst [vmem:[%s6711_s3 + $0x140] sm:$0xff] %v4662_v57   ;;  %v2648_v44 = vadd.f32 %v2647_v31, %v2419_v27  ;;  %v2192_v25 = vadd.f32 %v2191_v1, %v1963_v42 }
 0x3e8   :  { %v2878_v38 = vpop.f32.mrf.mxu0 }
 0x3e9   :  { %v2877_v7 = vadd.f32 %v2876_v51, %v2648_v44 }
 0x3eb   :  { %v2973_v59 = vmax.f32 %v2877_v7, 0.0 }
 0x3ec   :  { %v2420_v43 = vpop.f32.mrf.mxu2 }
 0x3ed   :  { %v2421_v5 = vadd.f32 %v2420_v43, %v2192_v25  ;;  %v2649_v20 = vpop.f32.mrf.mxu3 }
 0x3ee   :  { %v2194_v53 = vpop.f32.mrf.mxu1 }
 0x3ef   :  { %v2650_v35 = vadd.f32 %v2649_v20, %v2421_v5  ;;  %v2195_v15 = vadd.f32 %v2194_v53, %v1966_v2 }
 0x3f0   :  { %v2881_v14 = vpop.f32.mrf.mxu0 }
 0x3f1   :  { %v2879_v12 = vadd.f32 %v2878_v38, %v2650_v35 }
 0x3f3   :  { %v2974_v26 = vmax.f32 %v2879_v12, 0.0 }
 0x3f4   :  { %v2423_v22 = vpop.f32.mrf.mxu2 }
 0x3f5   :  { %v4667_v60 = vpack.c.bf16 %v2974_v26, %v2973_v59  ;;  %v2652_v36 = vpop.f32.mrf.mxu3  ;;  %v2424_v62 = vadd.f32 %v2423_v22, %v2195_v15 }
 0x3f6   :  { %v2196_v16 = vpop.f32.mrf.mxu1 }
 0x3f7   :  { %4719 = vst [vmem:[%s6711_s3 + $0x148] sm:$0xff] %v4667_v60   ;;  %v2653_v32 = vadd.f32 %v2652_v36, %v2424_v62  ;;  %v2197_v28 = vadd.f32 %v2196_v16, %v1968_v23 }
 0x3f8   :  { %v2883_v40 = vpop.f32.mrf.mxu0 }
 0x3f9   :  { %v2882_v10 = vadd.f32 %v2881_v14, %v2653_v32 }
 0x3fb   :  { %v2975_v13 = vmax.f32 %v2882_v10, 0.0 }
 0x3fc   :  { %v2425_v34 = vpop.f32.mrf.mxu2 }
 0x3fd   :  { %v2426_v41 = vadd.f32 %v2425_v34, %v2197_v28  ;;  %v2654_v4 = vpop.f32.mrf.mxu3 }
 0x3fe   :  { %v2199_v63 = vpop.f32.mrf.mxu1 }
 0x3ff   :  { %v2655_v55 = vadd.f32 %v2654_v4, %v2426_v41  ;;  %v2200_v52 = vadd.f32 %v2199_v63, %v1971_v11 }
 0x400   :  { %v2886_v54 = vpop.f32.mrf.mxu0 }
 0x401   :  { %v2884_v3 = vadd.f32 %v2883_v40, %v2655_v55 }
 0x403   :  { %v2976_v61 = vmax.f32 %v2884_v3, 0.0 }
 0x404   :  { %v2428_v58 = vpop.f32.mrf.mxu2 }
 0x405   :  { %v4672_v19 = vpack.c.bf16 %v2976_v61, %v2975_v13  ;;  %v2657_v47 = vpop.f32.mrf.mxu3  ;;  %v2429_v0 = vadd.f32 %v2428_v58, %v2200_v52 }
 0x406   :  { %v2201_v9 = vpop.f32.mrf.mxu1 }
 0x407   :  { %4720 = vst [vmem:[%s6711_s3 + $0x150] sm:$0xff] %v4672_v19   ;;  %v2658_v50 = vadd.f32 %v2657_v47, %v2429_v0  ;;  %v2202_v48 = vadd.f32 %v2201_v9, %v1973_v46 }
 0x408   :  { %v2888_v24 = vpop.f32.mrf.mxu0 }
 0x409   :  { %v2887_v56 = vadd.f32 %v2886_v54, %v2658_v50 }
 0x40b   :  { %v2977_v8 = vmax.f32 %v2887_v56, 0.0 }
 0x40c   :  { %v2430_v45 = vpop.f32.mrf.mxu2 }
 0x40d   :  { %v2431_v51 = vadd.f32 %v2430_v45, %v2202_v48  ;;  %v2659_v33 = vpop.f32.mrf.mxu3 }
 0x40f   :  { %v2660_v18 = vadd.f32 %v2659_v33, %v2431_v51 }
 0x411   :  { %v2889_v6 = vadd.f32 %v2888_v24, %v2660_v18 }
 0x413   :  { %v2978_v57 = vmax.f32 %v2889_v6, 0.0 }
 0x415   :  { %v4677_v17 = vpack.c.bf16 %v2978_v57, %v2977_v8 }
 0x417   :  { %4721 = vst [vmem:[%s6711_s3 + $0x158] sm:$0xff] %v4677_v17  }

// kernel: value_network_forward.7
= control target key start
LH: loop header
LB: loop body
LE: loop exit
PB: predicated region body
PF: predicated region fallthrough
CT: control target
= control target key end

     0   :  { %s7634_s0 = inlined_call_operand.vmem [shape: bf16[16,22528], index: 0, kind: input, shape index: {}]   ;;  %s7635_s1 = inlined_call_operand.vmem [shape: bf16[22528,512], index: 1, kind: input, shape index: {}]   ;;  %s7636_s2 = inlined_call_operand.vmem [shape: f32[1,512], index: 2, kind: input, shape index: {}]   ;;  %s7637_s3 = inlined_call_operand.vmem [shape: f32[16,512], index: 3, kind: output, shape index: {}]  }
   0x1   :  { %7639 = sst [smem:[#allocation7_spill]] %s7634_s0 }
   0x2   :  { %7640 = sst [smem:[#allocation8_spill]] %s7635_s1 }
   0x3   :  { %s6270_s12 = smov 0   ;;  %s6272_s13 = smov 0  }
   0x4   :  { %s6274_s14 = smov 0   ;;  %s6276_s15 = smov 0  }
   0x5   :  { %s6278_s16 = smov 0   ;;  %s6280_s17 = smov 0  }
   0x6   :  { %s6282_s18 = smov 0   ;;  %s6284_s19 = smov 0  }
   0x7   :  { %s6286_s20 = smov 0   ;;  %s6288_s21 = smov 0  }
   0x8   :  { %s6290_s22 = smov 0  }
   0x9 LB: > { %s4685_s23 = sadd.s32 4294967295, %s6247_s22   ;;  %s25_s24 = sadd.s32 1, %s6239_s20  ;;  %s6247_s22 = sphi %s6290_s22, %s13_s22   ;;  %s6243_s21 = sphi %s6288_s21, %s7657_s21   ;;  %s6239_s20 = sphi %s6286_s20, %s7656_s20   ;;  %s6235_s19 = sphi %s6284_s19, %s7655_s19   ;;  %s6231_s18 = sphi %s6282_s18, %s7654_s18   ;;  %s6227_s17 = sphi %s6280_s17, %s7653_s17   ;;  %s6223_s16 = sphi %s6278_s16, %s7652_s16   ;;  %s6219_s15 = sphi %s6276_s15, %s7651_s15   ;;  %s6215_s14 = sphi %s6274_s14, %s7650_s14   ;;  %s6211_s13 = sphi %s6272_s13, %s7649_s13   ;;  %s6207_s12 = sphi %s6270_s12, %s7648_s12  }
   0xa   : > { %p26_p0 = scmp.ge.s32.totalorder %s25_s24, 11  ;;  %s28_s25 = sadd.s32 1, %s6243_s21 }
   0xb   : > { %s41_s26 = sadd.s32 1, %s6227_s17  ;;  %p48_p1 = scmp.ne.s32.totalorder %s6227_s17, %s6223_s16 }
   0xc   : > { %s7659_s24 = smov (%p26_p0, %s25_s24), 0  ;;  %s7661_s25 = smov (!%p26_p0, %s28_s25), %s6243_s21 }
   0xd   : > { %s37_s27 = ssub.s32 %s6239_s20, %s7659_s24  ;;  %p49_p2 = scmp.eq.s32.totalorder %s6247_s22, 0 }
   0xe   : > { %p30_p3 = scmp.ge.s32.totalorder %s7661_s25, 2  ;;  %p39_p4 = scmp.eq.s32.totalorder %s37_s27, 0 }
   0xf   : > { %p6337_p5 = por %p49_p2, %p48_p1  ;;  %s69_s29 = sadd.s32 1, %s6219_s15 }
  0x10   : > { %s7663_s25 = smov (%p30_p3, %s7661_s25), 0  ;;  %p76_p6 = scmp.ne.s32.totalorder %s6219_s15, %s6215_s14 }
  0x11   : > { %7642 = sst [smem:[#allocation6_spill]] %s7663_s25  ;;  %s65_s4 = ssub.s32 %s6243_s21, %s7663_s25 }
  0x12   : > { %s6345_s30 = scalar_select %p39_p4, %s6227_s17, %s41_s26  }
  0x13   : > { %s66_s5 = sor.u32 %s65_s4, %s37_s27  ;;  %p121_p7 = scmp.eq.s32.totalorder %s65_s4, 0 }
  0x14   : > { %p67_p8 = scmp.eq.s32.totalorder %s66_s5, 0  ;;  %p6351_p9 = por %p76_p6, %p49_p2 }
  0x15   : > { %s123_s7 = sadd.s32 1, %s6211_s13  ;;  %p133_p10 = scmp.ne.s32.totalorder %s6211_s13, %s6207_s12 }
  0x16   : > { %s6359_s8 = scalar_select %p67_p8, %s6219_s15, %s69_s29  }
  0x17   : > { %s6362_s9 = scalar_select %p121_p7, %s6211_s13, %s123_s7  }
  0x18   : > { %p134_p11 = scmp.eq.s32.totalorder %s4685_s23, 21  ;;  %p4688_p13 = scmp.ge.s32.totalorder %s6247_s22, 22 }
  0x1a   : > { %p6364_p12 = por %p134_p11, %p133_p10  ;;  %156 = sbr.rel (%p4688_p13) target bundleno = 323 (0x143), region = 16 }
  0x1f   : > { %159 = sbr.rel (!%p6337_p5) target bundleno = 57 (0x39), region = 20  ;;  %s161_s11 = sand.u32 (%p6337_p5), 1, %s6227_s17  }
  0x20   : > { %s5797_s26 = sshll.u32 (%p6337_p5), %s6239_s20, 6  ;;  %s4689_s27 = sshll.u32 (%p6337_p5), %s161_s11, 7 }
  0x21   : > { %s7645_s0 = sld [smem:[#allocation7_spill]] (%p6337_p5)  ;;  %s163_s23 = scalar_lea.vmem (%p6337_p5), [#allocation3], %s4689_s27 }
  0x27   : > { %s6376_s5 = scalar_lea.vmem %s7645_s0, %s5797_s26 }
  0x28   : > { %v182_v0 = vld [vmem:[%s6376_s5] sm:$0xff]  ;;  %v184_v1 = vld [vmem:[%s6376_s5 + $0x8] sm:$0xff]  ;;  %v186_v2 = vld [vmem:[%s6376_s5 + $0x10] sm:$0xff] }
  0x29   : > { %183 = vst [vmem:[%s163_s23] sm:$0xff] %v182_v0  ;;  %v188_v3 = vld [vmem:[%s6376_s5 + $0x18] sm:$0xff]  ;;  %v190_v4 = vld [vmem:[%s6376_s5 + $0x20] sm:$0xff]  ;;  %v192_v5 = vld [vmem:[%s6376_s5 + $0x28] sm:$0xff] }
  0x2a   : > { %185 = vst [vmem:[%s163_s23 + $0x8] sm:$0xff] %v184_v1  ;;  %v194_v6 = vld [vmem:[%s6376_s5 + $0x30] sm:$0xff]  ;;  %v196_v7 = vld [vmem:[%s6376_s5 + $0x38] sm:$0xff]  ;;  %v198_v8 = vld [vmem:[%s6376_s5 + $0x2c0] sm:$0xff] }
  0x2b   : > { %187 = vst [vmem:[%s163_s23 + $0x10] sm:$0xff] %v186_v2  ;;  %v200_v9 = vld [vmem:[%s6376_s5 + $0x2c8] sm:$0xff]  ;;  %v202_v10 = vld [vmem:[%s6376_s5 + $0x2d0] sm:$0xff]  ;;  %v204_v11 = vld [vmem:[%s6376_s5 + $0x2d8] sm:$0xff] }
  0x2c   : > { %189 = vst [vmem:[%s163_s23 + $0x18] sm:$0xff] %v188_v3  ;;  %v206_v12 = vld [vmem:[%s6376_s5 + $0x2e0] sm:$0xff]  ;;  %v208_v13 = vld [vmem:[%s6376_s5 + $0x2e8] sm:$0xff]  ;;  %v210_v14 = vld [vmem:[%s6376_s5 + $0x2f0] sm:$0xff] }
  0x2d   : > { %191 = vst [vmem:[%s163_s23 + $0x20] sm:$0xff] %v190_v4  ;;  %v212_v15 = vld [vmem:[%s6376_s5 + $0x2f8] sm:$0xff] }
  0x2e   : > { %193 = vst [vmem:[%s163_s23 + $0x28] sm:$0xff] %v192_v5 }
  0x2f   : > { %195 = vst [vmem:[%s163_s23 + $0x30] sm:$0xff] %v194_v6 }
  0x30   : > { %197 = vst [vmem:[%s163_s23 + $0x38] sm:$0xff] %v196_v7 }
  0x31   : > { %199 = vst [vmem:[%s163_s23 + $0x40] sm:$0xff] %v198_v8 }
  0x32   : > { %201 = vst [vmem:[%s163_s23 + $0x48] sm:$0xff] %v200_v9 }
  0x33   : > { %203 = vst [vmem:[%s163_s23 + $0x50] sm:$0xff] %v202_v10 }
  0x34   : > { %205 = vst [vmem:[%s163_s23 + $0x58] sm:$0xff] %v204_v11 }
  0x35   : > { %207 = vst [vmem:[%s163_s23 + $0x60] sm:$0xff] %v206_v12 }
  0x36   : > { %209 = vst [vmem:[%s163_s23 + $0x68] sm:$0xff] %v208_v13 }
  0x37   : > { %211 = vst [vmem:[%s163_s23 + $0x70] sm:$0xff] %v210_v14 }
  0x38   : > { %213 = vst [vmem:[%s163_s23 + $0x78] sm:$0xff] %v212_v15 }
  0x39 PF: > { %219 = sbr.rel (!%p6351_p9) target bundleno = 323 (0x143), region = 43  ;;  %s221_s28 = sand.u32 (%p6351_p9), 1, %s6219_s15  }
  0x3a   : > { %s4694_s7 = sshll.u32 (%p6351_p9), %s6243_s21, 1  ;;  %s4692_s11 = sshll.u32 (%p6351_p9), %s221_s28, 11 }
  0x3b   : > { %s5798_s26 = sshll.u32 (%p6351_p9), %s6239_s20, 10  ;;  %s7646_s1 = sld [smem:[#allocation8_spill]] (%p6351_p9) }
  0x3c   : > { %s227_s27 = sadd.s32 (%p6351_p9), %s5798_s26, %s4694_s7  ;;  %s6407_s6 = scalar_lea.vmem (%p6351_p9), [#allocation4], %s4692_s11 }
  0x3d   : > { %s4696_s29 = sshll.u32 (%p6351_p9), %s227_s27, 2 }
  0x41   : > { %s6402_s5 = scalar_lea.vmem %s7646_s1, %s4696_s29 }
  0x42   : > { %v769_v16 = vld [vmem:[%s6402_s5] sm:$0xff]  ;;  %v771_v17 = vld [vmem:[%s6402_s5 + $0x10] sm:$0xff] }
  0x43   : > { %v773_v18 = vld [vmem:[%s6402_s5 + $0x20] sm:$0xff]  ;;  %770 = vst [vmem:[%s6407_s6] sm:$0xff] %v769_v16  ;;  %v775_v19 = vld [vmem:[%s6402_s5 + $0x30] sm:$0xff] }
  0x44   : > { %772 = vst [vmem:[%s6407_s6 + $0x8] sm:$0xff] %v771_v17  ;;  %v777_v20 = vld [vmem:[%s6402_s5 + $0x40] sm:$0xff]  ;;  %v779_v21 = vld [vmem:[%s6402_s5 + $0x50] sm:$0xff] }
  0x45   : > { %774 = vst [vmem:[%s6407_s6 + $0x10] sm:$0xff] %v773_v18  ;;  %v781_v22 = vld [vmem:[%s6402_s5 + $0x60] sm:$0xff]  ;;  %v783_v23 = vld [vmem:[%s6402_s5 + $0x70] sm:$0xff] }
  0x46   : > { %776 = vst [vmem:[%s6407_s6 + $0x18] sm:$0xff] %v775_v19  ;;  %v785_v24 = vld [vmem:[%s6402_s5 + $0x80] sm:$0xff]  ;;  %v787_v25 = vld [vmem:[%s6402_s5 + $0x90] sm:$0xff] }
  0x47   : > { %778 = vst [vmem:[%s6407_s6 + $0x20] sm:$0xff] %v777_v20  ;;  %v789_v26 = vld [vmem:[%s6402_s5 + $0xa0] sm:$0xff]  ;;  %v791_v27 = vld [vmem:[%s6402_s5 + $0xb0] sm:$0xff] }
  0x48   : > { %780 = vst [vmem:[%s6407_s6 + $0x28] sm:$0xff] %v779_v21  ;;  %v793_v28 = vld [vmem:[%s6402_s5 + $0xc0] sm:$0xff]  ;;  %v795_v29 = vld [vmem:[%s6402_s5 + $0xd0] sm:$0xff] }
  0x49   : > { %782 = vst [vmem:[%s6407_s6 + $0x30] sm:$0xff] %v781_v22  ;;  %v797_v30 = vld [vmem:[%s6402_s5 + $0xe0] sm:$0xff]  ;;  %v799_v31 = vld [vmem:[%s6402_s5 + $0xf0] sm:$0xff] }
  0x4a   : > { %784 = vst [vmem:[%s6407_s6 + $0x38] sm:$0xff] %v783_v23  ;;  %v801_v32 = vld [vmem:[%s6402_s5 + $0x100] sm:$0xff]  ;;  %v803_v33 = vld [vmem:[%s6402_s5 + $0x110] sm:$0xff] }
  0x4b   : > { %786 = vst [vmem:[%s6407_s6 + $0x40] sm:$0xff] %v785_v24  ;;  %v805_v34 = vld [vmem:[%s6402_s5 + $0x120] sm:$0xff]  ;;  %v807_v35 = vld [vmem:[%s6402_s5 + $0x130] sm:$0xff] }
  0x4c   : > { %788 = vst [vmem:[%s6407_s6 + $0x48] sm:$0xff] %v787_v25  ;;  %v809_v36 = vld [vmem:[%s6402_s5 + $0x140] sm:$0xff]  ;;  %v811_v37 = vld [vmem:[%s6402_s5 + $0x150] sm:$0xff] }
  0x4d   : > { %790 = vst [vmem:[%s6407_s6 + $0x50] sm:$0xff] %v789_v26  ;;  %v813_v38 = vld [vmem:[%s6402_s5 + $0x160] sm:$0xff]  ;;  %v815_v39 = vld [vmem:[%s6402_s5 + $0x170] sm:$0xff] }
  0x4e   : > { %792 = vst [vmem:[%s6407_s6 + $0x58] sm:$0xff] %v791_v27  ;;  %v817_v40 = vld [vmem:[%s6402_s5 + $0x180] sm:$0xff]  ;;  %v819_v41 = vld [vmem:[%s6402_s5 + $0x190] sm:$0xff] }
  0x4f   : > { %794 = vst [vmem:[%s6407_s6 + $0x60] sm:$0xff] %v793_v28  ;;  %v821_v42 = vld [vmem:[%s6402_s5 + $0x1a0] sm:$0xff]  ;;  %v823_v43 = vld [vmem:[%s6402_s5 + $0x1b0] sm:$0xff] }
  0x50   : > { %796 = vst [vmem:[%s6407_s6 + $0x68] sm:$0xff] %v795_v29  ;;  %v825_v44 = vld [vmem:[%s6402_s5 + $0x1c0] sm:$0xff]  ;;  %v827_v45 = vld [vmem:[%s6402_s5 + $0x1d0] sm:$0xff] }
  0x51   : > { %798 = vst [vmem:[%s6407_s6 + $0x70] sm:$0xff] %v797_v30  ;;  %v829_v46 = vld [vmem:[%s6402_s5 + $0x1e0] sm:$0xff]  ;;  %v831_v47 = vld [vmem:[%s6402_s5 + $0x1f0] sm:$0xff] }
  0x52   : > { %800 = vst [vmem:[%s6407_s6 + $0x78] sm:$0xff] %v799_v31  ;;  %v833_v48 = vld [vmem:[%s6402_s5 + $0x200] sm:$0xff]  ;;  %v835_v49 = vld [vmem:[%s6402_s5 + $0x210] sm:$0xff] }
  0x53   : > { %802 = vst [vmem:[%s6407_s6 + $0x80] sm:$0xff] %v801_v32  ;;  %v837_v50 = vld [vmem:[%s6402_s5 + $0x220] sm:$0xff]  ;;  %v839_v51 = vld [vmem:[%s6402_s5 + $0x230] sm:$0xff] }
  0x54   : > { %804 = vst [vmem:[%s6407_s6 + $0x88] sm:$0xff] %v803_v33  ;;  %v841_v52 = vld [vmem:[%s6402_s5 + $0x240] sm:$0xff]  ;;  %v843_v53 = vld [vmem:[%s6402_s5 + $0x250] sm:$0xff] }
  0x55   : > { %806 = vst [vmem:[%s6407_s6 + $0x90] sm:$0xff] %v805_v34  ;;  %v845_v54 = vld [vmem:[%s6402_s5 + $0x260] sm:$0xff]  ;;  %v847_v55 = vld [vmem:[%s6402_s5 + $0x270] sm:$0xff] }
  0x56   : > { %808 = vst [vmem:[%s6407_s6 + $0x98] sm:$0xff] %v807_v35  ;;  %v849_v56 = vld [vmem:[%s6402_s5 + $0x280] sm:$0xff]  ;;  %v851_v57 = vld [vmem:[%s6402_s5 + $0x290] sm:$0xff] }
  0x57   : > { %810 = vst [vmem:[%s6407_s6 + $0xa0] sm:$0xff] %v809_v36  ;;  %v853_v58 = vld [vmem:[%s6402_s5 + $0x2a0] sm:$0xff]  ;;  %v855_v59 = vld [vmem:[%s6402_s5 + $0x2b0] sm:$0xff] }
  0x58   : > { %812 = vst [vmem:[%s6407_s6 + $0xa8] sm:$0xff] %v811_v37  ;;  %v857_v60 = vld [vmem:[%s6402_s5 + $0x2c0] sm:$0xff]  ;;  %v859_v61 = vld [vmem:[%s6402_s5 + $0x2d0] sm:$0xff] }
  0x59   : > { %814 = vst [vmem:[%s6407_s6 + $0xb0] sm:$0xff] %v813_v38  ;;  %v861_v62 = vld [vmem:[%s6402_s5 + $0x2e0] sm:$0xff]  ;;  %v863_v63 = vld [vmem:[%s6402_s5 + $0x2f0] sm:$0xff] }
  0x5a   : > { %816 = vst [vmem:[%s6407_s6 + $0xb8] sm:$0xff] %v815_v39  ;;  %v865_v0 = vld [vmem:[%s6402_s5 + $0x300] sm:$0xff]  ;;  %v867_v1 = vld [vmem:[%s6402_s5 + $0x310] sm:$0xff] }
  0x5b   : > { %818 = vst [vmem:[%s6407_s6 + $0xc0] sm:$0xff] %v817_v40  ;;  %v869_v2 = vld [vmem:[%s6402_s5 + $0x320] sm:$0xff]  ;;  %v871_v3 = vld [vmem:[%s6402_s5 + $0x330] sm:$0xff] }
  0x5c   : > { %820 = vst [vmem:[%s6407_s6 + $0xc8] sm:$0xff] %v819_v41  ;;  %v873_v4 = vld [vmem:[%s6402_s5 + $0x340] sm:$0xff]  ;;  %v875_v5 = vld [vmem:[%s6402_s5 + $0x350] sm:$0xff] }
  0x5d   : > { %822 = vst [vmem:[%s6407_s6 + $0xd0] sm:$0xff] %v821_v42  ;;  %v877_v6 = vld [vmem:[%s6402_s5 + $0x360] sm:$0xff]  ;;  %v879_v7 = vld [vmem:[%s6402_s5 + $0x370] sm:$0xff] }
  0x5e   : > { %824 = vst [vmem:[%s6407_s6 + $0xd8] sm:$0xff] %v823_v43  ;;  %v881_v8 = vld [vmem:[%s6402_s5 + $0x380] sm:$0xff]  ;;  %v883_v9 = vld [vmem:[%s6402_s5 + $0x390] sm:$0xff] }
  0x5f   : > { %826 = vst [vmem:[%s6407_s6 + $0xe0] sm:$0xff] %v825_v44  ;;  %v885_v10 = vld [vmem:[%s6402_s5 + $0x3a0] sm:$0xff]  ;;  %v887_v11 = vld [vmem:[%s6402_s5 + $0x3b0] sm:$0xff] }
  0x60   : > { %828 = vst [vmem:[%s6407_s6 + $0xe8] sm:$0xff] %v827_v45  ;;  %v889_v12 = vld [vmem:[%s6402_s5 + $0x3c0] sm:$0xff]  ;;  %v891_v13 = vld [vmem:[%s6402_s5 + $0x3d0] sm:$0xff] }
  0x61   : > { %830 = vst [vmem:[%s6407_s6 + $0xf0] sm:$0xff] %v829_v46  ;;  %v893_v14 = vld [vmem:[%s6402_s5 + $0x3e0] sm:$0xff]  ;;  %v895_v15 = vld [vmem:[%s6402_s5 + $0x3f0] sm:$0xff] }
  0x62   : > { %832 = vst [vmem:[%s6407_s6 + $0xf8] sm:$0xff] %v831_v47  ;;  %v897_v16 = vld [vmem:[%s6402_s5 + $0x400] sm:$0xff]  ;;  %v899_v17 = vld [vmem:[%s6402_s5 + $0x410] sm:$0xff] }
  0x63   : > { %834 = vst [vmem:[%s6407_s6 + $0x100] sm:$0xff] %v833_v48  ;;  %v901_v18 = vld [vmem:[%s6402_s5 + $0x420] sm:$0xff]  ;;  %v903_v19 = vld [vmem:[%s6402_s5 + $0x430] sm:$0xff] }
  0x64   : > { %836 = vst [vmem:[%s6407_s6 + $0x108] sm:$0xff] %v835_v49  ;;  %v905_v20 = vld [vmem:[%s6402_s5 + $0x440] sm:$0xff]  ;;  %v907_v21 = vld [vmem:[%s6402_s5 + $0x450] sm:$0xff] }
  0x65   : > { %838 = vst [vmem:[%s6407_s6 + $0x110] sm:$0xff] %v837_v50  ;;  %v909_v22 = vld [vmem:[%s6402_s5 + $0x460] sm:$0xff]  ;;  %v911_v23 = vld [vmem:[%s6402_s5 + $0x470] sm:$0xff] }
  0x66   : > { %840 = vst [vmem:[%s6407_s6 + $0x118] sm:$0xff] %v839_v51  ;;  %v913_v24 = vld [vmem:[%s6402_s5 + $0x480] sm:$0xff]  ;;  %v915_v25 = vld [vmem:[%s6402_s5 + $0x490] sm:$0xff] }
  0x67   : > { %842 = vst [vmem:[%s6407_s6 + $0x120] sm:$0xff] %v841_v52  ;;  %v917_v26 = vld [vmem:[%s6402_s5 + $0x4a0] sm:$0xff]  ;;  %v919_v27 = vld [vmem:[%s6402_s5 + $0x4b0] sm:$0xff] }
  0x68   : > { %844 = vst [vmem:[%s6407_s6 + $0x128] sm:$0xff] %v843_v53  ;;  %v921_v28 = vld [vmem:[%s6402_s5 + $0x4c0] sm:$0xff]  ;;  %v923_v29 = vld [vmem:[%s6402_s5 + $0x4d0] sm:$0xff] }
  0x69   : > { %846 = vst [vmem:[%s6407_s6 + $0x130] sm:$0xff] %v845_v54  ;;  %v925_v30 = vld [vmem:[%s6402_s5 + $0x4e0] sm:$0xff]  ;;  %v927_v31 = vld [vmem:[%s6402_s5 + $0x4f0] sm:$0xff] }
  0x6a   : > { %848 = vst [vmem:[%s6407_s6 + $0x138] sm:$0xff] %v847_v55  ;;  %v929_v32 = vld [vmem:[%s6402_s5 + $0x500] sm:$0xff]  ;;  %v931_v33 = vld [vmem:[%s6402_s5 + $0x510] sm:$0xff] }
  0x6b   : > { %850 = vst [vmem:[%s6407_s6 + $0x140] sm:$0xff] %v849_v56  ;;  %v933_v34 = vld [vmem:[%s6402_s5 + $0x520] sm:$0xff]  ;;  %v935_v35 = vld [vmem:[%s6402_s5 + $0x530] sm:$0xff] }
  0x6c   : > { %852 = vst [vmem:[%s6407_s6 + $0x148] sm:$0xff] %v851_v57  ;;  %v937_v36 = vld [vmem:[%s6402_s5 + $0x540] sm:$0xff]  ;;  %v939_v37 = vld [vmem:[%s6402_s5 + $0x550] sm:$0xff] }
  0x6d   : > { %854 = vst [vmem:[%s6407_s6 + $0x150] sm:$0xff] %v853_v58  ;;  %v941_v38 = vld [vmem:[%s6402_s5 + $0x560] sm:$0xff]  ;;  %v943_v39 = vld [vmem:[%s6402_s5 + $0x570] sm:$0xff] }
  0x6e   : > { %856 = vst [vmem:[%s6407_s6 + $0x158] sm:$0xff] %v855_v59  ;;  %v945_v40 = vld [vmem:[%s6402_s5 + $0x580] sm:$0xff]  ;;  %v947_v41 = vld [vmem:[%s6402_s5 + $0x590] sm:$0xff] }
  0x6f   : > { %858 = vst [vmem:[%s6407_s6 + $0x160] sm:$0xff] %v857_v60  ;;  %v949_v42 = vld [vmem:[%s6402_s5 + $0x5a0] sm:$0xff]  ;;  %v951_v43 = vld [vmem:[%s6402_s5 + $0x5b0] sm:$0xff] }
  0x70   : > { %860 = vst [vmem:[%s6407_s6 + $0x168] sm:$0xff] %v859_v61  ;;  %v953_v44 = vld [vmem:[%s6402_s5 + $0x5c0] sm:$0xff]  ;;  %v955_v45 = vld [vmem:[%s6402_s5 + $0x5d0] sm:$0xff] }
  0x71   : > { %862 = vst [vmem:[%s6407_s6 + $0x170] sm:$0xff] %v861_v62  ;;  %v957_v46 = vld [vmem:[%s6402_s5 + $0x5e0] sm:$0xff]  ;;  %v959_v47 = vld [vmem:[%s6402_s5 + $0x5f0] sm:$0xff] }
  0x72   : > { %864 = vst [vmem:[%s6407_s6 + $0x178] sm:$0xff] %v863_v63  ;;  %v961_v48 = vld [vmem:[%s6402_s5 + $0x600] sm:$0xff]  ;;  %v963_v49 = vld [vmem:[%s6402_s5 + $0x610] sm:$0xff] }
  0x73   : > { %866 = vst [vmem:[%s6407_s6 + $0x180] sm:$0xff] %v865_v0  ;;  %v965_v50 = vld [vmem:[%s6402_s5 + $0x620] sm:$0xff]  ;;  %v967_v51 = vld [vmem:[%s6402_s5 + $0x630] sm:$0xff] }
  0x74   : > { %868 = vst [vmem:[%s6407_s6 + $0x188] sm:$0xff] %v867_v1  ;;  %v969_v52 = vld [vmem:[%s6402_s5 + $0x640] sm:$0xff]  ;;  %v971_v53 = vld [vmem:[%s6402_s5 + $0x650] sm:$0xff] }
  0x75   : > { %870 = vst [vmem:[%s6407_s6 + $0x190] sm:$0xff] %v869_v2  ;;  %v973_v54 = vld [vmem:[%s6402_s5 + $0x660] sm:$0xff]  ;;  %v975_v55 = vld [vmem:[%s6402_s5 + $0x670] sm:$0xff] }
  0x76   : > { %872 = vst [vmem:[%s6407_s6 + $0x198] sm:$0xff] %v871_v3  ;;  %v977_v56 = vld [vmem:[%s6402_s5 + $0x680] sm:$0xff]  ;;  %v979_v57 = vld [vmem:[%s6402_s5 + $0x690] sm:$0xff] }
  0x77   : > { %874 = vst [vmem:[%s6407_s6 + $0x1a0] sm:$0xff] %v873_v4  ;;  %v981_v58 = vld [vmem:[%s6402_s5 + $0x6a0] sm:$0xff]  ;;  %v983_v59 = vld [vmem:[%s6402_s5 + $0x6b0] sm:$0xff] }
  0x78   : > { %876 = vst [vmem:[%s6407_s6 + $0x1a8] sm:$0xff] %v875_v5  ;;  %v985_v60 = vld [vmem:[%s6402_s5 + $0x6c0] sm:$0xff]  ;;  %v987_v61 = vld [vmem:[%s6402_s5 + $0x6d0] sm:$0xff] }
  0x79   : > { %878 = vst [vmem:[%s6407_s6 + $0x1b0] sm:$0xff] %v877_v6  ;;  %v989_v62 = vld [vmem:[%s6402_s5 + $0x6e0] sm:$0xff]  ;;  %v991_v63 = vld [vmem:[%s6402_s5 + $0x6f0] sm:$0xff] }
  0x7a   : > { %880 = vst [vmem:[%s6407_s6 + $0x1b8] sm:$0xff] %v879_v7  ;;  %v993_v0 = vld [vmem:[%s6402_s5 + $0x700] sm:$0xff]  ;;  %v995_v1 = vld [vmem:[%s6402_s5 + $0x710] sm:$0xff] }
  0x7b   : > { %882 = vst [vmem:[%s6407_s6 + $0x1c0] sm:$0xff] %v881_v8  ;;  %v997_v2 = vld [vmem:[%s6402_s5 + $0x720] sm:$0xff]  ;;  %v999_v3 = vld [vmem:[%s6402_s5 + $0x730] sm:$0xff] }
  0x7c   : > { %884 = vst [vmem:[%s6407_s6 + $0x1c8] sm:$0xff] %v883_v9  ;;  %v1001_v4 = vld [vmem:[%s6402_s5 + $0x740] sm:$0xff]  ;;  %v1003_v5 = vld [vmem:[%s6402_s5 + $0x750] sm:$0xff] }
  0x7d   : > { %886 = vst [vmem:[%s6407_s6 + $0x1d0] sm:$0xff] %v885_v10  ;;  %v1005_v6 = vld [vmem:[%s6402_s5 + $0x760] sm:$0xff]  ;;  %v1007_v7 = vld [vmem:[%s6402_s5 + $0x770] sm:$0xff] }
  0x7e   : > { %888 = vst [vmem:[%s6407_s6 + $0x1d8] sm:$0xff] %v887_v11  ;;  %v1009_v8 = vld [vmem:[%s6402_s5 + $0x780] sm:$0xff]  ;;  %v1011_v9 = vld [vmem:[%s6402_s5 + $0x790] sm:$0xff] }
  0x7f   : > { %890 = vst [vmem:[%s6407_s6 + $0x1e0] sm:$0xff] %v889_v12  ;;  %v1013_v10 = vld [vmem:[%s6402_s5 + $0x7a0] sm:$0xff]  ;;  %v1015_v11 = vld [vmem:[%s6402_s5 + $0x7b0] sm:$0xff] }
  0x80   : > { %892 = vst [vmem:[%s6407_s6 + $0x1e8] sm:$0xff] %v891_v13  ;;  %v1017_v12 = vld [vmem:[%s6402_s5 + $0x7c0] sm:$0xff]  ;;  %v1019_v13 = vld [vmem:[%s6402_s5 + $0x7d0] sm:$0xff] }
  0x81   : > { %894 = vst [vmem:[%s6407_s6 + $0x1f0] sm:$0xff] %v893_v14  ;;  %v1021_v14 = vld [vmem:[%s6402_s5 + $0x7e0] sm:$0xff] }
  0x82   : > { %896 = vst [vmem:[%s6407_s6 + $0x1f8] sm:$0xff] %v895_v15  ;;  %v1023_v15 = vld [vmem:[%s6402_s5 + $0x7f0] sm:$0xff] }
  0x83   : > { %898 = vst [vmem:[%s6407_s6 + $0x200] sm:$0xff] %v897_v16  ;;  %v1025_v16 = vld [vmem:[%s6402_s5 + $0x800] sm:$0xff] }
  0x84   : > { %900 = vst [vmem:[%s6407_s6 + $0x208] sm:$0xff] %v899_v17  ;;  %v1027_v17 = vld [vmem:[%s6402_s5 + $0x810] sm:$0xff] }
  0x85   : > { %902 = vst [vmem:[%s6407_s6 + $0x210] sm:$0xff] %v901_v18  ;;  %v1029_v18 = vld [vmem:[%s6402_s5 + $0x820] sm:$0xff] }
  0x86   : > { %904 = vst [vmem:[%s6407_s6 + $0x218] sm:$0xff] %v903_v19  ;;  %v1031_v19 = vld [vmem:[%s6402_s5 + $0x830] sm:$0xff] }
  0x87   : > { %906 = vst [vmem:[%s6407_s6 + $0x220] sm:$0xff] %v905_v20  ;;  %v1033_v20 = vld [vmem:[%s6402_s5 + $0x840] sm:$0xff] }
  0x88   : > { %908 = vst [vmem:[%s6407_s6 + $0x228] sm:$0xff] %v907_v21  ;;  %v1035_v21 = vld [vmem:[%s6402_s5 + $0x850] sm:$0xff] }
  0x89   : > { %910 = vst [vmem:[%s6407_s6 + $0x230] sm:$0xff] %v909_v22  ;;  %v1037_v22 = vld [vmem:[%s6402_s5 + $0x860] sm:$0xff] }
  0x8a   : > { %912 = vst [vmem:[%s6407_s6 + $0x238] sm:$0xff] %v911_v23  ;;  %v1039_v23 = vld [vmem:[%s6402_s5 + $0x870] sm:$0xff] }
  0x8b   : > { %914 = vst [vmem:[%s6407_s6 + $0x240] sm:$0xff] %v913_v24  ;;  %v1041_v24 = vld [vmem:[%s6402_s5 + $0x880] sm:$0xff] }
  0x8c   : > { %916 = vst [vmem:[%s6407_s6 + $0x248] sm:$0xff] %v915_v25  ;;  %v1043_v25 = vld [vmem:[%s6402_s5 + $0x890] sm:$0xff] }
  0x8d   : > { %918 = vst [vmem:[%s6407_s6 + $0x250] sm:$0xff] %v917_v26  ;;  %v1045_v26 = vld [vmem:[%s6402_s5 + $0x8a0] sm:$0xff] }
  0x8e   : > { %920 = vst [vmem:[%s6407_s6 + $0x258] sm:$0xff] %v919_v27  ;;  %v1047_v27 = vld [vmem:[%s6402_s5 + $0x8b0] sm:$0xff] }
  0x8f   : > { %922 = vst [vmem:[%s6407_s6 + $0x260] sm:$0xff] %v921_v28  ;;  %v1049_v28 = vld [vmem:[%s6402_s5 + $0x8c0] sm:$0xff] }
  0x90   : > { %924 = vst [vmem:[%s6407_s6 + $0x268] sm:$0xff] %v923_v29  ;;  %v1051_v29 = vld [vmem:[%s6402_s5 + $0x8d0] sm:$0xff] }
  0x91   : > { %926 = vst [vmem:[%s6407_s6 + $0x270] sm:$0xff] %v925_v30  ;;  %v1053_v30 = vld [vmem:[%s6402_s5 + $0x8e0] sm:$0xff] }
  0x92   : > { %928 = vst [vmem:[%s6407_s6 + $0x278] sm:$0xff] %v927_v31  ;;  %v1055_v31 = vld [vmem:[%s6402_s5 + $0x8f0] sm:$0xff] }
  0x93   : > { %930 = vst [vmem:[%s6407_s6 + $0x280] sm:$0xff] %v929_v32  ;;  %v1057_v32 = vld [vmem:[%s6402_s5 + $0x900] sm:$0xff] }
  0x94   : > { %932 = vst [vmem:[%s6407_s6 + $0x288] sm:$0xff] %v931_v33  ;;  %v1059_v33 = vld [vmem:[%s6402_s5 + $0x910] sm:$0xff] }
  0x95   : > { %934 = vst [vmem:[%s6407_s6 + $0x290] sm:$0xff] %v933_v34  ;;  %v1061_v34 = vld [vmem:[%s6402_s5 + $0x920] sm:$0xff] }
  0x96   : > { %936 = vst [vmem:[%s6407_s6 + $0x298] sm:$0xff] %v935_v35  ;;  %v1063_v35 = vld [vmem:[%s6402_s5 + $0x930] sm:$0xff] }
  0x97   : > { %938 = vst [vmem:[%s6407_s6 + $0x2a0] sm:$0xff] %v937_v36  ;;  %v1065_v36 = vld [vmem:[%s6402_s5 + $0x940] sm:$0xff] }
  0x98   : > { %940 = vst [vmem:[%s6407_s6 + $0x2a8] sm:$0xff] %v939_v37  ;;  %v1067_v37 = vld [vmem:[%s6402_s5 + $0x950] sm:$0xff] }
  0x99   : > { %942 = vst [vmem:[%s6407_s6 + $0x2b0] sm:$0xff] %v941_v38  ;;  %v1069_v38 = vld [vmem:[%s6402_s5 + $0x960] sm:$0xff] }
  0x9a   : > { %944 = vst [vmem:[%s6407_s6 + $0x2b8] sm:$0xff] %v943_v39  ;;  %v1071_v39 = vld [vmem:[%s6402_s5 + $0x970] sm:$0xff] }
  0x9b   : > { %946 = vst [vmem:[%s6407_s6 + $0x2c0] sm:$0xff] %v945_v40  ;;  %v1073_v40 = vld [vmem:[%s6402_s5 + $0x980] sm:$0xff] }
  0x9c   : > { %948 = vst [vmem:[%s6407_s6 + $0x2c8] sm:$0xff] %v947_v41  ;;  %v1075_v41 = vld [vmem:[%s6402_s5 + $0x990] sm:$0xff] }
  0x9d   : > { %950 = vst [vmem:[%s6407_s6 + $0x2d0] sm:$0xff] %v949_v42  ;;  %v1077_v42 = vld [vmem:[%s6402_s5 + $0x9a0] sm:$0xff] }
  0x9e   : > { %952 = vst [vmem:[%s6407_s6 + $0x2d8] sm:$0xff] %v951_v43  ;;  %v1079_v43 = vld [vmem:[%s6402_s5 + $0x9b0] sm:$0xff] }
  0x9f   : > { %954 = vst [vmem:[%s6407_s6 + $0x2e0] sm:$0xff] %v953_v44  ;;  %v1081_v44 = vld [vmem:[%s6402_s5 + $0x9c0] sm:$0xff] }
  0xa0   : > { %956 = vst [vmem:[%s6407_s6 + $0x2e8] sm:$0xff] %v955_v45  ;;  %v1083_v45 = vld [vmem:[%s6402_s5 + $0x9d0] sm:$0xff] }
  0xa1   : > { %958 = vst [vmem:[%s6407_s6 + $0x2f0] sm:$0xff] %v957_v46  ;;  %v1085_v46 = vld [vmem:[%s6402_s5 + $0x9e0] sm:$0xff] }
  0xa2   : > { %960 = vst [vmem:[%s6407_s6 + $0x2f8] sm:$0xff] %v959_v47  ;;  %v1087_v47 = vld [vmem:[%s6402_s5 + $0x9f0] sm:$0xff] }
  0xa3   : > { %962 = vst [vmem:[%s6407_s6 + $0x300] sm:$0xff] %v961_v48  ;;  %v1089_v48 = vld [vmem:[%s6402_s5 + $0xa00] sm:$0xff] }
  0xa4   : > { %964 = vst [vmem:[%s6407_s6 + $0x308] sm:$0xff] %v963_v49  ;;  %v1091_v49 = vld [vmem:[%s6402_s5 + $0xa10] sm:$0xff] }
  0xa5   : > { %966 = vst [vmem:[%s6407_s6 + $0x310] sm:$0xff] %v965_v50  ;;  %v1093_v50 = vld [vmem:[%s6402_s5 + $0xa20] sm:$0xff] }
  0xa6   : > { %968 = vst [vmem:[%s6407_s6 + $0x318] sm:$0xff] %v967_v51  ;;  %v1095_v51 = vld [vmem:[%s6402_s5 + $0xa30] sm:$0xff] }
  0xa7   : > { %970 = vst [vmem:[%s6407_s6 + $0x320] sm:$0xff] %v969_v52  ;;  %v1097_v52 = vld [vmem:[%s6402_s5 + $0xa40] sm:$0xff] }
  0xa8   : > { %972 = vst [vmem:[%s6407_s6 + $0x328] sm:$0xff] %v971_v53  ;;  %v1099_v53 = vld [vmem:[%s6402_s5 + $0xa50] sm:$0xff] }
  0xa9   : > { %974 = vst [vmem:[%s6407_s6 + $0x330] sm:$0xff] %v973_v54  ;;  %v1101_v54 = vld [vmem:[%s6402_s5 + $0xa60] sm:$0xff] }
  0xaa   : > { %976 = vst [vmem:[%s6407_s6 + $0x338] sm:$0xff] %v975_v55  ;;  %v1103_v55 = vld [vmem:[%s6402_s5 + $0xa70] sm:$0xff] }
  0xab   : > { %978 = vst [vmem:[%s6407_s6 + $0x340] sm:$0xff] %v977_v56  ;;  %v1105_v56 = vld [vmem:[%s6402_s5 + $0xa80] sm:$0xff] }
  0xac   : > { %980 = vst [vmem:[%s6407_s6 + $0x348] sm:$0xff] %v979_v57  ;;  %v1107_v57 = vld [vmem:[%s6402_s5 + $0xa90] sm:$0xff] }
  0xad   : > { %982 = vst [vmem:[%s6407_s6 + $0x350] sm:$0xff] %v981_v58  ;;  %v1109_v58 = vld [vmem:[%s6402_s5 + $0xaa0] sm:$0xff] }
  0xae   : > { %984 = vst [vmem:[%s6407_s6 + $0x358] sm:$0xff] %v983_v59  ;;  %v1111_v59 = vld [vmem:[%s6402_s5 + $0xab0] sm:$0xff] }
  0xaf   : > { %986 = vst [vmem:[%s6407_s6 + $0x360] sm:$0xff] %v985_v60  ;;  %v1113_v60 = vld [vmem:[%s6402_s5 + $0xac0] sm:$0xff] }
  0xb0   : > { %988 = vst [vmem:[%s6407_s6 + $0x368] sm:$0xff] %v987_v61  ;;  %v1115_v61 = vld [vmem:[%s6402_s5 + $0xad0] sm:$0xff] }
  0xb1   : > { %990 = vst [vmem:[%s6407_s6 + $0x370] sm:$0xff] %v989_v62  ;;  %v1117_v62 = vld [vmem:[%s6402_s5 + $0xae0] sm:$0xff] }
  0xb2   : > { %992 = vst [vmem:[%s6407_s6 + $0x378] sm:$0xff] %v991_v63  ;;  %v1119_v63 = vld [vmem:[%s6402_s5 + $0xaf0] sm:$0xff] }
  0xb3   : > { %994 = vst [vmem:[%s6407_s6 + $0x380] sm:$0xff] %v993_v0  ;;  %v1121_v0 = vld [vmem:[%s6402_s5 + $0xb00] sm:$0xff] }
  0xb4   : > { %996 = vst [vmem:[%s6407_s6 + $0x388] sm:$0xff] %v995_v1  ;;  %v1123_v1 = vld [vmem:[%s6402_s5 + $0xb10] sm:$0xff] }
  0xb5   : > { %998 = vst [vmem:[%s6407_s6 + $0x390] sm:$0xff] %v997_v2  ;;  %v1125_v2 = vld [vmem:[%s6402_s5 + $0xb20] sm:$0xff] }
  0xb6   : > { %1000 = vst [vmem:[%s6407_s6 + $0x398] sm:$0xff] %v999_v3  ;;  %v1127_v3 = vld [vmem:[%s6402_s5 + $0xb30] sm:$0xff] }
  0xb7   : > { %1002 = vst [vmem:[%s6407_s6 + $0x3a0] sm:$0xff] %v1001_v4  ;;  %v1129_v4 = vld [vmem:[%s6402_s5 + $0xb40] sm:$0xff] }
  0xb8   : > { %1004 = vst [vmem:[%s6407_s6 + $0x3a8] sm:$0xff] %v1003_v5  ;;  %v1131_v5 = vld [vmem:[%s6402_s5 + $0xb50] sm:$0xff] }
  0xb9   : > { %1006 = vst [vmem:[%s6407_s6 + $0x3b0] sm:$0xff] %v1005_v6  ;;  %v1133_v6 = vld [vmem:[%s6402_s5 + $0xb60] sm:$0xff] }
  0xba   : > { %1008 = vst [vmem:[%s6407_s6 + $0x3b8] sm:$0xff] %v1007_v7  ;;  %v1135_v7 = vld [vmem:[%s6402_s5 + $0xb70] sm:$0xff] }
  0xbb   : > { %1010 = vst [vmem:[%s6407_s6 + $0x3c0] sm:$0xff] %v1009_v8  ;;  %v1137_v8 = vld [vmem:[%s6402_s5 + $0xb80] sm:$0xff] }
  0xbc   : > { %1012 = vst [vmem:[%s6407_s6 + $0x3c8] sm:$0xff] %v1011_v9  ;;  %v1139_v9 = vld [vmem:[%s6402_s5 + $0xb90] sm:$0xff] }
  0xbd   : > { %1014 = vst [vmem:[%s6407_s6 + $0x3d0] sm:$0xff] %v1013_v10  ;;  %v1141_v10 = vld [vmem:[%s6402_s5 + $0xba0] sm:$0xff] }
  0xbe   : > { %1016 = vst [vmem:[%s6407_s6 + $0x3d8] sm:$0xff] %v1015_v11  ;;  %v1143_v11 = vld [vmem:[%s6402_s5 + $0xbb0] sm:$0xff] }
  0xbf   : > { %1018 = vst [vmem:[%s6407_s6 + $0x3e0] sm:$0xff] %v1017_v12  ;;  %v1145_v12 = vld [vmem:[%s6402_s5 + $0xbc0] sm:$0xff] }
  0xc0   : > { %1020 = vst [vmem:[%s6407_s6 + $0x3e8] sm:$0xff] %v1019_v13  ;;  %v1147_v13 = vld [vmem:[%s6402_s5 + $0xbd0] sm:$0xff] }
  0xc1   : > { %1022 = vst [vmem:[%s6407_s6 + $0x3f0] sm:$0xff] %v1021_v14  ;;  %v1149_v14 = vld [vmem:[%s6402_s5 + $0xbe0] sm:$0xff] }
  0xc2   : > { %1024 = vst [vmem:[%s6407_s6 + $0x3f8] sm:$0xff] %v1023_v15  ;;  %v1151_v15 = vld [vmem:[%s6402_s5 + $0xbf0] sm:$0xff] }
  0xc3   : > { %1026 = vst [vmem:[%s6407_s6 + $0x400] sm:$0xff] %v1025_v16  ;;  %v1153_v16 = vld [vmem:[%s6402_s5 + $0xc00] sm:$0xff] }
  0xc4   : > { %1028 = vst [vmem:[%s6407_s6 + $0x408] sm:$0xff] %v1027_v17  ;;  %v1155_v17 = vld [vmem:[%s6402_s5 + $0xc10] sm:$0xff] }
  0xc5   : > { %1030 = vst [vmem:[%s6407_s6 + $0x410] sm:$0xff] %v1029_v18  ;;  %v1157_v18 = vld [vmem:[%s6402_s5 + $0xc20] sm:$0xff] }
  0xc6   : > { %1032 = vst [vmem:[%s6407_s6 + $0x418] sm:$0xff] %v1031_v19  ;;  %v1159_v19 = vld [vmem:[%s6402_s5 + $0xc30] sm:$0xff] }
  0xc7   : > { %1034 = vst [vmem:[%s6407_s6 + $0x420] sm:$0xff] %v1033_v20  ;;  %v1161_v20 = vld [vmem:[%s6402_s5 + $0xc40] sm:$0xff] }
  0xc8   : > { %1036 = vst [vmem:[%s6407_s6 + $0x428] sm:$0xff] %v1035_v21  ;;  %v1163_v21 = vld [vmem:[%s6402_s5 + $0xc50] sm:$0xff] }
  0xc9   : > { %1038 = vst [vmem:[%s6407_s6 + $0x430] sm:$0xff] %v1037_v22  ;;  %v1165_v22 = vld [vmem:[%s6402_s5 + $0xc60] sm:$0xff] }
  0xca   : > { %1040 = vst [vmem:[%s6407_s6 + $0x438] sm:$0xff] %v1039_v23  ;;  %v1167_v23 = vld [vmem:[%s6402_s5 + $0xc70] sm:$0xff] }
  0xcb   : > { %1042 = vst [vmem:[%s6407_s6 + $0x440] sm:$0xff] %v1041_v24  ;;  %v1169_v24 = vld [vmem:[%s6402_s5 + $0xc80] sm:$0xff] }
  0xcc   : > { %1044 = vst [vmem:[%s6407_s6 + $0x448] sm:$0xff] %v1043_v25  ;;  %v1171_v25 = vld [vmem:[%s6402_s5 + $0xc90] sm:$0xff] }
  0xcd   : > { %1046 = vst [vmem:[%s6407_s6 + $0x450] sm:$0xff] %v1045_v26  ;;  %v1173_v26 = vld [vmem:[%s6402_s5 + $0xca0] sm:$0xff] }
  0xce   : > { %1048 = vst [vmem:[%s6407_s6 + $0x458] sm:$0xff] %v1047_v27  ;;  %v1175_v27 = vld [vmem:[%s6402_s5 + $0xcb0] sm:$0xff] }
  0xcf   : > { %1050 = vst [vmem:[%s6407_s6 + $0x460] sm:$0xff] %v1049_v28  ;;  %v1177_v28 = vld [vmem:[%s6402_s5 + $0xcc0] sm:$0xff] }
  0xd0   : > { %1052 = vst [vmem:[%s6407_s6 + $0x468] sm:$0xff] %v1051_v29  ;;  %v1179_v29 = vld [vmem:[%s6402_s5 + $0xcd0] sm:$0xff] }
  0xd1   : > { %1054 = vst [vmem:[%s6407_s6 + $0x470] sm:$0xff] %v1053_v30  ;;  %v1181_v30 = vld [vmem:[%s6402_s5 + $0xce0] sm:$0xff] }
  0xd2   : > { %1056 = vst [vmem:[%s6407_s6 + $0x478] sm:$0xff] %v1055_v31  ;;  %v1183_v31 = vld [vmem:[%s6402_s5 + $0xcf0] sm:$0xff] }
  0xd3   : > { %1058 = vst [vmem:[%s6407_s6 + $0x480] sm:$0xff] %v1057_v32  ;;  %v1185_v32 = vld [vmem:[%s6402_s5 + $0xd00] sm:$0xff] }
  0xd4   : > { %1060 = vst [vmem:[%s6407_s6 + $0x488] sm:$0xff] %v1059_v33  ;;  %v1187_v33 = vld [vmem:[%s6402_s5 + $0xd10] sm:$0xff] }
  0xd5   : > { %1062 = vst [vmem:[%s6407_s6 + $0x490] sm:$0xff] %v1061_v34  ;;  %v1189_v34 = vld [vmem:[%s6402_s5 + $0xd20] sm:$0xff] }
  0xd6   : > { %1064 = vst [vmem:[%s6407_s6 + $0x498] sm:$0xff] %v1063_v35  ;;  %v1191_v35 = vld [vmem:[%s6402_s5 + $0xd30] sm:$0xff] }
  0xd7   : > { %1066 = vst [vmem:[%s6407_s6 + $0x4a0] sm:$0xff] %v1065_v36  ;;  %v1193_v36 = vld [vmem:[%s6402_s5 + $0xd40] sm:$0xff] }
  0xd8   : > { %1068 = vst [vmem:[%s6407_s6 + $0x4a8] sm:$0xff] %v1067_v37  ;;  %v1195_v37 = vld [vmem:[%s6402_s5 + $0xd50] sm:$0xff] }
  0xd9   : > { %1070 = vst [vmem:[%s6407_s6 + $0x4b0] sm:$0xff] %v1069_v38  ;;  %v1197_v38 = vld [vmem:[%s6402_s5 + $0xd60] sm:$0xff] }
  0xda   : > { %1072 = vst [vmem:[%s6407_s6 + $0x4b8] sm:$0xff] %v1071_v39  ;;  %v1199_v39 = vld [vmem:[%s6402_s5 + $0xd70] sm:$0xff] }
  0xdb   : > { %1074 = vst [vmem:[%s6407_s6 + $0x4c0] sm:$0xff] %v1073_v40  ;;  %v1201_v40 = vld [vmem:[%s6402_s5 + $0xd80] sm:$0xff] }
  0xdc   : > { %1076 = vst [vmem:[%s6407_s6 + $0x4c8] sm:$0xff] %v1075_v41  ;;  %v1203_v41 = vld [vmem:[%s6402_s5 + $0xd90] sm:$0xff] }
  0xdd   : > { %1078 = vst [vmem:[%s6407_s6 + $0x4d0] sm:$0xff] %v1077_v42  ;;  %v1205_v42 = vld [vmem:[%s6402_s5 + $0xda0] sm:$0xff] }
  0xde   : > { %1080 = vst [vmem:[%s6407_s6 + $0x4d8] sm:$0xff] %v1079_v43  ;;  %v1207_v43 = vld [vmem:[%s6402_s5 + $0xdb0] sm:$0xff] }
  0xdf   : > { %1082 = vst [vmem:[%s6407_s6 + $0x4e0] sm:$0xff] %v1081_v44  ;;  %v1209_v44 = vld [vmem:[%s6402_s5 + $0xdc0] sm:$0xff] }
  0xe0   : > { %1084 = vst [vmem:[%s6407_s6 + $0x4e8] sm:$0xff] %v1083_v45  ;;  %v1211_v45 = vld [vmem:[%s6402_s5 + $0xdd0] sm:$0xff] }
  0xe1   : > { %1086 = vst [vmem:[%s6407_s6 + $0x4f0] sm:$0xff] %v1085_v46  ;;  %v1213_v46 = vld [vmem:[%s6402_s5 + $0xde0] sm:$0xff] }
  0xe2   : > { %1088 = vst [vmem:[%s6407_s6 + $0x4f8] sm:$0xff] %v1087_v47  ;;  %v1215_v47 = vld [vmem:[%s6402_s5 + $0xdf0] sm:$0xff] }
  0xe3   : > { %1090 = vst [vmem:[%s6407_s6 + $0x500] sm:$0xff] %v1089_v48  ;;  %v1217_v48 = vld [vmem:[%s6402_s5 + $0xe00] sm:$0xff] }
  0xe4   : > { %1092 = vst [vmem:[%s6407_s6 + $0x508] sm:$0xff] %v1091_v49  ;;  %v1219_v49 = vld [vmem:[%s6402_s5 + $0xe10] sm:$0xff] }
  0xe5   : > { %1094 = vst [vmem:[%s6407_s6 + $0x510] sm:$0xff] %v1093_v50  ;;  %v1221_v50 = vld [vmem:[%s6402_s5 + $0xe20] sm:$0xff] }
  0xe6   : > { %1096 = vst [vmem:[%s6407_s6 + $0x518] sm:$0xff] %v1095_v51  ;;  %v1223_v51 = vld [vmem:[%s6402_s5 + $0xe30] sm:$0xff] }
  0xe7   : > { %1098 = vst [vmem:[%s6407_s6 + $0x520] sm:$0xff] %v1097_v52  ;;  %v1225_v52 = vld [vmem:[%s6402_s5 + $0xe40] sm:$0xff] }
  0xe8   : > { %1100 = vst [vmem:[%s6407_s6 + $0x528] sm:$0xff] %v1099_v53  ;;  %v1227_v53 = vld [vmem:[%s6402_s5 + $0xe50] sm:$0xff] }
  0xe9   : > { %1102 = vst [vmem:[%s6407_s6 + $0x530] sm:$0xff] %v1101_v54  ;;  %v1229_v54 = vld [vmem:[%s6402_s5 + $0xe60] sm:$0xff] }
  0xea   : > { %1104 = vst [vmem:[%s6407_s6 + $0x538] sm:$0xff] %v1103_v55  ;;  %v1231_v55 = vld [vmem:[%s6402_s5 + $0xe70] sm:$0xff] }
  0xeb   : > { %1106 = vst [vmem:[%s6407_s6 + $0x540] sm:$0xff] %v1105_v56  ;;  %v1233_v56 = vld [vmem:[%s6402_s5 + $0xe80] sm:$0xff] }
  0xec   : > { %1108 = vst [vmem:[%s6407_s6 + $0x548] sm:$0xff] %v1107_v57  ;;  %v1235_v57 = vld [vmem:[%s6402_s5 + $0xe90] sm:$0xff] }
  0xed   : > { %1110 = vst [vmem:[%s6407_s6 + $0x550] sm:$0xff] %v1109_v58  ;;  %v1237_v58 = vld [vmem:[%s6402_s5 + $0xea0] sm:$0xff] }
  0xee   : > { %1112 = vst [vmem:[%s6407_s6 + $0x558] sm:$0xff] %v1111_v59  ;;  %v1239_v59 = vld [vmem:[%s6402_s5 + $0xeb0] sm:$0xff] }
  0xef   : > { %1114 = vst [vmem:[%s6407_s6 + $0x560] sm:$0xff] %v1113_v60  ;;  %v1241_v60 = vld [vmem:[%s6402_s5 + $0xec0] sm:$0xff] }
  0xf0   : > { %1116 = vst [vmem:[%s6407_s6 + $0x568] sm:$0xff] %v1115_v61  ;;  %v1243_v61 = vld [vmem:[%s6402_s5 + $0xed0] sm:$0xff] }
  0xf1   : > { %1118 = vst [vmem:[%s6407_s6 + $0x570] sm:$0xff] %v1117_v62  ;;  %v1245_v62 = vld [vmem:[%s6402_s5 + $0xee0] sm:$0xff] }
  0xf2   : > { %1120 = vst [vmem:[%s6407_s6 + $0x578] sm:$0xff] %v1119_v63  ;;  %v1247_v63 = vld [vmem:[%s6402_s5 + $0xef0] sm:$0xff] }
  0xf3   : > { %1122 = vst [vmem:[%s6407_s6 + $0x580] sm:$0xff] %v1121_v0  ;;  %v1249_v0 = vld [vmem:[%s6402_s5 + $0xf00] sm:$0xff] }
  0xf4   : > { %1124 = vst [vmem:[%s6407_s6 + $0x588] sm:$0xff] %v1123_v1  ;;  %v1251_v1 = vld [vmem:[%s6402_s5 + $0xf10] sm:$0xff] }
  0xf5   : > { %1126 = vst [vmem:[%s6407_s6 + $0x590] sm:$0xff] %v1125_v2  ;;  %v1253_v2 = vld [vmem:[%s6402_s5 + $0xf20] sm:$0xff] }
  0xf6   : > { %1128 = vst [vmem:[%s6407_s6 + $0x598] sm:$0xff] %v1127_v3  ;;  %v1255_v3 = vld [vmem:[%s6402_s5 + $0xf30] sm:$0xff] }
  0xf7   : > { %1130 = vst [vmem:[%s6407_s6 + $0x5a0] sm:$0xff] %v1129_v4  ;;  %v1257_v4 = vld [vmem:[%s6402_s5 + $0xf40] sm:$0xff] }
  0xf8   : > { %1132 = vst [vmem:[%s6407_s6 + $0x5a8] sm:$0xff] %v1131_v5  ;;  %v1259_v5 = vld [vmem:[%s6402_s5 + $0xf50] sm:$0xff] }
  0xf9   : > { %1134 = vst [vmem:[%s6407_s6 + $0x5b0] sm:$0xff] %v1133_v6  ;;  %v1261_v6 = vld [vmem:[%s6402_s5 + $0xf60] sm:$0xff] }
  0xfa   : > { %1136 = vst [vmem:[%s6407_s6 + $0x5b8] sm:$0xff] %v1135_v7  ;;  %v1263_v7 = vld [vmem:[%s6402_s5 + $0xf70] sm:$0xff] }
  0xfb   : > { %1138 = vst [vmem:[%s6407_s6 + $0x5c0] sm:$0xff] %v1137_v8  ;;  %v1265_v8 = vld [vmem:[%s6402_s5 + $0xf80] sm:$0xff] }
  0xfc   : > { %1140 = vst [vmem:[%s6407_s6 + $0x5c8] sm:$0xff] %v1139_v9  ;;  %v1267_v9 = vld [vmem:[%s6402_s5 + $0xf90] sm:$0xff] }
  0xfd   : > { %1142 = vst [vmem:[%s6407_s6 + $0x5d0] sm:$0xff] %v1141_v10  ;;  %v1269_v10 = vld [vmem:[%s6402_s5 + $0xfa0] sm:$0xff] }
  0xfe   : > { %1144 = vst [vmem:[%s6407_s6 + $0x5d8] sm:$0xff] %v1143_v11  ;;  %v1271_v11 = vld [vmem:[%s6402_s5 + $0xfb0] sm:$0xff] }
  0xff   : > { %1146 = vst [vmem:[%s6407_s6 + $0x5e0] sm:$0xff] %v1145_v12  ;;  %v1273_v12 = vld [vmem:[%s6402_s5 + $0xfc0] sm:$0xff] }
 0x100   : > { %1148 = vst [vmem:[%s6407_s6 + $0x5e8] sm:$0xff] %v1147_v13  ;;  %v1275_v13 = vld [vmem:[%s6402_s5 + $0xfd0] sm:$0xff] }
 0x101   : > { %1150 = vst [vmem:[%s6407_s6 + $0x5f0] sm:$0xff] %v1149_v14  ;;  %v1277_v14 = vld [vmem:[%s6402_s5 + $0xfe0] sm:$0xff] }
 0x102   : > { %1152 = vst [vmem:[%s6407_s6 + $0x5f8] sm:$0xff] %v1151_v15  ;;  %v1279_v15 = vld [vmem:[%s6402_s5 + $0xff0] sm:$0xff] }
 0x103   : > { %1154 = vst [vmem:[%s6407_s6 + $0x600] sm:$0xff] %v1153_v16 }
 0x104   : > { %1156 = vst [vmem:[%s6407_s6 + $0x608] sm:$0xff] %v1155_v17 }
 0x105   : > { %1158 = vst [vmem:[%s6407_s6 + $0x610] sm:$0xff] %v1157_v18 }
 0x106   : > { %1160 = vst [vmem:[%s6407_s6 + $0x618] sm:$0xff] %v1159_v19 }
 0x107   : > { %1162 = vst [vmem:[%s6407_s6 + $0x620] sm:$0xff] %v1161_v20 }
 0x108   : > { %1164 = vst [vmem:[%s6407_s6 + $0x628] sm:$0xff] %v1163_v21 }
 0x109   : > { %1166 = vst [vmem:[%s6407_s6 + $0x630] sm:$0xff] %v1165_v22 }
 0x10a   : > { %1168 = vst [vmem:[%s6407_s6 + $0x638] sm:$0xff] %v1167_v23 }
 0x10b   : > { %1170 = vst [vmem:[%s6407_s6 + $0x640] sm:$0xff] %v1169_v24 }
 0x10c   : > { %1172 = vst [vmem:[%s6407_s6 + $0x648] sm:$0xff] %v1171_v25 }
 0x10d   : > { %1174 = vst [vmem:[%s6407_s6 + $0x650] sm:$0xff] %v1173_v26 }
 0x10e   : > { %1176 = vst [vmem:[%s6407_s6 + $0x658] sm:$0xff] %v1175_v27 }
 0x10f   : > { %1178 = vst [vmem:[%s6407_s6 + $0x660] sm:$0xff] %v1177_v28 }
 0x110   : > { %1180 = vst [vmem:[%s6407_s6 + $0x668] sm:$0xff] %v1179_v29 }
 0x111   : > { %1182 = vst [vmem:[%s6407_s6 + $0x670] sm:$0xff] %v1181_v30 }
 0x112   : > { %1184 = vst [vmem:[%s6407_s6 + $0x678] sm:$0xff] %v1183_v31 }
 0x113   : > { %1186 = vst [vmem:[%s6407_s6 + $0x680] sm:$0xff] %v1185_v32 }
 0x114   : > { %1188 = vst [vmem:[%s6407_s6 + $0x688] sm:$0xff] %v1187_v33 }
 0x115   : > { %1190 = vst [vmem:[%s6407_s6 + $0x690] sm:$0xff] %v1189_v34 }
 0x116   : > { %1192 = vst [vmem:[%s6407_s6 + $0x698] sm:$0xff] %v1191_v35 }
 0x117   : > { %1194 = vst [vmem:[%s6407_s6 + $0x6a0] sm:$0xff] %v1193_v36 }
 0x118   : > { %1196 = vst [vmem:[%s6407_s6 + $0x6a8] sm:$0xff] %v1195_v37 }
 0x119   : > { %1198 = vst [vmem:[%s6407_s6 + $0x6b0] sm:$0xff] %v1197_v38 }
 0x11a   : > { %1200 = vst [vmem:[%s6407_s6 + $0x6b8] sm:$0xff] %v1199_v39 }
 0x11b   : > { %1202 = vst [vmem:[%s6407_s6 + $0x6c0] sm:$0xff] %v1201_v40 }
 0x11c   : > { %1204 = vst [vmem:[%s6407_s6 + $0x6c8] sm:$0xff] %v1203_v41 }
 0x11d   : > { %1206 = vst [vmem:[%s6407_s6 + $0x6d0] sm:$0xff] %v1205_v42 }
 0x11e   : > { %1208 = vst [vmem:[%s6407_s6 + $0x6d8] sm:$0xff] %v1207_v43 }
 0x11f   : > { %1210 = vst [vmem:[%s6407_s6 + $0x6e0] sm:$0xff] %v1209_v44 }
 0x120   : > { %1212 = vst [vmem:[%s6407_s6 + $0x6e8] sm:$0xff] %v1211_v45 }
 0x121   : > { %1214 = vst [vmem:[%s6407_s6 + $0x6f0] sm:$0xff] %v1213_v46 }
 0x122   : > { %1216 = vst [vmem:[%s6407_s6 + $0x6f8] sm:$0xff] %v1215_v47 }
 0x123   : > { %1218 = vst [vmem:[%s6407_s6 + $0x700] sm:$0xff] %v1217_v48 }
 0x124   : > { %1220 = vst [vmem:[%s6407_s6 + $0x708] sm:$0xff] %v1219_v49 }
 0x125   : > { %1222 = vst [vmem:[%s6407_s6 + $0x710] sm:$0xff] %v1221_v50 }
 0x126   : > { %1224 = vst [vmem:[%s6407_s6 + $0x718] sm:$0xff] %v1223_v51 }
 0x127   : > { %1226 = vst [vmem:[%s6407_s6 + $0x720] sm:$0xff] %v1225_v52 }
 0x128   : > { %1228 = vst [vmem:[%s6407_s6 + $0x728] sm:$0xff] %v1227_v53 }
 0x129   : > { %1230 = vst [vmem:[%s6407_s6 + $0x730] sm:$0xff] %v1229_v54 }
 0x12a   : > { %1232 = vst [vmem:[%s6407_s6 + $0x738] sm:$0xff] %v1231_v55 }
 0x12b   : > { %1234 = vst [vmem:[%s6407_s6 + $0x740] sm:$0xff] %v1233_v56 }
 0x12c   : > { %1236 = vst [vmem:[%s6407_s6 + $0x748] sm:$0xff] %v1235_v57 }
 0x12d   : > { %1238 = vst [vmem:[%s6407_s6 + $0x750] sm:$0xff] %v1237_v58 }
 0x12e   : > { %1240 = vst [vmem:[%s6407_s6 + $0x758] sm:$0xff] %v1239_v59 }
 0x12f   : > { %1242 = vst [vmem:[%s6407_s6 + $0x760] sm:$0xff] %v1241_v60 }
 0x130   : > { %1244 = vst [vmem:[%s6407_s6 + $0x768] sm:$0xff] %v1243_v61 }
 0x131   : > { %1246 = vst [vmem:[%s6407_s6 + $0x770] sm:$0xff] %v1245_v62 }
 0x132   : > { %1248 = vst [vmem:[%s6407_s6 + $0x778] sm:$0xff] %v1247_v63 }
 0x133   : > { %1250 = vst [vmem:[%s6407_s6 + $0x780] sm:$0xff] %v1249_v0 }
 0x134   : > { %1252 = vst [vmem:[%s6407_s6 + $0x788] sm:$0xff] %v1251_v1 }
 0x135   : > { %1254 = vst [vmem:[%s6407_s6 + $0x790] sm:$0xff] %v1253_v2 }
 0x136   : > { %1256 = vst [vmem:[%s6407_s6 + $0x798] sm:$0xff] %v1255_v3 }
 0x137   : > { %1258 = vst [vmem:[%s6407_s6 + $0x7a0] sm:$0xff] %v1257_v4 }
 0x138   : > { %1260 = vst [vmem:[%s6407_s6 + $0x7a8] sm:$0xff] %v1259_v5 }
 0x139   : > { %1262 = vst [vmem:[%s6407_s6 + $0x7b0] sm:$0xff] %v1261_v6 }
 0x13a   : > { %1264 = vst [vmem:[%s6407_s6 + $0x7b8] sm:$0xff] %v1263_v7 }
 0x13b   : > { %1266 = vst [vmem:[%s6407_s6 + $0x7c0] sm:$0xff] %v1265_v8 }
 0x13c   : > { %1268 = vst [vmem:[%s6407_s6 + $0x7c8] sm:$0xff] %v1267_v9 }
 0x13d   : > { %1270 = vst [vmem:[%s6407_s6 + $0x7d0] sm:$0xff] %v1269_v10 }
 0x13e   : > { %1272 = vst [vmem:[%s6407_s6 + $0x7d8] sm:$0xff] %v1271_v11 }
 0x13f   : > { %1274 = vst [vmem:[%s6407_s6 + $0x7e0] sm:$0xff] %v1273_v12 }
 0x140   : > { %1276 = vst [vmem:[%s6407_s6 + $0x7e8] sm:$0xff] %v1275_v13 }
 0x141   : > { %1278 = vst [vmem:[%s6407_s6 + $0x7f0] sm:$0xff] %v1277_v14 }
 0x142   : > { %1280 = vst [vmem:[%s6407_s6 + $0x7f8] sm:$0xff] %v1279_v15 }
 0x143 PF: > { %p4697_p0 = scmp.ge.s32.totalorder %s6247_s22, 1  ;;  %p2352_p1 = scmp.lt.s32.totalorder %s6247_s22, 23 }
 0x145   : > { %p2353_p2 = pnand %p4697_p0, %p2352_p1 }
 0x146   : > { %s2359_s0 = sand.u32 (!%p2353_p2), 1, %s6223_s16   ;;  %s2366_s23 = sand.u32 (!%p2353_p2), 1, %s6215_s14  }
 0x147   : > { %2356 = sbr.rel (%p2353_p2) target bundleno = 771 (0x303), region = 99  ;;  %s4698_s28 = sshll.u32 (!%p2353_p2), %s2359_s0, 7 }
 0x148   : > { %s4699_s7 = sshll.u32 (!%p2353_p2), %s2366_s23, 11  ;;  %s2393_s11 = sand.u32 (!%p2353_p2), 1, %s6207_s12  }
 0x149   : > { %s4701_s26 = sshll.u32 (!%p2353_p2), %s6235_s19, 1  ;;  %s4700_s27 = sshll.u32 (!%p2353_p2), %s2393_s11, 5 }
 0x14a   : > { %p2401_p3 = scmp.lt.s32.totalorder (!%p2353_p2), %s4701_s26, 3  ;;  %s6930_s6 = scalar_lea.vmem (!%p2353_p2), [#allocation3], %s4698_s28 }
 0x14b   : > { %s6932_s1 = scalar_lea.vmem (!%p2353_p2), [#allocation4], %s4699_s7  ;;  %s6934_s25 = scalar_lea.vmem (!%p2353_p2), [#allocation5], %s4700_s27 }
 0x14c   : > { %s7665_s26 = smov (!%p2401_p3, %s4701_s26), 3  ;;  %p4702_p4 = scmp.ne.s32.totalorder %s6231_s18, 0 }
 0x14d   : > { %s2403_s5 = scalar_lea.vmem %s7636_s2, %s7665_s26 }
 0x14e   : > { %2410 = sbr.rel (%p4702_p4) target bundleno = 344 (0x158), region = 111 }
 0x153   : > { %v6249_v16 = vmov 0.0  }
 0x154   : > { %2411 = vst [vmem:[#allocation2 + $0x10] sm:$0xff] %v6249_v16 }
 0x155   : > { %2412 = vst [vmem:[#allocation2] sm:$0xff] %v6249_v16 }
 0x156   : > { %2413 = vst [vmem:[#allocation2 + $0x18] sm:$0xff] %v6249_v16 }
 0x157   : > { %2414 = vst [vmem:[#allocation2 + $0x8] sm:$0xff] %v6249_v16 }
 0x158 PF: > { %v4825_v17 = vld [vmem:[%s6932_s1 + $0x70] sm:$0xf]  ;;  %v5830_v18 = vld [vmem:[%s6932_s1 + $0x74] sm:$0xf0]  ;;  %v4817_v28 = vld [vmem:[%s6932_s1 + $0x60] sm:$0xf] }
 0x159   : > { %v4889_v19 = vld [vmem:[%s6932_s1 + $0xf0] sm:$0xf]  ;;  %v4826_v20 = vor.u32 %v5830_v18, %v4825_v17  ;;  %v5846_v21 = vld [vmem:[%s6932_s1 + $0xf4] sm:$0xf0]  ;;  %v5828_v30 = vld [vmem:[%s6932_s1 + $0x64] sm:$0xf0] }
 0x15a   : > { %v4953_v22 = vld [vmem:[%s6932_s1 + $0x170] sm:$0xf]  ;;  %v5862_v23 = vld [vmem:[%s6932_s1 + $0x174] sm:$0xf0]  ;;  %v4890_v24 = vor.u32 %v5846_v21, %v4889_v19  ;;  %v4881_v31 = vld [vmem:[%s6932_s1 + $0xe0] sm:$0xf]  ;;  %v4818_v33 = vor.u32 %v5828_v30, %v4817_v28 }
 0x15b   : > { %v4954_v25 = vor.u32 %v5862_v23, %v4953_v22  ;;  %v5017_v26 = vld [vmem:[%s6932_s1 + $0x1f0] sm:$0xf]  ;;  %v5878_v27 = vld [vmem:[%s6932_s1 + $0x1f4] sm:$0xf0]  ;;  %4051 = vmatpush.bf16.msra.mxu0 %v4826_v20  ;;  %v5844_v32 = vld [vmem:[%s6932_s1 + $0xe4] sm:$0xf0] }
 0x15c   : > { %v5018_v29 = vor.u32 %v5878_v27, %v5017_v26  ;;  %4065 = vmatpush.bf16.msra.mxu1 %v4890_v24  ;;  %v4882_v34 = vor.u32 %v5844_v32, %v4881_v31  ;;  %v4945_v35 = vld [vmem:[%s6932_s1 + $0x160] sm:$0xf]  ;;  %v5860_v36 = vld [vmem:[%s6932_s1 + $0x164] sm:$0xf0]  ;;  %v4809_v40 = vld [vmem:[%s6932_s1 + $0x50] sm:$0xf] }
 0x15d   : > { %4079 = vmatpush.bf16.msra.mxu2 %v4954_v25  ;;  %v5009_v37 = vld [vmem:[%s6932_s1 + $0x1e0] sm:$0xf]  ;;  %v4946_v38 = vor.u32 %v5860_v36, %v4945_v35  ;;  %v5876_v39 = vld [vmem:[%s6932_s1 + $0x1e4] sm:$0xf0]  ;;  %v5826_v41 = vld [vmem:[%s6932_s1 + $0x54] sm:$0xf0] }
 0x15e   : > { %4093 = vmatpush.bf16.msra.mxu3 %v5018_v29  ;;  %v5010_v42 = vor.u32 %v5876_v39, %v5009_v37  ;;  %v4873_v43 = vld [vmem:[%s6932_s1 + $0xd0] sm:$0xf]  ;;  %v5842_v44 = vld [vmem:[%s6932_s1 + $0xd4] sm:$0xf0]  ;;  %v4810_v46 = vor.u32 %v5826_v41, %v4809_v40  ;;  %v4801_v52 = vld [vmem:[%s6932_s1 + $0x40] sm:$0xf] }
 0x15f   : > { %v4937_v45 = vld [vmem:[%s6932_s1 + $0x150] sm:$0xf]  ;;  %4052 = vmatpush.bf16.msra.mxu0 %v4818_v33  ;;  %v5858_v47 = vld [vmem:[%s6932_s1 + $0x154] sm:$0xf0]  ;;  %v4874_v50 = vor.u32 %v5842_v44, %v4873_v43  ;;  %v5824_v53 = vld [vmem:[%s6932_s1 + $0x44] sm:$0xf0] }
 0x160   : > { %v5001_v48 = vld [vmem:[%s6932_s1 + $0x1d0] sm:$0xf]  ;;  %v5874_v49 = vld [vmem:[%s6932_s1 + $0x1d4] sm:$0xf0]  ;;  %4066 = vmatpush.bf16.msra.mxu1 %v4882_v34  ;;  %v4938_v51 = vor.u32 %v5858_v47, %v4937_v45  ;;  %v4865_v54 = vld [vmem:[%s6932_s1 + $0xc0] sm:$0xf]  ;;  %v4802_v61 = vor.u32 %v5824_v53, %v4801_v52 }
 0x161   : > { %4080 = vmatpush.bf16.msra.mxu2 %v4946_v38  ;;  %v5002_v55 = vor.u32 %v5874_v49, %v5001_v48  ;;  %v5840_v56 = vld [vmem:[%s6932_s1 + $0xc4] sm:$0xf0]  ;;  %v4929_v57 = vld [vmem:[%s6932_s1 + $0x140] sm:$0xf]  ;;  %v4793_v0 = vld [vmem:[%s6932_s1 + $0x30] sm:$0xf] }
 0x162   : > { %4094 = vmatpush.bf16.msra.mxu3 %v5010_v42  ;;  %v5856_v58 = vld [vmem:[%s6932_s1 + $0x144] sm:$0xf0]  ;;  %v4993_v59 = vld [vmem:[%s6932_s1 + $0x1c0] sm:$0xf]  ;;  %v4866_v62 = vor.u32 %v5840_v56, %v4865_v54  ;;  %v5822_v1 = vld [vmem:[%s6932_s1 + $0x34] sm:$0xf0] }
 0x163   : > { %v5872_v60 = vld [vmem:[%s6932_s1 + $0x1c4] sm:$0xf0]  ;;  %4053 = vmatpush.bf16.msra.mxu0 %v4810_v46  ;;  %v4930_v63 = vor.u32 %v5856_v58, %v4929_v57  ;;  %v4857_v2 = vld [vmem:[%s6932_s1 + $0xb0] sm:$0xf]  ;;  %v5838_v4 = vld [vmem:[%s6932_s1 + $0xb4] sm:$0xf0]  ;;  %v4794_v9 = vor.u32 %v5822_v1, %v4793_v0 }
 0x164   : > { %4067 = vmatpush.bf16.msra.mxu1 %v4874_v50  ;;  %v4994_v3 = vor.u32 %v5872_v60, %v4993_v59  ;;  %v4921_v5 = vld [vmem:[%s6932_s1 + $0x130] sm:$0xf]  ;;  %v5854_v6 = vld [vmem:[%s6932_s1 + $0x134] sm:$0xf0]  ;;  %v4858_v10 = vor.u32 %v5838_v4, %v4857_v2  ;;  %v4785_v12 = vld [vmem:[%s6932_s1 + $0x20] sm:$0xf] }
 0x165   : > { %4081 = vmatpush.bf16.msra.mxu2 %v4938_v51  ;;  %v4985_v7 = vld [vmem:[%s6932_s1 + $0x1b0] sm:$0xf]  ;;  %v5870_v8 = vld [vmem:[%s6932_s1 + $0x1b4] sm:$0xf0]  ;;  %v4922_v11 = vor.u32 %v5854_v6, %v4921_v5  ;;  %v5820_v13 = vld [vmem:[%s6932_s1 + $0x24] sm:$0xf0] }
 0x166   : > { %4095 = vmatpush.bf16.msra.mxu3 %v5002_v55  ;;  %v4849_v14 = vld [vmem:[%s6932_s1 + $0xa0] sm:$0xf]  ;;  %v4986_v15 = vor.u32 %v5870_v8, %v4985_v7  ;;  %v5836_v16 = vld [vmem:[%s6932_s1 + $0xa4] sm:$0xf0]  ;;  %v4786_v21 = vor.u32 %v5820_v13, %v4785_v12  ;;  %v4777_v24 = vld [vmem:[%s6932_s1 + $0x10] sm:$0xf] }
 0x167   : > { %4054 = vmatpush.bf16.msra.mxu0 %v4802_v61  ;;  %v4913_v17 = vld [vmem:[%s6932_s1 + $0x120] sm:$0xf]  ;;  %v5852_v18 = vld [vmem:[%s6932_s1 + $0x124] sm:$0xf0]  ;;  %v4850_v22 = vor.u32 %v5836_v16, %v4849_v14  ;;  %v5818_v25 = vld [vmem:[%s6932_s1 + $0x14] sm:$0xf0] }
 0x168   : > { %4068 = vmatpush.bf16.msra.mxu1 %v4866_v62  ;;  %v4977_v19 = vld [vmem:[%s6932_s1 + $0x1a0] sm:$0xf]  ;;  %v5868_v20 = vld [vmem:[%s6932_s1 + $0x1a4] sm:$0xf0]  ;;  %v4914_v23 = vor.u32 %v5852_v18, %v4913_v17  ;;  %v4841_v26 = vld [vmem:[%s6932_s1 + $0x90] sm:$0xf]  ;;  %v4778_v33 = vor.u32 %v5818_v25, %v4777_v24 }
 0x169   : > { %4082 = vmatpush.bf16.msra.mxu2 %v4930_v63  ;;  %v4978_v27 = vor.u32 %v5868_v20, %v4977_v19  ;;  %v5834_v28 = vld [vmem:[%s6932_s1 + $0x94] sm:$0xf0]  ;;  %v4905_v29 = vld [vmem:[%s6932_s1 + $0x110] sm:$0xf]  ;;  %v4769_v34 = vld [vmem:[%s6932_s1] sm:$0xf] }
 0x16a   : > { %4096 = vmatpush.bf16.msra.mxu3 %v4994_v3  ;;  %v5850_v30 = vld [vmem:[%s6932_s1 + $0x114] sm:$0xf0]  ;;  %v4969_v31 = vld [vmem:[%s6932_s1 + $0x190] sm:$0xf]  ;;  %v5816_v35 = vld [vmem:[%s6932_s1 + $0x4] sm:$0xf0]  ;;  %v4842_v36 = vor.u32 %v5834_v28, %v4841_v26 }
 0x16b   : > { %4055 = vmatpush.bf16.msra.mxu0 %v4794_v9  ;;  %v5866_v32 = vld [vmem:[%s6932_s1 + $0x194] sm:$0xf0]  ;;  %v4906_v37 = vor.u32 %v5850_v30, %v4905_v29  ;;  %v4833_v38 = vld [vmem:[%s6932_s1 + $0x80] sm:$0xf]  ;;  %v5832_v39 = vld [vmem:[%s6932_s1 + $0x84] sm:$0xf0]  ;;  %v4770_v48 = vor.u32 %v5816_v35, %v4769_v34 }
 0x16c   : > { %4069 = vmatpush.bf16.msra.mxu1 %v4858_v10  ;;  %v4897_v40 = vld [vmem:[%s6932_s1 + $0x100] sm:$0xf]  ;;  %v4970_v41 = vor.u32 %v5866_v32, %v4969_v31  ;;  %v5848_v42 = vld [vmem:[%s6932_s1 + $0x104] sm:$0xf0]  ;;  %v5081_v45 = vld [vmem:[%s6932_s1 + $0x270] sm:$0xf]  ;;  %v4834_v52 = vor.u32 %v5832_v39, %v4833_v38 }
 0x16d   : > { %4083 = vmatpush.bf16.msra.mxu2 %v4922_v11  ;;  %v4961_v43 = vld [vmem:[%s6932_s1 + $0x180] sm:$0xf]  ;;  %v5864_v44 = vld [vmem:[%s6932_s1 + $0x184] sm:$0xf0]  ;;  %v5894_v46 = vld [vmem:[%s6932_s1 + $0x274] sm:$0xf0]  ;;  %v4898_v53 = vor.u32 %v5848_v42, %v4897_v40 }
 0x16e   : > { %4097 = vmatpush.bf16.msra.mxu3 %v4986_v15  ;;  %v5145_v47 = vld [vmem:[%s6932_s1 + $0x2f0] sm:$0xf]  ;;  %v5910_v49 = vld [vmem:[%s6932_s1 + $0x2f4] sm:$0xf0]  ;;  %v4962_v56 = vor.u32 %v5864_v44, %v4961_v43  ;;  %v5082_v57 = vor.u32 %v5894_v46, %v5081_v45  ;;  %v5073_v58 = vld [vmem:[%s6932_s1 + $0x260] sm:$0xf] }
 0x16f   : > { %4056 = vmatpush.bf16.msra.mxu0 %v4786_v21  ;;  %v5209_v50 = vld [vmem:[%s6932_s1 + $0x370] sm:$0xf]  ;;  %v5926_v51 = vld [vmem:[%s6932_s1 + $0x374] sm:$0xf0]  ;;  %v5892_v59 = vld [vmem:[%s6932_s1 + $0x264] sm:$0xf0]  ;;  %v5146_v60 = vor.u32 %v5910_v49, %v5145_v47 }
 0x170   : > { %4070 = vmatpush.bf16.msra.mxu1 %v4850_v22  ;;  %v5273_v54 = vld [vmem:[%s6932_s1 + $0x3f0] sm:$0xf]  ;;  %v5942_v55 = vld [vmem:[%s6932_s1 + $0x3f4] sm:$0xf0]  ;;  %v5210_v61 = vor.u32 %v5926_v51, %v5209_v50  ;;  %v5137_v62 = vld [vmem:[%s6932_s1 + $0x2e0] sm:$0xf]  ;;  %v5074_v8 = vor.u32 %v5892_v59, %v5073_v58 }
 0x171   : > { %4084 = vmatpush.bf16.msra.mxu2 %v4914_v23  ;;  %v5908_v63 = vld [vmem:[%s6932_s1 + $0x2e4] sm:$0xf0]  ;;  %v5201_v0 = vld [vmem:[%s6932_s1 + $0x360] sm:$0xf]  ;;  %v5274_v1 = vor.u32 %v5942_v55, %v5273_v54  ;;  %v5065_v9 = vld [vmem:[%s6932_s1 + $0x250] sm:$0xf] }
 0x172   : > { %4098 = vmatpush.bf16.msra.mxu3 %v4978_v27  ;;  %v5924_v2 = vld [vmem:[%s6932_s1 + $0x364] sm:$0xf0]  ;;  %v5265_v3 = vld [vmem:[%s6932_s1 + $0x3e0] sm:$0xf]  ;;  %v5890_v10 = vld [vmem:[%s6932_s1 + $0x254] sm:$0xf0]  ;;  %v5138_v13 = vor.u32 %v5908_v63, %v5137_v62 }
 0x173   : > { %4057 = vmatpush.bf16.msra.mxu0 %v4778_v33  ;;  %v5940_v4 = vld [vmem:[%s6932_s1 + $0x3e4] sm:$0xf0]  ;;  %v4705_v5 = vld [vmem:[%s6930_s6] sm:$0xf]  ;;  %v5202_v14 = vor.u32 %v5924_v2, %v5201_v0  ;;  %v5129_v15 = vld [vmem:[%s6932_s1 + $0x2d0] sm:$0xf]  ;;  %v5066_v26 = vor.u32 %v5890_v10, %v5065_v9 }
 0x174   : > { %4071 = vmatpush.bf16.msra.mxu1 %v4842_v36  ;;  %v5807_v6 = vld [vmem:[%s6930_s6 + $0x3c] sm:$0xf0]  ;;  %v4713_v7 = vld [vmem:[%s6930_s6 + $0x8] sm:$0xf]  ;;  %v5906_v16 = vld [vmem:[%s6932_s1 + $0x2d4] sm:$0xf0]  ;;  %v5266_v19 = vor.u32 %v5940_v4, %v5265_v3 }
 0x175   : > { %4085 = vmatpush.bf16.msra.mxu2 %v4906_v37  ;;  %v7022_v11 = vor.u32 %v5807_v6, %v4705_v5  ;;  %v5808_v12 = vld [vmem:[%s6930_s6 + $0x44] sm:$0xf0]  ;;  %v5193_v17 = vld [vmem:[%s6932_s1 + $0x350] sm:$0xf]  ;;  %v5922_v20 = vld [vmem:[%s6932_s1 + $0x354] sm:$0xf0]  ;;  %v5130_v29 = vor.u32 %v5906_v16, %v5129_v15 }
 0x176   : > { %4099 = vmatpush.bf16.msra.mxu3 %v4970_v41  ;;  %v7028_v18 = vor.u32 %v5808_v12, %v4713_v7  ;;  %v5257_v21 = vld [vmem:[%s6932_s1 + $0x3d0] sm:$0xf]  ;;  %v5938_v22 = vld [vmem:[%s6932_s1 + $0x3d4] sm:$0xf0]  ;;  %v5799_v23 = vld [vmem:[%s6930_s6 + $0x4] sm:$0xf]  ;;  %v5194_v30 = vor.u32 %v5922_v20, %v5193_v17 }
 0x177   : > { %4058 = vmatpush.bf16.msra.mxu0 %v4770_v48  ;;  %v4707_v24 = vld [vmem:[%s6930_s6 + $0x40] sm:$0xf0]  ;;  %v5800_v25 = vld [vmem:[%s6930_s6 + $0xc] sm:$0xf]  ;;  %v5057_v31 = vld [vmem:[%s6932_s1 + $0x240] sm:$0xf]  ;;  %v5258_v35 = vor.u32 %v5938_v22, %v5257_v21 }
 0x178   : > { %4072 = vmatpush.bf16.msra.mxu1 %v4834_v52  ;;  %v7038_v27 = vor.u32 %v5799_v23, %v4707_v24  ;;  %v4715_v28 = vld [vmem:[%s6930_s6 + $0x48] sm:$0xf0]  ;;  %v5888_v32 = vld [vmem:[%s6932_s1 + $0x244] sm:$0xf0]  ;;  %v5121_v33 = vld [vmem:[%s6932_s1 + $0x2c0] sm:$0xf] }
 0x179   : > { %4086 = vmatpush.bf16.msra.mxu2 %v4898_v53  ;;  %v7044_v34 = vor.u32 %v5800_v25, %v4715_v28  ;;  %v5904_v36 = vld [vmem:[%s6932_s1 + $0x2c4] sm:$0xf0]  ;;  %v5185_v37 = vld [vmem:[%s6932_s1 + $0x340] sm:$0xf]  ;;  %v5058_v41 = vor.u32 %v5888_v32, %v5057_v31  ;;  %v5049_v44 = vld [vmem:[%s6932_s1 + $0x230] sm:$0xf] }
 0x17a   : > { %4100 = vmatpush.bf16.msra.mxu3 %v4962_v56  ;;  %4059 = vmatmul.bf16.vlgmr.msra.gmra.mxu0 %v7022_v11  ;;  %v5920_v38 = vld [vmem:[%s6932_s1 + $0x344] sm:$0xf0]  ;;  %v5249_v39 = vld [vmem:[%s6932_s1 + $0x3c0] sm:$0xf]  ;;  %v5122_v42 = vor.u32 %v5904_v36, %v5121_v33  ;;  %v5886_v45 = vld [vmem:[%s6932_s1 + $0x234] sm:$0xf0] }
 0x17b   : > { %4107 = vmatpush.bf16.msrb.mxu0 %v5082_v57  ;;  %4073 = vmatmul.bf16.vlgmr.msra.gmra.mxu1 %v7038_v27  ;;  %v5936_v40 = vld [vmem:[%s6932_s1 + $0x3c4] sm:$0xf0]  ;;  %v5186_v43 = vor.u32 %v5920_v38, %v5185_v37  ;;  %v5113_v46 = vld [vmem:[%s6932_s1 + $0x2b0] sm:$0xf]  ;;  %v5902_v48 = vld [vmem:[%s6932_s1 + $0x2b4] sm:$0xf0]  ;;  %v5050_v53 = vor.u32 %v5886_v45, %v5049_v44 }
 0x17c   : > { %4121 = vmatpush.bf16.msrb.mxu1 %v5146_v60  ;;  %4087 = vmatmul.bf16.vlgmr.msra.gmra.mxu2 %v7028_v18  ;;  %v5250_v47 = vor.u32 %v5936_v40, %v5249_v39  ;;  %v5177_v49 = vld [vmem:[%s6932_s1 + $0x330] sm:$0xf]  ;;  %v5918_v50 = vld [vmem:[%s6932_s1 + $0x334] sm:$0xf0]  ;;  %v5114_v54 = vor.u32 %v5902_v48, %v5113_v46  ;;  %v5041_v56 = vld [vmem:[%s6932_s1 + $0x220] sm:$0xf] }
 0x17d   : > { %4135 = vmatpush.bf16.msrb.mxu2 %v5210_v61  ;;  %4101 = vmatmul.bf16.vlgmr.msra.gmra.mxu3 %v7044_v34  ;;  %v5241_v51 = vld [vmem:[%s6932_s1 + $0x3b0] sm:$0xf]  ;;  %v5934_v52 = vld [vmem:[%s6932_s1 + $0x3b4] sm:$0xf0]  ;;  %v5178_v55 = vor.u32 %v5918_v50, %v5177_v49  ;;  %v5884_v57 = vld [vmem:[%s6932_s1 + $0x224] sm:$0xf0] }
 0x17e   : > { %4149 = vmatpush.bf16.msrb.mxu3 %v5274_v1  ;;  %v5105_v58 = vld [vmem:[%s6932_s1 + $0x2a0] sm:$0xf]  ;;  %v5242_v59 = vor.u32 %v5934_v52, %v5241_v51  ;;  %v5900_v60 = vld [vmem:[%s6932_s1 + $0x2a4] sm:$0xf0]  ;;  %v5042_v1 = vor.u32 %v5884_v57, %v5041_v56  ;;  %v5033_v2 = vld [vmem:[%s6932_s1 + $0x210] sm:$0xf] }
 0x17f   : > { %4108 = vmatpush.bf16.msrb.mxu0 %v5074_v8  ;;  %v5169_v61 = vld [vmem:[%s6932_s1 + $0x320] sm:$0xf]  ;;  %v5916_v62 = vld [vmem:[%s6932_s1 + $0x324] sm:$0xf0]  ;;  %v5106_v3 = vor.u32 %v5900_v60, %v5105_v58  ;;  %v5882_v5 = vld [vmem:[%s6932_s1 + $0x214] sm:$0xf0] }
 0x180   : > { %4122 = vmatpush.bf16.msrb.mxu1 %v5138_v13  ;;  %v5233_v63 = vld [vmem:[%s6932_s1 + $0x3a0] sm:$0xf]  ;;  %v5932_v0 = vld [vmem:[%s6932_s1 + $0x3a4] sm:$0xf0]  ;;  %v5170_v4 = vor.u32 %v5916_v62, %v5169_v61  ;;  %v5097_v6 = vld [vmem:[%s6932_s1 + $0x290] sm:$0xf]  ;;  %v5034_v16 = vor.u32 %v5882_v5, %v5033_v2 }
 0x181   : > { %4136 = vmatpush.bf16.msrb.mxu2 %v5202_v14  ;;  %v5898_v7 = vld [vmem:[%s6932_s1 + $0x294] sm:$0xf0]  ;;  %v5234_v8 = vor.u32 %v5932_v0, %v5233_v63  ;;  %v5161_v9 = vld [vmem:[%s6932_s1 + $0x310] sm:$0xf]  ;;  %v5025_v14 = vld [vmem:[%s6932_s1 + $0x200] sm:$0xf] }
 0x182   : > { %4150 = vmatpush.bf16.msrb.mxu3 %v5266_v19  ;;  %v5914_v10 = vld [vmem:[%s6932_s1 + $0x314] sm:$0xf0]  ;;  %v5225_v12 = vld [vmem:[%s6932_s1 + $0x390] sm:$0xf]  ;;  %v5880_v15 = vld [vmem:[%s6932_s1 + $0x204] sm:$0xf0]  ;;  %v5098_v22 = vor.u32 %v5898_v7, %v5097_v6 }
 0x183   : > { %4109 = vmatpush.bf16.msrb.mxu0 %v5066_v26  ;;  %v5930_v13 = vld [vmem:[%s6932_s1 + $0x394] sm:$0xf0]  ;;  %v5089_v17 = vld [vmem:[%s6932_s1 + $0x280] sm:$0xf]  ;;  %v5896_v19 = vld [vmem:[%s6932_s1 + $0x284] sm:$0xf0]  ;;  %v5162_v23 = vor.u32 %v5914_v10, %v5161_v9  ;;  %v5026_v36 = vor.u32 %v5880_v15, %v5025_v14 }
 0x184   : > { %4123 = vmatpush.bf16.msrb.mxu1 %v5130_v29  ;;  %v5153_v20 = vld [vmem:[%s6932_s1 + $0x300] sm:$0xf]  ;;  %v5912_v21 = vld [vmem:[%s6932_s1 + $0x304] sm:$0xf0]  ;;  %v5337_v26 = vld [vmem:[%s6932_s1 + $0x470] sm:$0xf]  ;;  %v5226_v28 = vor.u32 %v5930_v13, %v5225_v12  ;;  %v5090_v40 = vor.u32 %v5896_v19, %v5089_v17 }
 0x185   : > { %4137 = vmatpush.bf16.msrb.mxu2 %v5194_v30  ;;  %v5217_v24 = vld [vmem:[%s6932_s1 + $0x380] sm:$0xf]  ;;  %v5928_v25 = vld [vmem:[%s6932_s1 + $0x384] sm:$0xf0]  ;;  %v5958_v29 = vld [vmem:[%s6932_s1 + $0x474] sm:$0xf0] }
 0x186   : > { %4151 = vmatpush.bf16.msrb.mxu3 %v5258_v35  ;;  %v5401_v30 = vld [vmem:[%s6932_s1 + $0x4f0] sm:$0xf]  ;;  %v5974_v31 = vld [vmem:[%s6932_s1 + $0x4f4] sm:$0xf0]  ;;  %v5801_v44 = vld [vmem:[%s6930_s6 + $0x14] sm:$0xf]  ;;  %v5218_v45 = vor.u32 %v5928_v25, %v5217_v24  ;;  %v5338_v46 = vor.u32 %v5958_v29, %v5337_v26 }
 0x187   : > { %4110 = vmatpush.bf16.msrb.mxu0 %v5058_v41  ;;  %v5465_v32 = vld [vmem:[%s6932_s1 + $0x570] sm:$0xf]  ;;  %v5990_v33 = vld [vmem:[%s6932_s1 + $0x574] sm:$0xf0]  ;;  %v5154_v41 = vor.u32 %v5912_v21, %v5153_v20  ;;  %v5802_v48 = vld [vmem:[%s6930_s6 + $0x1c] sm:$0xf]  ;;  %v5402_v50 = vor.u32 %v5974_v31, %v5401_v30 }
 0x188   : > { %4124 = vmatpush.bf16.msrb.mxu1 %v5122_v42  ;;  %v5529_v35 = vld [vmem:[%s6932_s1 + $0x5f0] sm:$0xf]  ;;  %v6006_v37 = vld [vmem:[%s6932_s1 + $0x5f4] sm:$0xf0]  ;;  %v4731_v49 = vld [vmem:[%s6930_s6 + $0x58] sm:$0xf0]  ;;  %v5466_v51 = vor.u32 %v5990_v33, %v5465_v32 }
 0x189   : > { %4138 = vmatpush.bf16.msrb.mxu2 %v5186_v43  ;;  %v4721_v38 = vld [vmem:[%s6930_s6 + $0x10] sm:$0xf]  ;;  %v4729_v42 = vld [vmem:[%s6930_s6 + $0x18] sm:$0xf]  ;;  %v5329_v52 = vld [vmem:[%s6932_s1 + $0x460] sm:$0xf]  ;;  %v7115_v0 = vor.u32 %v5802_v48, %v4731_v49 }
 0x18a   : > { %4152 = vmatpush.bf16.msrb.mxu3 %v5250_v47  ;;  %v5809_v39 = vld [vmem:[%s6930_s6 + $0x4c] sm:$0xf0]  ;;  %v5810_v43 = vld [vmem:[%s6930_s6 + $0x54] sm:$0xf0]  ;;  %v4723_v47 = vld [vmem:[%s6930_s6 + $0x50] sm:$0xf0] }
 0x18b   : > { %4111 = vmatpush.bf16.msrb.mxu0 %v5050_v53  ;;  %v5956_v53 = vld [vmem:[%s6932_s1 + $0x464] sm:$0xf0]  ;;  %v7104_v56 = vor.u32 %v5809_v39, %v4721_v38  ;;  %v5457_v58 = vld [vmem:[%s6932_s1 + $0x560] sm:$0xf]  ;;  %v7109_v60 = vor.u32 %v5810_v43, %v4729_v42  ;;  %v7111_v61 = vor.u32 %v5801_v44, %v4723_v47  ;;  %v5954_v5 = vld [vmem:[%s6932_s1 + $0x454] sm:$0xf0] }
 0x18c   : > { %4125 = vmatpush.bf16.msrb.mxu1 %v5114_v54  ;;  %v5393_v54 = vld [vmem:[%s6932_s1 + $0x4e0] sm:$0xf]  ;;  %v5972_v57 = vld [vmem:[%s6932_s1 + $0x4e4] sm:$0xf0]  ;;  %v5385_v6 = vld [vmem:[%s6932_s1 + $0x4d0] sm:$0xf] }
 0x18d   : > { %4139 = vmatpush.bf16.msrb.mxu2 %v5178_v55  ;;  %v5530_v55 = vor.u32 %v6006_v37, %v5529_v35  ;;  %v5521_v62 = vld [vmem:[%s6932_s1 + $0x5e0] sm:$0xf]  ;;  %v6004_v63 = vld [vmem:[%s6932_s1 + $0x5e4] sm:$0xf0]  ;;  %v5394_v2 = vor.u32 %v5972_v57, %v5393_v54  ;;  %v5449_v9 = vld [vmem:[%s6932_s1 + $0x550] sm:$0xf] }
 0x18e   : > { %4153 = vmatpush.bf16.msrb.mxu3 %v5242_v59  ;;  %v5988_v59 = vld [vmem:[%s6932_s1 + $0x564] sm:$0xf0]  ;;  %v5522_v7 = vor.u32 %v6004_v63, %v5521_v62  ;;  %v5986_v10 = vld [vmem:[%s6932_s1 + $0x554] sm:$0xf0]  ;;  %v5513_v12 = vld [vmem:[%s6932_s1 + $0x5d0] sm:$0xf] }
 0x18f   : > { %4112 = vmatpush.bf16.msrb.mxu0 %v5042_v1  ;;  %v5330_v1 = vor.u32 %v5956_v53, %v5329_v52  ;;  %v6002_v13 = vld [vmem:[%s6932_s1 + $0x5d4] sm:$0xf0]  ;;  %v5313_v17 = vld [vmem:[%s6932_s1 + $0x440] sm:$0xf]  ;;  %v5952_v19 = vld [vmem:[%s6932_s1 + $0x444] sm:$0xf0] }
 0x190   : > { %4126 = vmatpush.bf16.msrb.mxu1 %v5106_v3  ;;  %v5458_v3 = vor.u32 %v5988_v59, %v5457_v58  ;;  %v5377_v20 = vld [vmem:[%s6932_s1 + $0x4c0] sm:$0xf]  ;;  %v5514_v21 = vor.u32 %v6002_v13, %v5513_v12  ;;  %v5984_v24 = vld [vmem:[%s6932_s1 + $0x544] sm:$0xf0]  ;;  %v5305_v31 = vld [vmem:[%s6932_s1 + $0x430] sm:$0xf] }
 0x191   : > { %4140 = vmatpush.bf16.msrb.mxu2 %v5170_v4  ;;  %v5321_v4 = vld [vmem:[%s6932_s1 + $0x450] sm:$0xf]  ;;  %v5505_v25 = vld [vmem:[%s6932_s1 + $0x5c0] sm:$0xf]  ;;  %v6000_v26 = vld [vmem:[%s6932_s1 + $0x5c4] sm:$0xf0] }
 0x192   : > { %4154 = vmatpush.bf16.msrb.mxu3 %v5234_v8  ;;  %v5970_v8 = vld [vmem:[%s6932_s1 + $0x4d4] sm:$0xf0]  ;;  %v5322_v14 = vor.u32 %v5954_v5, %v5321_v4  ;;  %v5369_v33 = vld [vmem:[%s6932_s1 + $0x4b0] sm:$0xf]  ;;  %v5506_v35 = vor.u32 %v6000_v26, %v5505_v25  ;;  %v5297_v44 = vld [vmem:[%s6932_s1 + $0x420] sm:$0xf] }
 0x193   : > { %4113 = vmatpush.bf16.msrb.mxu0 %v5034_v16  ;;  %v5386_v15 = vor.u32 %v5970_v8, %v5385_v6  ;;  %v5450_v16 = vor.u32 %v5986_v10, %v5449_v9  ;;  %v5950_v32 = vld [vmem:[%s6932_s1 + $0x434] sm:$0xf0]  ;;  %v5433_v37 = vld [vmem:[%s6932_s1 + $0x530] sm:$0xf]  ;;  %v5964_v48 = vld [vmem:[%s6932_s1 + $0x4a4] sm:$0xf0] }
 0x194   : > { %4127 = vmatpush.bf16.msrb.mxu1 %v5098_v22  ;;  %v5968_v22 = vld [vmem:[%s6932_s1 + $0x4c4] sm:$0xf0]  ;;  %v5982_v38 = vld [vmem:[%s6932_s1 + $0x534] sm:$0xf0]  ;;  %v5497_v39 = vld [vmem:[%s6932_s1 + $0x5b0] sm:$0xf] }
 0x195   : > { %4141 = vmatpush.bf16.msrb.mxu2 %v5162_v23  ;;  %v5441_v23 = vld [vmem:[%s6932_s1 + $0x540] sm:$0xf]  ;;  %v5378_v29 = vor.u32 %v5968_v22, %v5377_v20  ;;  %v5434_v43 = vor.u32 %v5982_v38, %v5433_v37  ;;  %v5996_v52 = vld [vmem:[%s6932_s1 + $0x5a4] sm:$0xf0]  ;;  %v5289_v54 = vld [vmem:[%s6932_s1 + $0x410] sm:$0xf] }
 0x196   : > { %4155 = vmatpush.bf16.msrb.mxu3 %v5226_v28  ;;  %v5314_v28 = vor.u32 %v5952_v19, %v5313_v17  ;;  %v5442_v30 = vor.u32 %v5984_v24, %v5441_v23  ;;  %v5425_v49 = vld [vmem:[%s6932_s1 + $0x520] sm:$0xf]  ;;  %v5946_v58 = vld [vmem:[%s6932_s1 + $0x414] sm:$0xf0]  ;;  %v5353_v59 = vld [vmem:[%s6932_s1 + $0x490] sm:$0xf] }
 0x197   : > { %4114 = vmatpush.bf16.msrb.mxu0 %v5026_v36  ;;  %v5966_v36 = vld [vmem:[%s6932_s1 + $0x4b4] sm:$0xf0]  ;;  %v5281_v5 = vld [vmem:[%s6932_s1 + $0x400] sm:$0xf]  ;;  %v5944_v6 = vld [vmem:[%s6932_s1 + $0x404] sm:$0xf0] }
 0x198   : > { %4128 = vmatpush.bf16.msrb.mxu1 %v5090_v40  ;;  %v5998_v40 = vld [vmem:[%s6932_s1 + $0x5b4] sm:$0xf0]  ;;  %v5370_v42 = vor.u32 %v5966_v36, %v5369_v33  ;;  %v5345_v8 = vld [vmem:[%s6932_s1 + $0x480] sm:$0xf]  ;;  %v5960_v9 = vld [vmem:[%s6932_s1 + $0x484] sm:$0xf0]  ;;  %v5282_v26 = vor.u32 %v5944_v6, %v5281_v5 }
 0x199   : > { %4142 = vmatpush.bf16.msrb.mxu2 %v5154_v41  ;;  %v5306_v41 = vor.u32 %v5950_v32, %v5305_v31  ;;  %v5498_v47 = vor.u32 %v5998_v40, %v5497_v39  ;;  %v5962_v62 = vld [vmem:[%s6932_s1 + $0x494] sm:$0xf0]  ;;  %v5409_v10 = vld [vmem:[%s6932_s1 + $0x500] sm:$0xf]  ;;  %v5976_v12 = vld [vmem:[%s6932_s1 + $0x504] sm:$0xf0]  ;;  %v5346_v31 = vor.u32 %v5960_v9, %v5345_v8 }
 0x19a   : > { %4156 = vmatpush.bf16.msrb.mxu3 %v5218_v45  ;;  %4115 = vmatmul.bf16.vlgmr.msrb.gmra.mxu0 %v7104_v56  ;;  %v5948_v45 = vld [vmem:[%s6932_s1 + $0x424] sm:$0xf0]  ;;  %v5994_v4 = vld [vmem:[%s6932_s1 + $0x594] sm:$0xf0]  ;;  %v5354_v13 = vor.u32 %v5962_v62, %v5353_v59  ;;  %v5593_v17 = vld [vmem:[%s6932_s1 + $0x670] sm:$0xf]  ;;  %v5410_v32 = vor.u32 %v5976_v12, %v5409_v10 }
 0x19b   : > { %4163 = vmatpush.bf16.msra.mxu0 %v5338_v46  ;;  %4129 = vmatmul.bf16.vlgmr.msrb.gmra.mxu1 %v7111_v61  ;;  %v5361_v46 = vld [vmem:[%s6932_s1 + $0x4a0] sm:$0xf]  ;;  %v5298_v53 = vor.u32 %v5948_v45, %v5297_v44  ;;  %v6022_v20 = vld [vmem:[%s6932_s1 + $0x674] sm:$0xf0]  ;;  %v5721_v23 = vld [vmem:[%s6932_s1 + $0x770] sm:$0xf] }
 0x19c   : > { %4177 = vmatpush.bf16.msra.mxu1 %v5402_v50  ;;  %4143 = vmatmul.bf16.vlgmr.msrb.gmra.mxu2 %v7109_v60  ;;  %v5980_v50 = vld [vmem:[%s6932_s1 + $0x524] sm:$0xf0]  ;;  %v6038_v22 = vld [vmem:[%s6932_s1 + $0x6f4] sm:$0xf0]  ;;  %v5785_v25 = vld [vmem:[%s6932_s1 + $0x7f0] sm:$0xf]  ;;  %v5594_v38 = vor.u32 %v6022_v20, %v5593_v17 }
 0x19d   : > { %4191 = vmatpush.bf16.msra.mxu2 %v5466_v51  ;;  %4157 = vmatmul.bf16.vlgmr.msrb.gmra.mxu3 %v7115_v0  ;;  %v5489_v51 = vld [vmem:[%s6932_s1 + $0x5a0] sm:$0xf]  ;;  %v5426_v57 = vor.u32 %v5980_v50, %v5425_v49  ;;  %v6054_v24 = vld [vmem:[%s6932_s1 + $0x774] sm:$0xf0]  ;;  %v4745_v33 = vld [vmem:[%s6930_s6 + $0x28] sm:$0xf] }
 0x19e   : > { %4205 = vmatpush.bf16.msra.mxu3 %v5530_v55  ;;  %v5362_v55 = vor.u32 %v5964_v48, %v5361_v46  ;;  %v5490_v63 = vor.u32 %v5996_v52, %v5489_v51  ;;  %v5803_v36 = vld [vmem:[%s6930_s6 + $0x24] sm:$0xf]  ;;  %v5804_v40 = vld [vmem:[%s6930_s6 + $0x2c] sm:$0xf]  ;;  %v5585_v44 = vld [vmem:[%s6932_s1 + $0x660] sm:$0xf] }
 0x19f   : > { %4164 = vmatpush.bf16.msra.mxu0 %v5330_v1  ;;  %v5417_v1 = vld [vmem:[%s6932_s1 + $0x510] sm:$0xf]  ;;  %v4739_v39 = vld [vmem:[%s6930_s6 + $0x60] sm:$0xf0]  ;;  %v6020_v45 = vld [vmem:[%s6932_s1 + $0x664] sm:$0xf0] }
 0x1a0   : > { %4178 = vmatpush.bf16.msra.mxu1 %v5394_v2  ;;  %v5978_v2 = vld [vmem:[%s6932_s1 + $0x514] sm:$0xf0]  ;;  %v5649_v46 = vld [vmem:[%s6932_s1 + $0x6e0] sm:$0xf]  ;;  %v6036_v49 = vld [vmem:[%s6932_s1 + $0x6e4] sm:$0xf0] }
 0x1a1   : > { %4192 = vmatpush.bf16.msra.mxu2 %v5458_v3  ;;  %v5481_v3 = vld [vmem:[%s6932_s1 + $0x590] sm:$0xf]  ;;  %v5713_v50 = vld [vmem:[%s6932_s1 + $0x760] sm:$0xf]  ;;  %v6052_v51 = vld [vmem:[%s6932_s1 + $0x764] sm:$0xf0]  ;;  %v5650_v59 = vor.u32 %v6036_v49, %v5649_v46 }
 0x1a2   : > { %4206 = vmatpush.bf16.msra.mxu3 %v5522_v7  ;;  %v5290_v7 = vor.u32 %v5946_v58, %v5289_v54  ;;  %v5482_v19 = vor.u32 %v5994_v4, %v5481_v3  ;;  %v5777_v54 = vld [vmem:[%s6932_s1 + $0x7e0] sm:$0xf]  ;;  %v5586_v58 = vor.u32 %v6020_v45, %v5585_v44  ;;  %v5714_v62 = vor.u32 %v6052_v51, %v5713_v50  ;;  %v6034_v4 = vld [vmem:[%s6932_s1 + $0x6d4] sm:$0xf0]  ;;  %v5705_v5 = vld [vmem:[%s6932_s1 + $0x750] sm:$0xf] }
 0x1a3   : > { %4165 = vmatpush.bf16.msra.mxu0 %v5322_v14  ;;  %v5418_v14 = vor.u32 %v5978_v2, %v5417_v1  ;;  %v6018_v1 = vld [vmem:[%s6932_s1 + $0x654] sm:$0xf0]  ;;  %v5641_v2 = vld [vmem:[%s6932_s1 + $0x6d0] sm:$0xf]  ;;  %v6032_v17 = vld [vmem:[%s6932_s1 + $0x6c4] sm:$0xf0] }
 0x1a4   : > { %4179 = vmatpush.bf16.msra.mxu1 %v5386_v15  ;;  %v5473_v15 = vld [vmem:[%s6932_s1 + $0x580] sm:$0xf]  ;;  %v6050_v6 = vld [vmem:[%s6932_s1 + $0x754] sm:$0xf0]  ;;  %v5642_v10 = vor.u32 %v6034_v4, %v5641_v2  ;;  %v6048_v20 = vld [vmem:[%s6932_s1 + $0x744] sm:$0xf0] }
 0x1a5   : > { %4193 = vmatpush.bf16.msra.mxu2 %v5450_v16  ;;  %v5992_v16 = vld [vmem:[%s6932_s1 + $0x584] sm:$0xf0]  ;;  %v6066_v8 = vld [vmem:[%s6932_s1 + $0x7d4] sm:$0xf0]  ;;  %v5706_v12 = vor.u32 %v6050_v6, %v5705_v5  ;;  %v5681_v45 = vld [vmem:[%s6932_s1 + $0x720] sm:$0xf] }
 0x1a6   : > { %4207 = vmatpush.bf16.msra.mxu3 %v5514_v21  ;;  %v5657_v21 = vld [vmem:[%s6932_s1 + $0x6f0] sm:$0xf]  ;;  %v5474_v37 = vor.u32 %v5992_v16, %v5473_v15  ;;  %v5633_v15 = vld [vmem:[%s6932_s1 + $0x6c0] sm:$0xf]  ;;  %v6028_v44 = vld [vmem:[%s6932_s1 + $0x6a4] sm:$0xf0] }
 0x1a7   : > { %4166 = vmatpush.bf16.msra.mxu0 %v5314_v28  ;;  %v6070_v28 = vld [vmem:[%s6932_s1 + $0x7f4] sm:$0xf0]  ;;  %v6044_v46 = vld [vmem:[%s6932_s1 + $0x724] sm:$0xf0]  ;;  %v5545_v51 = vld [vmem:[%s6932_s1 + $0x610] sm:$0xf] }
 0x1a8   : > { %4180 = vmatpush.bf16.msra.mxu1 %v5378_v29  ;;  %v4737_v29 = vld [vmem:[%s6930_s6 + $0x20] sm:$0xf]  ;;  %v6060_v49 = vld [vmem:[%s6932_s1 + $0x7a4] sm:$0xf0]  ;;  %v6042_v2 = vld [vmem:[%s6932_s1 + $0x714] sm:$0xf0] }
 0x1a9   : > { %4194 = vmatpush.bf16.msra.mxu2 %v5442_v30  ;;  %v5811_v30 = vld [vmem:[%s6930_s6 + $0x5c] sm:$0xf0]  ;;  %v6058_v4 = vld [vmem:[%s6932_s1 + $0x794] sm:$0xf0]  ;;  %v6008_v6 = vld [vmem:[%s6932_s1 + $0x604] sm:$0xf0] }
 0x1aa   : > { %4208 = vmatpush.bf16.msra.mxu3 %v5506_v35  ;;  %v5812_v35 = vld [vmem:[%s6930_s6 + $0x64] sm:$0xf0]  ;;  %v7188_v48 = vor.u32 %v5811_v30, %v4737_v29  ;;  %v5625_v29 = vld [vmem:[%s6932_s1 + $0x6b0] sm:$0xf]  ;;  %v5537_v5 = vld [vmem:[%s6932_s1 + $0x600] sm:$0xf] }
 0x1ab   : > { %4167 = vmatpush.bf16.msra.mxu0 %v5306_v41  ;;  %v4747_v41 = vld [vmem:[%s6930_s6 + $0x68] sm:$0xf0]  ;;  %v7193_v52 = vor.u32 %v5812_v35, %v4745_v33  ;;  %v6046_v33 = vld [vmem:[%s6932_s1 + $0x734] sm:$0xf0]  ;;  %v5753_v35 = vld [vmem:[%s6932_s1 + $0x7b0] sm:$0xf] }
 0x1ac   : > { %4181 = vmatpush.bf16.msra.mxu1 %v5370_v42  ;;  %v5658_v42 = vor.u32 %v6038_v22, %v5657_v21  ;;  %v5761_v21 = vld [vmem:[%s6932_s1 + $0x7c0] sm:$0xf]  ;;  %v6064_v22 = vld [vmem:[%s6932_s1 + $0x7c4] sm:$0xf0]  ;;  %p5791_p5 = scmp.ne.s32.totalorder %s6231_s18, 10 }
 0x1ad   : > { %4195 = vmatpush.bf16.msra.mxu2 %v5434_v43  ;;  %v5722_v43 = vor.u32 %v6054_v24, %v5721_v23  ;;  %v5634_v24 = vor.u32 %v6032_v17, %v5633_v15  ;;  %v5762_v30 = vor.u32 %v6064_v22, %v5761_v21  ;;  %v5729_v15 = vld [vmem:[%s6932_s1 + $0x780] sm:$0xf]  ;;  %v5829_v17 = vld [vmem:[%s6932_s1 + $0x74] sm:$0xf]  ;;  %v4891_v22 = vld [vmem:[%s6932_s1 + $0xf8] sm:$0xf0] }
 0x1ae   : > { %4209 = vmatpush.bf16.msra.mxu3 %v5498_v47  ;;  %v5786_v47 = vor.u32 %v6070_v28, %v5785_v25  ;;  %v6014_v28 = vld [vmem:[%s6932_s1 + $0x634] sm:$0xf0]  ;;  %v5845_v21 = vld [vmem:[%s6932_s1 + $0xf4] sm:$0xf] }
 0x1af   : > { %4168 = vmatpush.bf16.msra.mxu0 %v5298_v53  ;;  %v7195_v53 = vor.u32 %v5803_v36, %v4739_v39  ;;  %v6062_v36 = vld [vmem:[%s6932_s1 + $0x7b4] sm:$0xf0] }
 0x1b0   : > { %4182 = vmatpush.bf16.msra.mxu1 %v5362_v55  ;;  %v6068_v55 = vld [vmem:[%s6932_s1 + $0x7e4] sm:$0xf0] }
 0x1b1   : > { %4196 = vmatpush.bf16.msra.mxu2 %v5426_v57  ;;  %v7199_v57 = vor.u32 %v5804_v40, %v4747_v41  ;;  %v5778_v3 = vor.u32 %v6068_v55, %v5777_v54  ;;  %v5553_v40 = vld [vmem:[%s6932_s1 + $0x620] sm:$0xf]  ;;  %v6012_v41 = vld [vmem:[%s6932_s1 + $0x624] sm:$0xf0]  ;;  %v5682_v55 = vor.u32 %v6044_v46, %v5681_v45  ;;  %v4819_v45 = vld [vmem:[%s6932_s1 + $0x68] sm:$0xf0] }
 0x1b2   : > { %4210 = vmatpush.bf16.msra.mxu3 %v5490_v63  ;;  %v5577_v63 = vld [vmem:[%s6932_s1 + $0x650] sm:$0xf]  ;;  %v5554_v50 = vor.u32 %v6012_v41, %v5553_v40  ;;  %v5806_v40 = vld [vmem:[%s6930_s6 + $0x3c] sm:$0xf]  ;;  %v5843_v46 = vld [vmem:[%s6932_s1 + $0xe4] sm:$0xf] }
 0x1b3   : > { %4169 = vmatpush.bf16.msra.mxu0 %v5290_v7  ;;  %v5769_v7 = vld [vmem:[%s6932_s1 + $0x7d0] sm:$0xf]  ;;  %v5578_v9 = vor.u32 %v6018_v1, %v5577_v63  ;;  %v4763_v41 = vld [vmem:[%s6930_s6 + $0x78] sm:$0xf0] }
 0x1b4   : > { %4183 = vmatpush.bf16.msra.mxu1 %v5354_v13  ;;  %v5569_v13 = vld [vmem:[%s6932_s1 + $0x640] sm:$0xf]  ;;  %v5770_v16 = vor.u32 %v6066_v8, %v5769_v7  ;;  %v5673_v1 = vld [vmem:[%s6932_s1 + $0x710] sm:$0xf] }
 0x1b5   : > { %4197 = vmatpush.bf16.msra.mxu2 %v5418_v14  ;;  %v6016_v14 = vld [vmem:[%s6932_s1 + $0x644] sm:$0xf0]  ;;  %v5601_v8 = vld [vmem:[%s6932_s1 + $0x680] sm:$0xf] }
 0x1b6   : > { %4211 = vmatpush.bf16.msra.mxu3 %v5482_v19  ;;  %v5697_v19 = vld [vmem:[%s6932_s1 + $0x740] sm:$0xf]  ;;  %v5570_v23 = vor.u32 %v6016_v14, %v5569_v13  ;;  %v5674_v14 = vor.u32 %v6042_v2, %v5673_v1 }
 0x1b7   : > { %4170 = vmatpush.bf16.msra.mxu0 %v5282_v26  ;;  %v5698_v25 = vor.u32 %v6048_v20, %v5697_v19  ;;  %v5561_v26 = vld [vmem:[%s6932_s1 + $0x630] sm:$0xf]  ;;  %v4827_v20 = vld [vmem:[%s6932_s1 + $0x78] sm:$0xf0] }
 0x1b8   : > { %4184 = vmatpush.bf16.msra.mxu1 %v5346_v31  ;;  %v6030_v31 = vld [vmem:[%s6932_s1 + $0x6b4] sm:$0xf0] }
 0x1b9   : > { %4198 = vmatpush.bf16.msra.mxu2 %v5410_v32  ;;  %v5689_v32 = vld [vmem:[%s6932_s1 + $0x730] sm:$0xf] }
 0x1ba   : > { %4212 = vmatpush.bf16.msra.mxu3 %v5474_v37  ;;  %4171 = vmatmul.bf16.vlgmr.msra.gmra.mxu0 %v7188_v48  ;;  %v5562_v37 = vor.u32 %v6014_v28, %v5561_v26  ;;  %v5690_v39 = vor.u32 %v6046_v33, %v5689_v32  ;;  %v5538_v26 = vor.u32 %v6008_v6, %v5537_v5  ;;  %v5019_v28 = vld [vmem:[%s6932_s1 + $0x1f8] sm:$0xf0]  ;;  %v4761_v33 = vld [vmem:[%s6930_s6 + $0x38] sm:$0xf]  ;;  %v5841_v6 = vld [vmem:[%s6932_s1 + $0xd4] sm:$0xf] }
 0x1bb   : > { %4219 = vmatpush.bf16.msrb.mxu0 %v5594_v38  ;;  %4185 = vmatmul.bf16.vlgmr.msra.gmra.mxu1 %v7195_v53  ;;  %v5626_v38 = vor.u32 %v6030_v31, %v5625_v29  ;;  %v4753_v29 = vld [vmem:[%s6930_s6 + $0x30] sm:$0xf]  ;;  %v4811_v5 = vld [vmem:[%s6932_s1 + $0x58] sm:$0xf0] }
 0x1bc   : > { %4233 = vmatpush.bf16.msrb.mxu1 %v5658_v42  ;;  %4199 = vmatmul.bf16.vlgmr.msra.gmra.mxu2 %v7193_v52  ;;  %v5617_v42 = vld [vmem:[%s6932_s1 + $0x6a0] sm:$0xf] }
 0x1bd   : > { %4247 = vmatpush.bf16.msrb.mxu2 %v5722_v43  ;;  %4213 = vmatmul.bf16.vlgmr.msra.gmra.mxu3 %v7199_v57  ;;  %v5754_v43 = vor.u32 %v6062_v36, %v5753_v35  ;;  %v5618_v54 = vor.u32 %v6028_v44, %v5617_v42  ;;  %v5814_v35 = vld [vmem:[%s6930_s6 + $0x74] sm:$0xf0]  ;;  %v5805_v36 = vld [vmem:[%s6930_s6 + $0x34] sm:$0xf]  ;;  %v4894_v42 = vor.u32 %v5845_v21, %v4891_v22  ;;  %v5827_v44 = vld [vmem:[%s6932_s1 + $0x64] sm:$0xf] }
 0x1be   : > { %4261 = vmatpush.bf16.msrb.mxu3 %v5786_v47  ;;  %v5745_v47 = vld [vmem:[%s6932_s1 + $0x7a0] sm:$0xf]  ;;  %v4822_v1 = vor.u32 %v5827_v44, %v4819_v45  ;;  %v4867_v22 = vld [vmem:[%s6932_s1 + $0xc8] sm:$0xf0]  ;;  %v5819_v44 = vld [vmem:[%s6932_s1 + $0x24] sm:$0xf] }
 0x1bf   : > { %4220 = vmatpush.bf16.msrb.mxu0 %v5586_v58  ;;  %v6010_v58 = vld [vmem:[%s6932_s1 + $0x614] sm:$0xf0]  ;;  %v5746_v63 = vor.u32 %v6060_v49, %v5745_v47  ;;  %v4787_v45 = vld [vmem:[%s6932_s1 + $0x28] sm:$0xf0] }
 0x1c0   : > { %4234 = vmatpush.bf16.msrb.mxu1 %v5650_v59  ;;  %v5609_v59 = vld [vmem:[%s6932_s1 + $0x690] sm:$0xf]  ;;  %v5546_v7 = vor.u32 %v6010_v58, %v5545_v51  ;;  %v5859_v51 = vld [vmem:[%s6932_s1 + $0x164] sm:$0xf] }
 0x1c1   : > { %4248 = vmatpush.bf16.msrb.mxu2 %v5714_v62  ;;  %v6026_v62 = vld [vmem:[%s6932_s1 + $0x694] sm:$0xf0] }
 0x1c2   : > { %4262 = vmatpush.bf16.msrb.mxu3 %v5778_v3  ;;  %v5737_v3 = vld [vmem:[%s6932_s1 + $0x790] sm:$0xf]  ;;  %v5610_v13 = vor.u32 %v6026_v62, %v5609_v59  ;;  %v5875_v59 = vld [vmem:[%s6932_s1 + $0x1e4] sm:$0xf]  ;;  %v5011_v62 = vld [vmem:[%s6932_s1 + $0x1e8] sm:$0xf0] }
 0x1c3   : > { %4221 = vmatpush.bf16.msrb.mxu0 %v5578_v9  ;;  %v6024_v9 = vld [vmem:[%s6932_s1 + $0x684] sm:$0xf0]  ;;  %v5738_v19 = vor.u32 %v6058_v4, %v5737_v3  ;;  %v5825_v4 = vld [vmem:[%s6932_s1 + $0x54] sm:$0xf] }
 0x1c4   : > { %4235 = vmatpush.bf16.msrb.mxu1 %v5642_v10  ;;  %v5665_v10 = vld [vmem:[%s6932_s1 + $0x700] sm:$0xf]  ;;  %v5602_v31 = vor.u32 %v6024_v9, %v5601_v8  ;;  %v4875_v8 = vld [vmem:[%s6932_s1 + $0xd8] sm:$0xf0]  ;;  %v5857_v9 = vld [vmem:[%s6932_s1 + $0x154] sm:$0xf] }
 0x1c5   : > { %4249 = vmatpush.bf16.msrb.mxu2 %v5706_v12  ;;  %v6040_v12 = vld [vmem:[%s6932_s1 + $0x704] sm:$0xf0] }
 0x1c6   : > { %4263 = vmatpush.bf16.msrb.mxu3 %v5770_v16  ;;  %v6056_v16 = vld [vmem:[%s6932_s1 + $0x784] sm:$0xf0]  ;;  %v5666_v32 = vor.u32 %v6040_v12, %v5665_v10  ;;  %v4939_v10 = vld [vmem:[%s6932_s1 + $0x158] sm:$0xf0]  ;;  %v5873_v12 = vld [vmem:[%s6932_s1 + $0x1d4] sm:$0xf] }
 0x1c7   : > { %4222 = vmatpush.bf16.msrb.mxu0 %v5570_v23  ;;  %v5861_v23 = vld [vmem:[%s6932_s1 + $0x174] sm:$0xf] }
 0x1c8   : > { %4236 = vmatpush.bf16.msrb.mxu1 %v5634_v24  ;;  %v4955_v24 = vld [vmem:[%s6932_s1 + $0x178] sm:$0xf0] }
 0x1c9   : > { %4250 = vmatpush.bf16.msrb.mxu2 %v5698_v25  ;;  %v5877_v25 = vld [vmem:[%s6932_s1 + $0x1f4] sm:$0xf] }
 0x1ca   : > { %4264 = vmatpush.bf16.msrb.mxu3 %v5762_v30  ;;  %v5813_v30 = vld [vmem:[%s6930_s6 + $0x6c] sm:$0xf0]  ;;  %v5022_v47 = vor.u32 %v5877_v25, %v5019_v28  ;;  %v5871_v25 = vld [vmem:[%s6932_s1 + $0x1c4] sm:$0xf] }
 0x1cb   : > { %4223 = vmatpush.bf16.msrb.mxu0 %v5562_v37  ;;  %v5730_v37 = vor.u32 %v6056_v16, %v5729_v15  ;;  %v7272_v49 = vor.u32 %v5813_v30, %v4753_v29  ;;  %v4878_v15 = vor.u32 %v5841_v6, %v4875_v8  ;;  %v4942_v16 = vor.u32 %v5857_v9, %v4939_v10  ;;  %v5833_v6 = vld [vmem:[%s6932_s1 + $0x94] sm:$0xf]  ;;  %v4843_v8 = vld [vmem:[%s6932_s1 + $0x98] sm:$0xf0] }
 0x1cc   : > { %4237 = vmatpush.bf16.msrb.mxu1 %v5626_v38  ;;  %v4830_v38 = vor.u32 %v5829_v17, %v4827_v20  ;;  %v5823_v17 = vld [vmem:[%s6932_s1 + $0x44] sm:$0xf]  ;;  %v5849_v9 = vld [vmem:[%s6932_s1 + $0x114] sm:$0xf]  ;;  %v4907_v10 = vld [vmem:[%s6932_s1 + $0x118] sm:$0xf0] }
 0x1cd   : > { %4251 = vmatpush.bf16.msrb.mxu2 %v5690_v39  ;;  %v4755_v39 = vld [vmem:[%s6930_s6 + $0x70] sm:$0xf0]  ;;  %v5839_v20 = vld [vmem:[%s6932_s1 + $0xc4] sm:$0xf] }
 0x1ce   : > { %4265 = vmatpush.bf16.msrb.mxu3 %v5754_v43  ;;  %v4958_v43 = vor.u32 %v5861_v23, %v4955_v24  ;;  %v7279_v58 = vor.u32 %v5805_v36, %v4755_v39  ;;  %v5855_v23 = vld [vmem:[%s6932_s1 + $0x144] sm:$0xf]  ;;  %v4931_v24 = vld [vmem:[%s6932_s1 + $0x148] sm:$0xf0]  ;;  %v4870_v29 = vor.u32 %v5839_v20, %v4867_v22  ;;  %v4859_v36 = vld [vmem:[%s6932_s1 + $0xb8] sm:$0xf0] }
 0x1cf   : > { %4224 = vmatpush.bf16.msrb.mxu0 %v5554_v50  ;;  %v4883_v50 = vld [vmem:[%s6932_s1 + $0xe8] sm:$0xf0]  ;;  %v4934_v30 = vor.u32 %v5855_v23, %v4931_v24  ;;  %v5869_v39 = vld [vmem:[%s6932_s1 + $0x1b4] sm:$0xf]  ;;  %v5831_v20 = vld [vmem:[%s6932_s1 + $0x84] sm:$0xf] }
 0x1d0   : > { %4238 = vmatpush.bf16.msrb.mxu1 %v5618_v54  ;;  %v4947_v54 = vld [vmem:[%s6932_s1 + $0x168] sm:$0xf0]  ;;  %v4886_v2 = vor.u32 %v5843_v46, %v4883_v50  ;;  %v5835_v46 = vld [vmem:[%s6932_s1 + $0xa4] sm:$0xf] }
 0x1d1   : > { %4252 = vmatpush.bf16.msrb.mxu2 %v5682_v55  ;;  %v7277_v55 = vor.u32 %v5814_v35, %v4761_v33  ;;  %v4950_v3 = vor.u32 %v5859_v51, %v4947_v54  ;;  %v5837_v33 = vld [vmem:[%s6932_s1 + $0xb4] sm:$0xf]  ;;  %v4851_v50 = vld [vmem:[%s6932_s1 + $0xa8] sm:$0xf0]  ;;  %v5851_v51 = vld [vmem:[%s6932_s1 + $0x124] sm:$0xf] }
 0x1d2   : > { %4266 = vmatpush.bf16.msrb.mxu3 %v5746_v63  ;;  %v7283_v63 = vor.u32 %v5806_v40, %v4763_v41  ;;  %v4987_v40 = vld [vmem:[%s6932_s1 + $0x1b8] sm:$0xf0]  ;;  %v4915_v54 = vld [vmem:[%s6932_s1 + $0x128] sm:$0xf0]  ;;  %v5847_v22 = vld [vmem:[%s6932_s1 + $0x104] sm:$0xf] }
 0x1d3   : > { %4225 = vmatpush.bf16.msrb.mxu0 %v5546_v7  ;;  %v5014_v7 = vor.u32 %v5875_v59, %v5011_v62  ;;  %v5867_v59 = vld [vmem:[%s6932_s1 + $0x1a4] sm:$0xf]  ;;  %v4979_v62 = vld [vmem:[%s6932_s1 + $0x1a8] sm:$0xf0] }
 0x1d4   : > { %4239 = vmatpush.bf16.msrb.mxu1 %v5610_v13  ;;  %v5003_v13 = vld [vmem:[%s6932_s1 + $0x1d8] sm:$0xf0]  ;;  %v4899_v24 = vld [vmem:[%s6932_s1 + $0x108] sm:$0xf0] }
 0x1d5   : > { %4253 = vmatpush.bf16.msrb.mxu2 %v5674_v14  ;;  %v4814_v14 = vor.u32 %v5825_v4, %v4811_v5  ;;  %v5006_v21 = vor.u32 %v5873_v12, %v5003_v13  ;;  %v5817_v4 = vld [vmem:[%s6932_s1 + $0x14] sm:$0xf]  ;;  %v4779_v5 = vld [vmem:[%s6932_s1 + $0x18] sm:$0xf0] }
 0x1d6   : > { %4267 = vmatpush.bf16.msrb.mxu3 %v5738_v19  ;;  %v4803_v19 = vld [vmem:[%s6932_s1 + $0x48] sm:$0xf0]  ;;  %v5865_v12 = vld [vmem:[%s6932_s1 + $0x194] sm:$0xf]  ;;  %v4971_v13 = vld [vmem:[%s6932_s1 + $0x198] sm:$0xf0] }
 0x1d7   : > { %4226 = vmatpush.bf16.msrb.mxu0 %v5538_v26  ;;  %v4995_v26 = vld [vmem:[%s6932_s1 + $0x1c8] sm:$0xf0]  ;;  %v4806_v28 = vor.u32 %v5823_v17, %v4803_v19  ;;  %v4846_v17 = vor.u32 %v5833_v6, %v4843_v8  ;;  %v4910_v19 = vor.u32 %v5849_v9, %v4907_v10  ;;  %v4974_v23 = vor.u32 %v5865_v12, %v4971_v13  ;;  %v5905_v6 = vld [vmem:[%s6932_s1 + $0x2d4] sm:$0xf]  ;;  %v5131_v8 = vld [vmem:[%s6932_s1 + $0x2d8] sm:$0xf0] }
 0x1d8   : > { %4240 = vmatpush.bf16.msrb.mxu1 %v5602_v31  ;;  %v5821_v31 = vld [vmem:[%s6932_s1 + $0x34] sm:$0xf]  ;;  %v4998_v35 = vor.u32 %v5871_v25, %v4995_v26  ;;  %v5863_v25 = vld [vmem:[%s6932_s1 + $0x184] sm:$0xf]  ;;  %v4963_v26 = vld [vmem:[%s6932_s1 + $0x188] sm:$0xf0] }
 0x1d9   : > { %4254 = vmatpush.bf16.msrb.mxu2 %v5666_v32  ;;  %v4795_v32 = vld [vmem:[%s6932_s1 + $0x38] sm:$0xf0]  ;;  %v5921_v9 = vld [vmem:[%s6932_s1 + $0x354] sm:$0xf] }
 0x1da   : > { %4268 = vmatpush.bf16.msrb.mxu3 %v5730_v37  ;;  %4227 = vmatmul.bf16.vlgmr.msrb.gmra.mxu0 %v7272_v49  ;;  %v5853_v37 = vld [vmem:[%s6932_s1 + $0x134] sm:$0xf]  ;;  %v4798_v41 = vor.u32 %v5821_v31, %v4795_v32  ;;  %v5147_v32 = vld [vmem:[%s6932_s1 + $0x2f8] sm:$0xf0] }
 0x1db   : > { %4275 = vmatpush.bf16.msra.mxu0 %v4830_v38  ;;  %4241 = vmatmul.bf16.vlgmr.msrb.gmra.mxu1 %v7279_v58  ;;  %v4923_v38 = vld [vmem:[%s6932_s1 + $0x138] sm:$0xf0]  ;;  %v5937_v12 = vld [vmem:[%s6932_s1 + $0x3d4] sm:$0xf] }
 0x1dc   : > { %4289 = vmatpush.bf16.msra.mxu1 %v4894_v42  ;;  %4255 = vmatmul.bf16.vlgmr.msrb.gmra.mxu2 %v7277_v55  ;;  %v4862_v42 = vor.u32 %v5837_v33, %v4859_v36  ;;  %v5925_v33 = vld [vmem:[%s6932_s1 + $0x374] sm:$0xf]  ;;  %v5195_v10 = vld [vmem:[%s6932_s1 + $0x358] sm:$0xf0] }
 0x1dd   : > { %4303 = vmatpush.bf16.msra.mxu2 %v4958_v43  ;;  %4269 = vmatmul.bf16.vlgmr.msrb.gmra.mxu3 %v7283_v63  ;;  %v4926_v43 = vor.u32 %v5853_v37, %v4923_v38  ;;  %v4902_v37 = vor.u32 %v5847_v22, %v4899_v24  ;;  %v5941_v38 = vld [vmem:[%s6932_s1 + $0x3f4] sm:$0xf]  ;;  %v5259_v13 = vld [vmem:[%s6932_s1 + $0x3d8] sm:$0xf0]  ;;  %v5935_v22 = vld [vmem:[%s6932_s1 + $0x3c4] sm:$0xf] }
 0x1de   : > { %4317 = vmatpush.bf16.msra.mxu3 %v5022_v47  ;;  %v4990_v47 = vor.u32 %v5869_v39, %v4987_v40  ;;  %v5275_v39 = vld [vmem:[%s6932_s1 + $0x3f8] sm:$0xf0]  ;;  %v4966_v40 = vor.u32 %v5863_v25, %v4963_v26  ;;  %v5885_v26 = vld [vmem:[%s6932_s1 + $0x234] sm:$0xf] }
 0x1df   : > { %4276 = vmatpush.bf16.msra.mxu0 %v4822_v1  ;;  %v4790_v1 = vor.u32 %v5819_v44, %v4787_v45  ;;  %v5891_v44 = vld [vmem:[%s6932_s1 + $0x264] sm:$0xf]  ;;  %v5075_v45 = vld [vmem:[%s6932_s1 + $0x268] sm:$0xf0] }
 0x1e0   : > { %4290 = vmatpush.bf16.msra.mxu1 %v4886_v2  ;;  %v4854_v2 = vor.u32 %v5835_v46, %v4851_v50  ;;  %v5907_v46 = vld [vmem:[%s6932_s1 + $0x2e4] sm:$0xf]  ;;  %v5139_v50 = vld [vmem:[%s6932_s1 + $0x2e8] sm:$0xf0] }
 0x1e1   : > { %4304 = vmatpush.bf16.msra.mxu2 %v4950_v3  ;;  %v4918_v3 = vor.u32 %v5851_v51, %v4915_v54  ;;  %v5923_v51 = vld [vmem:[%s6932_s1 + $0x364] sm:$0xf]  ;;  %v5203_v54 = vld [vmem:[%s6932_s1 + $0x368] sm:$0xf0] }
 0x1e2   : > { %4318 = vmatpush.bf16.msra.mxu3 %v5014_v7  ;;  %v4982_v7 = vor.u32 %v5867_v59, %v4979_v62  ;;  %v5939_v59 = vld [vmem:[%s6932_s1 + $0x3e4] sm:$0xf]  ;;  %v5267_v62 = vld [vmem:[%s6932_s1 + $0x3e8] sm:$0xf0] }
 0x1e3   : > { %4277 = vmatpush.bf16.msra.mxu0 %v4814_v14  ;;  %v4782_v14 = vor.u32 %v5817_v4, %v4779_v5  ;;  %v5889_v4 = vld [vmem:[%s6932_s1 + $0x254] sm:$0xf]  ;;  %v5067_v5 = vld [vmem:[%s6932_s1 + $0x258] sm:$0xf0] }
 0x1e4   : > { %4291 = vmatpush.bf16.msra.mxu1 %v4878_v15  ;;  %v5815_v15 = vld [vmem:[%s6932_s1 + $0x4] sm:$0xf] }
 0x1e5   : > { %4305 = vmatpush.bf16.msra.mxu2 %v4942_v16  ;;  %v4771_v16 = vld [vmem:[%s6932_s1 + $0x8] sm:$0xf0] }
 0x1e6   : > { %4319 = vmatpush.bf16.msra.mxu3 %v5006_v21  ;;  %v4835_v21 = vld [vmem:[%s6932_s1 + $0x88] sm:$0xf0]  ;;  %v4774_v31 = vor.u32 %v5815_v15, %v4771_v16  ;;  %v5134_v15 = vor.u32 %v5905_v6, %v5131_v8  ;;  %v5198_v16 = vor.u32 %v5921_v9, %v5195_v10  ;;  %v5163_v6 = vld [vmem:[%s6932_s1 + $0x318] sm:$0xf0]  ;;  %v5879_v10 = vld [vmem:[%s6932_s1 + $0x204] sm:$0xf] }
 0x1e7   : > { %4278 = vmatpush.bf16.msra.mxu0 %v4806_v28  ;;  %v5893_v28 = vld [vmem:[%s6932_s1 + $0x274] sm:$0xf]  ;;  %v4838_v36 = vor.u32 %v5831_v20, %v4835_v21  ;;  %v5123_v20 = vld [vmem:[%s6932_s1 + $0x2c8] sm:$0xf0]  ;;  %v5227_v8 = vld [vmem:[%s6932_s1 + $0x398] sm:$0xf0] }
 0x1e8   : > { %4292 = vmatpush.bf16.msra.mxu1 %v4870_v29  ;;  %v5083_v29 = vld [vmem:[%s6932_s1 + $0x278] sm:$0xf0]  ;;  %v5187_v21 = vld [vmem:[%s6932_s1 + $0x348] sm:$0xf0] }
 0x1e9   : > { %4306 = vmatpush.bf16.msra.mxu2 %v4934_v30  ;;  %v5909_v30 = vld [vmem:[%s6932_s1 + $0x2f4] sm:$0xf] }
 0x1ea   : > { %4320 = vmatpush.bf16.msra.mxu3 %v4998_v35  ;;  %v5211_v35 = vld [vmem:[%s6932_s1 + $0x378] sm:$0xf0] }
 0x1eb   : > { %4279 = vmatpush.bf16.msra.mxu0 %v4798_v41  ;;  %v5086_v41 = vor.u32 %v5893_v28, %v5083_v29  ;;  %v5051_v28 = vld [vmem:[%s6932_s1 + $0x238] sm:$0xf0]  ;;  %v5901_v29 = vld [vmem:[%s6932_s1 + $0x2b4] sm:$0xf] }
 0x1ec   : > { %4293 = vmatpush.bf16.msra.mxu1 %v4862_v42  ;;  %v5150_v42 = vor.u32 %v5909_v30, %v5147_v32  ;;  %v5917_v32 = vld [vmem:[%s6932_s1 + $0x334] sm:$0xf] }
 0x1ed   : > { %4307 = vmatpush.bf16.msra.mxu2 %v4926_v43  ;;  %v5214_v43 = vor.u32 %v5925_v33, %v5211_v35  ;;  %v5179_v33 = vld [vmem:[%s6932_s1 + $0x338] sm:$0xf0]  ;;  %v5933_v35 = vld [vmem:[%s6932_s1 + $0x3b4] sm:$0xf] }
 0x1ee   : > { %4321 = vmatpush.bf16.msra.mxu3 %v4990_v47  ;;  %v5278_v47 = vor.u32 %v5941_v38, %v5275_v39  ;;  %v5182_v39 = vor.u32 %v5917_v32, %v5179_v33 }
 0x1ef   : > { %4280 = vmatpush.bf16.msra.mxu0 %v4790_v1  ;;  %v5078_v1 = vor.u32 %v5891_v44, %v5075_v45  ;;  %v5107_v44 = vld [vmem:[%s6932_s1 + $0x2a8] sm:$0xf0]  ;;  %v5915_v45 = vld [vmem:[%s6932_s1 + $0x324] sm:$0xf] }
 0x1f0   : > { %4294 = vmatpush.bf16.msra.mxu1 %v4854_v2  ;;  %v5142_v2 = vor.u32 %v5907_v46, %v5139_v50  ;;  %v5171_v46 = vld [vmem:[%s6932_s1 + $0x328] sm:$0xf0] }
 0x1f1   : > { %4308 = vmatpush.bf16.msra.mxu2 %v4918_v3  ;;  %v5206_v3 = vor.u32 %v5923_v51, %v5203_v54  ;;  %v5235_v50 = vld [vmem:[%s6932_s1 + $0x3a8] sm:$0xf0] }
 0x1f2   : > { %4322 = vmatpush.bf16.msra.mxu3 %v4982_v7  ;;  %v5270_v7 = vor.u32 %v5939_v59, %v5267_v62  ;;  %v5174_v59 = vor.u32 %v5915_v45, %v5171_v46  ;;  %v5881_v62 = vld [vmem:[%s6932_s1 + $0x214] sm:$0xf] }
 0x1f3   : > { %4281 = vmatpush.bf16.msra.mxu0 %v4782_v14  ;;  %v5070_v14 = vor.u32 %v5889_v4, %v5067_v5  ;;  %v5099_v4 = vld [vmem:[%s6932_s1 + $0x298] sm:$0xf0]  ;;  %v5913_v5 = vld [vmem:[%s6932_s1 + $0x314] sm:$0xf] }
 0x1f4   : > { %4295 = vmatpush.bf16.msra.mxu1 %v4846_v17  ;;  %v5059_v17 = vld [vmem:[%s6932_s1 + $0x248] sm:$0xf0] }
 0x1f5   : > { %4309 = vmatpush.bf16.msra.mxu2 %v4910_v19  ;;  %v5903_v19 = vld [vmem:[%s6932_s1 + $0x2c4] sm:$0xf] }
 0x1f6   : > { %4323 = vmatpush.bf16.msra.mxu3 %v4974_v23  ;;  %v5126_v24 = vor.u32 %v5903_v19, %v5123_v20  ;;  %v5155_v19 = vld [vmem:[%s6932_s1 + $0x308] sm:$0xf0] }
 0x1f7   : > { %4282 = vmatpush.bf16.msra.mxu0 %v4774_v31  ;;  %v5115_v31 = vld [vmem:[%s6932_s1 + $0x2b8] sm:$0xf0]  ;;  %v5219_v20 = vld [vmem:[%s6932_s1 + $0x388] sm:$0xf0] }
 0x1f8   : > { %4296 = vmatpush.bf16.msra.mxu1 %v4838_v36  ;;  %v5243_v36 = vld [vmem:[%s6932_s1 + $0x3b8] sm:$0xf0]  ;;  %v5118_v38 = vor.u32 %v5901_v29, %v5115_v31  ;;  %v6005_v29 = vld [vmem:[%s6932_s1 + $0x5f4] sm:$0xf] }
 0x1f9   : > { %4310 = vmatpush.bf16.msra.mxu2 %v4902_v37  ;;  %v5054_v37 = vor.u32 %v5885_v26, %v5051_v28 }
 0x1fa   : > { %4324 = vmatpush.bf16.msra.mxu3 %v4966_v40  ;;  %4283 = vmatmul.bf16.vlgmr.msra.gmra.mxu0 %v7022_v11  ;;  %v5887_v11 = vld [vmem:[%s6932_s1 + $0x244] sm:$0xf] }
 0x1fb   : > { %4331 = vmatpush.bf16.msrb.mxu0 %v5086_v41  ;;  %4297 = vmatmul.bf16.vlgmr.msra.gmra.mxu1 %v7038_v27  ;;  %v5919_v27 = vld [vmem:[%s6932_s1 + $0x344] sm:$0xf]  ;;  %v5062_v23 = vor.u32 %v5887_v11, %v5059_v17  ;;  %v5043_v41 = vld [vmem:[%s6932_s1 + $0x228] sm:$0xf0] }
 0x1fc   : > { %4345 = vmatpush.bf16.msrb.mxu1 %v5150_v42  ;;  %4311 = vmatmul.bf16.vlgmr.msra.gmra.mxu2 %v7028_v18  ;;  %v5262_v18 = vor.u32 %v5937_v12, %v5259_v13  ;;  %v5190_v25 = vor.u32 %v5919_v27, %v5187_v21  ;;  %v5883_v40 = vld [vmem:[%s6932_s1 + $0x224] sm:$0xf]  ;;  %v5027_v12 = vld [vmem:[%s6932_s1 + $0x208] sm:$0xf0]  ;;  %v5957_v27 = vld [vmem:[%s6932_s1 + $0x474] sm:$0xf] }
 0x1fd   : > { %4359 = vmatpush.bf16.msrb.mxu2 %v5214_v43  ;;  %4325 = vmatmul.bf16.vlgmr.msra.gmra.mxu3 %v7044_v34  ;;  %v5251_v34 = vld [vmem:[%s6932_s1 + $0x3c8] sm:$0xf0]  ;;  %v5899_v42 = vld [vmem:[%s6932_s1 + $0x2a4] sm:$0xf]  ;;  %v5246_v43 = vor.u32 %v5933_v35, %v5243_v36  ;;  %v5046_v51 = vor.u32 %v5883_v40, %v5043_v41  ;;  %v5339_v21 = vld [vmem:[%s6932_s1 + $0x478] sm:$0xf0] }
 0x1fe   : > { %4373 = vmatpush.bf16.msrb.mxu3 %v5278_v47  ;;  %v5254_v30 = vor.u32 %v5935_v22, %v5251_v34  ;;  %v5931_v47 = vld [vmem:[%s6932_s1 + $0x3a4] sm:$0xf]  ;;  %v5110_v54 = vor.u32 %v5899_v42, %v5107_v44  ;;  %v5973_v22 = vld [vmem:[%s6932_s1 + $0x4f4] sm:$0xf]  ;;  %v5030_v34 = vor.u32 %v5879_v10, %v5027_v12  ;;  %v5342_v32 = vor.u32 %v5957_v27, %v5339_v21  ;;  %v5395_v40 = vld [vmem:[%s6932_s1 + $0x4e8] sm:$0xf0] }
 0x1ff   : > { %4332 = vmatpush.bf16.msrb.mxu0 %v5078_v1  ;;  %v5035_v1 = vld [vmem:[%s6932_s1 + $0x218] sm:$0xf0]  ;;  %v5911_v11 = vld [vmem:[%s6932_s1 + $0x304] sm:$0xf]  ;;  %v5459_v42 = vld [vmem:[%s6932_s1 + $0x568] sm:$0xf0] }
 0x200   : > { %4346 = vmatpush.bf16.msrb.mxu1 %v5142_v2  ;;  %v5897_v2 = vld [vmem:[%s6932_s1 + $0x294] sm:$0xf]  ;;  %v5038_v9 = vor.u32 %v5881_v62, %v5035_v1  ;;  %v5158_v28 = vor.u32 %v5911_v11, %v5155_v19  ;;  %v5955_v36 = vld [vmem:[%s6932_s1 + $0x464] sm:$0xf]  ;;  %v5523_v44 = vld [vmem:[%s6932_s1 + $0x5e8] sm:$0xf0] }
 0x201   : > { %4360 = vmatpush.bf16.msrb.mxu2 %v5206_v3  ;;  %v5238_v3 = vor.u32 %v5931_v47, %v5235_v50  ;;  %v5102_v13 = vor.u32 %v5897_v2, %v5099_v4  ;;  %v5987_v41 = vld [vmem:[%s6932_s1 + $0x564] sm:$0xf]  ;;  %v5953_v50 = vld [vmem:[%s6932_s1 + $0x454] sm:$0xf]  ;;  %v5387_v62 = vld [vmem:[%s6932_s1 + $0x4d8] sm:$0xf0] }
 0x202   : > { %4374 = vmatpush.bf16.msrb.mxu3 %v5270_v7  ;;  %v5929_v7 = vld [vmem:[%s6932_s1 + $0x394] sm:$0xf]  ;;  %v5462_v47 = vor.u32 %v5987_v41, %v5459_v42  ;;  %v5451_v2 = vld [vmem:[%s6932_s1 + $0x558] sm:$0xf0]  ;;  %v5983_v10 = vld [vmem:[%s6932_s1 + $0x544] sm:$0xf] }
 0x203   : > { %4333 = vmatpush.bf16.msrb.mxu0 %v5070_v14  ;;  %v5166_v14 = vor.u32 %v5913_v5, %v5163_v6  ;;  %v5230_v17 = vor.u32 %v5929_v7, %v5227_v8  ;;  %v5985_v1 = vld [vmem:[%s6932_s1 + $0x554] sm:$0xf]  ;;  %v5515_v4 = vld [vmem:[%s6932_s1 + $0x5d8] sm:$0xf0]  ;;  %v5951_v7 = vld [vmem:[%s6932_s1 + $0x444] sm:$0xf] }
 0x204   : > { %4347 = vmatpush.bf16.msrb.mxu1 %v5134_v15  ;;  %v5895_v15 = vld [vmem:[%s6932_s1 + $0x284] sm:$0xf]  ;;  %v5454_v6 = vor.u32 %v5985_v1, %v5451_v2  ;;  %v5949_v11 = vld [vmem:[%s6932_s1 + $0x434] sm:$0xf]  ;;  %v5435_v21 = vld [vmem:[%s6932_s1 + $0x538] sm:$0xf0] }
 0x205   : > { %4361 = vmatpush.bf16.msrb.mxu2 %v5198_v16  ;;  %v5091_v16 = vld [vmem:[%s6932_s1 + $0x288] sm:$0xf0]  ;;  %v5967_v8 = vld [vmem:[%s6932_s1 + $0x4c4] sm:$0xf]  ;;  %v5965_v19 = vld [vmem:[%s6932_s1 + $0x4b4] sm:$0xf] }
 0x206   : > { %4375 = vmatpush.bf16.msrb.mxu3 %v5262_v18  ;;  %v5927_v18 = vld [vmem:[%s6932_s1 + $0x384] sm:$0xf]  ;;  %v5094_v26 = vor.u32 %v5895_v15, %v5091_v16  ;;  %v5981_v27 = vld [vmem:[%s6932_s1 + $0x534] sm:$0xf] }
 0x207   : > { %4334 = vmatpush.bf16.msrb.mxu0 %v5062_v23  ;;  %v5403_v23 = vld [vmem:[%s6932_s1 + $0x4f8] sm:$0xf0]  ;;  %v5222_v31 = vor.u32 %v5927_v18, %v5219_v20  ;;  %v5999_v12 = vld [vmem:[%s6932_s1 + $0x5c4] sm:$0xf]  ;;  %v5945_v42 = vld [vmem:[%s6932_s1 + $0x414] sm:$0xf] }
 0x208   : > { %4348 = vmatpush.bf16.msrb.mxu1 %v5126_v24  ;;  %v5989_v24 = vld [vmem:[%s6932_s1 + $0x574] sm:$0xf]  ;;  %v5406_v33 = vor.u32 %v5973_v22, %v5403_v23  ;;  %v5371_v20 = vld [vmem:[%s6932_s1 + $0x4b8] sm:$0xf0]  ;;  %v7447_v22 = vpop.f32.mrf.mxu0  ;;  %v5943_v2 = vld [vmem:[%s6932_s1 + $0x404] sm:$0xf] }
 0x209   : > { %4362 = vmatpush.bf16.msrb.mxu2 %v5190_v25  ;;  %v5467_v25 = vld [vmem:[%s6932_s1 + $0x578] sm:$0xf0] }
 0x20a   : > { %4376 = vmatpush.bf16.msrb.mxu3 %v5254_v30  ;;  %v5531_v30 = vld [vmem:[%s6932_s1 + $0x5f8] sm:$0xf0]  ;;  %v5470_v35 = vor.u32 %v5989_v24, %v5467_v25  ;;  %v7451_v24 = vpop.f32.mrf.mxu1 }
 0x20b   : > { %4335 = vmatpush.bf16.msrb.mxu0 %v5054_v37  ;;  %v5331_v37 = vld [vmem:[%s6932_s1 + $0x468] sm:$0xf0]  ;;  %v5499_v23 = vld [vmem:[%s6932_s1 + $0x5b8] sm:$0xf0] }
 0x20c   : > { %4349 = vmatpush.bf16.msrb.mxu1 %v5118_v38  ;;  %v5971_v38 = vld [vmem:[%s6932_s1 + $0x4e4] sm:$0xf]  ;;  %v5334_v45 = vor.u32 %v5955_v36, %v5331_v37  ;;  %v5427_v36 = vld [vmem:[%s6932_s1 + $0x528] sm:$0xf0] }
 0x20d   : > { %4363 = vmatpush.bf16.msrb.mxu2 %v5182_v39  ;;  %v5534_v39 = vor.u32 %v6005_v29, %v5531_v30  ;;  %v5398_v46 = vor.u32 %v5971_v38, %v5395_v40  ;;  %v5947_v29 = vld [vmem:[%s6932_s1 + $0x424] sm:$0xf]  ;;  %v5299_v30 = vld [vmem:[%s6932_s1 + $0x428] sm:$0xf0] }
 0x20e   : > { %4377 = vmatpush.bf16.msrb.mxu3 %v5246_v43  ;;  %v6003_v43 = vld [vmem:[%s6932_s1 + $0x5e4] sm:$0xf]  ;;  %v5491_v38 = vld [vmem:[%s6932_s1 + $0x5a8] sm:$0xf0] }
 0x20f   : > { %4336 = vmatpush.bf16.msrb.mxu0 %v5046_v51  ;;  %v5323_v51 = vld [vmem:[%s6932_s1 + $0x458] sm:$0xf0]  ;;  %v5995_v37 = vld [vmem:[%s6932_s1 + $0x5a4] sm:$0xf] }
 0x210   : > { %4350 = vmatpush.bf16.msrb.mxu1 %v5110_v54  ;;  %v5969_v54 = vld [vmem:[%s6932_s1 + $0x4d4] sm:$0xf] }
 0x211   : > { %4364 = vmatpush.bf16.msrb.mxu2 %v5174_v59  ;;  %v5526_v59 = vor.u32 %v6003_v43, %v5523_v44  ;;  %v5390_v5 = vor.u32 %v5969_v54, %v5387_v62  ;;  %v5291_v43 = vld [vmem:[%s6932_s1 + $0x418] sm:$0xf0]  ;;  %v5961_v44 = vld [vmem:[%s6932_s1 + $0x494] sm:$0xf]  ;;  %v7469_v54 = vpop.f32.mrf.mxu3 }
 0x212   : > { %4378 = vmatpush.bf16.msrb.mxu3 %v5238_v3  ;;  %v6001_v3 = vld [vmem:[%s6932_s1 + $0x5d4] sm:$0xf]  ;;  %v5483_v62 = vld [vmem:[%s6932_s1 + $0x598] sm:$0xf0]  ;;  %v5294_v1 = vor.u32 %v5945_v42, %v5291_v43 }
 0x213   : > { %4337 = vmatpush.bf16.msrb.mxu0 %v5038_v9  ;;  %v5379_v9 = vld [vmem:[%s6932_s1 + $0x4c8] sm:$0xf0] }
 0x214   : > { %4351 = vmatpush.bf16.msrb.mxu1 %v5102_v13  ;;  %v5507_v13 = vld [vmem:[%s6932_s1 + $0x5c8] sm:$0xf0]  ;;  %v5382_v15 = vor.u32 %v5967_v8, %v5379_v9  ;;  %v7480_v8 = vpop.f32.mrf.mxu1 }
 0x215   : > { %4365 = vmatpush.bf16.msrb.mxu2 %v5166_v14  ;;  %v5510_v18 = vor.u32 %v5999_v12, %v5507_v13  ;;  %v5411_v9 = vld [vmem:[%s6932_s1 + $0x508] sm:$0xf0]  ;;  %v6021_v12 = vld [vmem:[%s6932_s1 + $0x674] sm:$0xf]  ;;  %v5595_v13 = vld [vmem:[%s6932_s1 + $0x678] sm:$0xf0] }
 0x216   : > { %4379 = vmatpush.bf16.msrb.mxu3 %v5230_v17  ;;  %v5307_v17 = vld [vmem:[%s6932_s1 + $0x438] sm:$0xf0] }
 0x217   : > { %4338 = vmatpush.bf16.msrb.mxu0 %v5030_v34  ;;  %v5997_v34 = vld [vmem:[%s6932_s1 + $0x5b4] sm:$0xf]  ;;  %v5310_v25 = vor.u32 %v5949_v11, %v5307_v17  ;;  %v5723_v17 = vld [vmem:[%s6932_s1 + $0x778] sm:$0xf0] }
 0x218   : > { %4352 = vmatpush.bf16.msrb.mxu1 %v5094_v26  ;;  %v5374_v26 = vor.u32 %v5965_v19, %v5371_v20  ;;  %v6053_v11 = vld [vmem:[%s6932_s1 + $0x774] sm:$0xf] }
 0x219   : > { %4366 = vmatpush.bf16.msrb.mxu2 %v5158_v28  ;;  %v5438_v28 = vor.u32 %v5981_v27, %v5435_v21  ;;  %v6069_v20 = vld [vmem:[%s6932_s1 + $0x7f4] sm:$0xf]  ;;  %v5787_v27 = vld [vmem:[%s6932_s1 + $0x7f8] sm:$0xf0] }
 0x21a   : > { %4380 = vmatpush.bf16.msrb.mxu3 %v5222_v31  ;;  %4339 = vmatmul.bf16.vlgmr.msrb.gmra.mxu0 %v7104_v56  ;;  %v5326_v56 = vor.u32 %v5953_v50, %v5323_v51  ;;  %v5963_v31 = vld [vmem:[%s6932_s1 + $0x4a4] sm:$0xf]  ;;  %v5977_v50 = vld [vmem:[%s6932_s1 + $0x514] sm:$0xf]  ;;  %v5419_v51 = vld [vmem:[%s6932_s1 + $0x518] sm:$0xf0] }
 0x21b   : > { %4387 = vmatpush.bf16.msra.mxu0 %v5342_v32  ;;  %4353 = vmatmul.bf16.vlgmr.msrb.gmra.mxu1 %v7111_v61  ;;  %v5518_v61 = vor.u32 %v6001_v3, %v5515_v4  ;;  %v5502_v32 = vor.u32 %v5997_v34, %v5499_v23  ;;  %v5283_v3 = vld [vmem:[%s6932_s1 + $0x408] sm:$0xf0]  ;;  %v7475_v4 = vpop.f32.mrf.mxu0  ;;  %v5598_v34 = vor.u32 %v6021_v12, %v5595_v13 }
 0x21c   : > { %4401 = vmatpush.bf16.msra.mxu1 %v5406_v33  ;;  %4367 = vmatmul.bf16.vlgmr.msrb.gmra.mxu2 %v7109_v60  ;;  %v5315_v60 = vld [vmem:[%s6932_s1 + $0x448] sm:$0xf0] }
 0x21d   : > { %4415 = vmatpush.bf16.msra.mxu2 %v5470_v35  ;;  %4381 = vmatmul.bf16.vlgmr.msrb.gmra.mxu3 %v7115_v0  ;;  %v5443_v0 = vld [vmem:[%s6932_s1 + $0x548] sm:$0xf0]  ;;  %v5318_v14 = vor.u32 %v5951_v7, %v5315_v60  ;;  %v5979_v35 = vld [vmem:[%s6932_s1 + $0x524] sm:$0xf] }
 0x21e   : > { %4429 = vmatpush.bf16.msra.mxu3 %v5534_v39  ;;  %v5446_v16 = vor.u32 %v5983_v10, %v5443_v0  ;;  %v5363_v33 = vld [vmem:[%s6932_s1 + $0x4a8] sm:$0xf0]  ;;  %v5302_v39 = vor.u32 %v5947_v29, %v5299_v30  ;;  %v5430_v41 = vor.u32 %v5979_v35, %v5427_v36  ;;  %v5975_v60 = vld [vmem:[%s6932_s1 + $0x504] sm:$0xf]  ;;  %v7501_v36 = vpop.f32.mrf.mxu3 }
 0x21f   : > { %4388 = vmatpush.bf16.msra.mxu0 %v5334_v45  ;;  %v5366_v40 = vor.u32 %v5963_v31, %v5363_v33  ;;  %v7464_v45 = vpop.f32.mrf.mxu2  ;;  %v5347_v7 = vld [vmem:[%s6932_s1 + $0x488] sm:$0xf0]  ;;  %v5991_v10 = vld [vmem:[%s6932_s1 + $0x584] sm:$0xf]  ;;  %v5790_v31 = vor.u32 %v6069_v20, %v5787_v27  ;;  %v5691_v20 = vld [vmem:[%s6932_s1 + $0x738] sm:$0xf0] }
 0x220   : > { %4402 = vmatpush.bf16.msra.mxu1 %v5398_v46  ;;  %v5494_v46 = vor.u32 %v5995_v37, %v5491_v38  ;;  %v5475_v0 = vld [vmem:[%s6932_s1 + $0x588] sm:$0xf0]  ;;  %v6035_v29 = vld [vmem:[%s6932_s1 + $0x6e4] sm:$0xf] }
 0x221   : > { %4416 = vmatpush.bf16.msra.mxu2 %v5462_v47  ;;  %v5355_v47 = vld [vmem:[%s6932_s1 + $0x498] sm:$0xf0]  ;;  %v5478_v21 = vor.u32 %v5991_v10, %v5475_v0  ;;  %v6051_v33 = vld [vmem:[%s6932_s1 + $0x764] sm:$0xf]  ;;  %v5715_v35 = vld [vmem:[%s6932_s1 + $0x768] sm:$0xf0] }
 0x222   : > { %4430 = vmatpush.bf16.msra.mxu3 %v5526_v59  ;;  %v5993_v59 = vld [vmem:[%s6932_s1 + $0x594] sm:$0xf]  ;;  %v6067_v37 = vld [vmem:[%s6932_s1 + $0x7e4] sm:$0xf]  ;;  %v5779_v38 = vld [vmem:[%s6932_s1 + $0x7e8] sm:$0xf0]  ;;  %v5718_v43 = vor.u32 %v6051_v33, %v5715_v35 }
 0x223   : > { %4389 = vmatpush.bf16.msra.mxu0 %v5326_v56  ;;  %v5358_v56 = vor.u32 %v5961_v44, %v5355_v47  ;;  %v6017_v44 = vld [vmem:[%s6932_s1 + $0x654] sm:$0xf]  ;;  %v6027_v33 = vld [vmem:[%s6932_s1 + $0x6a4] sm:$0xf] }
 0x224   : > { %4403 = vmatpush.bf16.msra.mxu1 %v5390_v5  ;;  %v5422_v5 = vor.u32 %v5977_v50, %v5419_v51  ;;  %v6033_v47 = vld [vmem:[%s6932_s1 + $0x6d4] sm:$0xf]  ;;  %v7510_v50 = vpop.f32.mrf.mxu1  ;;  %v5782_v51 = vor.u32 %v6067_v37, %v5779_v38  ;;  %v5683_v37 = vld [vmem:[%s6932_s1 + $0x728] sm:$0xf0]  ;;  %v6059_v38 = vld [vmem:[%s6932_s1 + $0x7a4] sm:$0xf] }
 0x225   : > { %4417 = vmatpush.bf16.msra.mxu2 %v5454_v6  ;;  %v5959_v6 = vld [vmem:[%s6932_s1 + $0x484] sm:$0xf] }
 0x226   : > { %4431 = vmatpush.bf16.msra.mxu3 %v5518_v61  ;;  %v5486_v61 = vor.u32 %v5993_v59, %v5483_v62  ;;  %v5350_v19 = vor.u32 %v5959_v6, %v5347_v7  ;;  %v5643_v59 = vld [vmem:[%s6932_s1 + $0x6d8] sm:$0xf0]  ;;  %v6065_v62 = vld [vmem:[%s6932_s1 + $0x7d4] sm:$0xf]  ;;  %v5635_v7 = vld [vmem:[%s6932_s1 + $0x6c8] sm:$0xf0]  ;;  %v7533_v12 = vpop.f32.mrf.mxu3 }
 0x227   : > { %4390 = vmatpush.bf16.msra.mxu0 %v5318_v14  ;;  %v6037_v14 = vld [vmem:[%s6932_s1 + $0x6f4] sm:$0xf]  ;;  %v7496_v30 = vpop.f32.mrf.mxu2 }
 0x228   : > { %4404 = vmatpush.bf16.msra.mxu1 %v5382_v15  ;;  %v5286_v15 = vor.u32 %v5943_v2, %v5283_v3  ;;  %v5646_v3 = vor.u32 %v6033_v47, %v5643_v59  ;;  %v5547_v47 = vld [vmem:[%s6932_s1 + $0x618] sm:$0xf0] }
 0x229   : > { %4418 = vmatpush.bf16.msra.mxu2 %v5446_v16  ;;  %v5659_v16 = vld [vmem:[%s6932_s1 + $0x6f8] sm:$0xf0] }
 0x22a   : > { %4432 = vmatpush.bf16.msra.mxu3 %v5510_v18  ;;  %v5414_v18 = vor.u32 %v5975_v60, %v5411_v9  ;;  %v5662_v23 = vor.u32 %v6037_v14, %v5659_v16  ;;  %v5699_v60 = vld [vmem:[%s6932_s1 + $0x748] sm:$0xf0]  ;;  %v5563_v16 = vld [vmem:[%s6932_s1 + $0x638] sm:$0xf0] }
 0x22b   : > { %4391 = vmatpush.bf16.msra.mxu0 %v5310_v25  ;;  %v5726_v25 = vor.u32 %v6053_v11, %v5723_v17  ;;  %v5763_v9 = vld [vmem:[%s6932_s1 + $0x7c8] sm:$0xf0]  ;;  %v6029_v11 = vld [vmem:[%s6932_s1 + $0x6b4] sm:$0xf] }
 0x22c   : > { %4405 = vmatpush.bf16.msra.mxu1 %v5374_v26  ;;  %v6019_v26 = vld [vmem:[%s6932_s1 + $0x664] sm:$0xf] }
 0x22d   : > { %4419 = vmatpush.bf16.msra.mxu2 %v5438_v28  ;;  %v5587_v28 = vld [vmem:[%s6932_s1 + $0x668] sm:$0xf0] }
 0x22e   : > { %4433 = vmatpush.bf16.msra.mxu3 %v5502_v32  ;;  %v5651_v32 = vld [vmem:[%s6932_s1 + $0x6e8] sm:$0xf0] }
 0x22f   : > { %4392 = vmatpush.bf16.msra.mxu0 %v5302_v39  ;;  %v5590_v39 = vor.u32 %v6019_v26, %v5587_v28  ;;  %v5654_v42 = vor.u32 %v6035_v29, %v5651_v32  ;;  %v5555_v32 = vld [vmem:[%s6932_s1 + $0x628] sm:$0xf0] }
 0x230   : > { %4406 = vmatpush.bf16.msra.mxu1 %v5366_v40  ;;  %v4075_v40 = vadd.f32 %v7451_v24, %v7447_v22  ;;  %v6049_v22 = vld [vmem:[%s6932_s1 + $0x754] sm:$0xf]  ;;  %v5707_v24 = vld [vmem:[%s6932_s1 + $0x758] sm:$0xf0] }
 0x231   : > { %4420 = vmatpush.bf16.msra.mxu2 %v5430_v41  ;;  %v4116_v41 = vpop.f32.mrf.mxu0 }
 0x232   : > { %4434 = vmatpush.bf16.msra.mxu3 %v5494_v46  ;;  %v5579_v46 = vld [vmem:[%s6932_s1 + $0x658] sm:$0xf0]  ;;  %v4089_v2 = vadd.f32 %v7464_v45, %v4075_v40  ;;  %v7530_v45 = vpop.f32.mrf.mxu2 }
 0x233   : > { %4393 = vmatpush.bf16.msra.mxu0 %v5294_v1  ;;  %v5771_v1 = vld [vmem:[%s6932_s1 + $0x7d8] sm:$0xf0] }
 0x234   : > { %4407 = vmatpush.bf16.msra.mxu1 %v5358_v56  ;;  %v5710_v56 = vor.u32 %v6049_v22, %v5707_v24  ;;  %v5774_v6 = vor.u32 %v6065_v62, %v5771_v1  ;;  %v4103_v0 = vadd.f32 %v7469_v54, %v4089_v2  ;;  %v6061_v54 = vld [vmem:[%s6932_s1 + $0x7b4] sm:$0xf]  ;;  %v5611_v24 = vld [vmem:[%s6932_s1 + $0x698] sm:$0xf0]  ;;  %v4160_v1 = vpop.f32.mrf.mxu3 }
 0x235   : > { %4421 = vmatpush.bf16.msra.mxu2 %v5422_v5  ;;  %v5571_v5 = vld [vmem:[%s6932_s1 + $0x648] sm:$0xf0]  ;;  %v5675_v62 = vld [vmem:[%s6932_s1 + $0x718] sm:$0xf0] }
 0x236   : > { %4435 = vmatpush.bf16.msra.mxu3 %v5486_v61  ;;  %v6063_v61 = vld [vmem:[%s6932_s1 + $0x7c4] sm:$0xf]  ;;  %v4117_v26 = vadd.f32 %v4116_v41, %v4103_v0  ;;  %v5739_v2 = vld [vmem:[%s6932_s1 + $0x798] sm:$0xf0] }
 0x237   : > { %4394 = vmatpush.bf16.msra.mxu0 %v5286_v15  ;;  %v6013_v15 = vld [vmem:[%s6932_s1 + $0x634] sm:$0xf]  ;;  %v5766_v17 = vor.u32 %v6063_v61, %v5763_v9  ;;  %v5603_v9 = vld [vmem:[%s6932_s1 + $0x688] sm:$0xf0] }
 0x238   : > { %4408 = vmatpush.bf16.msra.mxu1 %v5350_v19  ;;  %v5627_v19 = vld [vmem:[%s6932_s1 + $0x6b8] sm:$0xf0] }
 0x239   : > { %4422 = vmatpush.bf16.msra.mxu2 %v5414_v18  ;;  %v6045_v18 = vld [vmem:[%s6932_s1 + $0x734] sm:$0xf]  ;;  %v4118_v27 = vpop.f32.mrf.mxu0  ;;  %v5630_v28 = vor.u32 %v6029_v11, %v5627_v19 }
 0x23a   : > { %4436 = vmatpush.bf16.msra.mxu3 %v5478_v21  ;;  %4395 = vmatmul.bf16.vlgmr.msra.gmra.mxu0 %v7188_v48  ;;  %v5582_v48 = vor.u32 %v6017_v44, %v5579_v46  ;;  %v5755_v21 = vld [vmem:[%s6932_s1 + $0x7b8] sm:$0xf0]  ;;  %v5694_v29 = vor.u32 %v6045_v18, %v5691_v20  ;;  %v6009_v46 = vld [vmem:[%s6932_s1 + $0x614] sm:$0xf]  ;;  %v4146_v59 = vpop.f32.mrf.mxu2 }
 0x23b   : > { %4443 = vmatpush.bf16.msrb.mxu0 %v5598_v34  ;;  %4409 = vmatmul.bf16.vlgmr.msra.gmra.mxu1 %v7195_v53  ;;  %v6031_v53 = vld [vmem:[%s6932_s1 + $0x6c4] sm:$0xf]  ;;  %v4077_v34 = vadd.f32 %v7480_v8, %v7475_v4  ;;  %v5758_v35 = vor.u32 %v6061_v54, %v5755_v21  ;;  %v5619_v4 = vld [vmem:[%s6932_s1 + $0x6a8] sm:$0xf0] }
 0x23c   : > { %4457 = vmatpush.bf16.msrb.mxu1 %v5662_v23  ;;  %4423 = vmatmul.bf16.vlgmr.msra.gmra.mxu2 %v7193_v52  ;;  %v6015_v52 = vld [vmem:[%s6932_s1 + $0x644] sm:$0xf]  ;;  %v5638_v13 = vor.u32 %v6031_v53, %v5635_v7  ;;  %v7545_v23 = vpop.f32.mrf.mxu1 }
 0x23d   : > { %4471 = vmatpush.bf16.msrb.mxu2 %v5726_v25  ;;  %4437 = vmatmul.bf16.vlgmr.msra.gmra.mxu3 %v7199_v57  ;;  %v6047_v57 = vld [vmem:[%s6932_s1 + $0x744] sm:$0xf]  ;;  %v5574_v10 = vor.u32 %v6015_v52, %v5571_v5  ;;  %v5566_v25 = vor.u32 %v6013_v15, %v5563_v16  ;;  %v4091_v40 = vadd.f32 %v7496_v30, %v4077_v34  ;;  %v6041_v30 = vld [vmem:[%s6932_s1 + $0x714] sm:$0xf] }
 0x23e   : > { %4485 = vmatpush.bf16.msrb.mxu3 %v5790_v31  ;;  %v5702_v14 = vor.u32 %v6047_v57, %v5699_v60  ;;  %v6011_v31 = vld [vmem:[%s6932_s1 + $0x624] sm:$0xf]  ;;  %v5550_v52 = vor.u32 %v6009_v46, %v5547_v47  ;;  %v5539_v57 = vld [vmem:[%s6932_s1 + $0x608] sm:$0xf0] }
 0x23f   : > { %4444 = vmatpush.bf16.msrb.mxu0 %v5590_v39  ;;  %v6043_v8 = vld [vmem:[%s6932_s1 + $0x724] sm:$0xf]  ;;  %v5747_v39 = vld [vmem:[%s6932_s1 + $0x7a8] sm:$0xf0]  ;;  %v5558_v41 = vor.u32 %v6011_v31, %v5555_v32 }
 0x240   : > { %4458 = vmatpush.bf16.msrb.mxu1 %v5654_v42  ;;  %v4131_v42 = vadd.f32 %v7510_v50, %v4117_v26  ;;  %v5686_v44 = vor.u32 %v6043_v8, %v5683_v37  ;;  %v5750_v22 = vor.u32 %v6059_v38, %v5747_v39  ;;  %v6007_v7 = vld [vmem:[%s6932_s1 + $0x604] sm:$0xf]  ;;  %v4214_v54 = vpop.f32.mrf.mxu3 }
 0x241   : > { %4472 = vmatpush.bf16.msrb.mxu2 %v5718_v43  ;;  %v5622_v43 = vor.u32 %v6027_v33, %v5619_v4  ;;  %v4172_v50 = vpop.f32.mrf.mxu0  ;;  %v6023_v60 = vld [vmem:[%s6932_s1 + $0x684] sm:$0xf]  ;;  %v5542_v15 = vor.u32 %v6007_v7, %v5539_v57 }
 0x242   : > { %4486 = vmatpush.bf16.msrb.mxu3 %v5782_v51  ;;  %v6025_v51 = vld [vmem:[%s6932_s1 + $0x694] sm:$0xf]  ;;  %v4145_v5 = vadd.f32 %v7530_v45, %v4131_v42  ;;  %v5606_v45 = vor.u32 %v6023_v60, %v5603_v9 }
 0x243   : > { %4445 = vmatpush.bf16.msrb.mxu0 %v5582_v48  ;;  %v6057_v48 = vld [vmem:[%s6932_s1 + $0x794] sm:$0xf]  ;;  %v5614_v53 = vor.u32 %v6025_v51, %v5611_v24 }
 0x244   : > { %4459 = vmatpush.bf16.msrb.mxu1 %v5646_v3  ;;  %v4105_v3 = vadd.f32 %v7501_v36, %v4091_v40  ;;  %v5742_v61 = vor.u32 %v6057_v48, %v5739_v2  ;;  %v5667_v36 = vld [vmem:[%s6932_s1 + $0x708] sm:$0xf0]  ;;  %v4159_v16 = vadd.f32 %v7533_v12, %v4145_v5 }
 0x245   : > { %4473 = vmatpush.bf16.msrb.mxu2 %v5710_v56  ;;  %v4186_v56 = vpop.f32.mrf.mxu1 }
 0x246   : > { %4487 = vmatpush.bf16.msrb.mxu3 %v5774_v6  ;;  %v5678_v6 = vor.u32 %v6041_v30, %v5675_v62  ;;  %v4119_v0 = vadd.f32 %v4118_v27, %v4105_v3  ;;  %v4173_v20 = vadd.f32 %v4172_v50, %v4159_v16 }
 0x247   : > { %4446 = vmatpush.bf16.msrb.mxu0 %v5574_v10  ;;  %v6039_v10 = vld [vmem:[%s6932_s1 + $0x704] sm:$0xf] }
 0x248   : > { %4460 = vmatpush.bf16.msrb.mxu1 %v5638_v13  ;;  %v6055_v13 = vld [vmem:[%s6932_s1 + $0x784] sm:$0xf]  ;;  %v5670_v11 = vor.u32 %v6039_v10, %v5667_v36  ;;  %v4133_v18 = vadd.f32 %v7545_v23, %v4119_v0  ;;  %v4216_v31 = vpop.f32.mrf.mxu3 }
 0x249   : > { %4474 = vmatpush.bf16.msrb.mxu2 %v5702_v14  ;;  %v5731_v14 = vld [vmem:[%s6932_s1 + $0x788] sm:$0xf0]  ;;  %v4174_v27 = vpop.f32.mrf.mxu0 }
 0x24a   : > { %4488 = vmatpush.bf16.msrb.mxu3 %v5766_v17  ;;  %v4200_v17 = vpop.f32.mrf.mxu2  ;;  %v5734_v19 = vor.u32 %v6055_v13, %v5731_v14  ;;  %v4147_v21 = vadd.f32 %v4146_v59, %v4133_v18  ;;  %v2417_v59 = vld [vmem:[#allocation2 + $0x18] sm:$0xff] }
 0x24b   : > { %4447 = vmatpush.bf16.msrb.mxu0 %v5566_v25  ;;  %v4187_v25 = vadd.f32 %v4186_v56, %v4173_v20 }
 0x24c   : > { %4461 = vmatpush.bf16.msrb.mxu1 %v5630_v28  ;;  %v4161_v12 = vadd.f32 %v4160_v1, %v4147_v21 }
 0x24d   : > { %4475 = vmatpush.bf16.msrb.mxu2 %v5694_v29  ;;  %v4188_v34 = vpop.f32.mrf.mxu1  ;;  %v4201_v26 = vadd.f32 %v4200_v17, %v4187_v25 }
 0x24e   : > { %4489 = vmatpush.bf16.msrb.mxu3 %v5758_v35  ;;  %v4175_v23 = vadd.f32 %v4174_v27, %v4161_v12 }
 0x24f   : > { %4448 = vmatpush.bf16.msrb.mxu0 %v5558_v41  ;;  %v4215_v29 = vadd.f32 %v4214_v54, %v4201_v26 }
 0x250   : > { %4462 = vmatpush.bf16.msrb.mxu1 %v5622_v43  ;;  %v4189_v35 = vadd.f32 %v4188_v34, %v4175_v23 }
 0x251   : > { %4476 = vmatpush.bf16.msrb.mxu2 %v5686_v44 }
 0x252   : > { %4490 = vmatpush.bf16.msrb.mxu3 %v5750_v22  ;;  %v4202_v28 = vpop.f32.mrf.mxu2 }
 0x253   : > { %4449 = vmatpush.bf16.msrb.mxu0 %v5550_v52  ;;  %v4203_v8 = vadd.f32 %v4202_v28, %v4189_v35 }
 0x254   : > { %4463 = vmatpush.bf16.msrb.mxu1 %v5614_v53 }
 0x255   : > { %4477 = vmatpush.bf16.msrb.mxu2 %v5678_v6 }
 0x256   : > { %4491 = vmatpush.bf16.msrb.mxu3 %v5742_v61 }
 0x257   : > { %4450 = vmatpush.bf16.msrb.mxu0 %v5542_v15  ;;  %v4228_v32 = vpop.f32.mrf.mxu0 }
 0x258   : > { %4464 = vmatpush.bf16.msrb.mxu1 %v5606_v45  ;;  %v4242_v33 = vpop.f32.mrf.mxu1  ;;  %v4229_v4 = vadd.f32 %v4228_v32, %v4215_v29 }
 0x259   : > { %4478 = vmatpush.bf16.msrb.mxu2 %v5670_v11 }
 0x25a   : > { %4492 = vmatpush.bf16.msrb.mxu3 %v5734_v19  ;;  %4451 = vmatmul.bf16.vlgmr.msrb.gmra.mxu0 %v7272_v49  ;;  %v4243_v37 = vadd.f32 %v4242_v33, %v4229_v4  ;;  %v4217_v49 = vadd.f32 %v4216_v31, %v4203_v8 }
 0x25b   : > { %4465 = vmatmul.bf16.vlgmr.msrb.gmra.mxu1 %v7279_v58 }
 0x25c   : > { %4479 = vmatmul.bf16.vlgmr.msrb.gmra.mxu2 %v7277_v55  ;;  %v2415_v55 = vld [vmem:[#allocation2 + $0x10] sm:$0xff] }
 0x25d   : > { %4493 = vmatmul.bf16.vlgmr.msrb.gmra.mxu3 %v7283_v63 }
 0x25f   : > { %v4256_v38 = vpop.f32.mrf.mxu2  ;;  %v4230_v58 = vpop.f32.mrf.mxu0 }
 0x260   : > { %v4257_v39 = vadd.f32 %v4256_v38, %v4243_v37  ;;  %v4270_v40 = vpop.f32.mrf.mxu3  ;;  %v4231_v41 = vadd.f32 %v4230_v58, %v4217_v49  ;;  %v4244_v43 = vpop.f32.mrf.mxu1 }
 0x262   : > { %v4271_v42 = vadd.f32 %v4270_v40, %v4257_v39  ;;  %v4245_v44 = vadd.f32 %v4244_v43, %v4231_v41 }
 0x264   : > { %v4499_v63 = vadd.f32 %v4271_v42, %v2415_v55  ;;  %v2416_v42 = vld [vmem:[#allocation2] sm:$0xff] }
 0x266   : > { %4503 = vst [vmem:[#allocation2 + $0x10] sm:$0xff] %v4499_v63 }
 0x267   : > { %v4258_v46 = vpop.f32.mrf.mxu2 }
 0x268   : > { %v4259_v47 = vadd.f32 %v4258_v46, %v4245_v44  ;;  %v4272_v51 = vpop.f32.mrf.mxu3 }
 0x26a   : > { %v4273_v22 = vadd.f32 %v4272_v51, %v4259_v47 }
 0x26c   : > { %v4501_v24 = vadd.f32 %v4273_v22, %v2417_v59  ;;  %v2418_v22 = vld [vmem:[#allocation2 + $0x8] sm:$0xff] }
 0x26e   : > { %4505 = vst [vmem:[#allocation2 + $0x18] sm:$0xff] %v4501_v24 }
 0x277   : > { %v4284_v30 = vpop.f32.mrf.mxu0 }
 0x278   : > { %v4298_v62 = vpop.f32.mrf.mxu1 }
 0x279   : > { %v4299_v52 = vadd.f32 %v4298_v62, %v4284_v30 }
 0x27f   : > { %v4312_v1 = vpop.f32.mrf.mxu2  ;;  %v4286_v48 = vpop.f32.mrf.mxu0 }
 0x280   : > { %v4326_v50 = vpop.f32.mrf.mxu3  ;;  %v4300_v2 = vpop.f32.mrf.mxu1  ;;  %v4313_v6 = vadd.f32 %v4312_v1, %v4299_v52 }
 0x281   : > { %v4301_v9 = vadd.f32 %v4300_v2, %v4286_v48 }
 0x282   : > { %v4327_v57 = vadd.f32 %v4326_v50, %v4313_v6 }
 0x287   : > { %v4314_v3 = vpop.f32.mrf.mxu2 }
 0x288   : > { %v4328_v56 = vpop.f32.mrf.mxu3  ;;  %v4315_v0 = vadd.f32 %v4314_v3, %v4301_v9 }
 0x28a   : > { %v4329_v45 = vadd.f32 %v4328_v56, %v4315_v0 }
 0x297   : > { %v4340_v5 = vpop.f32.mrf.mxu0 }
 0x298   : > { %v4354_v53 = vpop.f32.mrf.mxu1  ;;  %v4341_v10 = vadd.f32 %v4340_v5, %v4327_v57 }
 0x29a   : > { %v4355_v13 = vadd.f32 %v4354_v53, %v4341_v10 }
 0x29f   : > { %v4368_v7 = vpop.f32.mrf.mxu2  ;;  %v4342_v61 = vpop.f32.mrf.mxu0 }
 0x2a0   : > { %v4382_v60 = vpop.f32.mrf.mxu3  ;;  %v4356_v36 = vpop.f32.mrf.mxu1  ;;  %v4369_v11 = vadd.f32 %v4368_v7, %v4355_v13  ;;  %v4343_v19 = vadd.f32 %v4342_v61, %v4329_v45 }
 0x2a2   : > { %v4383_v18 = vadd.f32 %v4382_v60, %v4369_v11  ;;  %v4357_v54 = vadd.f32 %v4356_v36, %v4343_v19 }
 0x2a7   : > { %v4370_v14 = vpop.f32.mrf.mxu2 }
 0x2a8   : > { %v4384_v15 = vpop.f32.mrf.mxu3  ;;  %v4371_v34 = vadd.f32 %v4370_v14, %v4357_v54 }
 0x2aa   : > { %v4385_v23 = vadd.f32 %v4384_v15, %v4371_v34 }
 0x2b7   : > { %v4396_v16 = vpop.f32.mrf.mxu0 }
 0x2b8   : > { %v4410_v17 = vpop.f32.mrf.mxu1  ;;  %v4397_v21 = vadd.f32 %v4396_v16, %v4383_v18 }
 0x2ba   : > { %v4411_v12 = vadd.f32 %v4410_v17, %v4397_v21 }
 0x2bf   : > { %v4424_v20 = vpop.f32.mrf.mxu2  ;;  %v4398_v25 = vpop.f32.mrf.mxu0 }
 0x2c0   : > { %v4438_v27 = vpop.f32.mrf.mxu3  ;;  %v4412_v26 = vpop.f32.mrf.mxu1  ;;  %v4425_v28 = vadd.f32 %v4424_v20, %v4411_v12  ;;  %v4399_v29 = vadd.f32 %v4398_v25, %v4385_v23 }
 0x2c2   : > { %v4439_v32 = vadd.f32 %v4438_v27, %v4425_v28  ;;  %v4413_v4 = vadd.f32 %v4412_v26, %v4399_v29 }
 0x2c7   : > { %v4426_v31 = vpop.f32.mrf.mxu2 }
 0x2c8   : > { %v4440_v33 = vpop.f32.mrf.mxu3  ;;  %v4427_v38 = vadd.f32 %v4426_v31, %v4413_v4 }
 0x2ca   : > { %v4441_v58 = vadd.f32 %v4440_v33, %v4427_v38 }
 0x2d7   : > { %v4452_v35 = vpop.f32.mrf.mxu0 }
 0x2d8   : > { %v4453_v8 = vadd.f32 %v4452_v35, %v4439_v32  ;;  %v4466_v37 = vpop.f32.mrf.mxu1 }
 0x2da   : > { %v4467_v49 = vadd.f32 %v4466_v37, %v4453_v8 }
 0x2df   : > { %v4480_v39 = vpop.f32.mrf.mxu2  ;;  %v4454_v41 = vpop.f32.mrf.mxu0 }
 0x2e0   : > { %v4481_v40 = vadd.f32 %v4480_v39, %v4467_v49  ;;  %v4494_v55 = vpop.f32.mrf.mxu3  ;;  %v4455_v63 = vadd.f32 %v4454_v41, %v4441_v58  ;;  %v4468_v46 = vpop.f32.mrf.mxu1 }
 0x2e2   : > { %v4495_v43 = vadd.f32 %v4494_v55, %v4481_v40  ;;  %v4469_v47 = vadd.f32 %v4468_v46, %v4455_v63 }
 0x2e4   : > { %v4500_v44 = vadd.f32 %v4495_v43, %v2416_v42 }
 0x2e6   : > { %4504 = vst [vmem:[#allocation2] sm:$0xff] %v4500_v44 }
 0x2e7   : > { %v4482_v51 = vpop.f32.mrf.mxu2 }
 0x2e8   : > { %v4483_v59 = vadd.f32 %v4482_v51, %v4469_v47  ;;  %v4496_v24 = vpop.f32.mrf.mxu3 }
 0x2ea   : > { %v4497_v30 = vadd.f32 %v4496_v24, %v4483_v59  ;;  %4510 = sbr.rel (%p5791_p5) target bundleno = 763 (0x2fb), region = 115 }
 0x2ec   : > { %v4502_v62 = vadd.f32 %v4497_v30, %v2418_v22 }
 0x2ee   : > { %4506 = vst [vmem:[#allocation2 + $0x8] sm:$0xff] %v4502_v62 }
 0x2ef   : > { %v4511_v1 = vld [vmem:[#allocation2 + $0x10] sm:$0xff]  ;;  %v4515_v50 = vld [vmem:[%s2403_s5] sm:$0x3]  ;;  %v4513_v56 = vld [vmem:[#allocation2 + $0x18] sm:$0xff] }
 0x2f0   : > { %v4512_v48 = vld [vmem:[#allocation2] sm:$0xff]  ;;  %v4517_v2 = vperm.slane %v4515_v50, 0  ;;  %v4518_v3 = vperm.slane %v4515_v50, 1 }
 0x2f2   : > { %v4521_v5 = vadd.f32 %v4517_v2, %v4511_v1  ;;  %v4522_v53 = vadd.f32 %v4518_v3, %v4512_v48  ;;  %v4523_v6 = vadd.f32 %v4517_v2, %v4513_v56 }
 0x2f4   : > { %v4525_v57 = vmax.f32 %v4521_v5, 0.0  ;;  %v4526_v60 = vmax.f32 %v4522_v53, 0.0  ;;  %v4527_v61 = vmax.f32 %v4523_v6, 0.0 }
 0x2f5   : > { %v4514_v52 = vld [vmem:[#allocation2 + $0x8] sm:$0xff] }
 0x2f6   : > { %v4524_v7 = vadd.f32 %v4518_v3, %v4514_v52  ;;  %4529 = vst [vmem:[%s6934_s25] sm:$0xff] %v4525_v57 }
 0x2f7   : > { %4530 = vst [vmem:[%s6934_s25 + $0x8] sm:$0xff] %v4526_v60 }
 0x2f8   : > { %v4528_v9 = vmax.f32 %v4524_v7, 0.0  ;;  %4531 = vst [vmem:[%s6934_s25 + $0x10] sm:$0xff] %v4527_v61 }
 0x2fa   : > { %4532 = vst [vmem:[%s6934_s25 + $0x18] sm:$0xff] %v4528_v9 }
 0x2fb PF: > { %4539 = sbr.rel (!%p6364_p12) target bundleno = 771 (0x303), region = 119  ;;  %s6071_s14 = sshll.u32 (%p6364_p12), %s6235_s19, 4 }
 0x2fc   : > { %s4545_s0 = scalar_lea.vmem (%p6364_p12), %s7637_s3, %s6071_s14 }
 0x2fd   : > { %v4558_v10 = vld [vmem:[%s6934_s25] sm:$0xff] (%p6364_p12) }
 0x2fe   : > { %v4560_v36 = vld [vmem:[%s6934_s25 + $0x8] sm:$0xff] (%p6364_p12)  ;;  %4559 = vst [vmem:[%s4545_s0] sm:$0xff] (%p6364_p12), %v4558_v10 }
 0x2ff   : > { %v4562_v0 = vld [vmem:[%s6934_s25 + $0x10] sm:$0xff] (%p6364_p12)  ;;  %4561 = vst [vmem:[%s4545_s0 + $0x8] sm:$0xff] (%p6364_p12), %v4560_v36 }
 0x300   : > { %4563 = vst [vmem:[%s4545_s0 + $0x20] sm:$0xff] %v4562_v0 }
 0x301   : > { %v4564_v13 = vld [vmem:[%s6934_s25 + $0x18] sm:$0xff] }
 0x302   : > { %4565 = vst [vmem:[%s4545_s0 + $0x28] sm:$0xff] %v4564_v13 }
 0x303 PF: > { %s13_s22 = sadd.s32 1, %s6247_s22   ;;  %s7647_s10 = sld [smem:[#allocation6_spill]] }
 0x304   : > { %p10_p6 = scmp.ge.s32.totalorder %s13_s22, 24   ;;  %s7648_s12 = smov %s6211_s13 }
 0x305   : > { %s7649_s13 = smov %s6362_s9  ;;  %s7650_s14 = smov %s6219_s15 }
 0x306   : > { %s7651_s15 = smov %s6359_s8  ;;  %s7652_s16 = smov %s6227_s17 }
 0x307   : > { %s7653_s17 = smov %s6345_s30  ;;  %s7654_s18 = smov %s6239_s20 }
 0x308   : > { %s7655_s19 = smov %s6243_s21  ;;  %s7656_s20 = smov %s7659_s24 }
 0x309   : > { %s7657_s21 = smov %s7647_s10  ;;  %12 = sbr.rel (!%p10_p6) target bundleno = 9 (0x9), region = 190 }

</bundles_post_ra>
